<compile_context>
chip_gen: v7x
topology: tpu7x:2x2x1
jax: 0.10.0
libtpu: 0.0.40
codegen_flags: <defaults>
</compile_context>

<pallas_src>
import functools

import jax
import jax.numpy as jnp
from jax import lax
from jax.experimental import pallas as pl
from jax.experimental.pallas import tpu as pltpu


def _bpr_kernel(u_idx_ref, p_idx_ref, n_idx_ref,      # (TB, 1) int32 index blocks
                user_tab_ref, item_tab_ref,           # full (padded) tables, VMEM
                out_ref):                             # (2, TB) f32: row0=pos, row1=neg
    tb = u_idx_ref.shape[0]
    nu = user_tab_ref.shape[0]
    ni = item_tab_ref.shape[0]
    tab_dtype = user_tab_ref.dtype

    # One-hot gather matrices.  Padded batch rows (idx == 0) just pick row 0 and
    # are sliced off in the wrapper; padded table rows are all-zero.
    u_oh = (u_idx_ref[...] ==
            lax.broadcasted_iota(jnp.int32, (tb, nu), 1)).astype(tab_dtype)
    p_oh = (p_idx_ref[...] ==
            lax.broadcasted_iota(jnp.int32, (tb, ni), 1)).astype(tab_dtype)
    n_oh = (n_idx_ref[...] ==
            lax.broadcasted_iota(jnp.int32, (tb, ni), 1)).astype(tab_dtype)

    # MXU gathers: (TB, N) @ (N, D) -> (TB, D), f32 accumulation.
    u = jnp.dot(u_oh, user_tab_ref[...], preferred_element_type=jnp.float32)
    p = jnp.dot(p_oh, item_tab_ref[...], preferred_element_type=jnp.float32)
    n = jnp.dot(n_oh, item_tab_ref[...], preferred_element_type=jnp.float32)

    # VPU multiply + lane reduction; write the merged output lane-dense.
    out_ref[0:1, :] = jnp.sum(u * p, axis=-1).reshape(1, tb)
    out_ref[1:2, :] = jnp.sum(u * n, axis=-1).reshape(1, tb)


def _pad_table(tab):
    """Pad rows to a multiple of 8 (sublane) and cols to a multiple of 128 (lane)."""
    n, d = tab.shape
    n_pad = ((n + 7) // 8) * 8
    d_pad = ((d + 127) // 128) * 128
    if (n_pad, d_pad) != (n, d):
        tab = jnp.pad(tab, ((0, n_pad - n), (0, d_pad - d)))
    return tab


def _pad_idx(idx, b_pad):
    idx = idx.astype(jnp.int32).reshape(-1)
    pad = b_pad - idx.shape[0]
    if pad:
        idx = jnp.concatenate([idx, jnp.zeros((pad,), jnp.int32)])
    return idx.reshape(b_pad, 1)


@functools.partial(jax.jit, static_argnames=("tile_b",))
def bpr_forward(user, pos_item, neg_item, user_table, item_table, *, tile_b=512):
    """Equivalent of BPRRecommender.forward(user, pos_item, neg_item)."""
    B = user.shape[0]
    assert user_table.shape[1] == item_table.shape[1]

    user_tab = _pad_table(user_table)
    item_tab = _pad_table(item_table)
    nu, d = user_tab.shape
    ni, _ = item_tab.shape

    # VMEM-resident fast path only (see TODO above); keep well inside the default
    # scoped-VMEM budget on every TPU generation.
    table_bytes = (nu + ni) * d * user_tab.dtype.itemsize
    assert table_bytes < 8 * 1024 * 1024, "tables too large for VMEM-resident path"

    TB = tile_b
    b_pad = ((B + TB - 1) // TB) * TB
    num_tiles = b_pad // TB

    u_idx = _pad_idx(user, b_pad)
    p_idx = _pad_idx(pos_item, b_pad)
    n_idx = _pad_idx(neg_item, b_pad)

    grid_spec = pltpu.PrefetchScalarGridSpec(
        num_scalar_prefetch=0,
        grid=(num_tiles,),
        in_specs=[
            pl.BlockSpec((TB, 1), lambda t: (t, 0)),      # user indices
            pl.BlockSpec((TB, 1), lambda t: (t, 0)),      # pos-item indices
            pl.BlockSpec((TB, 1), lambda t: (t, 0)),      # neg-item indices
            pl.BlockSpec((nu, d), lambda t: (0, 0)),      # user table (resident)
            pl.BlockSpec((ni, d), lambda t: (0, 0)),      # item table (resident)
        ],
        out_specs=pl.BlockSpec((2, TB), lambda t: (0, t)),
    )

    scores = pl.pallas_call(
        _bpr_kernel,
        grid_spec=grid_spec,
        out_shape=jax.ShapeDtypeStruct((2, b_pad), jnp.float32),
        compiler_params=pltpu.CompilerParams(
            dimension_semantics=("parallel",)),           # tiles shard across v7x TCs
    )(u_idx, p_idx, n_idx, user_tab, item_tab)

    return scores[0, :B], scores[1, :B]


if __name__ == "__main__":
    key = jax.random.PRNGKey(0)
    num_users, num_items, embedding_size = 64, 128, 128
    batch = 200                      # intentionally not a multiple of the batch tile

    k1, k2, k3, k4, k5 = jax.random.split(key, 5)

    # Matches nn.init.normal_(std=0.1) and the (num_* + 1, embedding_size) shapes.
    user_table = (0.1 * jax.random.normal(
        k1, (num_users + 1, embedding_size))).astype(jnp.float32)
    item_table = (0.1 * jax.random.normal(
        k2, (num_items + 1, embedding_size))).astype(jnp.float32)

    user = jax.random.randint(k3, (batch,), 0, num_users + 1, dtype=jnp.int32)
    pos_item = jax.random.randint(k4, (batch,), 0, num_items + 1, dtype=jnp.int32)
    neg_item = jax.random.randint(k5, (batch,), 0, num_items + 1, dtype=jnp.int32)

    pos_score, neg_score = bpr_forward(user, pos_item, neg_item,
                                       user_table, item_table)
    jax.block_until_ready((pos_score, neg_score))

    # Pure-JAX reference (same semantics as the PyTorch forward).
    uv = user_table[user]
    pv = item_table[pos_item]
    nv = item_table[neg_item]
    ref_pos = jnp.sum(uv * pv, axis=1)
    ref_neg = jnp.sum(uv * nv, axis=1)
    assert pos_score.shape == (batch,) and neg_score.shape == (batch,)
    assert jnp.allclose(pos_score, ref_pos, atol=1e-5, rtol=1e-5)
    assert jnp.allclose(neg_score, ref_neg, atol=1e-5, rtol=1e-5)

    print("KERNEL_OK")
</pallas_src>

<mosaic_0001>
module attributes {stable_mosaic.version = 11 : i64} {
  func.func @_bpr_kernel(%arg0: i32, %arg1: memref<512x1xi32, #tpu.memory_space<vmem>>, %arg2: memref<512x1xi32, #tpu.memory_space<vmem>>, %arg3: memref<512x1xi32, #tpu.memory_space<vmem>>, %arg4: memref<72x128xf32, #tpu.memory_space<vmem>>, %arg5: memref<136x128xf32, #tpu.memory_space<vmem>>, %arg6: memref<2x512xf32, #tpu.memory_space<vmem>>) attributes {dimension_semantics = [#tpu.dimension_semantics<parallel>], iteration_bounds = array<i64: 1>, scalar_prefetch = 0 : i64, scratch_operands = 0 : i64, tpu.core_type = #tpu.core_type<tc>, window_params = [{transform_indices = @transform_0, window_bounds = array<i64: 512, 1>}, {transform_indices = @transform_1, window_bounds = array<i64: 512, 1>}, {transform_indices = @transform_2, window_bounds = array<i64: 512, 1>}, {pipeline_mode = #tpu.pipeline_mode<synchronous>, transform_indices = @transform_3, window_bounds = array<i64: 72, 128>}, {pipeline_mode = #tpu.pipeline_mode<synchronous>, transform_indices = @transform_4, window_bounds = array<i64: 136, 128>}, {transform_indices = @transform_5, window_bounds = array<i64: 2, 512>}]} {
    %c0 = arith.constant 0 : index
    %c0_0 = arith.constant 0 : index
    %0 = vector.load %arg1[%c0, %c0_0] : memref<512x1xi32, #tpu.memory_space<vmem>>, vector<512x1xi32>
    %1 = tpu.iota {dimensions = array<i32: 1>} : vector<512x72xi32>
    %2 = vector.broadcast %0 : vector<512x1xi32> to vector<512x72xi32>
    %3 = arith.cmpi eq, %2, %1 : vector<512x72xi32>
    %4 = arith.extui %3 : vector<512x72xi1> to vector<512x72xi32>
    %5 = arith.sitofp %4 : vector<512x72xi32> to vector<512x72xf32>
    %c0_1 = arith.constant 0 : index
    %c0_2 = arith.constant 0 : index
    %6 = vector.load %arg2[%c0_1, %c0_2] : memref<512x1xi32, #tpu.memory_space<vmem>>, vector<512x1xi32>
    %7 = tpu.iota {dimensions = array<i32: 1>} : vector<512x136xi32>
    %8 = vector.broadcast %6 : vector<512x1xi32> to vector<512x136xi32>
    %9 = arith.cmpi eq, %8, %7 : vector<512x136xi32>
    %10 = arith.extui %9 : vector<512x136xi1> to vector<512x136xi32>
    %11 = arith.sitofp %10 : vector<512x136xi32> to vector<512x136xf32>
    %c0_3 = arith.constant 0 : index
    %c0_4 = arith.constant 0 : index
    %12 = vector.load %arg3[%c0_3, %c0_4] : memref<512x1xi32, #tpu.memory_space<vmem>>, vector<512x1xi32>
    %13 = tpu.iota {dimensions = array<i32: 1>} : vector<512x136xi32>
    %14 = vector.broadcast %12 : vector<512x1xi32> to vector<512x136xi32>
    %15 = arith.cmpi eq, %14, %13 : vector<512x136xi32>
    %16 = arith.extui %15 : vector<512x136xi1> to vector<512x136xi32>
    %17 = arith.sitofp %16 : vector<512x136xi32> to vector<512x136xf32>
    %c0_5 = arith.constant 0 : index
    %c0_6 = arith.constant 0 : index
    %18 = vector.load %arg4[%c0_5, %c0_6] : memref<72x128xf32, #tpu.memory_space<vmem>>, vector<72x128xf32>
    %cst = arith.constant dense<0.000000e+00> : vector<512x128xf32>
    %19 = tpu.matmul %5, %18, %cst {dimension_numbers = #tpu.dot_dimension_numbers<[1], [0], [0], [1], [0, 0, 1, 1], [], []>} : vector<512x72xf32>, vector<72x128xf32>, vector<512x128xf32> -> vector<512x128xf32>
    %c0_7 = arith.constant 0 : index
    %c0_8 = arith.constant 0 : index
    %20 = vector.load %arg5[%c0_7, %c0_8] : memref<136x128xf32, #tpu.memory_space<vmem>>, vector<136x128xf32>
    %cst_9 = arith.constant dense<0.000000e+00> : vector<512x128xf32>
    %21 = tpu.matmul %11, %20, %cst_9 {dimension_numbers = #tpu.dot_dimension_numbers<[1], [0], [0], [1], [0, 0, 1, 1], [], []>} : vector<512x136xf32>, vector<136x128xf32>, vector<512x128xf32> -> vector<512x128xf32>
    %c0_10 = arith.constant 0 : index
    %c0_11 = arith.constant 0 : index
    %22 = vector.load %arg5[%c0_10, %c0_11] : memref<136x128xf32, #tpu.memory_space<vmem>>, vector<136x128xf32>
    %cst_12 = arith.constant dense<0.000000e+00> : vector<512x128xf32>
    %23 = tpu.matmul %17, %22, %cst_12 {dimension_numbers = #tpu.dot_dimension_numbers<[1], [0], [0], [1], [0, 0, 1, 1], [], []>} : vector<512x136xf32>, vector<136x128xf32>, vector<512x128xf32> -> vector<512x128xf32>
    %24 = arith.mulf %19, %21 : vector<512x128xf32>
    %cst_13 = arith.constant dense<0.000000e+00> : vector<512xf32>
    %25 = vector.multi_reduction <add>, %24, %cst_13 [1] : vector<512x128xf32> to vector<512xf32>
    %26 = vector.shape_cast %25 : vector<512xf32> to vector<1x512xf32>
    %c0_14 = arith.constant 0 : index
    %c0_15 = arith.constant 0 : index
    %27 = vector.load %arg6[%c0_14, %c0_15] : memref<2x512xf32, #tpu.memory_space<vmem>>, vector<1x512xf32>
    tpu.vector_store %arg6[%c0_14, %c0_15], %26 {strides = array<i32>} : memref<2x512xf32, #tpu.memory_space<vmem>>, vector<1x512xf32>,
    %28 = arith.mulf %19, %23 : vector<512x128xf32>
    %cst_16 = arith.constant dense<0.000000e+00> : vector<512xf32>
    %29 = vector.multi_reduction <add>, %28, %cst_16 [1] : vector<512x128xf32> to vector<512xf32>
    %30 = vector.shape_cast %29 : vector<512xf32> to vector<1x512xf32>
    %c1 = arith.constant 1 : index
    %c0_17 = arith.constant 0 : index
    %31 = vector.load %arg6[%c1, %c0_17] : memref<2x512xf32, #tpu.memory_space<vmem>>, vector<1x512xf32>
    tpu.vector_store %arg6[%c1, %c0_17], %30 {strides = array<i32>} : memref<2x512xf32, #tpu.memory_space<vmem>>, vector<1x512xf32>,
    return
  }
  func.func @transform_0(%arg0: i32) -> (i32, i32) {
    %c0_i32 = arith.constant 0 : i32
    %c0_i32_0 = arith.constant 0 : i32
    return %arg0, %c0_i32 : i32, i32
  }
  func.func @transform_1(%arg0: i32) -> (i32, i32) {
    %c0_i32 = arith.constant 0 : i32
    %c0_i32_0 = arith.constant 0 : i32
    return %arg0, %c0_i32 : i32, i32
  }
  func.func @transform_2(%arg0: i32) -> (i32, i32) {
    %c0_i32 = arith.constant 0 : i32
    %c0_i32_0 = arith.constant 0 : i32
    return %arg0, %c0_i32 : i32, i32
  }
  func.func @transform_3(%arg0: i32) -> (i32, i32) {
    %c0_i32 = arith.constant 0 : i32
    %c0_i32_0 = arith.constant 0 : i32
    %c0_i32_1 = arith.constant 0 : i32
    return %c0_i32, %c0_i32_0 : i32, i32
  }
  func.func @transform_4(%arg0: i32) -> (i32, i32) {
    %c0_i32 = arith.constant 0 : i32
    %c0_i32_0 = arith.constant 0 : i32
    %c0_i32_1 = arith.constant 0 : i32
    return %c0_i32, %c0_i32_0 : i32, i32
  }
  func.func @transform_5(%arg0: i32) -> (i32, i32) {
    %c0_i32 = arith.constant 0 : i32
    %c0_i32_0 = arith.constant 0 : i32
    return %c0_i32, %arg0 : i32, i32
  }
}

</mosaic_0001>

<bundles_post_ra>
// kernel: bpr_forward.1
= control target key start
LH: loop header
LB: loop body
LE: loop exit
PB: predicated region body
PF: predicated region fallthrough
CT: control target
= control target key end

     0   :  { %v16406_v0 = vmov 0   ;;  %vm1760_vm0 = vcmask 588800   ;;  %s22624_s0 = inlined_call_operand.vmem [shape: s32[512,1], index: 0, kind: input, shape index: {}]   ;;  %s22625_s3 = inlined_call_operand.vmem [shape: f32[72,128], index: 3, kind: input, shape index: {}]   ;;  %s22626_s1 = inlined_call_operand.vmem [shape: s32[512,1], index: 1, kind: input, shape index: {}]   ;;  %s22627_s4 = inlined_call_operand.vmem [shape: f32[136,128], index: 4, kind: input, shape index: {}]   ;;  %s22628_s2 = inlined_call_operand.vmem [shape: s32[512,1], index: 2, kind: input, shape index: {}]   ;;  %s22629_s5 = inlined_call_operand.vmem [shape: f32[2,512], index: 5, kind: output, shape index: {}]  }
   0x1   :  { %16405 = vset.pattern.permute.xlu1 %v16406_v0  ;;  %16404 = vset.pattern.permute.xlu0 %v16406_v0  ;;  %v22_v1 = vld [vmem:[%s22624_s0 + $0x10] sm:$0xff]  ;;  %v20_v2 = vld [vmem:[%s22624_s0] sm:$0xff]  ;;  %v23_v3 = vld [vmem:[%s22624_s0 + $0x18] sm:$0xff] }
   0x2   :  { %93 = vperm.xlu1 %16405, %v22_v1   ;;  %87 = vperm.xlu0 %16404, %v20_v2   ;;  %v21_v4 = vld [vmem:[%s22624_s0 + $0x8] sm:$0xff]  ;;  %v24_v6 = vld [vmem:[%s22624_s0 + $0x20] sm:$0xff]  ;;  %v27_v7 = vld [vmem:[%s22624_s0 + $0x38] sm:$0xff]  ;;  %v16407_v2 = vmov 0.0|0.0  }
   0x3   :  { %v25_v5 = vld [vmem:[%s22624_s0 + $0x28] sm:$0xff]  ;;  %v26_v8 = vld [vmem:[%s22624_s0 + $0x30] sm:$0xff]  ;;  %v28_v10 = vld [vmem:[%s22624_s0 + $0x40] sm:$0xff] }
   0x4   :  { %v29_v9 = vld [vmem:[%s22624_s0 + $0x48] sm:$0xff]  ;;  %v31_v11 = vld [vmem:[%s22624_s0 + $0x58] sm:$0xff]  ;;  %v30_v12 = vld [vmem:[%s22624_s0 + $0x50] sm:$0xff] }
   0x5   :  { %v1751_v13 = vld [vmem:[%s22625_s3] sm:$0xff]  ;;  %v1752_v14 = vld [vmem:[%s22625_s3 + $0x8] sm:$0xff]  ;;  %v1753_v16 = vld [vmem:[%s22625_s3 + $0x10] sm:$0xff] }
   0x6   :  { %96 = vperm.xlu1 %16405, %v23_v3   ;;  %90 = vperm.xlu0 %16404, %v21_v4   ;;  %v16325_v15 = vpack.c.bf16 %v1752_v14, %v1751_v13  ;;  %v33_v17 = vld [vmem:[%s22624_s0 + $0x68] sm:$0xff]  ;;  %v1754_v18 = vld [vmem:[%s22625_s3 + $0x18] sm:$0xff]  ;;  %v32_v19 = vld [vmem:[%s22624_s0 + $0x60] sm:$0xff]  ;;  %v22630_v13 = vlaneseq }
   0x7   :  { %v16329_v20 = vpack.c.bf16 %v1754_v18, %v1753_v16  ;;  %v1755_v21 = vld [vmem:[%s22625_s3 + $0x20] sm:$0xff]  ;;  %v1756_v22 = vld [vmem:[%s22625_s3 + $0x28] sm:$0xff]  ;;  %v1757_v24 = vld [vmem:[%s22625_s3 + $0x30] sm:$0xff] }
   0x8   :  { %16326 = vmatprep.subr.bf16.mxu0 %v16325_v15  ;;  %16389 = vmatprep.subr.bf16.mxu1 %v16325_v15  ;;  %v16333_v23 = vpack.c.bf16 %v1756_v22, %v1755_v21  ;;  %v1758_v25 = vld [vmem:[%s22625_s3 + $0x38] sm:$0xff]  ;;  %v34_v27 = vld [vmem:[%s22624_s0 + $0x70] sm:$0xff]  ;;  %v37_v29 = vld [vmem:[%s22624_s0 + $0x88] sm:$0xff]  ;;  %v16663_v16 = vand.u32 127, %v22630_v13  ;;  %v22637_v21 = vmov 0.0  }
   0x9   :  { %16328 = vmatpush3.bf16.msra.mxu0 %v16325_v15  ;;  %16394 = vmatpush3.bf16.msra.mxu1 %v16325_v15  ;;  %v35_v26 = vld [vmem:[%s22624_s0 + $0x78] sm:$0xff]  ;;  %v16337_v28 = vpack.c.bf16 %v1758_v25, %v1757_v24  ;;  %v36_v30 = vld [vmem:[%s22624_s0 + $0x80] sm:$0xff]  ;;  %v38_v33 = vld [vmem:[%s22624_s0 + $0x90] sm:$0xff] }
   0xa   :  { %102 = vperm.xlu1 %16405, %v25_v5   ;;  %99 = vperm.xlu0 %16404, %v24_v6   ;;  %v1759_v31 = vld [vmem:[%s22625_s3 + $0x40] sm:$0xff]  ;;  %v39_v32 = vld [vmem:[%s22624_s0 + $0x98] sm:$0xff]  ;;  %v41_v34 = vld [vmem:[%s22624_s0 + $0xa8] sm:$0xff]  ;;  %22765 = vst [vmem:[#allocation2_spill] sm:$0xff] %v16663_v16 }
   0xb   :  { %16330 = vmatprep.subr.bf16.mxu0 %v16329_v20  ;;  %16390 = vmatprep.subr.bf16.mxu1 %v16329_v20  ;;  %v40_v35 = vld [vmem:[%s22624_s0 + $0xa0] sm:$0xff]  ;;  %v43_v36 = vld [vmem:[%s22624_s0 + $0xb8] sm:$0xff]  ;;  %v42_v37 = vld [vmem:[%s22624_s0 + $0xb0] sm:$0xff] }
   0xc   :  { %v45_v38 = vld [vmem:[%s22624_s0 + $0xc8] sm:$0xff]  ;;  %v44_v39 = vld [vmem:[%s22624_s0 + $0xc0] sm:$0xff]  ;;  %v47_v40 = vld [vmem:[%s22624_s0 + $0xd8] sm:$0xff] }
   0xd   :  { %16332 = vmatpush3.bf16.msra.mxu0 %v16329_v20  ;;  %16395 = vmatpush3.bf16.msra.mxu1 %v16329_v20  ;;  %v46_v41 = vld [vmem:[%s22624_s0 + $0xd0] sm:$0xff]  ;;  %v49_v42 = vld [vmem:[%s22624_s0 + $0xe8] sm:$0xff]  ;;  %v48_v43 = vld [vmem:[%s22624_s0 + $0xe0] sm:$0xff] }
   0xe   :  { %108 = vperm.xlu1 %16405, %v27_v7   ;;  %105 = vperm.xlu0 %16404, %v26_v8   ;;  %v51_v44 = vld [vmem:[%s22624_s0 + $0xf8] sm:$0xff]  ;;  %v50_v45 = vld [vmem:[%s22624_s0 + $0xf0] sm:$0xff]  ;;  %v53_v46 = vld [vmem:[%s22624_s0 + $0x108] sm:$0xff] }
   0xf   :  { %16334 = vmatprep.subr.bf16.mxu0 %v16333_v23  ;;  %16391 = vmatprep.subr.bf16.mxu1 %v16333_v23  ;;  %v52_v47 = vld [vmem:[%s22624_s0 + $0x100] sm:$0xff]  ;;  %v55_v48 = vld [vmem:[%s22624_s0 + $0x118] sm:$0xff]  ;;  %v54_v49 = vld [vmem:[%s22624_s0 + $0x110] sm:$0xff] }
  0x10   :  { %v57_v50 = vld [vmem:[%s22624_s0 + $0x128] sm:$0xff]  ;;  %v56_v51 = vld [vmem:[%s22624_s0 + $0x120] sm:$0xff]  ;;  %v59_v52 = vld [vmem:[%s22624_s0 + $0x138] sm:$0xff] }
  0x11   :  { %16336 = vmatpush3.bf16.msra.mxu0 %v16333_v23  ;;  %16396 = vmatpush3.bf16.msra.mxu1 %v16333_v23  ;;  %v58_v53 = vld [vmem:[%s22624_s0 + $0x130] sm:$0xff]  ;;  %v61_v54 = vld [vmem:[%s22624_s0 + $0x148] sm:$0xff]  ;;  %v60_v55 = vld [vmem:[%s22624_s0 + $0x140] sm:$0xff] }
  0x12   :  { %114 = vperm.xlu1 %16405, %v29_v9   ;;  %111 = vperm.xlu0 %16404, %v28_v10   ;;  %v63_v56 = vld [vmem:[%s22624_s0 + $0x158] sm:$0xff]  ;;  %v62_v57 = vld [vmem:[%s22624_s0 + $0x150] sm:$0xff]  ;;  %v65_v58 = vld [vmem:[%s22624_s0 + $0x168] sm:$0xff] }
  0x13   :  { %16338 = vmatprep.subr.bf16.mxu0 %v16337_v28  ;;  %16392 = vmatprep.subr.bf16.mxu1 %v16337_v28  ;;  %v64_v59 = vld [vmem:[%s22624_s0 + $0x160] sm:$0xff]  ;;  %v67_v60 = vld [vmem:[%s22624_s0 + $0x178] sm:$0xff]  ;;  %v66_v61 = vld [vmem:[%s22624_s0 + $0x170] sm:$0xff] }
  0x14   :  { %v69_v62 = vld [vmem:[%s22624_s0 + $0x188] sm:$0xff]  ;;  %v68_v63 = vld [vmem:[%s22624_s0 + $0x180] sm:$0xff]  ;;  %v71_v0 = vld [vmem:[%s22624_s0 + $0x198] sm:$0xff] }
  0x15   :  { %16340 = vmatpush3.bf16.msra.mxu0 %v16337_v28  ;;  %16397 = vmatpush3.bf16.msra.mxu1 %v16337_v28  ;;  %v70_v1 = vld [vmem:[%s22624_s0 + $0x190] sm:$0xff]  ;;  %v73_v3 = vld [vmem:[%s22624_s0 + $0x1a8] sm:$0xff]  ;;  %v72_v4 = vld [vmem:[%s22624_s0 + $0x1a0] sm:$0xff] }
  0x16   :  { %120 = vperm.xlu1 %16405, %v31_v11   ;;  %117 = vperm.xlu0 %16404, %v30_v12   ;;  %v75_v5 = vld [vmem:[%s22624_s0 + $0x1b8] sm:$0xff]  ;;  %v74_v6 = vld [vmem:[%s22624_s0 + $0x1b0] sm:$0xff]  ;;  %v77_v7 = vld [vmem:[%s22624_s0 + $0x1c8] sm:$0xff] }
  0x17   :  { %16227 = vmatprep.subr.mxu0 %v1759_v31  ;;  %16393 = vmatprep.subr.mxu1 %v1759_v31  ;;  %v76_v8 = vld [vmem:[%s22624_s0 + $0x1c0] sm:$0xff]  ;;  %v79_v9 = vld [vmem:[%s22624_s0 + $0x1d8] sm:$0xff]  ;;  %v78_v10 = vld [vmem:[%s22624_s0 + $0x1d0] sm:$0xff] }
  0x18   :  { %v81_v11 = vld [vmem:[%s22624_s0 + $0x1e8] sm:$0xff]  ;;  %v80_v12 = vld [vmem:[%s22624_s0 + $0x1e0] sm:$0xff]  ;;  %v83_v14 = vld [vmem:[%s22624_s0 + $0x1f8] sm:$0xff] }
  0x19   :  { %16228 = vmatpush3.msra.mxu0 %v1759_v31  ;;  %16398 = vmatpush3.msra.mxu1 %v1759_v31  ;;  %v82_v15 = vld [vmem:[%s22624_s0 + $0x1f0] sm:$0xff]  ;;  %v470_v18 = vld [vmem:[%s22626_s1] sm:$0xff]  ;;  %v473_v23 = vld [vmem:[%s22626_s1 + $0x18] sm:$0xff] }
  0x1a   :  { %126 = vperm.xlu1 %16405, %v33_v17   ;;  %123 = vperm.xlu0 %16404, %v32_v19   ;;  %v471_v17 = vld [vmem:[%s22626_s1 + $0x8] sm:$0xff]  ;;  %v472_v24 = vld [vmem:[%s22626_s1 + $0x10] sm:$0xff]  ;;  %v2338_v25 = vld [vmem:[%s22627_s4] sm:$0xff] }
  0x1b   :  { %16341 = vmatprep.subr.bf16.mxu1 %v16407_v2  ;;  %16365 = vmatprep.subr.bf16.mxu0 %v16407_v2  ;;  %v475_v31 = vld [vmem:[%s22626_s1 + $0x28] sm:$0xff] }
  0x1e   :  { %132 = vperm.xlu1 %16405, %v35_v26   ;;  %129 = vperm.xlu0 %16404, %v34_v27   ;;  %v2339_v26 = vld [vmem:[%s22627_s4 + $0x8] sm:$0xff] }
  0x22   :  { %138 = vperm.xlu1 %16405, %v37_v29   ;;  %135 = vperm.xlu0 %16404, %v36_v30  }
  0x26   :  { %144 = vperm.xlu1 %16405, %v39_v32   ;;  %141 = vperm.xlu0 %16404, %v38_v33   ;;  %v474_v32 = vld [vmem:[%s22626_s1 + $0x20] sm:$0xff]  ;;  %v16696_v33 = vpack.c.bf16 %v2339_v26, %v2338_v25  ;;  %v487_v25 = vld [vmem:[%s22626_s1 + $0x88] sm:$0xff] }
  0x27   :  { %v486_v26 = vld [vmem:[%s22626_s1 + $0x80] sm:$0xff] }
  0x2a   :  { %150 = vperm.xlu1 %16405, %v41_v34   ;;  %147 = vperm.xlu0 %16404, %v40_v35   ;;  %v2340_v34 = vld [vmem:[%s22627_s4 + $0x10] sm:$0xff]  ;;  %v2341_v35 = vld [vmem:[%s22627_s4 + $0x18] sm:$0xff] }
  0x2e   :  { %156 = vperm.xlu1 %16405, %v43_v36   ;;  %153 = vperm.xlu0 %16404, %v42_v37  }
  0x32   :  { %162 = vperm.xlu1 %16405, %v45_v38   ;;  %159 = vperm.xlu0 %16404, %v44_v39  }
  0x36   :  { %168 = vperm.xlu1 %16405, %v47_v40   ;;  %165 = vperm.xlu0 %16404, %v46_v41   ;;  %v477_v40 = vld [vmem:[%s22626_s1 + $0x38] sm:$0xff]  ;;  %v476_v41 = vld [vmem:[%s22626_s1 + $0x30] sm:$0xff] }
  0x3a   :  { %174 = vperm.xlu1 %16405, %v49_v42   ;;  %171 = vperm.xlu0 %16404, %v48_v43   ;;  %v16717_v42 = vpack.c.bf16 %v2341_v35, %v2340_v34  ;;  %v2342_v43 = vld [vmem:[%s22627_s4 + $0x20] sm:$0xff]  ;;  %v489_v35 = vld [vmem:[%s22626_s1 + $0x98] sm:$0xff] }
  0x3e   :  { %180 = vperm.xlu1 %16405, %v51_v44   ;;  %177 = vperm.xlu0 %16404, %v50_v45   ;;  %v2343_v44 = vld [vmem:[%s22627_s4 + $0x28] sm:$0xff] }
  0x42   :  { %186 = vperm.xlu1 %16405, %v53_v46   ;;  %183 = vperm.xlu0 %16404, %v52_v47  }
  0x46   :  { %192 = vperm.xlu1 %16405, %v55_v48   ;;  %189 = vperm.xlu0 %16404, %v54_v49   ;;  %v479_v49 = vld [vmem:[%s22626_s1 + $0x48] sm:$0xff] }
  0x4a   :  { %198 = vperm.xlu1 %16405, %v57_v50   ;;  %195 = vperm.xlu0 %16404, %v56_v51   ;;  %v478_v50 = vld [vmem:[%s22626_s1 + $0x40] sm:$0xff]  ;;  %v16739_v51 = vpack.c.bf16 %v2343_v44, %v2342_v43  ;;  %v491_v43 = vld [vmem:[%s22626_s1 + $0xa8] sm:$0xff] }
  0x4b   :  { %v490_v44 = vld [vmem:[%s22626_s1 + $0xa0] sm:$0xff] }
  0x4e   :  { %204 = vperm.xlu1 %16405, %v59_v52   ;;  %201 = vperm.xlu0 %16404, %v58_v53   ;;  %v2344_v52 = vld [vmem:[%s22627_s4 + $0x30] sm:$0xff]  ;;  %v2345_v53 = vld [vmem:[%s22627_s4 + $0x38] sm:$0xff] }
  0x52   :  { %210 = vperm.xlu1 %16405, %v61_v54   ;;  %207 = vperm.xlu0 %16404, %v60_v55  }
  0x56   :  { %216 = vperm.xlu1 %16405, %v63_v56   ;;  %213 = vperm.xlu0 %16404, %v62_v57  }
  0x5a   :  { %222 = vperm.xlu1 %16405, %v65_v58   ;;  %219 = vperm.xlu0 %16404, %v64_v59   ;;  %v481_v58 = vld [vmem:[%s22626_s1 + $0x58] sm:$0xff]  ;;  %v480_v59 = vld [vmem:[%s22626_s1 + $0x50] sm:$0xff] }
  0x5e   :  { %228 = vperm.xlu1 %16405, %v67_v60   ;;  %225 = vperm.xlu0 %16404, %v66_v61   ;;  %v16761_v60 = vpack.c.bf16 %v2345_v53, %v2344_v52  ;;  %v2346_v61 = vld [vmem:[%s22627_s4 + $0x40] sm:$0xff]  ;;  %v492_v52 = vld [vmem:[%s22626_s1 + $0xb0] sm:$0xff] }
  0x62   :  { %234 = vperm.xlu1 %16405, %v69_v62   ;;  %231 = vperm.xlu0 %16404, %v68_v63   ;;  %v2347_v62 = vld [vmem:[%s22627_s4 + $0x48] sm:$0xff] }
  0x66   :  { %240 = vperm.xlu1 %16405, %v71_v0   ;;  %237 = vperm.xlu0 %16404, %v70_v1  }
  0x6a   :  { %246 = vperm.xlu1 %16405, %v73_v3   ;;  %243 = vperm.xlu0 %16404, %v72_v4   ;;  %v483_v4 = vld [vmem:[%s22626_s1 + $0x68] sm:$0xff] }
  0x6e   :  { %252 = vperm.xlu1 %16405, %v75_v5   ;;  %249 = vperm.xlu0 %16404, %v74_v6   ;;  %v482_v5 = vld [vmem:[%s22626_s1 + $0x60] sm:$0xff]  ;;  %v16783_v6 = vpack.c.bf16 %v2347_v62, %v2346_v61 }
  0x72   :  { %258 = vperm.xlu1 %16405, %v77_v7   ;;  %255 = vperm.xlu0 %16404, %v76_v8   ;;  %v2348_v7 = vld [vmem:[%s22627_s4 + $0x50] sm:$0xff]  ;;  %v2349_v8 = vld [vmem:[%s22627_s4 + $0x58] sm:$0xff] }
  0x76   :  { %264 = vperm.xlu1 %16405, %v79_v9   ;;  %261 = vperm.xlu0 %16404, %v78_v10  }
  0x7a   :  { %270 = vperm.xlu1 %16405, %v81_v11   ;;  %267 = vperm.xlu0 %16404, %v80_v12  }
  0x7e   :  { %276 = vperm.xlu1 %16405, %v83_v14   ;;  %273 = vperm.xlu0 %16404, %v82_v15   ;;  %v485_v14 = vld [vmem:[%s22626_s1 + $0x78] sm:$0xff]  ;;  %v484_v15 = vld [vmem:[%s22626_s1 + $0x70] sm:$0xff] }
  0x81   :  { %v94_v19 = vpop.permute.xlu1 %93  ;;  %v88_v20 = vpop.permute.xlu0 %87 }
  0x82   :  { %539 = vperm.xlu1 %16405, %v471_v17   ;;  %536 = vperm.xlu0 %16404, %v470_v18   ;;  %vm278_vm1 = vcmp.eq.s32.totalorder %v88_v20, %v16663_v16  ;;  %vm280_vm2 = vcmp.eq.s32.totalorder %v94_v19, %v16663_v16  ;;  %v16805_v17 = vpack.c.bf16 %v2349_v8, %v2348_v7  ;;  %v2350_v18 = vld [vmem:[%s22627_s4 + $0x60] sm:$0xff]  ;;  %v2351_v19 = vld [vmem:[%s22627_s4 + $0x68] sm:$0xff] }
  0x83   :  { %v15497_v22 = vsel %vm278_vm1, 1.0, %v22637_v21  ;;  %v15499_v29 = vsel %vm280_vm2, 1.0, %v22637_v21  ;;  %v499_v8 = vld [vmem:[%s22626_s1 + $0xe8] sm:$0xff] }
  0x84   :  { %16229 = vmatprep.mubr.msk.f32.mxu0 %vm1760_vm0, %v15497_v22 }
  0x85   :  { %v97_v27 = vpop.permute.xlu1 %96  ;;  %v91_v28 = vpop.permute.xlu0 %90 }
  0x86   :  { %vm279_vm3 = vcmp.eq.s32.totalorder %v91_v28, %v16663_v16  ;;  %545 = vperm.xlu1 %16405, %v473_v23   ;;  %542 = vperm.xlu0 %16404, %v472_v24   ;;  %vm281_vm4 = vcmp.eq.s32.totalorder %v97_v27, %v16663_v16  ;;  %v16827_v27 = vpack.c.bf16 %v2351_v19, %v2350_v18  ;;  %v2352_v28 = vld [vmem:[%s22627_s4 + $0x70] sm:$0xff] }
  0x87   :  { %v15498_v30 = vsel %vm279_vm3, 1.0, %v22637_v21  ;;  %v15500_v38 = vsel %vm281_vm4, 1.0, %v22637_v21  ;;  %v500_v18 = vld [vmem:[%s22626_s1 + $0xf0] sm:$0xff] }
  0x88   :  { %16230 = vmatmul.mubr.msk.f32.vlgmr.msra.gmra.mrb[0].mxu0 %vm1760_vm0, %v15498_v30 }
  0x89   :  { %v103_v36 = vpop.permute.xlu1 %102  ;;  %16232 = vmatprep.mubr.msk.f32.mxu0 %vm1760_vm0, %v15499_v29  ;;  %v100_v37 = vpop.permute.xlu0 %99  ;;  %16367 = vmatpush1.bf16.msra.mxu0 %v16696_v33  ;;  %v2353_v29 = vld [vmem:[%s22627_s4 + $0x78] sm:$0xff] }
  0x8a   :  { %vm282_vm5 = vcmp.eq.s32.totalorder %v100_v37, %v16663_v16  ;;  %551 = vperm.xlu1 %16405, %v475_v31   ;;  %548 = vperm.xlu0 %16404, %v474_v32   ;;  %vm283_vm6 = vcmp.eq.s32.totalorder %v103_v36, %v16663_v16  ;;  %v488_v36 = vld [vmem:[%s22626_s1 + $0x90] sm:$0xff]  ;;  %v16849_v37 = vpack.c.bf16 %v2353_v29, %v2352_v28 }
  0x8b   :  { %v15501_v39 = vsel %vm282_vm5, 1.0, %v22637_v21  ;;  %16368 = vmatprep.subr.bf16.mxu0 %v16407_v2  ;;  %v15502_v47 = vsel %vm283_vm6, 1.0, %v22637_v21 }
  0x8c   :  { %16233 = vmatmul.mubr.msk.f32.gmra.mrb[2].mxu0 %vm1760_vm0, %v15500_v38 }
  0x8d   :  { %v109_v45 = vpop.permute.xlu1 %108  ;;  %16235 = vmatprep.mubr.msk.f32.mxu0 %vm1760_vm0, %v15501_v39  ;;  %v106_v46 = vpop.permute.xlu0 %105  ;;  %16370 = vmatpush1.bf16.msra.mxu0 %v16717_v42 }
  0x8e   :  { %vm284_vm7 = vcmp.eq.s32.totalorder %v106_v46, %v16663_v16  ;;  %557 = vperm.xlu1 %16405, %v477_v40   ;;  %554 = vperm.xlu0 %16404, %v476_v41   ;;  %vm285_vm8 = vcmp.eq.s32.totalorder %v109_v45, %v16663_v16  ;;  %v16871_v45 = vld [vmem:[%s22627_s4 + $0x80] sm:$0xff] }
  0x8f   :  { %v15503_v48 = vsel %vm284_vm7, 1.0, %v22637_v21  ;;  %16371 = vmatprep.subr.bf16.mxu0 %v16407_v2  ;;  %v15504_v56 = vsel %vm285_vm8, 1.0, %v22637_v21 }
  0x90   :  { %16236 = vmatmul.mubr.msk.f32.gmra.mrb[4].mxu0 %vm1760_vm0, %v15502_v47 }
  0x91   :  { %v115_v54 = vpop.permute.xlu1 %114  ;;  %16238 = vmatprep.mubr.msk.f32.mxu0 %vm1760_vm0, %v15503_v48  ;;  %v112_v55 = vpop.permute.xlu0 %111  ;;  %16373 = vmatpush1.bf16.msra.mxu0 %v16739_v51 }
  0x92   :  { %vm286_vm9 = vcmp.eq.s32.totalorder %v112_v55, %v16663_v16  ;;  %563 = vperm.xlu1 %16405, %v479_v49   ;;  %560 = vperm.xlu0 %16404, %v478_v50   ;;  %vm287_vm10 = vcmp.eq.s32.totalorder %v115_v54, %v16663_v16  ;;  %v493_v50 = vld [vmem:[%s22626_s1 + $0xb8] sm:$0xff] }
  0x93   :  { %v15505_v57 = vsel %vm286_vm9, 1.0, %v22637_v21  ;;  %16374 = vmatprep.subr.bf16.mxu0 %v16407_v2  ;;  %v15506_v1 = vsel %vm287_vm10, 1.0, %v22637_v21 }
  0x94   :  { %16239 = vmatmul.mubr.msk.f32.gmra.mrb[6].mxu0 %vm1760_vm0, %v15504_v56 }
  0x95   :  { %v121_v63 = vpop.permute.xlu1 %120  ;;  %16241 = vmatprep.mubr.msk.f32.mxu0 %vm1760_vm0, %v15505_v57  ;;  %v118_v0 = vpop.permute.xlu0 %117  ;;  %16376 = vmatpush1.bf16.msra.mxu0 %v16761_v60  ;;  %v495_v57 = vld [vmem:[%s22626_s1 + $0xc8] sm:$0xff] }
  0x96   :  { %vm288_vm11 = vcmp.eq.s32.totalorder %v118_v0, %v16663_v16  ;;  %569 = vperm.xlu1 %16405, %v481_v58   ;;  %566 = vperm.xlu0 %16404, %v480_v59   ;;  %vm289_vm12 = vcmp.eq.s32.totalorder %v121_v63, %v16663_v16  ;;  %v494_v58 = vld [vmem:[%s22626_s1 + $0xc0] sm:$0xff]  ;;  %v497_v0 = vld [vmem:[%s22626_s1 + $0xd8] sm:$0xff] }
  0x97   :  { %v15507_v3 = vsel %vm288_vm11, 1.0, %v22637_v21  ;;  %16377 = vmatprep.subr.bf16.mxu0 %v16407_v2  ;;  %v15508_v11 = vsel %vm289_vm12, 1.0, %v22637_v21 }
  0x98   :  { %16242 = vmatmul.mubr.msk.f32.gmra.mrb[8].mxu0 %vm1760_vm0, %v15506_v1  ;;  %v496_v1 = vld [vmem:[%s22626_s1 + $0xd0] sm:$0xff] }
  0x99   :  { %v127_v9 = vpop.permute.xlu1 %126  ;;  %16244 = vmatprep.mubr.msk.f32.mxu0 %vm1760_vm0, %v15507_v3  ;;  %v124_v10 = vpop.permute.xlu0 %123  ;;  %16379 = vmatpush1.bf16.msra.mxu0 %v16783_v6 }
  0x9a   :  { %vm290_vm13 = vcmp.eq.s32.totalorder %v124_v10, %v16663_v16  ;;  %575 = vperm.xlu1 %16405, %v483_v4   ;;  %572 = vperm.xlu0 %16404, %v482_v5   ;;  %vm291_vm14 = vcmp.eq.s32.totalorder %v127_v9, %v16663_v16  ;;  %v498_v9 = vld [vmem:[%s22626_s1 + $0xe0] sm:$0xff] }
  0x9b   :  { %v15509_v12 = vsel %vm290_vm13, 1.0, %v22637_v21  ;;  %16380 = vmatprep.subr.bf16.mxu0 %v16407_v2  ;;  %v15510_v23 = vsel %vm291_vm14, 1.0, %v22637_v21 }
  0x9c   :  { %16245 = vmatmul.mubr.msk.f32.gmra.mrb[10].mxu0 %vm1760_vm0, %v15508_v11 }
  0x9d   :  { %v133_v20 = vpop.permute.xlu1 %132  ;;  %16247 = vmatprep.mubr.msk.f32.mxu0 %vm1760_vm0, %v15509_v12  ;;  %v130_v22 = vpop.permute.xlu0 %129  ;;  %16382 = vmatpush1.bf16.msra.mxu0 %v16805_v17 }
  0x9e   :  { %vm292_vm15 = vcmp.eq.s32.totalorder %v130_v22, %v16663_v16  ;;  %581 = vperm.xlu1 %16405, %v485_v14   ;;  %578 = vperm.xlu0 %16404, %v484_v15   ;;  %vm293_vm1 = vcmp.eq.s32.totalorder %v133_v20, %v16663_v16  ;;  %v501_v15 = vld [vmem:[%s22626_s1 + $0xf8] sm:$0xff] }
  0x9f   :  { %v15511_v24 = vsel %vm292_vm15, 1.0, %v22637_v21  ;;  %16383 = vmatprep.subr.bf16.mxu0 %v16407_v2  ;;  %v15512_v32 = vsel %vm293_vm1, 1.0, %v22637_v21 }
  0xa0   :  { %16248 = vmatmul.mubr.msk.f32.gmra.mrb[12].mxu0 %vm1760_vm0, %v15510_v23 }
  0xa1   :  { %v139_v30 = vpop.permute.xlu1 %138  ;;  %16250 = vmatprep.mubr.msk.f32.mxu0 %vm1760_vm0, %v15511_v24  ;;  %v136_v31 = vpop.permute.xlu0 %135  ;;  %16385 = vmatpush1.bf16.msra.mxu0 %v16827_v27  ;;  %v503_v24 = vld [vmem:[%s22626_s1 + $0x108] sm:$0xff] }
  0xa2   :  { %vm294_vm2 = vcmp.eq.s32.totalorder %v136_v31, %v16663_v16  ;;  %587 = vperm.xlu1 %16405, %v487_v25   ;;  %584 = vperm.xlu0 %16404, %v486_v26   ;;  %vm295_vm3 = vcmp.eq.s32.totalorder %v139_v30, %v16663_v16  ;;  %v502_v25 = vld [vmem:[%s22626_s1 + $0x100] sm:$0xff] }
  0xa3   :  { %v15513_v34 = vsel %vm294_vm2, 1.0, %v22637_v21  ;;  %16386 = vmatprep.subr.bf16.mxu0 %v16407_v2  ;;  %v15514_v40 = vsel %vm295_vm3, 1.0, %v22637_v21 }
  0xa4   :  { %16251 = vmatmul.mubr.msk.f32.gmra.mrb[14].mxu0 %vm1760_vm0, %v15512_v32  ;;  %v505_v32 = vld [vmem:[%s22626_s1 + $0x118] sm:$0xff] }
  0xa5   :  { %v145_v38 = vpop.permute.xlu1 %144  ;;  %16253 = vmatprep.mubr.msk.f32.mxu0 %vm1760_vm0, %v15513_v34  ;;  %v142_v39 = vpop.permute.xlu0 %141  ;;  %16388 = vmatpush1.bf16.msra.mxu0 %v16849_v37  ;;  %v504_v34 = vld [vmem:[%s22626_s1 + $0x110] sm:$0xff] }
  0xa6   :  { %vm296_vm4 = vcmp.eq.s32.totalorder %v142_v39, %v16663_v16  ;;  %593 = vperm.xlu1 %16405, %v489_v35   ;;  %590 = vperm.xlu0 %16404, %v488_v36   ;;  %vm297_vm5 = vcmp.eq.s32.totalorder %v145_v38, %v16663_v16 }
  0xa7   :  { %v15515_v41 = vsel %vm296_vm4, 1.0, %v22637_v21  ;;  %3157 = vmatprep.subr.mxu0 %v22637_v21  ;;  %v15516_v48 = vsel %vm297_vm5, 1.0, %v22637_v21 }
  0xa8   :  { %16254 = vmatmul.mubr.msk.f32.gmra.mrb[16].mxu0 %vm1760_vm0, %v15514_v40  ;;  %v507_v40 = vld [vmem:[%s22626_s1 + $0x128] sm:$0xff] }
  0xa9   :  { %v151_v46 = vpop.permute.xlu1 %150  ;;  %16256 = vmatprep.mubr.msk.f32.mxu0 %vm1760_vm0, %v15515_v41  ;;  %v148_v47 = vpop.permute.xlu0 %147  ;;  %3158 = vmatpush1.msra.mxu0 %v16871_v45  ;;  %v506_v41 = vld [vmem:[%s22626_s1 + $0x120] sm:$0xff] }
  0xaa   :  { %vm298_vm6 = vcmp.eq.s32.totalorder %v148_v47, %v16663_v16  ;;  %599 = vperm.xlu1 %16405, %v491_v43   ;;  %596 = vperm.xlu0 %16404, %v490_v44   ;;  %vm299_vm7 = vcmp.eq.s32.totalorder %v151_v46, %v16663_v16 }
  0xab   :  { %v15517_v49 = vsel %vm298_vm6, 1.0, %v22637_v21  ;;  %v15518_v55 = vsel %vm299_vm7, 1.0, %v22637_v21 }
  0xac   :  { %16257 = vmatmul.mubr.msk.f32.gmra.mrb[18].mxu0 %vm1760_vm0, %v15516_v48  ;;  %v508_v48 = vld [vmem:[%s22626_s1 + $0x130] sm:$0xff] }
  0xad   :  { %v157_v53 = vpop.permute.xlu1 %156  ;;  %16259 = vmatprep.mubr.msk.f32.mxu0 %vm1760_vm0, %v15517_v49  ;;  %v154_v54 = vpop.permute.xlu0 %153 }
  0xae   :  { %vm300_vm8 = vcmp.eq.s32.totalorder %v154_v54, %v16663_v16  ;;  %605 = vperm.xlu1 %16405, %v493_v50   ;;  %602 = vperm.xlu0 %16404, %v492_v52   ;;  %vm301_vm9 = vcmp.eq.s32.totalorder %v157_v53, %v16663_v16  ;;  %v510_v54 = vld [vmem:[%s22626_s1 + $0x140] sm:$0xff] }
  0xaf   :  { %v15519_v56 = vsel %vm300_vm8, 1.0, %v22637_v21  ;;  %v15520_v62 = vsel %vm301_vm9, 1.0, %v22637_v21 }
  0xb0   :  { %16260 = vmatmul.mubr.msk.f32.gmra.mrb[20].mxu0 %vm1760_vm0, %v15518_v55 }
  0xb1   :  { %v163_v59 = vpop.permute.xlu1 %162  ;;  %16262 = vmatprep.mubr.msk.f32.mxu0 %vm1760_vm0, %v15519_v56  ;;  %v160_v61 = vpop.permute.xlu0 %159 }
  0xb2   :  { %vm302_vm10 = vcmp.eq.s32.totalorder %v160_v61, %v16663_v16  ;;  %611 = vperm.xlu1 %16405, %v495_v57   ;;  %608 = vperm.xlu0 %16404, %v494_v58   ;;  %vm303_vm11 = vcmp.eq.s32.totalorder %v163_v59, %v16663_v16  ;;  %v512_v59 = vld [vmem:[%s22626_s1 + $0x150] sm:$0xff] }
  0xb3   :  { %v15521_v63 = vsel %vm302_vm10, 1.0, %v22637_v21  ;;  %v15522_v5 = vsel %vm303_vm11, 1.0, %v22637_v21 }
  0xb4   :  { %16263 = vmatmul.mubr.msk.f32.gmra.mrb[22].mxu0 %vm1760_vm0, %v15520_v62 }
  0xb5   :  { %v169_v3 = vpop.permute.xlu1 %168  ;;  %16265 = vmatprep.mubr.msk.f32.mxu0 %vm1760_vm0, %v15521_v63  ;;  %v166_v4 = vpop.permute.xlu0 %165 }
  0xb6   :  { %vm304_vm12 = vcmp.eq.s32.totalorder %v166_v4, %v16663_v16  ;;  %617 = vperm.xlu1 %16405, %v497_v0   ;;  %614 = vperm.xlu0 %16404, %v496_v1   ;;  %vm305_vm13 = vcmp.eq.s32.totalorder %v169_v3, %v16663_v16  ;;  %v514_v1 = vld [vmem:[%s22626_s1 + $0x160] sm:$0xff] }
  0xb7   :  { %v15523_v7 = vsel %vm304_vm12, 1.0, %v22637_v21  ;;  %v15524_v12 = vsel %vm305_vm13, 1.0, %v22637_v21 }
  0xb8   :  { %16266 = vmatmul.mubr.msk.f32.gmra.mrb[24].mxu0 %vm1760_vm0, %v15522_v5 }
  0xb9   :  { %v175_v10 = vpop.permute.xlu1 %174  ;;  %16268 = vmatprep.mubr.msk.f32.mxu0 %vm1760_vm0, %v15523_v7  ;;  %v172_v11 = vpop.permute.xlu0 %171 }
  0xba   :  { %vm306_vm14 = vcmp.eq.s32.totalorder %v172_v11, %v16663_v16  ;;  %623 = vperm.xlu1 %16405, %v499_v8   ;;  %620 = vperm.xlu0 %16404, %v498_v9   ;;  %vm307_vm15 = vcmp.eq.s32.totalorder %v175_v10, %v16663_v16  ;;  %v516_v8 = vld [vmem:[%s22626_s1 + $0x170] sm:$0xff] }
  0xbb   :  { %v15525_v14 = vsel %vm306_vm14, 1.0, %v22637_v21  ;;  %v15526_v22 = vsel %vm307_vm15, 1.0, %v22637_v21 }
  0xbc   :  { %16269 = vmatmul.mubr.msk.f32.gmra.mrb[26].mxu0 %vm1760_vm0, %v15524_v12 }
  0xbd   :  { %v181_v19 = vpop.permute.xlu1 %180  ;;  %16271 = vmatprep.mubr.msk.f32.mxu0 %vm1760_vm0, %v15525_v14  ;;  %v178_v20 = vpop.permute.xlu0 %177  ;;  %v518_v14 = vld [vmem:[%s22626_s1 + $0x180] sm:$0xff] }
  0xbe   :  { %vm308_vm1 = vcmp.eq.s32.totalorder %v178_v20, %v16663_v16  ;;  %629 = vperm.xlu1 %16405, %v501_v15   ;;  %626 = vperm.xlu0 %16404, %v500_v18   ;;  %vm309_vm2 = vcmp.eq.s32.totalorder %v181_v19, %v16663_v16 }
  0xbf   :  { %v15527_v23 = vsel %vm308_vm1, 1.0, %v22637_v21  ;;  %v15528_v29 = vsel %vm309_vm2, 1.0, %v22637_v21 }
  0xc0   :  { %16272 = vmatmul.mubr.msk.f32.gmra.mrb[28].mxu0 %vm1760_vm0, %v15526_v22 }
  0xc1   :  { %v187_v26 = vpop.permute.xlu1 %186  ;;  %16274 = vmatprep.mubr.msk.f32.mxu0 %vm1760_vm0, %v15527_v23  ;;  %v184_v28 = vpop.permute.xlu0 %183 }
  0xc2   :  { %vm311_vm3 = vcmp.eq.s32.totalorder %v187_v26, %v16663_v16  ;;  %635 = vperm.xlu1 %16405, %v503_v24   ;;  %632 = vperm.xlu0 %16404, %v502_v25   ;;  %vm310_vm4 = vcmp.eq.s32.totalorder %v184_v28, %v16663_v16  ;;  %v522_v26 = vld [vmem:[%s22626_s1 + $0x1a0] sm:$0xff] }
  0xc3   :  { %v15530_v30 = vsel %vm311_vm3, 1.0, %v22637_v21  ;;  %v15529_v31 = vsel %vm310_vm4, 1.0, %v22637_v21 }
  0xc4   :  { %16275 = vmatmul.mubr.msk.f32.gmra.mrb[30].mxu0 %vm1760_vm0, %v15528_v29  ;;  %16277 = vmatprep.mubr.msk.f32.mxu1 %vm1760_vm0, %v15529_v31 }
  0xc5   :  { %v193_v35 = vpop.permute.xlu1 %192  ;;  %16278 = vmatmul.mubr.msk.f32.vlgmr.msra.gmra.mrb[0].mxu1 %vm1760_vm0, %v15530_v30  ;;  %v190_v36 = vpop.permute.xlu0 %189 }
  0xc6   :  { %vm313_vm5 = vcmp.eq.s32.totalorder %v193_v35, %v16663_v16  ;;  %vm312_vm6 = vcmp.eq.s32.totalorder %v190_v36, %v16663_v16  ;;  %641 = vperm.xlu1 %16405, %v505_v32   ;;  %638 = vperm.xlu0 %16404, %v504_v34   ;;  %v524_v32 = vld [vmem:[%s22626_s1 + $0x1b0] sm:$0xff] }
  0xc7   :  { %v15532_v38 = vsel %vm313_vm5, 1.0, %v22637_v21  ;;  %v15531_v39 = vsel %vm312_vm6, 1.0, %v22637_v21  ;;  %16343 = vmatpush1.bf16.msra.mxu1 %v16696_v33  ;;  %v509_v33 = vld [vmem:[%s22626_s1 + $0x138] sm:$0xff] }
  0xc8   :  { %16280 = vmatprep.mubr.msk.f32.mxu1 %vm1760_vm0, %v15531_v39  ;;  %16344 = vmatprep.subr.bf16.mxu1 %v16407_v2  ;;  %v527_v39 = vld [vmem:[%s22626_s1 + $0x1c8] sm:$0xff] }
  0xc9   :  { %v199_v43 = vpop.permute.xlu1 %198  ;;  %16281 = vmatmul.mubr.msk.f32.gmra.mrb[2].mxu1 %vm1760_vm0, %v15532_v38  ;;  %v196_v44 = vpop.permute.xlu0 %195 }
  0xca   :  { %vm315_vm7 = vcmp.eq.s32.totalorder %v199_v43, %v16663_v16  ;;  %vm314_vm8 = vcmp.eq.s32.totalorder %v196_v44, %v16663_v16  ;;  %647 = vperm.xlu1 %16405, %v507_v40   ;;  %644 = vperm.xlu0 %16404, %v506_v41   ;;  %v526_v40 = vld [vmem:[%s22626_s1 + $0x1c0] sm:$0xff] }
  0xcb   :  { %v15534_v46 = vsel %vm315_vm7, 1.0, %v22637_v21  ;;  %v15533_v47 = vsel %vm314_vm8, 1.0, %v22637_v21  ;;  %16346 = vmatpush1.bf16.msra.mxu1 %v16717_v42  ;;  %v511_v42 = vld [vmem:[%s22626_s1 + $0x148] sm:$0xff] }
  0xcc   :  { %16283 = vmatprep.mubr.msk.f32.mxu1 %vm1760_vm0, %v15533_v47  ;;  %16347 = vmatprep.subr.bf16.mxu1 %v16407_v2  ;;  %v529_v47 = vld [vmem:[%s22626_s1 + $0x1d8] sm:$0xff] }
  0xcd   :  { %v205_v49 = vpop.permute.xlu1 %204  ;;  %16284 = vmatmul.mubr.msk.f32.gmra.mrb[4].mxu1 %vm1760_vm0, %v15534_v46  ;;  %v202_v50 = vpop.permute.xlu0 %201 }
  0xce   :  { %vm317_vm9 = vcmp.eq.s32.totalorder %v205_v49, %v16663_v16  ;;  %vm316_vm10 = vcmp.eq.s32.totalorder %v202_v50, %v16663_v16  ;;  %653 = vperm.xlu1 %16405, %v509_v33   ;;  %650 = vperm.xlu0 %16404, %v508_v48   ;;  %v528_v33 = vld [vmem:[%s22626_s1 + $0x1d0] sm:$0xff] }
  0xcf   :  { %v15536_v52 = vsel %vm317_vm9, 1.0, %v22637_v21  ;;  %v15535_v53 = vsel %vm316_vm10, 1.0, %v22637_v21  ;;  %16349 = vmatpush1.bf16.msra.mxu1 %v16739_v51  ;;  %v513_v51 = vld [vmem:[%s22626_s1 + $0x158] sm:$0xff] }
  0xd0   :  { %16286 = vmatprep.mubr.msk.f32.mxu1 %vm1760_vm0, %v15535_v53  ;;  %16350 = vmatprep.subr.bf16.mxu1 %v16407_v2  ;;  %v531_v53 = vld [vmem:[%s22626_s1 + $0x1e8] sm:$0xff] }
  0xd1   :  { %v211_v55 = vpop.permute.xlu1 %210  ;;  %16287 = vmatmul.mubr.msk.f32.gmra.mrb[6].mxu1 %vm1760_vm0, %v15536_v52  ;;  %v208_v56 = vpop.permute.xlu0 %207 }
  0xd2   :  { %vm319_vm11 = vcmp.eq.s32.totalorder %v211_v55, %v16663_v16  ;;  %vm318_vm12 = vcmp.eq.s32.totalorder %v208_v56, %v16663_v16  ;;  %659 = vperm.xlu1 %16405, %v511_v42   ;;  %656 = vperm.xlu0 %16404, %v510_v54   ;;  %v530_v42 = vld [vmem:[%s22626_s1 + $0x1e0] sm:$0xff] }
  0xd3   :  { %v15538_v57 = vsel %vm319_vm11, 1.0, %v22637_v21  ;;  %v15537_v58 = vsel %vm318_vm12, 1.0, %v22637_v21  ;;  %16352 = vmatpush1.bf16.msra.mxu1 %v16761_v60  ;;  %v515_v60 = vld [vmem:[%s22626_s1 + $0x168] sm:$0xff] }
  0xd4   :  { %16289 = vmatprep.mubr.msk.f32.mxu1 %vm1760_vm0, %v15537_v58  ;;  %16353 = vmatprep.subr.bf16.mxu1 %v16407_v2  ;;  %v533_v58 = vld [vmem:[%s22626_s1 + $0x1f8] sm:$0xff] }
  0xd5   :  { %v217_v61 = vpop.permute.xlu1 %216  ;;  %16290 = vmatmul.mubr.msk.f32.gmra.mrb[8].mxu1 %vm1760_vm0, %v15538_v57  ;;  %v214_v62 = vpop.permute.xlu0 %213 }
  0xd6   :  { %vm321_vm13 = vcmp.eq.s32.totalorder %v217_v61, %v16663_v16  ;;  %vm320_vm14 = vcmp.eq.s32.totalorder %v214_v62, %v16663_v16  ;;  %665 = vperm.xlu1 %16405, %v513_v51   ;;  %662 = vperm.xlu0 %16404, %v512_v59   ;;  %v532_v51 = vld [vmem:[%s22626_s1 + $0x1f0] sm:$0xff]  ;;  %v17149_v62 = vadd.s32 128, %v16663_v16 }
  0xd7   :  { %v15540_v63 = vsel %vm321_vm13, 1.0, %v22637_v21  ;;  %v15539_v0 = vsel %vm320_vm14, 1.0, %v22637_v21  ;;  %16355 = vmatpush1.bf16.msra.mxu1 %v16783_v6  ;;  %v517_v6 = vld [vmem:[%s22626_s1 + $0x178] sm:$0xff] }
  0xd8   :  { %16292 = vmatprep.mubr.msk.f32.mxu1 %vm1760_vm0, %v15539_v0  ;;  %16356 = vmatprep.subr.bf16.mxu1 %v16407_v2 }
  0xd9   :  { %v223_v3 = vpop.permute.xlu1 %222  ;;  %16293 = vmatmul.mubr.msk.f32.gmra.mrb[10].mxu1 %vm1760_vm0, %v15540_v63  ;;  %v220_v4 = vpop.permute.xlu0 %219 }
  0xda   :  { %vm323_vm15 = vcmp.eq.s32.totalorder %v223_v3, %v16663_v16  ;;  %vm322_vm1 = vcmp.eq.s32.totalorder %v220_v4, %v16663_v16  ;;  %671 = vperm.xlu1 %16405, %v515_v60   ;;  %668 = vperm.xlu0 %16404, %v514_v1   ;;  %v1112_v60 = vld [vmem:[%s22628_s2 + $0x8] sm:$0xff]  ;;  %v1111_v1 = vld [vmem:[%s22628_s2] sm:$0xff] }
  0xdb   :  { %v15542_v5 = vsel %vm323_vm15, 1.0, %v22637_v21  ;;  %v15541_v7 = vsel %vm322_vm1, 1.0, %v22637_v21  ;;  %16358 = vmatpush1.bf16.msra.mxu1 %v16805_v17  ;;  %v519_v17 = vld [vmem:[%s22626_s1 + $0x188] sm:$0xff] }
  0xdc   :  { %16295 = vmatprep.mubr.msk.f32.mxu1 %vm1760_vm0, %v15541_v7  ;;  %16359 = vmatprep.subr.bf16.mxu1 %v16407_v2  ;;  %v1114_v7 = vld [vmem:[%s22628_s2 + $0x18] sm:$0xff] }
  0xdd   :  { %v229_v9 = vpop.permute.xlu1 %228  ;;  %16296 = vmatmul.mubr.msk.f32.gmra.mrb[12].mxu1 %vm1760_vm0, %v15542_v5  ;;  %v226_v10 = vpop.permute.xlu0 %225 }
  0xde   :  { %vm325_vm2 = vcmp.eq.s32.totalorder %v229_v9, %v16663_v16  ;;  %vm324_vm3 = vcmp.eq.s32.totalorder %v226_v10, %v16663_v16  ;;  %677 = vperm.xlu1 %16405, %v517_v6   ;;  %674 = vperm.xlu0 %16404, %v516_v8   ;;  %v1113_v6 = vld [vmem:[%s22628_s2 + $0x10] sm:$0xff]  ;;  %v22640_v9 = vmov 1.0  }
  0xdf   :  { %v15544_v11 = vsel %vm325_vm2, 1.0, %v22637_v21  ;;  %v15543_v12 = vsel %vm324_vm3, 1.0, %v22637_v21  ;;  %16361 = vmatpush1.bf16.msra.mxu1 %v16827_v27  ;;  %v521_v27 = vld [vmem:[%s22626_s1 + $0x198] sm:$0xff] }
  0xe0   :  { %16298 = vmatprep.mubr.msk.f32.mxu1 %vm1760_vm0, %v15543_v12  ;;  %16362 = vmatprep.subr.bf16.mxu1 %v16407_v2  ;;  %v520_v2 = vld [vmem:[%s22626_s1 + $0x190] sm:$0xff]  ;;  %v1116_v12 = vld [vmem:[%s22628_s2 + $0x28] sm:$0xff] }
  0xe1   :  { %v235_v15 = vpop.permute.xlu1 %234  ;;  %16299 = vmatmul.mubr.msk.f32.gmra.mrb[14].mxu1 %vm1760_vm0, %v15544_v11  ;;  %v232_v18 = vpop.permute.xlu0 %231 }
  0xe2   :  { %vm327_vm4 = vcmp.eq.s32.totalorder %v235_v15, %v16663_v16  ;;  %vm326_vm5 = vcmp.eq.s32.totalorder %v232_v18, %v16663_v16  ;;  %683 = vperm.xlu1 %16405, %v519_v17   ;;  %680 = vperm.xlu0 %16404, %v518_v14   ;;  %v1115_v17 = vld [vmem:[%s22628_s2 + $0x20] sm:$0xff] }
  0xe3   :  { %v15546_v19 = vsel %vm327_vm4, 1.0, %v22637_v21  ;;  %v15545_v20 = vsel %vm326_vm5, 1.0, %v22637_v21  ;;  %16364 = vmatpush1.bf16.msra.mxu1 %v16849_v37  ;;  %v523_v37 = vld [vmem:[%s22626_s1 + $0x1a8] sm:$0xff]  ;;  %vm2355_vm5 = vcmask 64512  }
  0xe4   :  { %16301 = vmatprep.mubr.msk.f32.mxu1 %vm1760_vm0, %v15545_v20  ;;  %2580 = vmatprep.subr.mxu1 %v22637_v21  ;;  %v1117_v20 = vld [vmem:[%s22628_s2 + $0x30] sm:$0xff] }
  0xe5   :  { %v241_v22 = vpop.permute.xlu1 %240  ;;  %16302 = vmatmul.mubr.msk.f32.gmra.mrb[16].mxu1 %vm1760_vm0, %v15546_v19  ;;  %v238_v23 = vpop.permute.xlu0 %237  ;;  %v1118_v19 = vld [vmem:[%s22628_s2 + $0x38] sm:$0xff] }
  0xe6   :  { %vm329_vm6 = vcmp.eq.s32.totalorder %v241_v22, %v16663_v16  ;;  %vm328_vm7 = vcmp.eq.s32.totalorder %v238_v23, %v16663_v16  ;;  %689 = vperm.xlu1 %16405, %v521_v27   ;;  %686 = vperm.xlu0 %16404, %v520_v2   ;;  %v1120_v23 = vld [vmem:[%s22628_s2 + $0x48] sm:$0xff] }
  0xe7   :  { %v15548_v24 = vsel %vm329_vm6, 1.0, %v22637_v21  ;;  %v15547_v25 = vsel %vm328_vm7, 1.0, %v22637_v21  ;;  %2581 = vmatpush1.msra.mxu1 %v16871_v45  ;;  %v525_v45 = vld [vmem:[%s22626_s1 + $0x1b8] sm:$0xff] }
  0xe8   :  { %16304 = vmatprep.mubr.msk.f32.mxu1 %vm1760_vm0, %v15547_v25 }
  0xe9   :  { %v247_v28 = vpop.permute.xlu1 %246  ;;  %16305 = vmatmul.mubr.msk.f32.gmra.mrb[18].mxu1 %vm1760_vm0, %v15548_v24  ;;  %v244_v29 = vpop.permute.xlu0 %243  ;;  %v1119_v24 = vld [vmem:[%s22628_s2 + $0x40] sm:$0xff] }
  0xea   :  { %vm331_vm8 = vcmp.eq.s32.totalorder %v247_v28, %v16663_v16  ;;  %vm330_vm9 = vcmp.eq.s32.totalorder %v244_v29, %v16663_v16  ;;  %695 = vperm.xlu1 %16405, %v523_v37   ;;  %692 = vperm.xlu0 %16404, %v522_v26   ;;  %v1122_v28 = vld [vmem:[%s22628_s2 + $0x58] sm:$0xff]  ;;  %v1121_v29 = vld [vmem:[%s22628_s2 + $0x50] sm:$0xff] }
  0xeb   :  { %v15550_v30 = vsel %vm331_vm8, 1.0, %v22637_v21  ;;  %v15549_v31 = vsel %vm330_vm9, 1.0, %v22637_v21 }
  0xec   :  { %16307 = vmatprep.mubr.msk.f32.mxu1 %vm1760_vm0, %v15549_v31 }
  0xed   :  { %v253_v34 = vpop.permute.xlu1 %252  ;;  %16308 = vmatmul.mubr.msk.f32.gmra.mrb[20].mxu1 %vm1760_vm0, %v15550_v30  ;;  %v250_v35 = vpop.permute.xlu0 %249 }
  0xee   :  { %vm333_vm10 = vcmp.eq.s32.totalorder %v253_v34, %v16663_v16  ;;  %vm332_vm11 = vcmp.eq.s32.totalorder %v250_v35, %v16663_v16  ;;  %701 = vperm.xlu1 %16405, %v525_v45   ;;  %698 = vperm.xlu0 %16404, %v524_v32   ;;  %v1124_v32 = vld [vmem:[%s22628_s2 + $0x68] sm:$0xff]  ;;  %v1123_v34 = vld [vmem:[%s22628_s2 + $0x60] sm:$0xff] }
  0xef   :  { %v15552_v36 = vsel %vm333_vm10, 1.0, %v22637_v21  ;;  %v15551_v38 = vsel %vm332_vm11, 1.0, %v22637_v21 }
  0xf0   :  { %16310 = vmatprep.mubr.msk.f32.mxu1 %vm1760_vm0, %v15551_v38 }
  0xf1   :  { %v259_v41 = vpop.permute.xlu1 %258  ;;  %16311 = vmatmul.mubr.msk.f32.gmra.mrb[22].mxu1 %vm1760_vm0, %v15552_v36  ;;  %v256_v43 = vpop.permute.xlu0 %255 }
  0xf2   :  { %vm335_vm12 = vcmp.eq.s32.totalorder %v259_v41, %v16663_v16  ;;  %vm334_vm13 = vcmp.eq.s32.totalorder %v256_v43, %v16663_v16  ;;  %707 = vperm.xlu1 %16405, %v527_v39   ;;  %704 = vperm.xlu0 %16404, %v526_v40   ;;  %v1126_v39 = vld [vmem:[%s22628_s2 + $0x78] sm:$0xff]  ;;  %v1125_v40 = vld [vmem:[%s22628_s2 + $0x70] sm:$0xff] }
  0xf3   :  { %v15554_v44 = vsel %vm335_vm12, 1.0, %v22637_v21  ;;  %v15553_v46 = vsel %vm334_vm13, 1.0, %v22637_v21 }
  0xf4   :  { %16313 = vmatprep.mubr.msk.f32.mxu1 %vm1760_vm0, %v15553_v46  ;;  %v1128_v46 = vld [vmem:[%s22628_s2 + $0x88] sm:$0xff] }
  0xf5   :  { %v265_v48 = vpop.permute.xlu1 %264  ;;  %16314 = vmatmul.mubr.msk.f32.gmra.mrb[24].mxu1 %vm1760_vm0, %v15554_v44  ;;  %v262_v49 = vpop.permute.xlu0 %261 }
  0xf6   :  { %vm337_vm14 = vcmp.eq.s32.totalorder %v265_v48, %v16663_v16  ;;  %vm336_vm15 = vcmp.eq.s32.totalorder %v262_v49, %v16663_v16  ;;  %713 = vperm.xlu1 %16405, %v529_v47   ;;  %710 = vperm.xlu0 %16404, %v528_v33   ;;  %v1127_v47 = vld [vmem:[%s22628_s2 + $0x80] sm:$0xff] }
  0xf7   :  { %v15556_v50 = vsel %vm337_vm14, 1.0, %v22637_v21  ;;  %v15555_v52 = vsel %vm336_vm15, 1.0, %v22637_v21 }
  0xf8   :  { %16316 = vmatprep.mubr.msk.f32.mxu1 %vm1760_vm0, %v15555_v52  ;;  %v1129_v52 = vld [vmem:[%s22628_s2 + $0x90] sm:$0xff] }
  0xf9   :  { %v271_v54 = vpop.permute.xlu1 %270  ;;  %16317 = vmatmul.mubr.msk.f32.gmra.mrb[26].mxu1 %vm1760_vm0, %v15556_v50  ;;  %v268_v55 = vpop.permute.xlu0 %267  ;;  %v1130_v50 = vld [vmem:[%s22628_s2 + $0x98] sm:$0xff] }
  0xfa   :  { %vm339_vm1 = vcmp.eq.s32.totalorder %v271_v54, %v16663_v16  ;;  %vm338_vm2 = vcmp.eq.s32.totalorder %v268_v55, %v16663_v16  ;;  %719 = vperm.xlu1 %16405, %v531_v53   ;;  %716 = vperm.xlu0 %16404, %v530_v42   ;;  %v1132_v55 = vld [vmem:[%s22628_s2 + $0xa8] sm:$0xff] }
  0xfb   :  { %v15558_v56 = vsel %vm339_vm1, 1.0, %v22637_v21  ;;  %v15557_v57 = vsel %vm338_vm2, 1.0, %v22637_v21 }
  0xfc   :  { %16319 = vmatprep.mubr.msk.f32.mxu1 %vm1760_vm0, %v15557_v57 }
  0xfd   :  { %v277_v59 = vpop.permute.xlu1 %276  ;;  %16320 = vmatmul.mubr.msk.f32.gmra.mrb[28].mxu1 %vm1760_vm0, %v15558_v56  ;;  %v274_v61 = vpop.permute.xlu0 %273  ;;  %v1131_v56 = vld [vmem:[%s22628_s2 + $0xa0] sm:$0xff] }
  0xfe   :  { %vm341_vm3 = vcmp.eq.s32.totalorder %v277_v59, %v16663_v16  ;;  %vm340_vm4 = vcmp.eq.s32.totalorder %v274_v61, %v16663_v16  ;;  %725 = vperm.xlu1 %16405, %v533_v58   ;;  %722 = vperm.xlu0 %16404, %v532_v51   ;;  %v1134_v59 = vld [vmem:[%s22628_s2 + $0xb8] sm:$0xff]  ;;  %v1133_v61 = vld [vmem:[%s22628_s2 + $0xb0] sm:$0xff] }
  0xff   :  { %v15560_v63 = vsel %vm341_vm3, 1.0, %v22637_v21  ;;  %v15559_v0 = vsel %vm340_vm4, 1.0, %v22637_v21 }
 0x100   :  { %16322 = vmatprep.mubr.msk.f32.mxu1 %vm1760_vm0, %v15559_v0 }
 0x101   :  { %v540_v3 = vpop.permute.xlu1 %539  ;;  %16323 = vmatmul.mubr.msk.f32.gmra.mrb[30].mxu1 %vm1760_vm0, %v15560_v63  ;;  %v537_v4 = vpop.permute.xlu0 %536 }
 0x102   :  { %vm728_vm6 = vcmp.eq.s32.totalorder %v537_v4, %v17149_v62  ;;  %1179 = vperm.xlu1 %16405, %v1112_v60   ;;  %1176 = vperm.xlu0 %16404, %v1111_v1   ;;  %vm730_vm7 = vcmp.eq.s32.totalorder %v540_v3, %v17149_v62  ;;  %vm727_vm0 = vcmp.eq.s32.totalorder %v537_v4, %v16663_v16  ;;  %v1136_v1 = vld [vmem:[%s22628_s2 + $0xc8] sm:$0xff] }
 0x103   :  { %v15562_v5 = vsel %vm728_vm6, 1.0, %v22637_v21  ;;  %v15564_v11 = vsel %vm730_vm7, 1.0, %v22637_v21  ;;  %vm729_vm9 = vcmp.eq.s32.totalorder %v540_v3, %v16663_v16  ;;  %v1135_v3 = vld [vmem:[%s22628_s2 + $0xc0] sm:$0xff] }
 0x104   :  { %15881 = vmatprep.mubr.msk.f32.mxu1 %vm2355_vm5, %v15562_v5 }
 0x105   :  { %v546_v8 = vpop.permute.xlu1 %545  ;;  %15882 = vmatmul.mubr.msk.f32.vlgmr.msra.gmra.mrb[32].mxu1 %vm727_vm0, %v22640_v9  ;;  %v543_v10 = vpop.permute.xlu0 %542 }
 0x106   :  { %1185 = vperm.xlu1 %16405, %v1114_v7   ;;  %1182 = vperm.xlu0 %16404, %v1113_v6   ;;  %vm732_vm8 = vcmp.eq.s32.totalorder %v543_v10, %v17149_v62  ;;  %vm734_vm10 = vcmp.eq.s32.totalorder %v546_v8, %v17149_v62  ;;  %vm731_vm11 = vcmp.eq.s32.totalorder %v543_v10, %v16663_v16  ;;  %v1138_v6 = vld [vmem:[%s22628_s2 + $0xd8] sm:$0xff] }
 0x107   :  { %15883 = vmatprep.mubr.msk.f32.mxu1 %vm2355_vm5, %v15564_v11  ;;  %v15566_v18 = vsel %vm732_vm8, 1.0, %v22637_v21  ;;  %v15568_v22 = vsel %vm734_vm10, 1.0, %v22637_v21  ;;  %vm733_vm13 = vcmp.eq.s32.totalorder %v546_v8, %v16663_v16  ;;  %v1137_v8 = vld [vmem:[%s22628_s2 + $0xd0] sm:$0xff] }
 0x109   :  { %v552_v14 = vpop.permute.xlu1 %551  ;;  %15884 = vmatmul.mubr.msk.f32.gmra.mrb[34].mxu1 %vm729_vm9, %v22640_v9  ;;  %v549_v15 = vpop.permute.xlu0 %548 }
 0x10a   :  { %1191 = vperm.xlu1 %16405, %v1116_v12   ;;  %1188 = vperm.xlu0 %16404, %v1115_v17   ;;  %vm736_vm12 = vcmp.eq.s32.totalorder %v549_v15, %v17149_v62  ;;  %vm738_vm14 = vcmp.eq.s32.totalorder %v552_v14, %v17149_v62  ;;  %vm735_vm15 = vcmp.eq.s32.totalorder %v549_v15, %v16663_v16  ;;  %v1140_v17 = vld [vmem:[%s22628_s2 + $0xe8] sm:$0xff] }
 0x10b   :  { %15885 = vmatprep.mubr.msk.f32.mxu1 %vm2355_vm5, %v15566_v18  ;;  %v15570_v26 = vsel %vm736_vm12, 1.0, %v22637_v21  ;;  %v15572_v45 = vsel %vm738_vm14, 1.0, %v22637_v21  ;;  %vm737_vm2 = vcmp.eq.s32.totalorder %v552_v14, %v16663_v16  ;;  %v1139_v14 = vld [vmem:[%s22628_s2 + $0xe0] sm:$0xff] }
 0x10d   :  { %v558_v27 = vpop.permute.xlu1 %557  ;;  %15886 = vmatmul.mubr.msk.f32.gmra.mrb[36].mxu1 %vm731_vm11, %v22640_v9  ;;  %v555_v2 = vpop.permute.xlu0 %554 }
 0x10e   :  { %1197 = vperm.xlu1 %16405, %v1118_v19   ;;  %1194 = vperm.xlu0 %16404, %v1117_v20   ;;  %vm740_vm1 = vcmp.eq.s32.totalorder %v555_v2, %v17149_v62  ;;  %vm742_vm3 = vcmp.eq.s32.totalorder %v558_v27, %v17149_v62  ;;  %vm739_vm4 = vcmp.eq.s32.totalorder %v555_v2, %v16663_v16  ;;  %v1142_v20 = vld [vmem:[%s22628_s2 + $0xf8] sm:$0xff] }
 0x10f   :  { %15887 = vmatprep.mubr.msk.f32.mxu1 %vm2355_vm5, %v15568_v22  ;;  %v15574_v38 = vsel %vm740_vm1, 1.0, %v22637_v21  ;;  %v15576_v44 = vsel %vm742_vm3, 1.0, %v22637_v21  ;;  %vm741_vm7 = vcmp.eq.s32.totalorder %v558_v27, %v16663_v16  ;;  %v1141_v27 = vld [vmem:[%s22628_s2 + $0xf0] sm:$0xff] }
 0x111   :  { %v17205_v25 = vpop.permute.xlu1 %563  ;;  %15888 = vmatmul.mubr.msk.f32.gmra.mrb[38].mxu1 %vm733_vm13, %v22640_v9  ;;  %v561_v37 = vpop.permute.xlu0 %560 }
 0x112   :  { %1203 = vperm.xlu1 %16405, %v1120_v23   ;;  %1200 = vperm.xlu0 %16404, %v1119_v24   ;;  %vm744_vm6 = vcmp.eq.s32.totalorder %v561_v37, %v17149_v62  ;;  %vm746_vm0 = vcmp.eq.s32.totalorder %v17205_v25, %v17149_v62  ;;  %vm743_vm8 = vcmp.eq.s32.totalorder %v561_v37, %v16663_v16  ;;  %v1144_v24 = vld [vmem:[%s22628_s2 + $0x108] sm:$0xff] }
 0x113   :  { %15889 = vmatprep.mubr.msk.f32.mxu1 %vm2355_vm5, %v15570_v26  ;;  %v15578_v49 = vsel %vm744_vm6, 1.0, %v22637_v21  ;;  %v15580_v54 = vsel %vm746_vm0, 1.0, %v22637_v21  ;;  %vm745_vm10 = vcmp.eq.s32.totalorder %v17205_v25, %v16663_v16  ;;  %v1143_v25 = vld [vmem:[%s22628_s2 + $0x100] sm:$0xff] }
 0x115   :  { %v17218_v30 = vpop.permute.xlu1 %569  ;;  %15890 = vmatmul.mubr.msk.f32.gmra.mrb[40].mxu1 %vm735_vm15, %v22640_v9  ;;  %v17221_v31 = vpop.permute.xlu0 %566 }
 0x116   :  { %1209 = vperm.xlu1 %16405, %v1122_v28   ;;  %1206 = vperm.xlu0 %16404, %v1121_v29   ;;  %vm748_vm9 = vcmp.eq.s32.totalorder %v17221_v31, %v17149_v62  ;;  %vm750_vm11 = vcmp.eq.s32.totalorder %v17218_v30, %v17149_v62  ;;  %vm747_vm12 = vcmp.eq.s32.totalorder %v17221_v31, %v16663_v16  ;;  %v1146_v29 = vld [vmem:[%s22628_s2 + $0x118] sm:$0xff] }
 0x117   :  { %15891 = vmatprep.mubr.msk.f32.mxu1 %vm2355_vm5, %v15572_v45  ;;  %v15582_v51 = vsel %vm748_vm9, 1.0, %v22637_v21  ;;  %v15584_v60 = vsel %vm750_vm11, 1.0, %v22637_v21  ;;  %vm749_vm14 = vcmp.eq.s32.totalorder %v17218_v30, %v16663_v16  ;;  %v1145_v30 = vld [vmem:[%s22628_s2 + $0x110] sm:$0xff] }
 0x119   :  { %v17233_v35 = vpop.permute.xlu1 %575  ;;  %15892 = vmatmul.mubr.msk.f32.gmra.mrb[42].mxu1 %vm737_vm2, %v22640_v9  ;;  %v17236_v36 = vpop.permute.xlu0 %572 }
 0x11a   :  { %1215 = vperm.xlu1 %16405, %v1124_v32   ;;  %1212 = vperm.xlu0 %16404, %v1123_v34   ;;  %vm752_vm13 = vcmp.eq.s32.totalorder %v17236_v36, %v17149_v62  ;;  %vm754_vm15 = vcmp.eq.s32.totalorder %v17233_v35, %v17149_v62  ;;  %vm751_vm1 = vcmp.eq.s32.totalorder %v17236_v36, %v16663_v16  ;;  %v1148_v34 = vld [vmem:[%s22628_s2 + $0x128] sm:$0xff] }
 0x11b   :  { %15893 = vmatprep.mubr.msk.f32.mxu1 %vm2355_vm5, %v15574_v38  ;;  %v15586_v7 = vsel %vm752_vm13, 1.0, %v22637_v21  ;;  %v15588_v12 = vsel %vm754_vm15, 1.0, %v22637_v21  ;;  %vm753_vm3 = vcmp.eq.s32.totalorder %v17233_v35, %v16663_v16  ;;  %v1147_v35 = vld [vmem:[%s22628_s2 + $0x120] sm:$0xff] }
 0x11d   :  { %v17248_v41 = vpop.permute.xlu1 %581  ;;  %15894 = vmatmul.mubr.msk.f32.gmra.mrb[44].mxu1 %vm739_vm4, %v22640_v9  ;;  %v17251_v43 = vpop.permute.xlu0 %578 }
 0x11e   :  { %1221 = vperm.xlu1 %16405, %v1126_v39   ;;  %1218 = vperm.xlu0 %16404, %v1125_v40   ;;  %vm756_vm2 = vcmp.eq.s32.totalorder %v17251_v43, %v17149_v62  ;;  %vm758_vm4 = vcmp.eq.s32.totalorder %v17248_v41, %v17149_v62  ;;  %vm755_vm6 = vcmp.eq.s32.totalorder %v17251_v43, %v16663_v16  ;;  %v1150_v40 = vld [vmem:[%s22628_s2 + $0x138] sm:$0xff] }
 0x11f   :  { %15895 = vmatprep.mubr.msk.f32.mxu1 %vm2355_vm5, %v15576_v44  ;;  %v15590_v19 = vsel %vm756_vm2, 1.0, %v22637_v21  ;;  %v15592_v23 = vsel %vm758_vm4, 1.0, %v22637_v21  ;;  %vm757_vm0 = vcmp.eq.s32.totalorder %v17248_v41, %v16663_v16  ;;  %v1149_v41 = vld [vmem:[%s22628_s2 + $0x130] sm:$0xff] }
 0x121   :  { %v17263_v33 = vpop.permute.xlu1 %587  ;;  %15896 = vmatmul.mubr.msk.f32.gmra.mrb[46].mxu1 %vm741_vm7, %v22640_v9  ;;  %v17266_v48 = vpop.permute.xlu0 %584 }
 0x122   :  { %1227 = vperm.xlu1 %16405, %v1128_v46   ;;  %1224 = vperm.xlu0 %16404, %v1127_v47   ;;  %vm760_vm7 = vcmp.eq.s32.totalorder %v17266_v48, %v17149_v62  ;;  %vm759_vm9 = vcmp.eq.s32.totalorder %v17266_v48, %v16663_v16  ;;  %vm761_vm11 = vcmp.eq.s32.totalorder %v17263_v33, %v16663_v16  ;;  %v1152_v47 = vld [vmem:[%s22628_s2 + $0x148] sm:$0xff] }
 0x123   :  { %15897 = vmatprep.mubr.msk.f32.mxu1 %vm2355_vm5, %v15578_v49  ;;  %v15594_v28 = vsel %vm760_vm7, 1.0, %v22637_v21 }
 0x125   :  { %v17279_v53 = vpop.permute.xlu1 %593  ;;  %15898 = vmatmul.mubr.msk.f32.gmra.mrb[48].mxu1 %vm743_vm8, %v22640_v9  ;;  %v17282_v42 = vpop.permute.xlu0 %590  ;;  %vm762_vm8 = vcmp.eq.s32.totalorder %v17263_v33, %v17149_v62  ;;  %v1151_v33 = vld [vmem:[%s22628_s2 + $0x140] sm:$0xff] }
 0x126   :  { %1233 = vperm.xlu1 %16405, %v1130_v50   ;;  %1230 = vperm.xlu0 %16404, %v1129_v52   ;;  %v15596_v32 = vsel %vm762_vm8, 1.0, %v22637_v21  ;;  %vm763_vm13 = vcmp.eq.s32.totalorder %v17282_v42, %v16663_v16  ;;  %vm765_vm15 = vcmp.eq.s32.totalorder %v17279_v53, %v16663_v16  ;;  %v1154_v52 = vld [vmem:[%s22628_s2 + $0x158] sm:$0xff] }
 0x127   :  { %15899 = vmatprep.mubr.msk.f32.mxu1 %vm2355_vm5, %v15580_v54 }
 0x129   :  { %v17296_v57 = vpop.permute.xlu1 %599  ;;  %15900 = vmatmul.mubr.msk.f32.gmra.mrb[50].mxu1 %vm745_vm10, %v22640_v9  ;;  %v17299_v58 = vpop.permute.xlu0 %596  ;;  %vm764_vm10 = vcmp.eq.s32.totalorder %v17282_v42, %v17149_v62 }
 0x12a   :  { %1239 = vperm.xlu1 %16405, %v1132_v55   ;;  %1236 = vperm.xlu0 %16404, %v1131_v56   ;;  %v15598_v39 = vsel %vm764_vm10, 1.0, %v22637_v21  ;;  %vm767_vm2 = vcmp.eq.s32.totalorder %v17299_v58, %v16663_v16  ;;  %v1156_v56 = vld [vmem:[%s22628_s2 + $0x168] sm:$0xff]  ;;  %vm769_vm4 = vcmp.eq.s32.totalorder %v17296_v57, %v16663_v16 }
 0x12b   :  { %15901 = vmatprep.mubr.msk.f32.mxu1 %vm2355_vm5, %v15582_v51 }
 0x12d   :  { %v17313_v63 = vpop.permute.xlu1 %605  ;;  %15902 = vmatmul.mubr.msk.f32.gmra.mrb[52].mxu1 %vm747_vm12, %v22640_v9  ;;  %v17316_v0 = vpop.permute.xlu0 %602  ;;  %vm766_vm12 = vcmp.eq.s32.totalorder %v17279_v53, %v17149_v62  ;;  %v1153_v53 = vld [vmem:[%s22628_s2 + $0x150] sm:$0xff] }
 0x12e   :  { %1245 = vperm.xlu1 %16405, %v1134_v59   ;;  %1242 = vperm.xlu0 %16404, %v1133_v61   ;;  %v15600_v46 = vsel %vm766_vm12, 1.0, %v22637_v21  ;;  %vm771_vm7 = vcmp.eq.s32.totalorder %v17316_v0, %v16663_v16  ;;  %vm773_vm8 = vcmp.eq.s32.totalorder %v17313_v63, %v16663_v16 }
 0x12f   :  { %15903 = vmatprep.mubr.msk.f32.mxu1 %vm2355_vm5, %v15584_v60 }
 0x131   :  { %v17330_v4 = vpop.permute.xlu1 %611  ;;  %15904 = vmatmul.mubr.msk.f32.gmra.mrb[54].mxu1 %vm749_vm14, %v22640_v9  ;;  %v17333_v5 = vpop.permute.xlu0 %608  ;;  %vm768_vm14 = vcmp.eq.s32.totalorder %v17299_v58, %v17149_v62  ;;  %v1155_v58 = vld [vmem:[%s22628_s2 + $0x160] sm:$0xff] }
 0x132   :  { %1251 = vperm.xlu1 %16405, %v1136_v1   ;;  %1248 = vperm.xlu0 %16404, %v1135_v3   ;;  %v15602_v50 = vsel %vm768_vm14, 1.0, %v22637_v21  ;;  %v1157_v1 = vld [vmem:[%s22628_s2 + $0x170] sm:$0xff]  ;;  %vm775_vm10 = vcmp.eq.s32.totalorder %v17333_v5, %v16663_v16  ;;  %vm777_vm12 = vcmp.eq.s32.totalorder %v17330_v4, %v16663_v16 }
 0x133   :  { %15905 = vmatprep.mubr.msk.f32.mxu1 %vm2355_vm5, %v15586_v7 }
 0x135   :  { %v17347_v10 = vpop.permute.xlu1 %617  ;;  %15906 = vmatmul.mubr.msk.f32.gmra.mrb[56].mxu1 %vm751_vm1, %v22640_v9  ;;  %v17350_v11 = vpop.permute.xlu0 %614  ;;  %vm770_vm1 = vcmp.eq.s32.totalorder %v17296_v57, %v17149_v62  ;;  %v1158_v57 = vld [vmem:[%s22628_s2 + $0x178] sm:$0xff] }
 0x136   :  { %1257 = vperm.xlu1 %16405, %v1138_v6   ;;  %1254 = vperm.xlu0 %16404, %v1137_v8   ;;  %v15604_v55 = vsel %vm770_vm1, 1.0, %v22637_v21  ;;  %vm779_vm14 = vcmp.eq.s32.totalorder %v17350_v11, %v16663_v16  ;;  %vm781_vm1 = vcmp.eq.s32.totalorder %v17347_v10, %v16663_v16 }
 0x137   :  { %15907 = vmatprep.mubr.msk.f32.mxu1 %vm2355_vm5, %v15588_v12 }
 0x139   :  { %v17364_v15 = vpop.permute.xlu1 %623  ;;  %15908 = vmatmul.mubr.msk.f32.gmra.mrb[58].mxu1 %vm753_vm3, %v22640_v9  ;;  %v17367_v18 = vpop.permute.xlu0 %620  ;;  %vm772_vm3 = vcmp.eq.s32.totalorder %v17316_v0, %v17149_v62  ;;  %v1160_v0 = vld [vmem:[%s22628_s2 + $0x188] sm:$0xff] }
 0x13a   :  { %1263 = vperm.xlu1 %16405, %v1140_v17   ;;  %1260 = vperm.xlu0 %16404, %v1139_v14   ;;  %v15606_v61 = vsel %vm772_vm3, 1.0, %v22637_v21  ;;  %v1159_v17 = vld [vmem:[%s22628_s2 + $0x180] sm:$0xff]  ;;  %vm783_vm3 = vcmp.eq.s32.totalorder %v17367_v18, %v16663_v16 }
 0x13b   :  { %15909 = vmatprep.mubr.msk.f32.mxu1 %vm2355_vm5, %v15590_v19 }
 0x13d   :  { %v17381_v2 = vpop.permute.xlu1 %629  ;;  %15910 = vmatmul.mubr.msk.f32.gmra.mrb[60].mxu1 %vm755_vm6, %v22640_v9  ;;  %v17384_v22 = vpop.permute.xlu0 %626  ;;  %vm774_vm6 = vcmp.eq.s32.totalorder %v17313_v63, %v17149_v62  ;;  %v1162_v63 = vld [vmem:[%s22628_s2 + $0x198] sm:$0xff] }
 0x13e   :  { %1269 = vperm.xlu1 %16405, %v1142_v20   ;;  %1266 = vperm.xlu0 %16404, %v1141_v27   ;;  %v15608_v8 = vsel %vm774_vm6, 1.0, %v22637_v21  ;;  %vm785_vm6 = vcmp.eq.s32.totalorder %v17364_v15, %v16663_v16 }
 0x13f   :  { %15911 = vmatprep.mubr.msk.f32.mxu1 %vm2355_vm5, %v15592_v23 }
 0x141   :  { %v17398_v37 = vpop.permute.xlu1 %635  ;;  %15912 = vmatmul.mubr.msk.f32.gmra.mrb[62].mxu1 %vm757_vm0, %v22640_v9  ;;  %v17401_v26 = vpop.permute.xlu0 %632  ;;  %vm776_vm0 = vcmp.eq.s32.totalorder %v17333_v5, %v17149_v62  ;;  %v1164_v5 = vld [vmem:[%s22628_s2 + $0x1a8] sm:$0xff] }
 0x142   :  { %1275 = vperm.xlu1 %16405, %v1144_v24   ;;  %1272 = vperm.xlu0 %16404, %v1143_v25   ;;  %v15610_v27 = vsel %vm776_vm0, 1.0, %v22637_v21  ;;  %v1161_v24 = vld [vmem:[%s22628_s2 + $0x190] sm:$0xff]  ;;  %vm787_vm0 = vcmp.eq.s32.totalorder %v17384_v22, %v16663_v16 }
 0x143   :  { %15913 = vmatprep.mubr.msk.f32.mxu1 %vm2355_vm5, %v15594_v28 }
 0x145   :  { %v17415_v31 = vpop.permute.xlu1 %641  ;;  %15914 = vmatmul.mubr.msk.f32.gmra.mrb[64].mxu1 %vm759_vm9, %v22640_v9  ;;  %v17418_v45 = vpop.permute.xlu0 %638  ;;  %vm778_vm9 = vcmp.eq.s32.totalorder %v17330_v4, %v17149_v62  ;;  %v1166_v4 = vld [vmem:[%s22628_s2 + $0x1b8] sm:$0xff] }
 0x146   :  { %1281 = vperm.xlu1 %16405, %v1146_v29   ;;  %1278 = vperm.xlu0 %16404, %v1145_v30   ;;  %v15612_v30 = vsel %vm778_vm9, 1.0, %v22637_v21  ;;  %vm789_vm9 = vcmp.eq.s32.totalorder %v17381_v2, %v16663_v16 }
 0x147   :  { %15915 = vmatprep.mubr.msk.f32.mxu1 %vm2355_vm5, %v15596_v32 }
 0x149   :  { %v17432_v36 = vpop.permute.xlu1 %647  ;;  %15916 = vmatmul.mubr.msk.f32.gmra.mrb[66].mxu1 %vm761_vm11, %v22640_v9  ;;  %v17435_v38 = vpop.permute.xlu0 %644  ;;  %vm780_vm11 = vcmp.eq.s32.totalorder %v17350_v11, %v17149_v62  ;;  %v1168_v11 = vld [vmem:[%s22628_s2 + $0x1c8] sm:$0xff] }
 0x14a   :  { %1287 = vperm.xlu1 %16405, %v1148_v34   ;;  %1284 = vperm.xlu0 %16404, %v1147_v35   ;;  %v1163_v34 = vld [vmem:[%s22628_s2 + $0x1a0] sm:$0xff] }
 0x14b   :  { %15917 = vmatprep.mubr.msk.f32.mxu1 %vm2355_vm5, %v15598_v39 }
 0x14d   :  { %v17449_v43 = vpop.permute.xlu1 %653  ;;  %15918 = vmatmul.mubr.msk.f32.gmra.mrb[68].mxu1 %vm763_vm13, %v22640_v9  ;;  %v17452_v44 = vpop.permute.xlu0 %650  ;;  %vm782_vm13 = vcmp.eq.s32.totalorder %v17347_v10, %v17149_v62  ;;  %v1170_v10 = vld [vmem:[%s22628_s2 + $0x1d8] sm:$0xff] }
 0x14e   :  { %1293 = vperm.xlu1 %16405, %v1150_v40   ;;  %1290 = vperm.xlu0 %16404, %v1149_v41   ;;  %v15614_v41 = vsel %vm780_vm11, 1.0, %v22637_v21 }
 0x14f   :  { %15919 = vmatprep.mubr.msk.f32.mxu1 %vm2355_vm5, %v15600_v46 }
 0x151   :  { %v17466_v48 = vpop.permute.xlu1 %659  ;;  %15920 = vmatmul.mubr.msk.f32.gmra.mrb[70].mxu1 %vm765_vm15, %v22640_v9  ;;  %v17469_v49 = vpop.permute.xlu0 %656  ;;  %vm784_vm15 = vcmp.eq.s32.totalorder %v17367_v18, %v17149_v62  ;;  %v1172_v18 = vld [vmem:[%s22628_s2 + $0x1e8] sm:$0xff] }
 0x152   :  { %1299 = vperm.xlu1 %16405, %v1152_v47   ;;  %1296 = vperm.xlu0 %16404, %v1151_v33   ;;  %v1165_v47 = vld [vmem:[%s22628_s2 + $0x1b0] sm:$0xff] }
 0x153   :  { %15921 = vmatprep.mubr.msk.f32.mxu1 %vm2355_vm5, %v15602_v50 }
 0x155   :  { %v17483_v42 = vpop.permute.xlu1 %665  ;;  %15922 = vmatmul.mubr.msk.f32.gmra.mrb[72].mxu1 %vm767_vm2, %v22640_v9  ;;  %v17486_v54 = vpop.permute.xlu0 %662  ;;  %vm786_vm2 = vcmp.eq.s32.totalorder %v17364_v15, %v17149_v62  ;;  %v1174_v15 = vld [vmem:[%s22628_s2 + $0x1f8] sm:$0xff] }
 0x156   :  { %1305 = vperm.xlu1 %16405, %v1154_v52   ;;  %1302 = vperm.xlu0 %16404, %v1153_v53   ;;  %v15616_v53 = vsel %vm782_vm13, 1.0, %v22637_v21 }
 0x157   :  { %15923 = vmatprep.mubr.msk.f32.mxu1 %vm2355_vm5, %v15604_v55 }
 0x159   :  { %v17500_v51 = vpop.permute.xlu1 %671  ;;  %15924 = vmatmul.mubr.msk.f32.gmra.mrb[74].mxu1 %vm769_vm4, %v22640_v9  ;;  %v17503_v59 = vpop.permute.xlu0 %668  ;;  %vm788_vm4 = vcmp.eq.s32.totalorder %v17384_v22, %v17149_v62 }
 0x15a   :  { %1311 = vperm.xlu1 %16405, %v1156_v56   ;;  %1308 = vperm.xlu0 %16404, %v1155_v58   ;;  %v1167_v56 = vld [vmem:[%s22628_s2 + $0x1c0] sm:$0xff] }
 0x15b   :  { %15925 = vmatprep.mubr.msk.f32.mxu1 %vm2355_vm5, %v15606_v61  ;;  %v17509_v60 = vpop.f32.mrb[0].mxu0 }
 0x15c   :  { %v17517_v3 = vpop.f32.mrb[1].mxu0 }
 0x15d   :  { %v17521_v7 = vpop.permute.xlu1 %677  ;;  %15926 = vmatmul.mubr.msk.f32.gmra.mrb[76].mxu1 %vm771_vm7, %v22640_v9  ;;  %v17524_v6 = vpop.permute.xlu0 %674  ;;  %vm790_vm7 = vcmp.eq.s32.totalorder %v17381_v2, %v17149_v62 }
 0x15e   :  { %1317 = vperm.xlu1 %16405, %v1158_v57   ;;  %1314 = vperm.xlu0 %16404, %v1157_v1   ;;  %v15618_v1 = vsel %vm784_vm15, 1.0, %v22637_v21  ;;  %vm796_vm15 = vcmp.eq.s32.totalorder %v17418_v45, %v17149_v62 }
 0x15f   :  { %15927 = vmatprep.mubr.msk.f32.mxu1 %vm2355_vm5, %v15608_v8  ;;  %v17530_v12 = vpop.f32.mrb[2].mxu0 }
 0x160   :  { %v17538_v14 = vpop.f32.mrb[3].mxu0 }
 0x161   :  { %v17542_v19 = vpop.permute.xlu1 %683  ;;  %15928 = vmatmul.mubr.msk.f32.gmra.mrb[78].mxu1 %vm773_vm8, %v22640_v9  ;;  %v17545_v20 = vpop.permute.xlu0 %680  ;;  %vm792_vm8 = vcmp.eq.s32.totalorder %v17401_v26, %v17149_v62 }
 0x162   :  { %1323 = vperm.xlu1 %16405, %v1160_v0   ;;  %1320 = vperm.xlu0 %16404, %v1159_v17   ;;  %v1169_v0 = vld [vmem:[%s22628_s2 + $0x1d0] sm:$0xff] }
 0x163   :  { %15929 = vmatprep.mubr.msk.f32.mxu1 %vm2355_vm5, %v15610_v27  ;;  %v17551_v23 = vpop.f32.mrb[4].mxu0 }
 0x164   :  { %v17559_v25 = vpop.f32.mrb[5].mxu0 }
 0x165   :  { %v17563_v28 = vpop.permute.xlu1 %689  ;;  %15930 = vmatmul.mubr.msk.f32.gmra.mrb[80].mxu1 %vm775_vm10, %v22640_v9  ;;  %v17566_v29 = vpop.permute.xlu0 %686  ;;  %vm794_vm10 = vcmp.eq.s32.totalorder %v17398_v37, %v17149_v62 }
 0x166   :  { %1329 = vperm.xlu1 %16405, %v1162_v63   ;;  %1326 = vperm.xlu0 %16404, %v1161_v24   ;;  %v15620_v24 = vsel %vm786_vm2, 1.0, %v22637_v21  ;;  %vm793_vm2 = vcmp.eq.s32.totalorder %v17398_v37, %v16663_v16 }
 0x167   :  { %15931 = vmatprep.mubr.msk.f32.mxu1 %vm2355_vm5, %v15612_v30  ;;  %v17572_v32 = vpop.f32.mrb[6].mxu0 }
 0x168   :  { %v17580_v35 = vpop.f32.mrb[7].mxu0 }
 0x169   :  { %v17584_v39 = vpop.permute.xlu1 %695  ;;  %15932 = vmatmul.mubr.msk.f32.gmra.mrb[82].mxu1 %vm777_vm12, %v22640_v9  ;;  %v17587_v40 = vpop.permute.xlu0 %692 }
 0x16a   :  { %1335 = vperm.xlu1 %16405, %v1164_v5   ;;  %1332 = vperm.xlu0 %16404, %v1163_v34   ;;  %v1171_v5 = vld [vmem:[%s22628_s2 + $0x1e0] sm:$0xff] }
 0x16b   :  { %15933 = vmatprep.mubr.msk.f32.mxu1 %vm2355_vm5, %v15614_v41  ;;  %v17593_v46 = vpop.f32.mrb[8].mxu0 }
 0x16c   :  { %v17601_v33 = vpop.f32.mrb[9].mxu0 }
 0x16d   :  { %v17605_v50 = vpop.permute.xlu1 %701  ;;  %15934 = vmatmul.mubr.msk.f32.gmra.mrb[84].mxu1 %vm779_vm14, %v22640_v9  ;;  %v17608_v52 = vpop.permute.xlu0 %698  ;;  %vm791_vm14 = vcmp.eq.s32.totalorder %v17401_v26, %v16663_v16 }
 0x16e   :  { %1341 = vperm.xlu1 %16405, %v1166_v4   ;;  %1338 = vperm.xlu0 %16404, %v1165_v47   ;;  %v15622_v47 = vsel %vm788_vm4, 1.0, %v22637_v21  ;;  %vm798_vm4 = vcmp.eq.s32.totalorder %v17415_v31, %v17149_v62 }
 0x16f   :  { %15935 = vmatprep.mubr.msk.f32.mxu1 %vm2355_vm5, %v15616_v53  ;;  %v17614_v55 = vpop.f32.mrb[10].mxu0 }
 0x170   :  { %v17622_v58 = vpop.f32.mrb[11].mxu0 }
 0x171   :  { %v17626_v61 = vpop.permute.xlu1 %707  ;;  %15936 = vmatmul.mubr.msk.f32.gmra.mrb[86].mxu1 %vm781_vm1, %v22640_v9  ;;  %v17629_v57 = vpop.permute.xlu0 %704 }
 0x172   :  { %1347 = vperm.xlu1 %16405, %v1168_v11   ;;  %1344 = vperm.xlu0 %16404, %v1167_v56   ;;  %v1173_v11 = vld [vmem:[%s22628_s2 + $0x1f0] sm:$0xff] }
 0x173   :  { %15937 = vmatprep.mubr.msk.f32.mxu1 %vm2355_vm5, %v15618_v1  ;;  %v17635_v8 = vpop.f32.mrb[12].mxu0 }
 0x174   :  { %v17643_v17 = vpop.f32.mrb[13].mxu0 }
 0x175   :  { %v17647_v27 = vpop.permute.xlu1 %713  ;;  %15938 = vmatmul.mubr.msk.f32.gmra.mrb[88].mxu1 %vm783_vm3, %v22640_v9  ;;  %v17650_v63 = vpop.permute.xlu0 %710 }
 0x176   :  { %1353 = vperm.xlu1 %16405, %v1170_v10   ;;  %1350 = vperm.xlu0 %16404, %v1169_v0   ;;  %v15624_v0 = vsel %vm790_vm7, 1.0, %v22637_v21  ;;  %vm795_vm7 = vcmp.eq.s32.totalorder %v17418_v45, %v16663_v16 }
 0x177   :  { %15939 = vmatprep.mubr.msk.f32.mxu1 %vm2355_vm5, %v15620_v24  ;;  %v17656_v30 = vpop.f32.mrb[14].mxu0 }
 0x178   :  { %v17664_v34 = vpop.f32.mrb[15].mxu0 }
 0x179   :  { %v17668_v41 = vpop.permute.xlu1 %719  ;;  %15940 = vmatmul.mubr.msk.f32.gmra.mrb[90].mxu1 %vm785_vm6, %v22640_v9  ;;  %v17671_v4 = vpop.permute.xlu0 %716 }
 0x17a   :  { %1359 = vperm.xlu1 %16405, %v1172_v18   ;;  %1356 = vperm.xlu0 %16404, %v1171_v5  }
 0x17b   :  { %15941 = vmatprep.mubr.msk.f32.mxu1 %vm2355_vm5, %v15622_v47  ;;  %v17677_v53 = vpop.f32.mrb[16].mxu0  ;;  %v15626_v47 = vsel %vm792_vm8, 1.0, %v22637_v21  ;;  %vm800_vm8 = vcmp.eq.s32.totalorder %v17435_v38, %v17149_v62 }
 0x17c   :  { %v17685_v56 = vpop.f32.mrb[17].mxu0 }
 0x17d   :  { %v17689_v1 = vpop.permute.xlu1 %725  ;;  %15942 = vmatmul.mubr.msk.f32.gmra.mrb[92].mxu1 %vm787_vm0, %v22640_v9  ;;  %v17692_v10 = vpop.permute.xlu0 %722 }
 0x17e   :  { %1365 = vperm.xlu1 %16405, %v1174_v15   ;;  %1362 = vperm.xlu0 %16404, %v1173_v11  }
 0x17f   :  { %15943 = vmatprep.mubr.msk.f32.mxu1 %vm2355_vm5, %v15624_v0  ;;  %v17698_v24 = vpop.f32.mrb[18].mxu0 }
 0x180   :  { %v17700_v18 = vpop.f32.mrb[19].mxu0 }
 0x181   :  { %v1180_v22 = vpop.permute.xlu1 %1179  ;;  %15944 = vmatmul.mubr.msk.f32.gmra.mrb[94].mxu1 %vm789_vm9, %v22640_v9  ;;  %v1177_v5 = vpop.permute.xlu0 %1176 }
 0x182   :  { %vm1370_vm11 = vcmp.eq.s32.totalorder %v1180_v22, %v17149_v62  ;;  %vm1368_vm12 = vcmp.eq.s32.totalorder %v1177_v5, %v17149_v62  ;;  %15945 = vmatprep.mubr.msk.f32.mxu1 %vm2355_vm5, %v15626_v47  ;;  %vm1367_vm13 = vcmp.eq.s32.totalorder %v1177_v5, %v16663_v16  ;;  %v15628_v47 = vsel %vm794_vm10, 1.0, %v22637_v21 }
 0x183   :  { %v17711_v15 = vpop.f32.mrb[20].mxu0  ;;  %v15690_v11 = vsel %vm1368_vm12, 1.0, %v22637_v21  ;;  %v15692_v13 = vsel %vm1370_vm11, 1.0, %v22637_v21  ;;  %vm1369_vm3 = vcmp.eq.s32.totalorder %v1180_v22, %v16663_v16  ;;  %vm797_vm10 = vcmp.eq.s32.totalorder %v17415_v31, %v16663_v16 }
 0x184   :  { %22766 = vst [vmem:[#allocation3_spill] sm:$0xff] %v17711_v15  ;;  %v17715_v2 = vpop.f32.mrb[21].mxu0  ;;  %16009 = vmatprep.mubr.msk.f32.mxu0 %vm2355_vm5, %v15690_v11  ;;  %v15630_v15 = vsel %vm796_vm15, 1.0, %v22637_v21  ;;  %vm802_vm12 = vcmp.eq.s32.totalorder %v17432_v36, %v17149_v62 }
 0x185   :  { %22767 = vst [vmem:[#allocation4_spill] sm:$0xff] %v17715_v2  ;;  %15946 = vmatmul.mubr.msk.f32.gmra.mrb[96].mxu1 %vm791_vm14, %v22640_v9  ;;  %16010 = vmatmul.mubr.msk.f32.vlgmr.msra.gmra.mrb[32].mxu0 %vm1367_vm13, %v22640_v9  ;;  %v1183_v0 = vpop.permute.xlu0 %1182  ;;  %v1186_v5 = vpop.permute.xlu1 %1185  ;;  %vm799_vm14 = vcmp.eq.s32.totalorder %v17435_v38, %v16663_v16 }
 0x186   :  { %vm1372_vm1 = vcmp.eq.s32.totalorder %v1183_v0, %v17149_v62  ;;  %15947 = vmatprep.mubr.msk.f32.mxu1 %vm2355_vm5, %v15628_v47  ;;  %16011 = vmatprep.mubr.msk.f32.mxu0 %vm2355_vm5, %v15692_v13  ;;  %vm1374_vm6 = vcmp.eq.s32.totalorder %v1186_v5, %v17149_v62  ;;  %vm1371_vm0 = vcmp.eq.s32.totalorder %v1183_v0, %v16663_v16 }
 0x187   :  { %v17729_v26 = vpop.f32.mrb[22].mxu0  ;;  %v15694_v47 = vsel %vm1372_vm1, 1.0, %v22637_v21  ;;  %vm1373_vm11 = vcmp.eq.s32.totalorder %v1186_v5, %v16663_v16  ;;  %vm804_vm1 = vcmp.eq.s32.totalorder %v17452_v44, %v17149_v62 }
 0x188   :  { %22768 = vst [vmem:[#allocation5_spill] sm:$0xff] %v17729_v26  ;;  %v17731_v11 = vpop.f32.mrb[23].mxu0  ;;  %v15632_v26 = vsel %vm798_vm4, 1.0, %v22637_v21 }
 0x189   :  { %22769 = vst [vmem:[#allocation6_spill] sm:$0xff] %v17731_v11  ;;  %15948 = vmatmul.mubr.msk.f32.gmra.mrb[98].mxu1 %vm793_vm2, %v22640_v9  ;;  %16012 = vmatmul.mubr.msk.f32.gmra.mrb[34].mxu0 %vm1369_vm3, %v22640_v9  ;;  %v1189_v13 = vpop.permute.xlu0 %1188  ;;  %v1192_v45 = vpop.permute.xlu1 %1191  ;;  %vm801_vm3 = vcmp.eq.s32.totalorder %v17432_v36, %v16663_v16 }
 0x18a   :  { %15949 = vmatprep.mubr.msk.f32.mxu1 %vm2355_vm5, %v15630_v15  ;;  %16013 = vmatprep.mubr.msk.f32.mxu0 %vm2355_vm5, %v15694_v47  ;;  %v15696_v15 = vsel %vm1374_vm6, 1.0, %v22637_v21  ;;  %vm1376_vm9 = vcmp.eq.s32.totalorder %v1189_v13, %v17149_v62  ;;  %vm1378_vm13 = vcmp.eq.s32.totalorder %v1192_v45, %v17149_v62  ;;  %vm1375_vm15 = vcmp.eq.s32.totalorder %v1189_v13, %v16663_v16 }
 0x18b   :  { %v17745_v37 = vpop.f32.mrb[24].mxu0  ;;  %vm1377_vm4 = vcmp.eq.s32.totalorder %v1192_v45, %v16663_v16  ;;  %vm806_vm6 = vcmp.eq.s32.totalorder %v17449_v43, %v17149_v62 }
 0x18c   :  { %22770 = vst [vmem:[#allocation7_spill] sm:$0xff] %v17745_v37  ;;  %v17747_v22 = vpop.f32.mrb[25].mxu0  ;;  %v15634_v37 = vsel %vm800_vm8, 1.0, %v22637_v21 }
 0x18d   :  { %22771 = vst [vmem:[#allocation8_spill] sm:$0xff] %v17747_v22  ;;  %15950 = vmatmul.mubr.msk.f32.gmra.mrb[100].mxu1 %vm795_vm7, %v22640_v9  ;;  %16014 = vmatmul.mubr.msk.f32.gmra.mrb[36].mxu0 %vm1371_vm0, %v22640_v9  ;;  %v1195_v31 = vpop.permute.xlu0 %1194  ;;  %v1198_v38 = vpop.permute.xlu1 %1197  ;;  %vm803_vm0 = vcmp.eq.s32.totalorder %v17452_v44, %v16663_v16 }
 0x18e   :  { %15951 = vmatprep.mubr.msk.f32.mxu1 %vm2355_vm5, %v15632_v26  ;;  %16015 = vmatprep.mubr.msk.f32.mxu0 %vm2355_vm5, %v15696_v15  ;;  %v15698_v26 = vsel %vm1376_vm9, 1.0, %v22637_v21  ;;  %vm1380_vm2 = vcmp.eq.s32.totalorder %v1195_v31, %v17149_v62  ;;  %vm1382_vm7 = vcmp.eq.s32.totalorder %v1198_v38, %v17149_v62  ;;  %vm1379_vm8 = vcmp.eq.s32.totalorder %v1195_v31, %v16663_v16 }
 0x18f   :  { %v17761_v47 = vpop.f32.mrb[26].mxu0  ;;  %vm808_vm9 = vcmp.eq.s32.totalorder %v17469_v49, %v17149_v62 }
 0x190   :  { %22772 = vst [vmem:[#allocation9_spill] sm:$0xff] %v17761_v47  ;;  %v17763_v0 = vpop.f32.mrb[27].mxu0  ;;  %v15636_v47 = vsel %vm802_vm12, 1.0, %v22637_v21  ;;  %vm1381_vm12 = vcmp.eq.s32.totalorder %v1198_v38, %v16663_v16 }
 0x191   :  { %22773 = vst [vmem:[#allocation10_spill] sm:$0xff] %v17763_v0  ;;  %15952 = vmatmul.mubr.msk.f32.gmra.mrb[102].mxu1 %vm797_vm10, %v22640_v9  ;;  %16016 = vmatmul.mubr.msk.f32.gmra.mrb[38].mxu0 %vm1373_vm11, %v22640_v9  ;;  %v1201_v36 = vpop.permute.xlu0 %1200  ;;  %v1204_v44 = vpop.permute.xlu1 %1203  ;;  %vm805_vm11 = vcmp.eq.s32.totalorder %v17449_v43, %v16663_v16 }
 0x192   :  { %15953 = vmatprep.mubr.msk.f32.mxu1 %vm2355_vm5, %v15634_v37  ;;  %16017 = vmatprep.mubr.msk.f32.mxu0 %vm2355_vm5, %v15698_v26  ;;  %v15700_v37 = vsel %vm1378_vm13, 1.0, %v22637_v21  ;;  %vm1384_vm10 = vcmp.eq.s32.totalorder %v1201_v36, %v17149_v62  ;;  %vm810_vm13 = vcmp.eq.s32.totalorder %v17466_v48, %v17149_v62 }
 0x193   :  { %v17777_v15 = vpop.f32.mrb[28].mxu0 }
 0x194   :  { %22774 = vst [vmem:[#allocation11_spill] sm:$0xff] %v17777_v15  ;;  %v17779_v5 = vpop.f32.mrb[29].mxu0 }
 0x195   :  { %22775 = vst [vmem:[#allocation12_spill] sm:$0xff] %v17779_v5  ;;  %15954 = vmatmul.mubr.msk.f32.gmra.mrb[104].mxu1 %vm799_vm14, %v22640_v9  ;;  %16018 = vmatmul.mubr.msk.f32.gmra.mrb[40].mxu0 %vm1375_vm15, %v22640_v9  ;;  %vm1386_vm14 = vcmp.eq.s32.totalorder %v1204_v44, %v17149_v62  ;;  %v1207_v43 = vpop.permute.xlu0 %1206  ;;  %vm807_vm15 = vcmp.eq.s32.totalorder %v17469_v49, %v16663_v16  ;;  %v1210_v49 = vpop.permute.xlu1 %1209 }
 0x196   :  { %15955 = vmatprep.mubr.msk.f32.mxu1 %vm2355_vm5, %v15636_v47  ;;  %16019 = vmatprep.mubr.msk.f32.mxu0 %vm2355_vm5, %v15700_v37  ;;  %v22780_v47 = vmov 0.0  }
 0x197   :  { %v17793_v26 = vpop.f32.mrb[30].mxu0  ;;  %v15638_v37 = vsel %vm804_vm1, 1.0, %v22780_v47  ;;  %v15702_v5 = vsel %vm1380_vm2, 1.0, %v22780_v47  ;;  %vm1383_vm1 = vcmp.eq.s32.totalorder %v1201_v36, %v16663_v16  ;;  %vm812_vm2 = vcmp.eq.s32.totalorder %v17486_v54, %v17149_v62 }
 0x198   :  { %22776 = vst [vmem:[#allocation13_spill] sm:$0xff] %v17793_v26  ;;  %v17795_v13 = vpop.f32.mrb[31].mxu0  ;;  %v17797_v15 = vpop.f32.mrb[0].mxu1 }
 0x199   :  { %22777 = vst [vmem:[#allocation14_spill] sm:$0xff] %v17795_v13  ;;  %22778 = vst [vmem:[#allocation15_spill] sm:$0xff] %v17797_v15  ;;  %v17802_v21 = vpop.f32.mrb[1].mxu1  ;;  %15956 = vmatmul.mubr.msk.f32.gmra.mrb[106].mxu1 %vm801_vm3, %v22640_v9  ;;  %16020 = vmatmul.mubr.msk.f32.gmra.mrb[42].mxu0 %vm1377_vm4, %v22640_v9  ;;  %v22783_v15 = vmov 1.0   ;;  %vm1388_vm3 = vcmp.eq.s32.totalorder %v1207_v43, %v17149_v62  ;;  %vm809_vm4 = vcmp.eq.s32.totalorder %v17466_v48, %v16663_v16  ;;  %v1213_v48 = vpop.permute.xlu0 %1212 }
 0x19a   :  { %22779 = vst [vmem:[#allocation16_spill] sm:$0xff] %v17802_v21  ;;  %15957 = vmatprep.mubr.msk.f32.mxu1 %vm2355_vm5, %v15638_v37  ;;  %16021 = vmatprep.mubr.msk.f32.mxu0 %vm2355_vm5, %v15702_v5  ;;  %v15640_v21 = vsel %vm806_vm6, 1.0, %v22780_v47  ;;  %v15704_v37 = vsel %vm1382_vm7, 1.0, %v22780_v47  ;;  %vm1385_vm6 = vcmp.eq.s32.totalorder %v1204_v44, %v16663_v16  ;;  %vm814_vm7 = vcmp.eq.s32.totalorder %v17483_v42, %v17149_v62 }
 0x19c   :  { %v17813_v45 = vpop.f32.mrb[2].mxu1 }
 0x19d   :  { %22781 = vst [vmem:[#allocation17_spill] sm:$0xff] %v17813_v45  ;;  %v17818_v9 = vpop.f32.mrb[3].mxu1  ;;  %15958 = vmatmul.mubr.msk.f32.gmra.mrb[108].mxu1 %vm803_vm0, %v22783_v15  ;;  %16022 = vmatmul.mubr.msk.f32.gmra.mrb[44].mxu0 %vm1379_vm8, %v22783_v15  ;;  %v15642_v45 = vsel %vm808_vm9, 1.0, %v22780_v47  ;;  %vm1390_vm0 = vcmp.eq.s32.totalorder %v1210_v49, %v17149_v62  ;;  %vm811_vm8 = vcmp.eq.s32.totalorder %v17486_v54, %v16663_v16  ;;  %v1216_v54 = vpop.permute.xlu1 %1215 }
 0x19e   :  { %22782 = vst [vmem:[#allocation18_spill] sm:$0xff] %v17818_v9  ;;  %15959 = vmatprep.mubr.msk.f32.mxu1 %vm2355_vm5, %v15640_v21  ;;  %16023 = vmatprep.mubr.msk.f32.mxu0 %vm2355_vm5, %v15704_v37  ;;  %v15706_v21 = vsel %vm1384_vm10, 1.0, %v22780_v47  ;;  %vm1387_vm9 = vcmp.eq.s32.totalorder %v1207_v43, %v16663_v16  ;;  %vm816_vm10 = vcmp.eq.s32.totalorder %v17503_v59, %v17149_v62 }
 0x1a0   :  { %v17829_v31 = vpop.f32.mrb[4].mxu1 }
 0x1a1   :  { %22784 = vst [vmem:[#allocation19_spill] sm:$0xff] %v17829_v31  ;;  %v17834_v5 = vpop.f32.mrb[5].mxu1  ;;  %15960 = vmatmul.mubr.msk.f32.gmra.mrb[110].mxu1 %vm805_vm11, %v22783_v15  ;;  %16024 = vmatmul.mubr.msk.f32.gmra.mrb[46].mxu0 %vm1381_vm12, %v22783_v15  ;;  %v15644_v31 = vsel %vm810_vm13, 1.0, %v22780_v47  ;;  %vm1392_vm11 = vcmp.eq.s32.totalorder %v1213_v48, %v17149_v62  ;;  %vm813_vm12 = vcmp.eq.s32.totalorder %v17483_v42, %v16663_v16  ;;  %v1219_v42 = vpop.permute.xlu0 %1218 }
 0x1a2   :  { %22785 = vst [vmem:[#allocation20_spill] sm:$0xff] %v17834_v5  ;;  %15961 = vmatprep.mubr.msk.f32.mxu1 %vm2355_vm5, %v15642_v45  ;;  %16025 = vmatprep.mubr.msk.f32.mxu0 %vm2355_vm5, %v15706_v21  ;;  %v15708_v45 = vsel %vm1386_vm14, 1.0, %v22780_v47  ;;  %vm1389_vm13 = vcmp.eq.s32.totalorder %v1210_v49, %v16663_v16  ;;  %vm818_vm14 = vcmp.eq.s32.totalorder %v17500_v51, %v17149_v62 }
 0x1a4   :  { %v17845_v38 = vpop.f32.mrb[6].mxu1 }
 0x1a5   :  { %22786 = vst [vmem:[#allocation21_spill] sm:$0xff] %v17845_v38  ;;  %v17850_v37 = vpop.f32.mrb[7].mxu1  ;;  %15962 = vmatmul.mubr.msk.f32.gmra.mrb[112].mxu1 %vm807_vm15, %v22783_v15  ;;  %16026 = vmatmul.mubr.msk.f32.gmra.mrb[48].mxu0 %vm1383_vm1, %v22783_v15  ;;  %v15646_v38 = vsel %vm812_vm2, 1.0, %v22780_v47  ;;  %vm1394_vm15 = vcmp.eq.s32.totalorder %v1216_v54, %v17149_v62  ;;  %vm815_vm1 = vcmp.eq.s32.totalorder %v17503_v59, %v16663_v16  ;;  %v1222_v59 = vpop.permute.xlu1 %1221 }
 0x1a6   :  { %22787 = vst [vmem:[#allocation22_spill] sm:$0xff] %v17850_v37  ;;  %15963 = vmatprep.mubr.msk.f32.mxu1 %vm2355_vm5, %v15644_v31  ;;  %16027 = vmatprep.mubr.msk.f32.mxu0 %vm2355_vm5, %v15708_v45  ;;  %v15710_v31 = vsel %vm1388_vm3, 1.0, %v22780_v47  ;;  %vm1391_vm2 = vcmp.eq.s32.totalorder %v1213_v48, %v16663_v16  ;;  %vm820_vm3 = vcmp.eq.s32.totalorder %v17524_v6, %v17149_v62 }
 0x1a8   :  { %v17861_v36 = vpop.f32.mrb[8].mxu1 }
 0x1a9   :  { %22788 = vst [vmem:[#allocation23_spill] sm:$0xff] %v17861_v36  ;;  %v17866_v21 = vpop.f32.mrb[9].mxu1  ;;  %15964 = vmatmul.mubr.msk.f32.gmra.mrb[114].mxu1 %vm809_vm4, %v22783_v15  ;;  %16028 = vmatmul.mubr.msk.f32.gmra.mrb[50].mxu0 %vm1385_vm6, %v22783_v15  ;;  %v15648_v36 = vsel %vm814_vm7, 1.0, %v22780_v47  ;;  %vm1396_vm4 = vcmp.eq.s32.totalorder %v1219_v42, %v17149_v62  ;;  %vm817_vm6 = vcmp.eq.s32.totalorder %v17500_v51, %v16663_v16  ;;  %v1225_v51 = vpop.permute.xlu0 %1224 }
 0x1aa   :  { %22789 = vst [vmem:[#allocation24_spill] sm:$0xff] %v17866_v21  ;;  %15965 = vmatprep.mubr.msk.f32.mxu1 %vm2355_vm5, %v15646_v38  ;;  %16029 = vmatprep.mubr.msk.f32.mxu0 %vm2355_vm5, %v15710_v31  ;;  %v15712_v38 = vsel %vm1390_vm0, 1.0, %v22780_v47  ;;  %vm1393_vm7 = vcmp.eq.s32.totalorder %v1216_v54, %v16663_v16  ;;  %vm822_vm0 = vcmp.eq.s32.totalorder %v17521_v7, %v17149_v62 }
 0x1ac   :  { %v17877_v44 = vpop.f32.mrb[10].mxu1 }
 0x1ad   :  { %22790 = vst [vmem:[#allocation25_spill] sm:$0xff] %v17877_v44  ;;  %v17882_v45 = vpop.f32.mrb[11].mxu1  ;;  %15966 = vmatmul.mubr.msk.f32.gmra.mrb[116].mxu1 %vm811_vm8, %v22783_v15  ;;  %16030 = vmatmul.mubr.msk.f32.gmra.mrb[52].mxu0 %vm1387_vm9, %v22783_v15  ;;  %v15650_v44 = vsel %vm816_vm10, 1.0, %v22780_v47  ;;  %vm1398_vm8 = vcmp.eq.s32.totalorder %v1222_v59, %v17149_v62  ;;  %vm819_vm9 = vcmp.eq.s32.totalorder %v17524_v6, %v16663_v16  ;;  %v1228_v6 = vpop.permute.xlu1 %1227 }
 0x1ae   :  { %22791 = vst [vmem:[#allocation26_spill] sm:$0xff] %v17882_v45  ;;  %15967 = vmatprep.mubr.msk.f32.mxu1 %vm2355_vm5, %v15648_v36  ;;  %16031 = vmatprep.mubr.msk.f32.mxu0 %vm2355_vm5, %v15712_v38  ;;  %v15714_v36 = vsel %vm1392_vm11, 1.0, %v22780_v47  ;;  %vm1395_vm10 = vcmp.eq.s32.totalorder %v1219_v42, %v16663_v16  ;;  %vm824_vm11 = vcmp.eq.s32.totalorder %v17545_v20, %v17149_v62 }
 0x1b0   :  { %v17893_v43 = vpop.f32.mrb[12].mxu1 }
 0x1b1   :  { %22792 = vst [vmem:[#allocation27_spill] sm:$0xff] %v17893_v43  ;;  %v17898_v31 = vpop.f32.mrb[13].mxu1  ;;  %15968 = vmatmul.mubr.msk.f32.gmra.mrb[118].mxu1 %vm813_vm12, %v22783_v15  ;;  %16032 = vmatmul.mubr.msk.f32.gmra.mrb[54].mxu0 %vm1389_vm13, %v22783_v15  ;;  %v15652_v43 = vsel %vm818_vm14, 1.0, %v22780_v47  ;;  %vm1400_vm12 = vcmp.eq.s32.totalorder %v1225_v51, %v17149_v62  ;;  %vm821_vm13 = vcmp.eq.s32.totalorder %v17521_v7, %v16663_v16  ;;  %v1231_v7 = vpop.permute.xlu0 %1230 }
 0x1b2   :  { %22793 = vst [vmem:[#allocation28_spill] sm:$0xff] %v17898_v31  ;;  %15969 = vmatprep.mubr.msk.f32.mxu1 %vm2355_vm5, %v15650_v44  ;;  %16033 = vmatprep.mubr.msk.f32.mxu0 %vm2355_vm5, %v15714_v36  ;;  %v15716_v44 = vsel %vm1394_vm15, 1.0, %v22780_v47  ;;  %vm1397_vm14 = vcmp.eq.s32.totalorder %v1222_v59, %v16663_v16  ;;  %vm826_vm15 = vcmp.eq.s32.totalorder %v17542_v19, %v17149_v62 }
 0x1b4   :  { %v17909_v49 = vpop.f32.mrb[14].mxu1 }
 0x1b5   :  { %22794 = vst [vmem:[#allocation29_spill] sm:$0xff] %v17909_v49  ;;  %v17914_v38 = vpop.f32.mrb[15].mxu1  ;;  %15970 = vmatmul.mubr.msk.f32.gmra.mrb[120].mxu1 %vm815_vm1, %v22783_v15  ;;  %16034 = vmatmul.mubr.msk.f32.gmra.mrb[56].mxu0 %vm1391_vm2, %v22783_v15  ;;  %v15654_v49 = vsel %vm820_vm3, 1.0, %v22780_v47  ;;  %vm1402_vm1 = vcmp.eq.s32.totalorder %v1228_v6, %v17149_v62  ;;  %vm823_vm2 = vcmp.eq.s32.totalorder %v17545_v20, %v16663_v16  ;;  %v1234_v20 = vpop.permute.xlu1 %1233 }
 0x1b6   :  { %22795 = vst [vmem:[#allocation30_spill] sm:$0xff] %v17914_v38  ;;  %15971 = vmatprep.mubr.msk.f32.mxu1 %vm2355_vm5, %v15652_v43  ;;  %16035 = vmatprep.mubr.msk.f32.mxu0 %vm2355_vm5, %v15716_v44  ;;  %v15718_v43 = vsel %vm1396_vm4, 1.0, %v22780_v47  ;;  %vm1399_vm3 = vcmp.eq.s32.totalorder %v1225_v51, %v16663_v16  ;;  %vm828_vm4 = vcmp.eq.s32.totalorder %v17566_v29, %v17149_v62 }
 0x1b8   :  { %v17925_v48 = vpop.f32.mrb[16].mxu1 }
 0x1b9   :  { %22796 = vst [vmem:[#allocation31_spill] sm:$0xff] %v17925_v48  ;;  %v17930_v36 = vpop.f32.mrb[17].mxu1  ;;  %15972 = vmatmul.mubr.msk.f32.gmra.mrb[122].mxu1 %vm817_vm6, %v22783_v15  ;;  %16036 = vmatmul.mubr.msk.f32.gmra.mrb[58].mxu0 %vm1393_vm7, %v22783_v15  ;;  %v15656_v48 = vsel %vm822_vm0, 1.0, %v22780_v47  ;;  %vm1404_vm6 = vcmp.eq.s32.totalorder %v1231_v7, %v17149_v62  ;;  %vm825_vm7 = vcmp.eq.s32.totalorder %v17542_v19, %v16663_v16  ;;  %v1237_v19 = vpop.permute.xlu0 %1236 }
 0x1ba   :  { %22797 = vst [vmem:[#allocation32_spill] sm:$0xff] %v17930_v36  ;;  %15973 = vmatprep.mubr.msk.f32.mxu1 %vm2355_vm5, %v15654_v49  ;;  %16037 = vmatprep.mubr.msk.f32.mxu0 %vm2355_vm5, %v15718_v43  ;;  %v15720_v49 = vsel %vm1398_vm8, 1.0, %v22780_v47  ;;  %vm1401_vm0 = vcmp.eq.s32.totalorder %v1228_v6, %v16663_v16  ;;  %vm830_vm8 = vcmp.eq.s32.totalorder %v17563_v28, %v17149_v62 }
 0x1bc   :  { %v17941_v54 = vpop.f32.mrb[18].mxu1 }
 0x1bd   :  { %22798 = vst [vmem:[#allocation33_spill] sm:$0xff] %v17941_v54  ;;  %v17946_v44 = vpop.f32.mrb[19].mxu1  ;;  %15974 = vmatmul.mubr.msk.f32.gmra.mrb[124].mxu1 %vm819_vm9, %v22783_v15  ;;  %16038 = vmatmul.mubr.msk.f32.gmra.mrb[60].mxu0 %vm1395_vm10, %v22783_v15  ;;  %v15658_v54 = vsel %vm824_vm11, 1.0, %v22780_v47  ;;  %vm1406_vm9 = vcmp.eq.s32.totalorder %v1234_v20, %v17149_v62  ;;  %vm827_vm10 = vcmp.eq.s32.totalorder %v17566_v29, %v16663_v16  ;;  %v1240_v29 = vpop.permute.xlu1 %1239 }
 0x1be   :  { %22799 = vst [vmem:[#allocation34_spill] sm:$0xff] %v17946_v44  ;;  %15975 = vmatprep.mubr.msk.f32.mxu1 %vm2355_vm5, %v15656_v48  ;;  %16039 = vmatprep.mubr.msk.f32.mxu0 %vm2355_vm5, %v15720_v49  ;;  %v15722_v48 = vsel %vm1400_vm12, 1.0, %v22780_v47  ;;  %vm1403_vm11 = vcmp.eq.s32.totalorder %v1231_v7, %v16663_v16  ;;  %vm832_vm12 = vcmp.eq.s32.totalorder %v17587_v40, %v17149_v62 }
 0x1c0   :  { %v17957_v42 = vpop.f32.mrb[20].mxu1 }
 0x1c1   :  { %22800 = vst [vmem:[#allocation35_spill] sm:$0xff] %v17957_v42  ;;  %v17962_v43 = vpop.f32.mrb[21].mxu1  ;;  %15976 = vmatmul.mubr.msk.f32.gmra.mrb[126].mxu1 %vm821_vm13, %v22783_v15  ;;  %16040 = vmatmul.mubr.msk.f32.gmra.mrb[62].mxu0 %vm1397_vm14, %v22783_v15  ;;  %v15660_v42 = vsel %vm826_vm15, 1.0, %v22780_v47  ;;  %vm1408_vm13 = vcmp.eq.s32.totalorder %v1237_v19, %v17149_v62  ;;  %vm829_vm14 = vcmp.eq.s32.totalorder %v17563_v28, %v16663_v16  ;;  %v1243_v28 = vpop.permute.xlu0 %1242 }
 0x1c2   :  { %22801 = vst [vmem:[#allocation36_spill] sm:$0xff] %v17962_v43  ;;  %15977 = vmatprep.mubr.msk.f32.mxu1 %vm2355_vm5, %v15658_v54  ;;  %16041 = vmatprep.mubr.msk.f32.mxu0 %vm2355_vm5, %v15722_v48  ;;  %v15724_v54 = vsel %vm1402_vm1, 1.0, %v22780_v47  ;;  %vm1405_vm15 = vcmp.eq.s32.totalorder %v1234_v20, %v16663_v16  ;;  %vm834_vm1 = vcmp.eq.s32.totalorder %v17584_v39, %v17149_v62 }
 0x1c4   :  { %v17973_v59 = vpop.f32.mrb[22].mxu1 }
 0x1c5   :  { %22802 = vst [vmem:[#allocation37_spill] sm:$0xff] %v17973_v59  ;;  %v17978_v49 = vpop.f32.mrb[23].mxu1  ;;  %15978 = vmatmul.mubr.msk.f32.gmra.mrb[128].mxu1 %vm823_vm2, %v22783_v15  ;;  %16042 = vmatmul.mubr.msk.f32.gmra.mrb[64].mxu0 %vm1399_vm3, %v22783_v15  ;;  %v15662_v59 = vsel %vm828_vm4, 1.0, %v22780_v47  ;;  %vm1410_vm2 = vcmp.eq.s32.totalorder %v1240_v29, %v17149_v62  ;;  %vm831_vm3 = vcmp.eq.s32.totalorder %v17587_v40, %v16663_v16  ;;  %v1246_v40 = vpop.permute.xlu1 %1245 }
 0x1c6   :  { %22803 = vst [vmem:[#allocation38_spill] sm:$0xff] %v17978_v49  ;;  %15979 = vmatprep.mubr.msk.f32.mxu1 %vm2355_vm5, %v15660_v42  ;;  %16043 = vmatprep.mubr.msk.f32.mxu0 %vm2355_vm5, %v15724_v54  ;;  %v15726_v42 = vsel %vm1404_vm6, 1.0, %v22780_v47  ;;  %vm1407_vm4 = vcmp.eq.s32.totalorder %v1237_v19, %v16663_v16  ;;  %vm836_vm6 = vcmp.eq.s32.totalorder %v17608_v52, %v17149_v62 }
 0x1c8   :  { %v17989_v51 = vpop.f32.mrb[24].mxu1 }
 0x1c9   :  { %22804 = vst [vmem:[#allocation39_spill] sm:$0xff] %v17989_v51  ;;  %v17994_v48 = vpop.f32.mrb[25].mxu1  ;;  %15980 = vmatmul.mubr.msk.f32.gmra.mrb[130].mxu1 %vm825_vm7, %v22783_v15  ;;  %16044 = vmatmul.mubr.msk.f32.gmra.mrb[66].mxu0 %vm1401_vm0, %v22783_v15  ;;  %v15664_v51 = vsel %vm830_vm8, 1.0, %v22780_v47  ;;  %vm1412_vm7 = vcmp.eq.s32.totalorder %v1243_v28, %v17149_v62  ;;  %vm833_vm0 = vcmp.eq.s32.totalorder %v17584_v39, %v16663_v16  ;;  %v1249_v39 = vpop.permute.xlu0 %1248 }
 0x1ca   :  { %22805 = vst [vmem:[#allocation40_spill] sm:$0xff] %v17994_v48  ;;  %15981 = vmatprep.mubr.msk.f32.mxu1 %vm2355_vm5, %v15662_v59  ;;  %16045 = vmatprep.mubr.msk.f32.mxu0 %vm2355_vm5, %v15726_v42  ;;  %v15728_v59 = vsel %vm1406_vm9, 1.0, %v22780_v47  ;;  %vm1409_vm8 = vcmp.eq.s32.totalorder %v1240_v29, %v16663_v16  ;;  %vm838_vm9 = vcmp.eq.s32.totalorder %v17605_v50, %v17149_v62 }
 0x1cc   :  { %v18005_v6 = vpop.f32.mrb[26].mxu1 }
 0x1cd   :  { %22806 = vst [vmem:[#allocation41_spill] sm:$0xff] %v18005_v6  ;;  %v18010_v54 = vpop.f32.mrb[27].mxu1  ;;  %15982 = vmatmul.mubr.msk.f32.gmra.mrb[132].mxu1 %vm827_vm10, %v22783_v15  ;;  %16046 = vmatmul.mubr.msk.f32.gmra.mrb[68].mxu0 %vm1403_vm11, %v22783_v15  ;;  %v15666_v6 = vsel %vm832_vm12, 1.0, %v22780_v47  ;;  %vm1414_vm10 = vcmp.eq.s32.totalorder %v1246_v40, %v17149_v62  ;;  %vm835_vm11 = vcmp.eq.s32.totalorder %v17608_v52, %v16663_v16  ;;  %v1252_v52 = vpop.permute.xlu1 %1251 }
 0x1ce   :  { %22807 = vst [vmem:[#allocation42_spill] sm:$0xff] %v18010_v54  ;;  %15983 = vmatprep.mubr.msk.f32.mxu1 %vm2355_vm5, %v15664_v51  ;;  %16047 = vmatprep.mubr.msk.f32.mxu0 %vm2355_vm5, %v15728_v59  ;;  %v15730_v51 = vsel %vm1408_vm13, 1.0, %v22780_v47  ;;  %vm1411_vm12 = vcmp.eq.s32.totalorder %v1243_v28, %v16663_v16  ;;  %vm840_vm13 = vcmp.eq.s32.totalorder %v17629_v57, %v17149_v62 }
 0x1d0   :  { %v18021_v7 = vpop.f32.mrb[28].mxu1 }
 0x1d1   :  { %22808 = vst [vmem:[#allocation43_spill] sm:$0xff] %v18021_v7  ;;  %v18026_v42 = vpop.f32.mrb[29].mxu1  ;;  %15984 = vmatmul.mubr.msk.f32.gmra.mrb[134].mxu1 %vm829_vm14, %v22783_v15  ;;  %16048 = vmatmul.mubr.msk.f32.gmra.mrb[70].mxu0 %vm1405_vm15, %v22783_v15  ;;  %v15668_v7 = vsel %vm834_vm1, 1.0, %v22780_v47  ;;  %vm1416_vm14 = vcmp.eq.s32.totalorder %v1249_v39, %v17149_v62  ;;  %vm837_vm15 = vcmp.eq.s32.totalorder %v17605_v50, %v16663_v16  ;;  %v1255_v50 = vpop.permute.xlu0 %1254 }
 0x1d2   :  { %22809 = vst [vmem:[#allocation44_spill] sm:$0xff] %v18026_v42  ;;  %15985 = vmatprep.mubr.msk.f32.mxu1 %vm2355_vm5, %v15666_v6  ;;  %16049 = vmatprep.mubr.msk.f32.mxu0 %vm2355_vm5, %v15730_v51  ;;  %v15732_v6 = vsel %vm1410_vm2, 1.0, %v22780_v47  ;;  %vm1413_vm1 = vcmp.eq.s32.totalorder %v1246_v40, %v16663_v16  ;;  %vm842_vm2 = vcmp.eq.s32.totalorder %v17626_v61, %v17149_v62 }
 0x1d4   :  { %v18037_v20 = vpop.f32.mrb[30].mxu1 }
 0x1d5   :  { %22810 = vst [vmem:[#allocation45_spill] sm:$0xff] %v18037_v20  ;;  %v18042_v59 = vpop.f32.mrb[31].mxu1  ;;  %15986 = vmatmul.mubr.msk.f32.gmra.mrb[136].mxu1 %vm831_vm3, %v22783_v15  ;;  %16050 = vmatmul.mubr.msk.f32.gmra.mrb[72].mxu0 %vm1407_vm4, %v22783_v15  ;;  %vm1418_vm3 = vcmp.eq.s32.totalorder %v1252_v52, %v17149_v62  ;;  %vm839_vm4 = vcmp.eq.s32.totalorder %v17629_v57, %v16663_v16  ;;  %v1258_v57 = vpop.permute.xlu1 %1257 }
 0x1d6   :  { %22811 = vst [vmem:[#allocation46_spill] sm:$0xff] %v18042_v59  ;;  %15987 = vmatprep.mubr.msk.f32.mxu1 %vm2355_vm5, %v15668_v7  ;;  %16051 = vmatprep.mubr.msk.f32.mxu0 %vm2355_vm5, %v15732_v6  ;;  %v15670_v59 = vsel %vm836_vm6, 1.0, %v22780_v47  ;;  %v15734_v7 = vsel %vm1412_vm7, 1.0, %v22780_v47  ;;  %vm1415_vm6 = vcmp.eq.s32.totalorder %v1249_v39, %v16663_v16  ;;  %vm844_vm7 = vcmp.eq.s32.totalorder %v17650_v63, %v17149_v62 }
 0x1d8   :  { %v2614_v19 = vpop.f32.mrb[32].mxu1 }
 0x1d9   :  { %v3510_v51 = vmul.f32 %v2614_v19, %v17517_v3  ;;  %v2616_v20 = vpop.f32.mrb[33].mxu1  ;;  %15988 = vmatmul.mubr.msk.f32.gmra.mrb[138].mxu1 %vm833_vm0, %v22783_v15  ;;  %16052 = vmatmul.mubr.msk.f32.gmra.mrb[74].mxu0 %vm1409_vm8, %v22783_v15  ;;  %v15672_v19 = vsel %vm838_vm9, 1.0, %v22780_v47  ;;  %vm1420_vm0 = vcmp.eq.s32.totalorder %v1255_v50, %v17149_v62  ;;  %vm841_vm8 = vcmp.eq.s32.totalorder %v17626_v61, %v16663_v16  ;;  %v1261_v61 = vpop.permute.xlu0 %1260 }
 0x1da   :  { %15989 = vmatprep.mubr.msk.f32.mxu1 %vm2355_vm5, %v15670_v59  ;;  %16053 = vmatprep.mubr.msk.f32.mxu0 %vm2355_vm5, %v15734_v7  ;;  %v15736_v59 = vsel %vm1414_vm10, 1.0, %v22780_v47  ;;  %vm1417_vm9 = vcmp.eq.s32.totalorder %v1252_v52, %v16663_v16  ;;  %vm846_vm10 = vcmp.eq.s32.totalorder %v17647_v27, %v17149_v62 }
 0x1db   :  { %3574 = vadd.xlane.f32.xlu0 %v3510_v51 }
 0x1dc   :  { %v2619_v29 = vpop.f32.mrb[34].mxu1 }
 0x1dd   :  { %v3511_v20 = vmul.f32 %v17509_v60, %v2619_v29  ;;  %v2621_v6 = vpop.f32.mrb[35].mxu1  ;;  %15990 = vmatmul.mubr.msk.f32.gmra.mrb[140].mxu1 %vm835_vm11, %v22783_v15  ;;  %16054 = vmatmul.mubr.msk.f32.gmra.mrb[76].mxu0 %vm1411_vm12, %v22783_v15  ;;  %v15674_v29 = vsel %vm840_vm13, 1.0, %v22780_v47  ;;  %vm1422_vm11 = vcmp.eq.s32.totalorder %v1258_v57, %v17149_v62  ;;  %vm843_vm12 = vcmp.eq.s32.totalorder %v17650_v63, %v16663_v16  ;;  %v1264_v63 = vpop.permute.xlu1 %1263 }
 0x1de   :  { %15991 = vmatprep.mubr.msk.f32.mxu1 %vm2355_vm5, %v15672_v19  ;;  %16055 = vmatprep.mubr.msk.f32.mxu0 %vm2355_vm5, %v15736_v59  ;;  %v15738_v6 = vsel %vm1416_vm14, 1.0, %v22780_v47  ;;  %v15676_v59 = vsel %vm842_vm2, 1.0, %v22780_v47  ;;  %vm1419_vm13 = vcmp.eq.s32.totalorder %v1255_v50, %v16663_v16  ;;  %vm848_vm14 = vcmp.eq.s32.totalorder %v17671_v4, %v17149_v62 }
 0x1df   :  { %3576 = vadd.xlane.f32.xlu1 %v3511_v20  ;;  %vm1421_vm2 = vcmp.eq.s32.totalorder %v1258_v57, %v16663_v16 }
 0x1e0   :  { %v2624_v28 = vpop.f32.mrb[36].mxu1 }
 0x1e1   :  { %v3512_v51 = vmul.f32 %v2624_v28, %v17538_v14  ;;  %v2626_v7 = vpop.f32.mrb[37].mxu1  ;;  %15992 = vmatmul.mubr.msk.f32.gmra.mrb[142].mxu1 %vm837_vm15, %v22783_v15  ;;  %16056 = vmatmul.mubr.msk.f32.gmra.mrb[78].mxu0 %vm1413_vm1, %v22783_v15  ;;  %v15740_v28 = vsel %vm1418_vm3, 1.0, %v22780_v47  ;;  %vm1424_vm15 = vcmp.eq.s32.totalorder %v1261_v61, %v17149_v62  ;;  %vm845_vm1 = vcmp.eq.s32.totalorder %v17647_v27, %v16663_v16  ;;  %v1267_v27 = vpop.permute.xlu0 %1266 }
 0x1e2   :  { %15993 = vmatprep.mubr.msk.f32.mxu1 %vm2355_vm5, %v15674_v29  ;;  %16057 = vmatprep.mubr.msk.f32.mxu0 %vm2355_vm5, %v15738_v6  ;;  %v15678_v29 = vsel %vm844_vm7, 1.0, %v22780_v47  ;;  %v15742_v6 = vsel %vm1420_vm0, 1.0, %v22780_v47  ;;  %vm850_vm3 = vcmp.eq.s32.totalorder %v17668_v41, %v17149_v62  ;;  %vm1423_vm7 = vcmp.eq.s32.totalorder %v1261_v61, %v16663_v16 }
 0x1e3   :  { %3578 = vadd.xlane.f32.xlu0 %v3512_v51  ;;  %vm852_vm0 = vcmp.eq.s32.totalorder %v17692_v10, %v17149_v62 }
 0x1e4   :  { %v2629_v40 = vpop.f32.mrb[38].mxu1 }
 0x1e5   :  { %v3513_v20 = vmul.f32 %v17530_v12, %v2629_v40  ;;  %v2631_v19 = vpop.f32.mrb[39].mxu1  ;;  %15994 = vmatmul.mubr.msk.f32.gmra.mrb[144].mxu1 %vm839_vm4, %v22783_v15  ;;  %16058 = vmatmul.mubr.msk.f32.gmra.mrb[80].mxu0 %vm1415_vm6, %v22783_v15  ;;  %vm1426_vm4 = vcmp.eq.s32.totalorder %v1264_v63, %v17149_v62  ;;  %vm847_vm6 = vcmp.eq.s32.totalorder %v17671_v4, %v16663_v16  ;;  %v1270_v4 = vpop.permute.xlu1 %1269 }
 0x1e6   :  { %15995 = vmatprep.mubr.msk.f32.mxu1 %vm2355_vm5, %v15676_v59  ;;  %16059 = vmatprep.mubr.msk.f32.mxu0 %vm2355_vm5, %v15740_v28  ;;  %v15680_v19 = vsel %vm846_vm10, 1.0, %v22780_v47  ;;  %v15744_v59 = vsel %vm1422_vm11, 1.0, %v22780_v47  ;;  %vm1425_vm10 = vcmp.eq.s32.totalorder %v1264_v63, %v16663_v16  ;;  %vm854_vm11 = vcmp.eq.s32.totalorder %v17689_v1, %v17149_v62 }
 0x1e7   :  { %3580 = vadd.xlane.f32.xlu0 %v3513_v20 }
 0x1e8   :  { %v2634_v39 = vpop.f32.mrb[40].mxu1 }
 0x1e9   :  { %v3514_v51 = vmul.f32 %v2634_v39, %v17559_v25  ;;  %v2636_v7 = vpop.f32.mrb[41].mxu1  ;;  %15996 = vmatmul.mubr.msk.f32.gmra.mrb[146].mxu1 %vm841_vm8, %v22783_v15  ;;  %16060 = vmatmul.mubr.msk.f32.gmra.mrb[82].mxu0 %vm1417_vm9, %v22783_v15  ;;  %vm1428_vm8 = vcmp.eq.s32.totalorder %v1267_v27, %v17149_v62  ;;  %vm849_vm9 = vcmp.eq.s32.totalorder %v17668_v41, %v16663_v16  ;;  %v1273_v41 = vpop.permute.xlu0 %1272 }
 0x1ea   :  { %15997 = vmatprep.mubr.msk.f32.mxu1 %vm2355_vm5, %v15678_v29  ;;  %16061 = vmatprep.mubr.msk.f32.mxu0 %vm2355_vm5, %v15742_v6  ;;  %v15746_v7 = vsel %vm1424_vm15, 1.0, %v22780_v47  ;;  %vm1432_vm15 = vcmp.eq.s32.totalorder %v1273_v41, %v17149_v62 }
 0x1eb   :  { %3582 = vadd.xlane.f32.xlu1 %v3514_v51  ;;  %v15682_v51 = vsel %vm848_vm14, 1.0, %v22780_v47  ;;  %vm1427_vm14 = vcmp.eq.s32.totalorder %v1267_v27, %v16663_v16 }
 0x1ec   :  { %v2639_v52 = vpop.f32.mrb[42].mxu1 }
 0x1ed   :  { %v3515_v40 = vmul.f32 %v17551_v23, %v2639_v52  ;;  %v2641_v20 = vpop.f32.mrb[43].mxu1  ;;  %15998 = vmatmul.mubr.msk.f32.gmra.mrb[148].mxu1 %vm843_vm12, %v22783_v15  ;;  %16062 = vmatmul.mubr.msk.f32.gmra.mrb[84].mxu0 %vm1419_vm13, %v22783_v15  ;;  %v15684_v52 = vsel %vm850_vm3, 1.0, %v22780_v47  ;;  %vm1430_vm12 = vcmp.eq.s32.totalorder %v1270_v4, %v17149_v62  ;;  %vm851_vm13 = vcmp.eq.s32.totalorder %v17692_v10, %v16663_v16  ;;  %v1276_v10 = vpop.permute.xlu1 %1275 }
 0x1ee   :  { %15999 = vmatprep.mubr.msk.f32.mxu1 %vm2355_vm5, %v15680_v19  ;;  %16063 = vmatprep.mubr.msk.f32.mxu0 %vm2355_vm5, %v15744_v59  ;;  %v15686_v59 = vsel %vm852_vm0, 1.0, %v22780_v47  ;;  %vm1434_vm3 = vcmp.eq.s32.totalorder %v1276_v10, %v17149_v62 }
 0x1ef   :  { %3584 = vadd.xlane.f32.xlu0 %v3515_v40  ;;  %v15748_v40 = vsel %vm1426_vm4, 1.0, %v22780_v47  ;;  %vm1431_vm4 = vcmp.eq.s32.totalorder %v1273_v41, %v16663_v16 }
 0x1f0   :  { %v2644_v50 = vpop.f32.mrb[44].mxu1 }
 0x1f1   :  { %v3516_v28 = vmul.f32 %v2644_v50, %v17580_v35  ;;  %v2646_v39 = vpop.f32.mrb[45].mxu1  ;;  %16000 = vmatmul.mubr.msk.f32.gmra.mrb[150].mxu1 %vm845_vm1, %v22783_v15  ;;  %16064 = vmatmul.mubr.msk.f32.gmra.mrb[86].mxu0 %vm1421_vm2, %v22783_v15  ;;  %v15750_v50 = vsel %vm1428_vm8, 1.0, %v22780_v47  ;;  %vm853_vm1 = vcmp.eq.s32.totalorder %v17689_v1, %v16663_v16  ;;  %vm1429_vm2 = vcmp.eq.s32.totalorder %v1270_v4, %v16663_v16 }
 0x1f2   :  { %16001 = vmatprep.mubr.msk.f32.mxu1 %vm2355_vm5, %v15682_v51  ;;  %16065 = vmatprep.mubr.msk.f32.mxu0 %vm2355_vm5, %v15746_v7  ;;  %v15688_v51 = vsel %vm854_vm11, 1.0, %v22780_v47  ;;  %v15752_v7 = vsel %vm1430_vm12, 1.0, %v22780_v47 }
 0x1f3   :  { %3586 = vadd.xlane.f32.xlu1 %v3516_v28 }
 0x1f4   :  { %v2649_v57 = vpop.f32.mrb[46].mxu1 }
 0x1f5   :  { %v3517_v29 = vmul.f32 %v17572_v32, %v2649_v57  ;;  %v2651_v6 = vpop.f32.mrb[47].mxu1  ;;  %16002 = vmatmul.mubr.msk.f32.gmra.mrb[152].mxu1 %vm847_vm6, %v22783_v15  ;;  %16066 = vmatmul.mubr.msk.f32.gmra.mrb[88].mxu0 %vm1423_vm7, %v22783_v15  ;;  %vm1433_vm7 = vcmp.eq.s32.totalorder %v1276_v10, %v16663_v16 }
 0x1f6   :  { %16003 = vmatprep.mubr.msk.f32.mxu1 %vm2355_vm5, %v15684_v52  ;;  %16067 = vmatprep.mubr.msk.f32.mxu0 %vm2355_vm5, %v15748_v40  ;;  %v15754_v6 = vsel %vm1432_vm15, 1.0, %v22780_v47  ;;  %v1279_v52 = vpop.permute.xlu0 %1278 }
 0x1f7   :  { %3588 = vadd.xlane.f32.xlu0 %v3517_v29  ;;  %vm1436_vm6 = vcmp.eq.s32.totalorder %v1279_v52, %v17149_v62  ;;  %vm1435_vm8 = vcmp.eq.s32.totalorder %v1279_v52, %v16663_v16 }
 0x1f8   :  { %v2654_v61 = vpop.f32.mrb[48].mxu1  ;;  %v15758_v41 = vsel %vm1436_vm6, 1.0, %v22780_v47 }
 0x1f9   :  { %v3518_v20 = vmul.f32 %v2654_v61, %v17601_v33  ;;  %v2656_v19 = vpop.f32.mrb[49].mxu1  ;;  %16004 = vmatmul.mubr.msk.f32.gmra.mrb[154].mxu1 %vm849_vm9, %v22783_v15  ;;  %16068 = vmatmul.mubr.msk.f32.gmra.mrb[90].mxu0 %vm1425_vm10, %v22783_v15  ;;  %v15756_v61 = vsel %vm1434_vm3, 1.0, %v22780_v47 }
 0x1fa   :  { %16005 = vmatprep.mubr.msk.f32.mxu1 %vm2355_vm5, %v15686_v59  ;;  %16069 = vmatprep.mubr.msk.f32.mxu0 %vm2355_vm5, %v15750_v50 }
 0x1fb   :  { %3590 = vadd.xlane.f32.xlu1 %v3518_v20  ;;  %v1282_v20 = vpop.permute.xlu1 %1281 }
 0x1fc   :  { %v2659_v63 = vpop.f32.mrb[50].mxu1  ;;  %vm1438_vm0 = vcmp.eq.s32.totalorder %v1282_v20, %v17149_v62  ;;  %vm1437_vm10 = vcmp.eq.s32.totalorder %v1282_v20, %v16663_v16 }
 0x1fd   :  { %v3519_v28 = vmul.f32 %v17593_v46, %v2659_v63  ;;  %v2661_v39 = vpop.f32.mrb[51].mxu1  ;;  %16006 = vmatmul.mubr.msk.f32.gmra.mrb[156].mxu1 %vm851_vm13, %v22783_v15  ;;  %16070 = vmatmul.mubr.msk.f32.gmra.mrb[92].mxu0 %vm1427_vm14, %v22783_v15  ;;  %v1285_v63 = vpop.permute.xlu0 %1284 }
 0x1fe   :  { %16007 = vmatprep.mubr.msk.f32.mxu1 %vm2355_vm5, %v15688_v51  ;;  %16071 = vmatprep.mubr.msk.f32.mxu0 %vm2355_vm5, %v15752_v7  ;;  %v15760_v7 = vsel %vm1438_vm0, 1.0, %v22780_v47  ;;  %vm1440_vm9 = vcmp.eq.s32.totalorder %v1285_v63, %v17149_v62  ;;  %vm1439_vm12 = vcmp.eq.s32.totalorder %v1285_v63, %v16663_v16 }
 0x1ff   :  { %3592 = vadd.xlane.f32.xlu0 %v3519_v28  ;;  %v1288_v10 = vpop.permute.xlu1 %1287 }
 0x200   :  { %v2664_v27 = vpop.f32.mrb[52].mxu1  ;;  %vm1442_vm11 = vcmp.eq.s32.totalorder %v1288_v10, %v17149_v62  ;;  %vm1441_vm14 = vcmp.eq.s32.totalorder %v1288_v10, %v16663_v16 }
 0x201   :  { %v3520_v57 = vmul.f32 %v2664_v27, %v17622_v58  ;;  %v2666_v29 = vpop.f32.mrb[53].mxu1  ;;  %16008 = vmatmul.mubr.msk.f32.gmra.mrb[158].mxu1 %vm853_vm1, %v22783_v15  ;;  %16072 = vmatmul.mubr.msk.f32.gmra.mrb[94].mxu0 %vm1429_vm2, %v22783_v15  ;;  %v1291_v52 = vpop.permute.xlu0 %1290 }
 0x202   :  { %16073 = vmatprep.mubr.msk.f32.mxu0 %vm2355_vm5, %v15754_v6  ;;  %v15762_v6 = vsel %vm1440_vm9, 1.0, %v22780_v47  ;;  %vm1444_vm13 = vcmp.eq.s32.totalorder %v1291_v52, %v17149_v62  ;;  %vm1443_vm1 = vcmp.eq.s32.totalorder %v1291_v52, %v16663_v16 }
 0x203   :  { %3594 = vadd.xlane.f32.xlu1 %v3520_v57  ;;  %v1294_v20 = vpop.permute.xlu1 %1293 }
 0x204   :  { %v2669_v40 = vpop.f32.mrb[54].mxu1  ;;  %vm1446_vm15 = vcmp.eq.s32.totalorder %v1294_v20, %v17149_v62  ;;  %vm1445_vm3 = vcmp.eq.s32.totalorder %v1294_v20, %v16663_v16 }
 0x205   :  { %v3521_v1 = vmul.f32 %v17614_v55, %v2669_v40  ;;  %v2671_v4 = vpop.f32.mrb[55].mxu1  ;;  %16074 = vmatmul.mubr.msk.f32.gmra.mrb[96].mxu0 %vm1431_vm4, %v22783_v15  ;;  %v1297_v63 = vpop.permute.xlu0 %1296 }
 0x206   :  { %16075 = vmatprep.mubr.msk.f32.mxu0 %vm2355_vm5, %v15756_v61  ;;  %v15764_v61 = vsel %vm1442_vm11, 1.0, %v22780_v47  ;;  %vm1448_vm2 = vcmp.eq.s32.totalorder %v1297_v63, %v17149_v62  ;;  %vm1447_vm6 = vcmp.eq.s32.totalorder %v1297_v63, %v16663_v16 }
 0x207   :  { %3596 = vadd.xlane.f32.xlu0 %v3521_v1  ;;  %v1300_v10 = vpop.permute.xlu1 %1299 }
 0x208   :  { %v2674_v19 = vpop.f32.mrb[56].mxu1  ;;  %vm1450_vm4 = vcmp.eq.s32.totalorder %v1300_v10, %v17149_v62  ;;  %vm1449_vm0 = vcmp.eq.s32.totalorder %v1300_v10, %v16663_v16 }
 0x209   :  { %v3522_v59 = vmul.f32 %v2674_v19, %v17643_v17  ;;  %v2676_v50 = vpop.f32.mrb[57].mxu1  ;;  %16076 = vmatmul.mubr.msk.f32.gmra.mrb[98].mxu0 %vm1433_vm7, %v22783_v15  ;;  %v1303_v52 = vpop.permute.xlu0 %1302 }
 0x20a   :  { %16077 = vmatprep.mubr.msk.f32.mxu0 %vm2355_vm5, %v15758_v41  ;;  %v15766_v41 = vsel %vm1444_vm13, 1.0, %v22780_v47  ;;  %vm1452_vm7 = vcmp.eq.s32.totalorder %v1303_v52, %v17149_v62  ;;  %vm1451_vm9 = vcmp.eq.s32.totalorder %v1303_v52, %v16663_v16 }
 0x20b   :  { %3598 = vadd.xlane.f32.xlu1 %v3522_v59  ;;  %v1306_v20 = vpop.permute.xlu1 %1305 }
 0x20c   :  { %v2679_v28 = vpop.f32.mrb[58].mxu1  ;;  %vm1453_vm11 = vcmp.eq.s32.totalorder %v1306_v20, %v16663_v16 }
 0x20d   :  { %v3523_v39 = vmul.f32 %v17635_v8, %v2679_v28  ;;  %v2681_v51 = vpop.f32.mrb[59].mxu1  ;;  %16078 = vmatmul.mubr.msk.f32.gmra.mrb[100].mxu0 %vm1435_vm8, %v22783_v15  ;;  %vm1454_vm8 = vcmp.eq.s32.totalorder %v1306_v20, %v17149_v62  ;;  %v1309_v63 = vpop.permute.xlu0 %1308 }
 0x20e   :  { %16079 = vmatprep.mubr.msk.f32.mxu0 %vm2355_vm5, %v15760_v7  ;;  %v15768_v7 = vsel %vm1446_vm15, 1.0, %v22780_v47  ;;  %vm1455_vm13 = vcmp.eq.s32.totalorder %v1309_v63, %v16663_v16 }
 0x20f   :  { %3600 = vadd.xlane.f32.xlu0 %v3523_v39 }
 0x210   :  { %v2684_v27 = vpop.f32.mrb[60].mxu1 }
 0x211   :  { %v3524_v57 = vmul.f32 %v2684_v27, %v17664_v34  ;;  %v2686_v29 = vpop.f32.mrb[61].mxu1  ;;  %16080 = vmatmul.mubr.msk.f32.gmra.mrb[102].mxu0 %vm1437_vm10, %v22783_v15  ;;  %vm1456_vm10 = vcmp.eq.s32.totalorder %v1309_v63, %v17149_v62 }
 0x212   :  { %16081 = vmatprep.mubr.msk.f32.mxu0 %vm2355_vm5, %v15762_v6  ;;  %v15770_v6 = vsel %vm1448_vm2, 1.0, %v22780_v47 }
 0x213   :  { %3602 = vadd.xlane.f32.xlu1 %v3524_v57 }
 0x214   :  { %v2689_v40 = vpop.f32.mrb[62].mxu1 }
 0x215   :  { %v3525_v1 = vmul.f32 %v17656_v30, %v2689_v40  ;;  %v2691_v4 = vpop.f32.mrb[63].mxu1  ;;  %16082 = vmatmul.mubr.msk.f32.gmra.mrb[104].mxu0 %vm1439_vm12, %v22783_v15 }
 0x216   :  { %16083 = vmatprep.mubr.msk.f32.mxu0 %vm2355_vm5, %v15764_v61  ;;  %v15772_v61 = vsel %vm1450_vm4, 1.0, %v22780_v47 }
 0x217   :  { %3604 = vadd.xlane.f32.xlu0 %v3525_v1 }
 0x218   :  { %v2694_v19 = vpop.f32.mrb[64].mxu1 }
 0x219   :  { %v3526_v59 = vmul.f32 %v2694_v19, %v17685_v56  ;;  %v2696_v50 = vpop.f32.mrb[65].mxu1  ;;  %16084 = vmatmul.mubr.msk.f32.gmra.mrb[106].mxu0 %vm1441_vm14, %v22783_v15 }
 0x21a   :  { %16085 = vmatprep.mubr.msk.f32.mxu0 %vm2355_vm5, %v15766_v41  ;;  %v15774_v41 = vsel %vm1452_vm7, 1.0, %v22780_v47 }
 0x21b   :  { %3606 = vadd.xlane.f32.xlu1 %v3526_v59 }
 0x21c   :  { %v2699_v28 = vpop.f32.mrb[66].mxu1 }
 0x21d   :  { %v18228_v39 = vmul.f32 %v17677_v53, %v2699_v28  ;;  %v2701_v51 = vpop.f32.mrb[67].mxu1  ;;  %16086 = vmatmul.mubr.msk.f32.gmra.mrb[108].mxu0 %vm1443_vm1, %v22783_v15 }
 0x21e   :  { %16087 = vmatprep.mubr.msk.f32.mxu0 %vm2355_vm5, %v15768_v7  ;;  %v22812_v51 = vld [vmem:[#allocation3_spill] sm:$0xff] }
 0x220   :  { %v2704_v27 = vpop.f32.mrb[68].mxu1 }
 0x221   :  { %v3528_v57 = vmul.f32 %v2704_v27, %v17700_v18  ;;  %v2706_v29 = vpop.f32.mrb[69].mxu1  ;;  %16088 = vmatmul.mubr.msk.f32.gmra.mrb[110].mxu0 %vm1445_vm3, %v22783_v15  ;;  %v15776_v27 = vsel %vm1454_vm8, 1.0, %v22780_v47 }
 0x222   :  { %16089 = vmatprep.mubr.msk.f32.mxu0 %vm2355_vm5, %v15770_v6 }
 0x223   :  { %3610 = vadd.xlane.f32.xlu1 %v3528_v57  ;;  %v1312_v57 = vpop.permute.xlu1 %1311 }
 0x224   :  { %v2709_v40 = vpop.f32.mrb[70].mxu1  ;;  %vm1458_vm12 = vcmp.eq.s32.totalorder %v1312_v57, %v17149_v62  ;;  %vm1457_vm15 = vcmp.eq.s32.totalorder %v1312_v57, %v16663_v16 }
 0x225   :  { %v18242_v1 = vmul.f32 %v17698_v24, %v2709_v40  ;;  %v2711_v4 = vpop.f32.mrb[71].mxu1  ;;  %16090 = vmatmul.mubr.msk.f32.gmra.mrb[112].mxu0 %vm1447_vm6, %v22783_v15  ;;  %v15778_v40 = vsel %vm1456_vm10, 1.0, %v22780_v47 }
 0x226   :  { %16091 = vmatprep.mubr.msk.f32.mxu0 %vm2355_vm5, %v15772_v61  ;;  %v1315_v4 = vpop.permute.xlu0 %1314 }
 0x227   :  { %vm1460_vm14 = vcmp.eq.s32.totalorder %v1315_v4, %v17149_v62  ;;  %vm1459_vm2 = vcmp.eq.s32.totalorder %v1315_v4, %v16663_v16 }
 0x228   :  { %v2714_v19 = vpop.f32.mrb[72].mxu1 }
 0x229   :  { %v18250_v59 = vmul.f32 %v2714_v19, %v17715_v2  ;;  %v2716_v50 = vpop.f32.mrb[73].mxu1  ;;  %16092 = vmatmul.mubr.msk.f32.gmra.mrb[114].mxu0 %vm1449_vm0, %v22783_v15  ;;  %v22813_v19 = vld [vmem:[#allocation5_spill] sm:$0xff] }
 0x22a   :  { %16093 = vmatprep.mubr.msk.f32.mxu0 %vm2355_vm5, %v15774_v41  ;;  %v15780_v41 = vsel %vm1458_vm12, 1.0, %v22780_v47 }
 0x22c   :  { %v2719_v28 = vpop.f32.mrb[74].mxu1 }
 0x22d   :  { %v18258_v7 = vmul.f32 %v22812_v51, %v2719_v28  ;;  %v2721_v10 = vpop.f32.mrb[75].mxu1  ;;  %16094 = vmatmul.mubr.msk.f32.gmra.mrb[116].mxu0 %vm1451_vm9, %v22783_v15  ;;  %v1318_v28 = vpop.permute.xlu1 %1317 }
 0x22e   :  { %16095 = vmatprep.mubr.msk.f32.mxu0 %vm2355_vm5, %v15776_v27  ;;  %vm1462_vm1 = vcmp.eq.s32.totalorder %v1318_v28, %v17149_v62  ;;  %vm1461_vm4 = vcmp.eq.s32.totalorder %v1318_v28, %v16663_v16 }
 0x230   :  { %v2724_v29 = vpop.f32.mrb[76].mxu1 }
 0x231   :  { %v18266_v6 = vmul.f32 %v2724_v29, %v17731_v11  ;;  %v2726_v52 = vpop.f32.mrb[77].mxu1  ;;  %16096 = vmatmul.mubr.msk.f32.gmra.mrb[118].mxu0 %vm1453_vm11, %v22783_v15  ;;  %v15782_v29 = vsel %vm1460_vm14, 1.0, %v22780_v47 }
 0x232   :  { %16097 = vmatprep.mubr.msk.f32.mxu0 %vm2355_vm5, %v15778_v40  ;;  %v1321_v52 = vpop.permute.xlu0 %1320 }
 0x233   :  { %vm1464_vm3 = vcmp.eq.s32.totalorder %v1321_v52, %v17149_v62  ;;  %vm1463_vm7 = vcmp.eq.s32.totalorder %v1321_v52, %v16663_v16 }
 0x234   :  { %v2729_v61 = vpop.f32.mrb[78].mxu1 }
 0x235   :  { %v18274_v50 = vmul.f32 %v22813_v19, %v2729_v61  ;;  %v2731_v20 = vpop.f32.mrb[79].mxu1  ;;  %16098 = vmatmul.mubr.msk.f32.gmra.mrb[120].mxu0 %vm1455_vm13, %v22783_v15  ;;  %v22814_v61 = vld [vmem:[#allocation7_spill] sm:$0xff] }
 0x236   :  { %16099 = vmatprep.mubr.msk.f32.mxu0 %vm2355_vm5, %v15780_v41  ;;  %v15784_v41 = vsel %vm1462_vm1, 1.0, %v22780_v47 }
 0x238   :  { %v2734_v10 = vpop.f32.mrb[80].mxu1 }
 0x239   :  { %v18282_v27 = vmul.f32 %v2734_v10, %v17747_v22  ;;  %v2736_v63 = vpop.f32.mrb[81].mxu1  ;;  %16100 = vmatmul.mubr.msk.f32.gmra.mrb[122].mxu0 %vm1457_vm15, %v22783_v15  ;;  %v1324_v10 = vpop.permute.xlu1 %1323 }
 0x23a   :  { %16101 = vmatprep.mubr.msk.f32.mxu0 %vm2355_vm5, %v15782_v29  ;;  %vm1466_vm6 = vcmp.eq.s32.totalorder %v1324_v10, %v17149_v62  ;;  %vm1465_vm8 = vcmp.eq.s32.totalorder %v1324_v10, %v16663_v16 }
 0x23c   :  { %v2739_v40 = vpop.f32.mrb[82].mxu1 }
 0x23d   :  { %v18290_v20 = vmul.f32 %v22814_v61, %v2739_v40  ;;  %v2741_v57 = vpop.f32.mrb[83].mxu1  ;;  %16102 = vmatmul.mubr.msk.f32.gmra.mrb[124].mxu0 %vm1459_vm2, %v22783_v15  ;;  %v15786_v40 = vsel %vm1464_vm3, 1.0, %v22780_v47 }
 0x23e   :  { %16103 = vmatprep.mubr.msk.f32.mxu0 %vm2355_vm5, %v15784_v41  ;;  %v1327_v57 = vpop.permute.xlu0 %1326  ;;  %v22815_v41 = vld [vmem:[#allocation9_spill] sm:$0xff] }
 0x23f   :  { %vm1468_vm0 = vcmp.eq.s32.totalorder %v1327_v57, %v17149_v62  ;;  %vm1467_vm10 = vcmp.eq.s32.totalorder %v1327_v57, %v16663_v16 }
 0x240   :  { %v2744_v63 = vpop.f32.mrb[84].mxu1 }
 0x241   :  { %v18298_v29 = vmul.f32 %v2744_v63, %v17763_v0  ;;  %v2746_v4 = vpop.f32.mrb[85].mxu1  ;;  %16104 = vmatmul.mubr.msk.f32.gmra.mrb[126].mxu0 %vm1461_vm4, %v22783_v15  ;;  %v15788_v63 = vsel %vm1466_vm6, 1.0, %v22780_v47 }
 0x242   :  { %16105 = vmatprep.mubr.msk.f32.mxu0 %vm2355_vm5, %v15786_v40  ;;  %v1330_v4 = vpop.permute.xlu1 %1329  ;;  %v22816_v40 = vld [vmem:[#allocation12_spill] sm:$0xff] }
 0x243   :  { %vm1470_vm9 = vcmp.eq.s32.totalorder %v1330_v4, %v17149_v62  ;;  %vm1469_vm12 = vcmp.eq.s32.totalorder %v1330_v4, %v16663_v16 }
 0x244   :  { %v2749_v42 = vpop.f32.mrb[86].mxu1 }
 0x245   :  { %v18306_v54 = vmul.f32 %v22815_v41, %v2749_v42  ;;  %v2751_v28 = vpop.f32.mrb[87].mxu1  ;;  %16106 = vmatmul.mubr.msk.f32.gmra.mrb[128].mxu0 %vm1463_vm7, %v22783_v15  ;;  %v15790_v42 = vsel %vm1468_vm0, 1.0, %v22780_v47 }
 0x246   :  { %16107 = vmatprep.mubr.msk.f32.mxu0 %vm2355_vm5, %v15788_v63  ;;  %v1333_v28 = vpop.permute.xlu0 %1332  ;;  %v22817_v63 = vld [vmem:[#allocation11_spill] sm:$0xff] }
 0x247   :  { %vm1472_vm11 = vcmp.eq.s32.totalorder %v1333_v28, %v17149_v62  ;;  %vm1471_vm14 = vcmp.eq.s32.totalorder %v1333_v28, %v16663_v16 }
 0x248   :  { %v2754_v0 = vpop.f32.mrb[88].mxu1 }
 0x249   :  { %v18314_v61 = vmul.f32 %v2754_v0, %v22816_v40  ;;  %v2756_v52 = vpop.f32.mrb[89].mxu1  ;;  %16108 = vmatmul.mubr.msk.f32.gmra.mrb[130].mxu0 %vm1465_vm8, %v22783_v15  ;;  %v15792_v0 = vsel %vm1470_vm9, 1.0, %v22780_v47 }
 0x24a   :  { %16109 = vmatprep.mubr.msk.f32.mxu0 %vm2355_vm5, %v15790_v42  ;;  %v1336_v52 = vpop.permute.xlu1 %1335 }
 0x24b   :  { %vm1474_vm13 = vcmp.eq.s32.totalorder %v1336_v52, %v17149_v62  ;;  %vm1473_vm1 = vcmp.eq.s32.totalorder %v1336_v52, %v16663_v16 }
 0x24c   :  { %v2759_v41 = vpop.f32.mrb[90].mxu1 }
 0x24d   :  { %v18322_v22 = vmul.f32 %v22817_v63, %v2759_v41  ;;  %v2761_v10 = vpop.f32.mrb[91].mxu1  ;;  %16110 = vmatmul.mubr.msk.f32.gmra.mrb[132].mxu0 %vm1467_vm10, %v22783_v15  ;;  %v15794_v41 = vsel %vm1472_vm11, 1.0, %v22780_v47 }
 0x24e   :  { %16111 = vmatprep.mubr.msk.f32.mxu0 %vm2355_vm5, %v15792_v0  ;;  %v1339_v10 = vpop.permute.xlu0 %1338 }
 0x24f   :  { %vm1476_vm15 = vcmp.eq.s32.totalorder %v1339_v10, %v17149_v62  ;;  %vm1475_vm3 = vcmp.eq.s32.totalorder %v1339_v10, %v16663_v16 }
 0x250   :  { %v2764_v40 = vpop.f32.mrb[92].mxu1 }
 0x251   :  { %v18330_v42 = vmul.f32 %v2764_v40, %v17795_v13  ;;  %v2766_v57 = vpop.f32.mrb[93].mxu1  ;;  %16112 = vmatmul.mubr.msk.f32.gmra.mrb[134].mxu0 %vm1469_vm12, %v22783_v15  ;;  %v15796_v40 = vsel %vm1474_vm13, 1.0, %v22780_v47 }
 0x252   :  { %16113 = vmatprep.mubr.msk.f32.mxu0 %vm2355_vm5, %v15794_v41  ;;  %v1342_v57 = vpop.permute.xlu1 %1341  ;;  %v22818_v41 = vld [vmem:[#allocation16_spill] sm:$0xff] }
 0x253   :  { %vm1478_vm2 = vcmp.eq.s32.totalorder %v1342_v57, %v17149_v62  ;;  %vm1477_vm6 = vcmp.eq.s32.totalorder %v1342_v57, %v16663_v16 }
 0x254   :  { %v2769_v63 = vpop.f32.mrb[94].mxu1 }
 0x255   :  { %v18338_v0 = vmul.f32 %v17793_v26, %v2769_v63  ;;  %v2771_v4 = vpop.f32.mrb[95].mxu1  ;;  %16114 = vmatmul.mubr.msk.f32.gmra.mrb[136].mxu0 %vm1471_vm14, %v22783_v15  ;;  %v15798_v26 = vsel %vm1476_vm15, 1.0, %v22780_v47 }
 0x256   :  { %16115 = vmatprep.mubr.msk.f32.mxu0 %vm2355_vm5, %v15796_v40  ;;  %v1345_v40 = vpop.permute.xlu0 %1344 }
 0x257   :  { %vm1480_vm4 = vcmp.eq.s32.totalorder %v1345_v40, %v17149_v62  ;;  %vm1479_vm0 = vcmp.eq.s32.totalorder %v1345_v40, %v16663_v16 }
 0x258   :  { %v2774_v13 = vpop.f32.mrb[96].mxu1  ;;  %v3191_v48 = vpop.f32.mrb[32].mxu0 }
 0x259   :  { %v18346_v19 = vmul.f32 %v2774_v13, %v22818_v41  ;;  %v9518_v28 = vmul.f32 %v3191_v48, %v17517_v3  ;;  %v2776_v63 = vpop.f32.mrb[97].mxu1  ;;  %v3193_v4 = vpop.f32.mrb[33].mxu0  ;;  %16116 = vmatmul.mubr.msk.f32.gmra.mrb[138].mxu0 %vm1473_vm1, %v22783_v15  ;;  %v22819_v13 = vld [vmem:[#allocation15_spill] sm:$0xff] }
 0x25a   :  { %16117 = vmatprep.mubr.msk.f32.mxu0 %vm2355_vm5, %v15798_v26  ;;  %v15800_v4 = vsel %vm1478_vm2, 1.0, %v22780_v47  ;;  %v1348_v26 = vpop.permute.xlu1 %1347 }
 0x25b   :  { %9582 = vadd.xlane.f32.xlu0 %v9518_v28  ;;  %vm1482_vm7 = vcmp.eq.s32.totalorder %v1348_v26, %v17149_v62  ;;  %vm1481_vm9 = vcmp.eq.s32.totalorder %v1348_v26, %v16663_v16  ;;  %v22823_v26 = vld [vmem:[#allocation19_spill] sm:$0xff] }
 0x25c   :  { %v2779_v11 = vpop.f32.mrb[98].mxu1  ;;  %v3196_v49 = vpop.f32.mrb[34].mxu0 }
 0x25d   :  { %v18355_v52 = vmul.f32 %v22819_v13, %v2779_v11  ;;  %v9519_v3 = vmul.f32 %v17509_v60, %v3196_v49  ;;  %v2781_v48 = vpop.f32.mrb[99].mxu1  ;;  %v3198_v63 = vpop.f32.mrb[35].mxu0  ;;  %16118 = vmatmul.mubr.msk.f32.gmra.mrb[140].mxu0 %vm1475_vm3, %v22783_v15 }
 0x25e   :  { %16119 = vmatprep.mubr.msk.f32.mxu0 %vm2355_vm5, %v15800_v4  ;;  %v15802_v63 = vsel %vm1480_vm4, 1.0, %v22780_v47  ;;  %v22820_v4 = vld [vmem:[#allocation17_spill] sm:$0xff] }
 0x25f   :  { %3608 = vadd.xlane.f32.xlu0 %v18228_v39  ;;  %9584 = vadd.xlane.f32.xlu1 %v9519_v3  ;;  %v1351_v39 = vpop.permute.xlu0 %1350 }
 0x260   :  { %v2784_v10 = vpop.f32.mrb[100].mxu1  ;;  %v3201_v28 = vpop.f32.mrb[36].mxu0  ;;  %vm1484_vm8 = vcmp.eq.s32.totalorder %v1351_v39, %v17149_v62  ;;  %vm1483_vm11 = vcmp.eq.s32.totalorder %v1351_v39, %v16663_v16 }
 0x261   :  { %v18365_v60 = vmul.f32 %v2784_v10, %v17818_v9  ;;  %v9520_v11 = vmul.f32 %v3201_v28, %v17538_v14  ;;  %v2786_v49 = vpop.f32.mrb[101].mxu1  ;;  %v3203_v48 = vpop.f32.mrb[37].mxu0  ;;  %16120 = vmatmul.mubr.msk.f32.gmra.mrb[142].mxu0 %vm1477_vm6, %v22783_v15 }
 0x262   :  { %16121 = vmatprep.mubr.msk.f32.mxu0 %vm2355_vm5, %v15802_v63  ;;  %v15804_v48 = vsel %vm1482_vm7, 1.0, %v22780_v47  ;;  %vm9158_vm7 = vcmask 195712  }
 0x263   :  { %3614 = vadd.xlane.f32.xlu1 %v18250_v59  ;;  %9586 = vadd.xlane.f32.xlu0 %v9520_v11  ;;  %v1354_v59 = vpop.permute.xlu1 %1353 }
 0x264   :  { %v2789_v57 = vpop.f32.mrb[102].mxu1  ;;  %v3206_v3 = vpop.f32.mrb[38].mxu0  ;;  %vm1486_vm10 = vcmp.eq.s32.totalorder %v1354_v59, %v17149_v62  ;;  %vm1485_vm13 = vcmp.eq.s32.totalorder %v1354_v59, %v16663_v16 }
 0x265   :  { %v18375_v14 = vmul.f32 %v22820_v4, %v2789_v57  ;;  %v9521_v10 = vmul.f32 %v17530_v12, %v3206_v3  ;;  %v2791_v28 = vpop.f32.mrb[103].mxu1  ;;  %v3208_v49 = vpop.f32.mrb[39].mxu0  ;;  %16122 = vmatmul.mubr.msk.f32.gmra.mrb[144].mxu0 %vm1479_vm0, %v22783_v15  ;;  %v15806_v3 = vsel %vm1484_vm8, 1.0, %v22780_v47  ;;  %vm9165_vm0 = vcmask 261312  }
 0x266   :  { %16123 = vmatprep.mubr.msk.f32.mxu0 %vm2355_vm5, %v15804_v48  ;;  %vm9172_vm8 = vcmask 326912  }
 0x267   :  { %22821 = vst [vmem:[#allocation47_spill] sm:$0xff] %v18375_v14  ;;  %3612 = vadd.xlane.f32.xlu0 %v18242_v1  ;;  %v1357_v1 = vpop.permute.xlu0 %1356 }
 0x268   :  { %v2794_v11 = vpop.f32.mrb[104].mxu1  ;;  %v3211_v40 = vpop.f32.mrb[40].mxu0  ;;  %vm1488_vm12 = vcmp.eq.s32.totalorder %v1357_v1, %v17149_v62  ;;  %vm1487_vm15 = vcmp.eq.s32.totalorder %v1357_v1, %v16663_v16 }
 0x269   :  { %v18385_v63 = vmul.f32 %v2794_v11, %v17834_v5  ;;  %v9522_v12 = vmul.f32 %v3211_v40, %v17559_v25  ;;  %v2796_v57 = vpop.f32.mrb[105].mxu1  ;;  %16124 = vmatmul.mubr.msk.f32.gmra.mrb[146].mxu0 %vm1481_vm9, %v22783_v15  ;;  %v3213_v28 = vpop.f32.mrb[41].mxu0  ;;  %v15808_v40 = vsel %vm1486_vm10, 1.0, %v22780_v47  ;;  %vm9179_vm9 = vcmask 392512  }
 0x26a   :  { %16125 = vmatprep.mubr.msk.f32.mxu0 %vm2355_vm5, %v15806_v3  ;;  %vm9186_vm10 = vcmask 458112  }
 0x26b   :  { %22822 = vst [vmem:[#allocation48_spill] sm:$0xff] %v18385_v63  ;;  %9588 = vadd.xlane.f32.xlu0 %v9521_v10  ;;  %9590 = vadd.xlane.f32.xlu1 %v9522_v12  ;;  %v1360_v10 = vpop.permute.xlu1 %1359 }
 0x26c   :  { %v2799_v49 = vpop.f32.mrb[106].mxu1  ;;  %v3216_v25 = vpop.f32.mrb[42].mxu0  ;;  %vm1490_vm14 = vcmp.eq.s32.totalorder %v1360_v10, %v17149_v62  ;;  %vm1489_vm2 = vcmp.eq.s32.totalorder %v1360_v10, %v16663_v16 }
 0x26d   :  { %v18394_v48 = vmul.f32 %v22823_v26, %v2799_v49  ;;  %v2801_v11 = vpop.f32.mrb[107].mxu1  ;;  %16126 = vmatmul.mubr.msk.f32.gmra.mrb[148].mxu0 %vm1483_vm11, %v22783_v15  ;;  %v9523_v57 = vmul.f32 %v17551_v23, %v3216_v25  ;;  %v3218_v3 = vpop.f32.mrb[43].mxu0  ;;  %v15810_v23 = vsel %vm1488_vm12, 1.0, %v22780_v47  ;;  %vm9193_vm11 = vcmask 523712  }
 0x26e   :  { %16127 = vmatprep.mubr.msk.f32.mxu0 %vm2355_vm5, %v15808_v40  ;;  %v22826_v40 = vld [vmem:[#allocation21_spill] sm:$0xff]  ;;  %vm9200_vm12 = vcmask 589312  }
 0x26f   :  { %22824 = vst [vmem:[#allocation49_spill] sm:$0xff] %v18394_v48  ;;  %3616 = vadd.xlane.f32.xlu0 %v18258_v7  ;;  %3618 = vadd.xlane.f32.xlu1 %v18266_v6  ;;  %v1363_v7 = vpop.permute.xlu0 %1362 }
 0x270   :  { %v2804_v39 = vpop.f32.mrb[108].mxu1  ;;  %v3221_v12 = vpop.f32.mrb[44].mxu0  ;;  %vm1492_vm1 = vcmp.eq.s32.totalorder %v1363_v7, %v17149_v62  ;;  %vm1491_vm4 = vcmp.eq.s32.totalorder %v1363_v7, %v16663_v16 }
 0x271   :  { %v18405_v28 = vmul.f32 %v2804_v39, %v17850_v37  ;;  %v9524_v49 = vmul.f32 %v3221_v12, %v17580_v35  ;;  %v2806_v11 = vpop.f32.mrb[109].mxu1  ;;  %16128 = vmatmul.mubr.msk.f32.gmra.mrb[150].mxu0 %vm1485_vm13, %v22783_v15  ;;  %v3223_v25 = vpop.f32.mrb[45].mxu0  ;;  %v15812_v12 = vsel %vm1490_vm14, 1.0, %v22780_v47  ;;  %vm9207_vm13 = vcmask 654912  }
 0x272   :  { %16129 = vmatprep.mubr.msk.f32.mxu0 %vm2355_vm5, %v15810_v23  ;;  %v22828_v11 = vlaneseq  ;;  %vm9214_vm14 = vcmask 720512  }
 0x273   :  { %22825 = vst [vmem:[#allocation50_spill] sm:$0xff] %v18405_v28  ;;  %9592 = vadd.xlane.f32.xlu0 %v9523_v57  ;;  %9594 = vadd.xlane.f32.xlu1 %v9524_v49  ;;  %v1366_v49 = vpop.permute.xlu1 %1365  ;;  %v18426_v1 = vpop.xlane.xlu0 %3574 }
 0x274   :  { %v2809_v6 = vpop.f32.mrb[110].mxu1  ;;  %v3226_v59 = vpop.f32.mrb[46].mxu0  ;;  %v18420_v25 = vshrl.u32 %v22828_v11, 7  ;;  %vm1494_vm3 = vcmp.eq.s32.totalorder %v1366_v49, %v17149_v62  ;;  %vm1493_vm6 = vcmp.eq.s32.totalorder %v1366_v49, %v16663_v16 }
 0x275   :  { %v18414_v3 = vmul.f32 %v22826_v40, %v2809_v6  ;;  %v9525_v35 = vmul.f32 %v17572_v32, %v3226_v59  ;;  %v2811_v39 = vpop.f32.mrb[111].mxu1  ;;  %16130 = vmatmul.mubr.msk.f32.gmra.mrb[152].mxu0 %vm1487_vm15, %v22783_v15  ;;  %v3228_v57 = vpop.f32.mrb[47].mxu0  ;;  %v22839_v40 = vld [vmem:[#allocation23_spill] sm:$0xff]  ;;  %vm9221_vm15 = vcmask 786112  }
 0x276   :  { %22829 = vst [vmem:[#allocation52_spill] sm:$0xff] %v18420_v25  ;;  %16131 = vmatprep.mubr.msk.f32.mxu0 %vm2355_vm5, %v15812_v12  ;;  %v15814_v39 = vsel %vm1492_vm1, 1.0, %v22780_v47  ;;  %v18435_v12 = vsub.s32 0, %v18420_v25  ;;  %v18441_v10 = vsub.s32 1, %v18420_v25  ;;  %vm9228_vm1 = vcmask 851712  }
 0x277   :  { %22827 = vst [vmem:[#allocation51_spill] sm:$0xff] %v18414_v3  ;;  %3620 = vadd.xlane.f32.xlu0 %v18274_v50  ;;  %3622 = vadd.xlane.f32.xlu1 %v18282_v27  ;;  %v16410_v50 = vmov 1966171168  }
 0x278   :  { %v2814_v32 = vpop.f32.mrb[112].mxu1  ;;  %v3231_v6 = vpop.f32.mrb[48].mxu0  ;;  %22831 = vst [vmem:[#allocation54_spill] sm:$0xff] %v18435_v12  ;;  %v5819_v57 = vunpack.c.l.s4 %v16410_v50  ;;  %22832 = vst [vmem:[#allocation55_spill] sm:$0xff] %v18441_v10  ;;  %v18453_v50 = vsub.s32 5, %v18420_v25  ;;  %v3769_v7 = vrot.slane %v18426_v1, %v18435_v12 }
 0x279   :  { %v18430_v23 = vmul.f32 %v2814_v32, %v17866_v21  ;;  %v2816_v59 = vpop.f32.mrb[113].mxu1  ;;  %16132 = vmatmul.mubr.msk.f32.gmra.mrb[154].mxu0 %vm1489_vm2, %v22783_v15  ;;  %v9526_v27 = vmul.f32 %v3231_v6, %v17601_v33  ;;  %v3233_v11 = vpop.f32.mrb[49].mxu0  ;;  %v18444_v32 = vsub.s32 2, %v18420_v25  ;;  %v18450_v21 = vsub.s32 4, %v18420_v25 }
 0x27a   :  { %16133 = vmatprep.mubr.msk.f32.mxu0 %vm2355_vm5, %v15814_v39  ;;  %v18447_v59 = vsub.s32 3, %v18420_v25  ;;  %22836 = vst [vmem:[#allocation59_spill] sm:$0xff] %v18453_v50  ;;  %v18456_v33 = vsub.s32 6, %v18420_v25  ;;  %v18460_v39 = vsub.s32 7, %v18420_v25  ;;  %v5820_v4 = vunpack.c.0.s8 %v5819_v57 }
 0x27b   :  { %22830 = vst [vmem:[#allocation53_spill] sm:$0xff] %v18430_v23  ;;  %22833 = vst [vmem:[#allocation56_spill] sm:$0xff] %v18444_v32  ;;  %9596 = vadd.xlane.f32.xlu0 %v9525_v35  ;;  %9598 = vadd.xlane.f32.xlu1 %v9526_v27  ;;  %v3579_v35 = vpop.xlane.xlu0 %3578  ;;  %v15816_v27 = vsel %vm1494_vm3, 1.0, %v22780_v47  ;;  %v3789_v47 = vrot.slane %v18426_v1, %v18453_v50  ;;  %vm9235_vm2 = vcmask 917312   ;;  %vm9242_vm3 = vcmask 982912  }
 0x27c   :  { %22834 = vst [vmem:[#allocation57_spill] sm:$0xff] %v18447_v59  ;;  %22835 = vst [vmem:[#allocation58_spill] sm:$0xff] %v18450_v21  ;;  %v2819_v11 = vpop.f32.mrb[114].mxu1  ;;  %v3236_v6 = vpop.f32.mrb[50].mxu0  ;;  %v3781_v62 = vrot.slane %v18426_v1, %v18447_v59  ;;  %v3849_v23 = vrot.slane %v3579_v35, %v18450_v21  ;;  %v3857_v48 = vrot.slane %v3579_v35, %v18456_v33 }
 0x27d   :  { %22837 = vst [vmem:[#allocation60_spill] sm:$0xff] %v18456_v33  ;;  %22838 = vst [vmem:[#allocation61_spill] sm:$0xff] %v18460_v39  ;;  %v18463_v37 = vmul.f32 %v22839_v40, %v2819_v11  ;;  %v9527_v26 = vmul.f32 %v17593_v46, %v3236_v6  ;;  %v2821_v5 = vpop.f32.mrb[115].mxu1  ;;  %16134 = vmatmul.mubr.msk.f32.gmra.mrb[156].mxu0 %vm1491_vm4, %v22783_v15  ;;  %v3238_v9 = vpop.f32.mrb[51].mxu0  ;;  %v3773_v11 = vrot.slane %v18426_v1, %v18441_v10  ;;  %vm9249_vm4 = vcmask 1048512  }
 0x27e   :  { %16135 = vmatprep.mubr.msk.f32.mxu0 %vm2355_vm5, %v15816_v27  ;;  %v3777_v46 = vrot.slane %v18426_v1, %v18444_v32  ;;  %v3785_v9 = vrot.slane %v18426_v1, %v18450_v21  ;;  %v3793_v5 = vrot.slane %v18426_v1, %v18456_v33  ;;  %v3797_v6 = vrot.slane %v18426_v1, %v18460_v39 }
 0x27f   :  { %22840 = vst [vmem:[#allocation62_spill] sm:$0xff] %v18463_v37  ;;  %3624 = vadd.xlane.f32.xlu0 %v18290_v20  ;;  %3626 = vadd.xlane.f32.xlu1 %v18298_v29  ;;  %v3833_v20 = vrot.slane %v3579_v35, %v18435_v12  ;;  %v3837_v27 = vrot.slane %v3579_v35, %v18441_v10  ;;  %vm9151_vm5 = vcmask 130112  }
 0x280   :  { %v2824_v57 = vpop.f32.mrb[116].mxu1  ;;  %v3841_v40 = vrot.slane %v3579_v35, %v18444_v32  ;;  %v3241_v41 = vpop.f32.mrb[52].mxu0  ;;  %v3845_v29 = vrot.slane %v3579_v35, %v18447_v59  ;;  %v3853_v1 = vrot.slane %v3579_v35, %v18453_v50  ;;  %v5816_v49 = vcombine.low %v3785_v9, %v3789_v47 }
 0x281   :  { %v18494_v13 = vmul.f32 %v2824_v57, %v17882_v45  ;;  %v2826_v37 = vpop.f32.mrb[117].mxu1  ;;  %16136 = vmatmul.mubr.msk.f32.gmra.mrb[158].mxu0 %vm1493_vm6, %v22783_v15  ;;  %v9528_v3 = vmul.f32 %v3241_v41, %v17622_v58  ;;  %v3243_v28 = vpop.f32.mrb[53].mxu0  ;;  %v3861_v57 = vrot.slane %v3579_v35, %v18460_v39  ;;  %v18508_v15 = vsub.s32 %v5820_v4, %v18420_v25  ;;  %v22842_v41 = vld [vmem:[#allocation25_spill] sm:$0xff] }
 0x282   :  { %v18505_v45 = vpop.xlane.xlu1 %3576  ;;  %v5814_v37 = vcombine.low %v3769_v7, %v3773_v11  ;;  %v5817_v2 = vcombine.low %v3793_v5, %v3797_v6  ;;  %v5912_v43 = vcombine.low %v3833_v20, %v3837_v27  ;;  %v3581_v58 = vpop.xlane.xlu0 %3580  ;;  %v5913_v14 = vcombine.low %v3841_v40, %v3845_v29 }
 0x283   :  { %22841 = vst [vmem:[#allocation63_spill] sm:$0xff] %v18494_v13  ;;  %9600 = vadd.xlane.f32.xlu0 %v9527_v26  ;;  %v5815_v13 = vcombine.low %v3777_v46, %v3781_v62  ;;  %9602 = vadd.xlane.f32.xlu1 %v9528_v3  ;;  %v5914_v26 = vcombine.low %v3849_v23, %v3853_v1 }
 0x284   :  { %v2829_v16 = vpop.f32.mrb[118].mxu1  ;;  %v3246_v51 = vpop.f32.mrb[54].mxu0  ;;  %v5915_v11 = vcombine.low %v3857_v48, %v3861_v57  ;;  %v3801_v4 = vrot.slane %v18505_v45, %v18435_v12  ;;  %v3805_v3 = vrot.slane %v18505_v45, %v18441_v10  ;;  %v5824_v46 = vrot.slane %v5814_v37, %v18508_v15 }
 0x285   :  { %v18511_v28 = vmul.f32 %v22842_v41, %v2829_v16  ;;  %v9529_v35 = vmul.f32 %v17614_v55, %v3246_v51  ;;  %v2831_v63 = vpop.f32.mrb[119].mxu1  ;;  %v3248_v7 = vpop.f32.mrb[55].mxu0  ;;  %v5831_v16 = vrot.slane %v5815_v13, %v18508_v15  ;;  %v5838_v62 = vrot.slane %v5816_v49, %v18508_v15 }
 0x286   :  { %v3809_v55 = vrot.slane %v18505_v45, %v18444_v32  ;;  %v5845_v63 = vrot.slane %v5817_v2, %v18508_v15  ;;  %v5922_v48 = vrot.slane %v5912_v43, %v18508_v15  ;;  %v3865_v40 = vrot.slane %v3581_v58, %v18435_v12  ;;  %v18540_v29 = vpop.xlane.xlu0 %3584 }
 0x287   :  { %3628 = vadd.xlane.f32.xlu0 %v18306_v54  ;;  %3630 = vadd.xlane.f32.xlu1 %v18314_v61  ;;  %v3813_v54 = vrot.slane %v18505_v45, %v18447_v59  ;;  %v5929_v47 = vrot.slane %v5913_v14, %v18508_v15  ;;  %v5936_v5 = vrot.slane %v5914_v26, %v18508_v15 }
 0x288   :  { %v2834_v51 = vpop.f32.mrb[120].mxu1  ;;  %v3251_v13 = vpop.f32.mrb[56].mxu0  ;;  %v3869_v61 = vrot.slane %v3581_v58, %v18441_v10  ;;  %v5943_v43 = vrot.slane %v5915_v11, %v18508_v15  ;;  %v3873_v20 = vrot.slane %v3581_v58, %v18444_v32  ;;  %v3877_v27 = vrot.slane %v3581_v58, %v18447_v59 }
 0x289   :  { %v18531_v23 = vmul.f32 %v2834_v51, %v17898_v31  ;;  %v2836_v9 = vpop.f32.mrb[121].mxu1  ;;  %v9530_v2 = vmul.f32 %v3251_v13, %v17643_v17  ;;  %v3253_v6 = vpop.f32.mrb[57].mxu0  ;;  %v3881_v1 = vrot.slane %v3581_v58, %v18450_v21  ;;  %v3885_v14 = vrot.slane %v3581_v58, %v18453_v50  ;;  %v22844_v51 = vld [vmem:[#allocation27_spill] sm:$0xff] }
 0x28a   :  { %v3889_v57 = vrot.slane %v3581_v58, %v18456_v33  ;;  %v3893_v37 = vrot.slane %v3581_v58, %v18460_v39  ;;  %v18546_v26 = vcombine.low %v5824_v46, %v5831_v16  ;;  %v3817_v7 = vrot.slane %v18505_v45, %v18450_v21 }
 0x28b   :  { %22843 = vst [vmem:[#allocation64_spill] sm:$0xff] %v18531_v23  ;;  %9604 = vadd.xlane.f32.xlu0 %v9529_v35  ;;  %9606 = vadd.xlane.f32.xlu1 %v9530_v2  ;;  %v3821_v11 = vrot.slane %v18505_v45, %v18453_v50  ;;  %v3825_v35 = vrot.slane %v18505_v45, %v18456_v33 }
 0x28c   :  { %v2839_v17 = vpop.f32.mrb[122].mxu1  ;;  %v3256_v49 = vpop.f32.mrb[58].mxu0  ;;  %v18558_v2 = vcombine.low %v5838_v62, %v5845_v63  ;;  %v3829_v46 = vrot.slane %v18505_v45, %v18460_v39  ;;  %v18562_v6 = vcombine.low %v5922_v48, %v5929_v47  ;;  %v18564_v25 = vcombine.low %v5936_v5, %v5943_v43 }
 0x28d   :  { %v18555_v13 = vmul.f32 %v22844_v51, %v2839_v17  ;;  %v9531_v9 = vmul.f32 %v17635_v8, %v3256_v49  ;;  %v2841_v58 = vpop.f32.mrb[123].mxu1  ;;  %v3258_v16 = vpop.f32.mrb[59].mxu0  ;;  %v5961_v31 = vcombine.low %v3865_v40, %v3869_v61  ;;  %v5962_v41 = vcombine.low %v3873_v20, %v3877_v27 }
 0x28e   :  { %v5963_v23 = vcombine.low %v3881_v1, %v3885_v14  ;;  %v5964_v17 = vcombine.low %v3889_v57, %v3893_v37  ;;  %v18567_v51 = vcombine.low %v3801_v4, %v3805_v3  ;;  %v3929_v8 = vrot.slane %v18540_v29, %v18435_v12 }
 0x28f   :  { %3632 = vadd.xlane.f32.xlu0 %v18322_v22  ;;  %3634 = vadd.xlane.f32.xlu1 %v18330_v42  ;;  %v3933_v45 = vrot.slane %v18540_v29, %v18441_v10  ;;  %v3937_v63 = vrot.slane %v18540_v29, %v18444_v32  ;;  %v3941_v48 = vrot.slane %v18540_v29, %v18447_v59 }
 0x290   :  { %v2844_v62 = vpop.f32.mrb[124].mxu1  ;;  %v3945_v22 = vrot.slane %v18540_v29, %v18450_v21  ;;  %v3261_v3 = vpop.f32.mrb[60].mxu0  ;;  %v3949_v42 = vrot.slane %v18540_v29, %v18453_v50  ;;  %v3953_v47 = vrot.slane %v18540_v29, %v18456_v33  ;;  %v3957_v5 = vrot.slane %v18540_v29, %v18460_v39 }
 0x291   :  { %v18581_v4 = vmul.f32 %v2844_v62, %v17914_v38  ;;  %v2846_v40 = vpop.f32.mrb[125].mxu1  ;;  %v9532_v61 = vmul.f32 %v3261_v3, %v17664_v34  ;;  %v3263_v43 = vpop.f32.mrb[61].mxu0  ;;  %v5971_v20 = vrot.slane %v5961_v31, %v18508_v15  ;;  %v5978_v27 = vrot.slane %v5962_v41, %v18508_v15 }
 0x292   :  { %v5864_v1 = vcombine.low %v3809_v55, %v3813_v54  ;;  %v5985_v14 = vrot.slane %v5963_v23, %v18508_v15  ;;  %v5992_v57 = vrot.slane %v5964_v17, %v18508_v15  ;;  %v5865_v37 = vcombine.low %v3817_v7, %v3821_v11  ;;  %v18598_v41 = vpop.xlane.xlu1 %3582  ;;  %v22845_v55 = vld [vmem:[#allocation29_spill] sm:$0xff] }
 0x293   :  { %9608 = vadd.xlane.f32.xlu0 %v9531_v9  ;;  %v5866_v49 = vcombine.low %v3825_v35, %v3829_v46  ;;  %9610 = vadd.xlane.f32.xlu1 %v9532_v61  ;;  %v5854_v29 = vrot.slane %v18546_v26, %v18508_v15  ;;  %v5861_v34 = vrot.slane %v18558_v2, %v18508_v15 }
 0x294   :  { %v2849_v58 = vpop.f32.mrb[126].mxu1  ;;  %v3266_v16 = vpop.f32.mrb[62].mxu0  ;;  %v6059_v31 = vcombine.low %v3929_v8, %v3933_v45  ;;  %v6060_v62 = vcombine.low %v3937_v63, %v3941_v48  ;;  %v6061_v11 = vcombine.low %v3945_v22, %v3949_v42  ;;  %v6062_v35 = vcombine.low %v3953_v47, %v3957_v5 }
 0x295   :  { %v18601_v54 = vmul.f32 %v22845_v55, %v2849_v58  ;;  %v9533_v23 = vmul.f32 %v17656_v30, %v3266_v16  ;;  %v2851_v7 = vpop.f32.mrb[127].mxu1  ;;  %v3268_v9 = vpop.f32.mrb[63].mxu0  ;;  %v5952_v46 = vrot.slane %v18562_v6, %v18508_v15  ;;  %v5959_v26 = vrot.slane %v18564_v25, %v18508_v15 }
 0x296   :  { %v5993_v2 = vcombine.low %v5971_v20, %v5978_v27  ;;  %v5873_v17 = vrot.slane %v18567_v51, %v18508_v15  ;;  %v5994_v8 = vcombine.low %v5985_v14, %v5992_v57  ;;  %v5880_v45 = vrot.slane %v5864_v1, %v18508_v15 }
 0x297   :  { %3636 = vadd.xlane.f32.xlu0 %v18338_v0  ;;  %v5887_v30 = vrot.slane %v5865_v37, %v18508_v15  ;;  %v5894_v63 = vrot.slane %v5866_v49, %v18508_v15  ;;  %3638 = vadd.xlane.f32.xlu1 %v18346_v19  ;;  %v6069_v6 = vrot.slane %v6059_v31, %v18508_v15  ;;  %v18645_v31 = vpop.xlane.xlu0 %3588 }
 0x298   :  { %v2854_v48 = vpop.f32.mrb[128].mxu1  ;;  %v6076_v25 = vrot.slane %v6060_v62, %v18508_v15  ;;  %v3897_v22 = vrot.slane %v18598_v41, %v18435_v12  ;;  %v3901_v0 = vrot.slane %v18598_v41, %v18441_v10  ;;  %v3271_v3 = vpop.f32.mrb[64].mxu0  ;;  %v6083_v42 = vrot.slane %v6061_v11, %v18508_v15  ;;  %v22846_v62 = vld [vmem:[#allocation31_spill] sm:$0xff] }
 0x299   :  { %v18622_v51 = vmul.f32 %v2854_v48, %v17930_v36  ;;  %v2856_v40 = vpop.f32.mrb[129].mxu1  ;;  %v6090_v19 = vrot.slane %v6062_v35, %v18508_v15  ;;  %v3905_v47 = vrot.slane %v18598_v41, %v18444_v32  ;;  %v9534_v5 = vmul.f32 %v3271_v3, %v17685_v56  ;;  %v3273_v61 = vpop.f32.mrb[65].mxu0 }
 0x29a   :  { %v3909_v43 = vrot.slane %v18598_v41, %v18447_v59  ;;  %v3913_v20 = vrot.slane %v18598_v41, %v18450_v21  ;;  %v3917_v27 = vrot.slane %v18598_v41, %v18453_v50  ;;  %v6001_v1 = vrot.slane %v5993_v2, %v18508_v15 }
 0x29b   :  { %9612 = vadd.xlane.f32.xlu0 %v9533_v23  ;;  %v6008_v14 = vrot.slane %v5994_v8, %v18508_v15  ;;  %v18637_v57 = vcombine.low %v5873_v17, %v5880_v45  ;;  %v18639_v37 = vcombine.low %v5887_v30, %v5894_v63  ;;  %9614 = vadd.xlane.f32.xlu1 %v9534_v5 }
 0x29c   :  { %v2859_v56 = vpop.f32.mrb[130].mxu1  ;;  %v3276_v49 = vpop.f32.mrb[66].mxu0  ;;  %v18641_v58 = vcombine.low %v6069_v6, %v6076_v25  ;;  %v3921_v16 = vrot.slane %v18598_v41, %v18456_v33  ;;  %v18651_v35 = vcombine.low %v6083_v42, %v6090_v19  ;;  %v3925_v9 = vrot.slane %v18598_v41, %v18460_v39 }
 0x29d   :  { %v18648_v23 = vmul.f32 %v22846_v62, %v2859_v56  ;;  %v9535_v7 = vmul.f32 %v17677_v53, %v3276_v49  ;;  %v2861_v11 = vpop.f32.mrb[131].mxu1  ;;  %v3278_v2 = vpop.f32.mrb[67].mxu0  ;;  %v18655_v17 = vcombine.low %v5854_v29, %v5861_v34  ;;  %v18657_v8 = vcombine.low %v3897_v22, %v3901_v0 }
 0x29e   :  { %v18659_v45 = vcombine.low %v3905_v47, %v3909_v43  ;;  %v18661_v30 = vcombine.low %v3913_v20, %v3917_v27  ;;  %v18664_v63 = vcombine.low %v5952_v46, %v5959_v26  ;;  %v18666_v53 = vcombine.low %v6001_v1, %v6008_v14  ;;  %v18672_v29 = vpop.xlane.xlu1 %3586  ;;  %v3593_v43 = vpop.xlane.xlu0 %3592 }
 0x29f   :  { %22847 = vst [vmem:[#allocation65_spill] sm:$0xff] %v18655_v17  ;;  %3640 = vadd.xlane.f32.xlu0 %v18355_v52  ;;  %3642 = vadd.xlane.f32.xlu1 %v18365_v60  ;;  %v3993_v6 = vrot.slane %v18645_v31, %v18435_v12  ;;  %v3997_v52 = vrot.slane %v18645_v31, %v18441_v10 }
 0x2a0   :  { %22848 = vst [vmem:[#allocation66_spill] sm:$0xff] %v18664_v63  ;;  %22849 = vst [vmem:[#allocation67_spill] sm:$0xff] %v18666_v53  ;;  %v2864_v34 = vpop.f32.mrb[132].mxu1  ;;  %v4001_v46 = vrot.slane %v18645_v31, %v18444_v32  ;;  %v4005_v26 = vrot.slane %v18645_v31, %v18447_v59  ;;  %v3281_v22 = vpop.f32.mrb[68].mxu0  ;;  %v18690_v40 = vcombine.low %v3921_v16, %v3925_v9  ;;  %v22850_v9 = vld [vmem:[#allocation33_spill] sm:$0xff] }
 0x2a1   :  { %v18684_v25 = vmul.f32 %v2864_v34, %v17946_v44  ;;  %v2866_v0 = vpop.f32.mrb[133].mxu1  ;;  %v9536_v42 = vmul.f32 %v3281_v22, %v17700_v18  ;;  %v3283_v19 = vpop.f32.mrb[69].mxu0  ;;  %v6020_v47 = vrot.slane %v18657_v8, %v18508_v15  ;;  %v6027_v5 = vrot.slane %v18659_v45, %v18508_v15  ;;  %v22852_v22 = vld [vmem:[#allocation47_spill] sm:$0xff] }
 0x2a2   :  { %v4009_v20 = vrot.slane %v18645_v31, %v18450_v21  ;;  %v4013_v27 = vrot.slane %v18645_v31, %v18453_v50  ;;  %v4017_v18 = vrot.slane %v18645_v31, %v18456_v33  ;;  %v4021_v1 = vrot.slane %v18645_v31, %v18460_v39 }
 0x2a3   :  { %9616 = vadd.xlane.f32.xlu0 %v9535_v7  ;;  %9618 = vadd.xlane.f32.xlu1 %v9536_v42  ;;  %v18707_v49 = vcombine.low %v3993_v6, %v3997_v52  ;;  %v18709_v16 = vcombine.low %v4001_v46, %v4005_v26  ;;  %v3961_v7 = vrot.slane %v18672_v29, %v18435_v12 }
 0x2a4   :  { %v2869_v14 = vpop.f32.mrb[134].mxu1  ;;  %v3286_v56 = vpop.f32.mrb[70].mxu0  ;;  %v3965_v11 = vrot.slane %v18672_v29, %v18441_v10  ;;  %v3969_v31 = vrot.slane %v18672_v29, %v18444_v32  ;;  %v3973_v34 = vrot.slane %v18672_v29, %v18447_v59  ;;  %v3977_v52 = vrot.slane %v18672_v29, %v18450_v21 }
 0x2a5   :  { %v18716_v2 = vmul.f32 %v22850_v9, %v2869_v14  ;;  %v9537_v8 = vmul.f32 %v17698_v24, %v3286_v56  ;;  %v2871_v45 = vpop.f32.mrb[135].mxu1  ;;  %v3288_v6 = vpop.f32.mrb[71].mxu0  ;;  %v3981_v46 = vrot.slane %v18672_v29, %v18453_v50  ;;  %v3985_v26 = vrot.slane %v18672_v29, %v18456_v33  ;;  %v22853_v56 = vld [vmem:[#allocation48_spill] sm:$0xff] }
 0x2a6   :  { %v3989_v24 = vrot.slane %v18672_v29, %v18460_v39  ;;  %v4057_v0 = vrot.slane %v3593_v43, %v18435_v12  ;;  %v4061_v42 = vrot.slane %v3593_v43, %v18441_v10  ;;  %v4065_v19 = vrot.slane %v3593_v43, %v18444_v32  ;;  %v22856_v9 = vld [vmem:[#allocation4_spill] sm:$0xff] }
 0x2a7   :  { %22851 = vst [vmem:[#allocation68_spill] sm:$0xff] %v18716_v2  ;;  %3644 = vadd.xlane.f32.xlu0 %v22852_v22  ;;  %v4069_v14 = vrot.slane %v3593_v43, %v18447_v59  ;;  %3646 = vadd.xlane.f32.xlu1 %v22853_v56  ;;  %v4073_v6 = vrot.slane %v3593_v43, %v18450_v21  ;;  %v22854_v22 = vld [vmem:[#allocation36_spill] sm:$0xff] }
 0x2a8   :  { %v2874_v45 = vpop.f32.mrb[136].mxu1  ;;  %v4077_v60 = vrot.slane %v3593_v43, %v18453_v50  ;;  %v4081_v3 = vrot.slane %v3593_v43, %v18456_v33  ;;  %v4085_v29 = vrot.slane %v3593_v43, %v18460_v39  ;;  %v3291_v48 = vpop.f32.mrb[72].mxu0  ;;  %v6159_v53 = vcombine.low %v4009_v20, %v4013_v27 }
 0x2a9   :  { %v18742_v61 = vmul.f32 %v2874_v45, %v22854_v22  ;;  %v2876_v41 = vpop.f32.mrb[137].mxu1  ;;  %v6160_v63 = vcombine.low %v4017_v18, %v4021_v1  ;;  %v6108_v17 = vcombine.low %v3961_v7, %v3965_v11  ;;  %v9538_v44 = vmul.f32 %v3291_v48, %v22856_v9  ;;  %v3293_v56 = vpop.f32.mrb[73].mxu0  ;;  %v22857_v1 = vld [vmem:[#allocation35_spill] sm:$0xff] }
 0x2aa   :  { %v6109_v62 = vcombine.low %v3969_v31, %v3973_v34  ;;  %v6110_v36 = vcombine.low %v3977_v52, %v3981_v46  ;;  %v6111_v55 = vcombine.low %v3985_v26, %v3989_v24  ;;  %v6041_v38 = vrot.slane %v18690_v40, %v18508_v15  ;;  %v22859_v11 = vld [vmem:[#allocation3_spill] sm:$0xff] }
 0x2ab   :  { %22855 = vst [vmem:[#allocation47_spill] sm:$0xff] %v18742_v61  ;;  %9620 = vadd.xlane.f32.xlu0 %v9537_v8  ;;  %v18747_v2 = vcombine.low %v6020_v47, %v6027_v5  ;;  %v6255_v43 = vcombine.low %v4057_v0, %v4061_v42  ;;  %v6256_v45 = vcombine.low %v4065_v19, %v4069_v14  ;;  %v18759_v8 = vpop.xlane.xlu1 %3590  ;;  %v22869_v0 = vld [vmem:[#allocation38_spill] sm:$0xff] }
 0x2ac   :  { %9622 = vadd.xlane.f32.xlu1 %v9538_v44  ;;  %v2879_v22 = vpop.f32.mrb[138].mxu1  ;;  %v3296_v41 = vpop.f32.mrb[74].mxu0  ;;  %v6167_v20 = vrot.slane %v18707_v49, %v18508_v15  ;;  %v6174_v48 = vrot.slane %v18709_v16, %v18508_v15  ;;  %v6257_v27 = vcombine.low %v4073_v6, %v4077_v60  ;;  %v6258_v18 = vcombine.low %v4081_v3, %v4085_v29  ;;  %v22860_v16 = vld [vmem:[#allocation49_spill] sm:$0xff]  ;;  %v22871_v29 = vld [vmem:[#allocation6_spill] sm:$0xff] }
 0x2ad   :  { %v18754_v7 = vmul.f32 %v22857_v1, %v2879_v22  ;;  %v9539_v40 = vmul.f32 %v22859_v11, %v3296_v41  ;;  %v2881_v47 = vpop.f32.mrb[139].mxu1  ;;  %v3298_v5 = vpop.f32.mrb[75].mxu0  ;;  %v6181_v9 = vrot.slane %v6159_v53, %v18508_v15  ;;  %v6188_v44 = vrot.slane %v6160_v63, %v18508_v15 }
 0x2ae   :  { %v6118_v49 = vrot.slane %v6108_v17, %v18508_v15  ;;  %v6125_v31 = vrot.slane %v6109_v62, %v18508_v15  ;;  %v6132_v60 = vrot.slane %v6110_v36, %v18508_v15  ;;  %v6139_v3 = vrot.slane %v6111_v55, %v18508_v15  ;;  %v22865_v55 = vld [vmem:[#allocation50_spill] sm:$0xff] }
 0x2af   :  { %22858 = vst [vmem:[#allocation48_spill] sm:$0xff] %v18754_v7  ;;  %3648 = vadd.xlane.f32.xlu0 %v22860_v16  ;;  %v22861_v34 = vrot.slane %v18639_v37, %v18508_v15  ;;  %v22862_v53 = vrot.slane %v18637_v57, %v18508_v15  ;;  %v22864_v63 = vrot.slane %v18661_v30, %v18508_v15 }
 0x2b0   :  { %v6265_v62 = vrot.slane %v6255_v43, %v18508_v15  ;;  %v6272_v36 = vrot.slane %v6256_v45, %v18508_v15  ;;  %3650 = vadd.xlane.f32.xlu1 %v22865_v55  ;;  %v2884_v46 = vpop.f32.mrb[140].mxu1  ;;  %v22866_v37 = vrot.slane %v18651_v35, %v18508_v15  ;;  %v22867_v57 = vrot.slane %v18641_v58, %v18508_v15  ;;  %v3301_v19 = vpop.f32.mrb[76].mxu0 }
 0x2b1   :  { %v18772_v52 = vcombine.low %v22862_v53, %v22861_v34  ;;  %v18777_v17 = vcombine.low %v22864_v63, %v6041_v38  ;;  %v6279_v38 = vrot.slane %v6257_v27, %v18508_v15  ;;  %v6286_v24 = vrot.slane %v6258_v18, %v18508_v15  ;;  %v2886_v14 = vpop.f32.mrb[141].mxu1  ;;  %v3303_v56 = vpop.f32.mrb[77].mxu0 }
 0x2b2   :  { %v18788_v26 = vcombine.low %v22867_v57, %v22866_v37  ;;  %v18795_v42 = vmul.f32 %v2884_v46, %v22869_v0  ;;  %v18797_v6 = vcombine.low %v6167_v20, %v6174_v48  ;;  %v4025_v35 = vrot.slane %v18759_v8, %v18435_v12  ;;  %v18810_v27 = vpop.xlane.xlu0 %3596  ;;  %v18844_v57 = vpop.xlane.xlu1 %3594 }
 0x2b3   :  { %22863 = vst [vmem:[#allocation4_spill] sm:$0xff] %v18772_v52  ;;  %v4029_v58 = vrot.slane %v18759_v8, %v18441_v10  ;;  %v9540_v22 = vmul.f32 %v3301_v19, %v22871_v29  ;;  %v18804_v43 = vcombine.low %v6181_v9, %v6188_v44  ;;  %v18806_v45 = vcombine.low %v6118_v49, %v6125_v31  ;;  %v22872_v31 = vld [vmem:[#allocation37_spill] sm:$0xff] }
 0x2b4   :  { %22868 = vst [vmem:[#allocation3_spill] sm:$0xff] %v18788_v26  ;;  %22870 = vst [vmem:[#allocation49_spill] sm:$0xff] %v18795_v42  ;;  %v18808_v41 = vcombine.low %v6132_v60, %v6139_v3  ;;  %9624 = vadd.xlane.f32.xlu0 %v9539_v40  ;;  %v18814_v48 = vcombine.low %v6265_v62, %v6272_v36  ;;  %v4033_v18 = vrot.slane %v18759_v8, %v18444_v32  ;;  %v2889_v47 = vpop.f32.mrb[142].mxu1  ;;  %v3306_v5 = vpop.f32.mrb[78].mxu0  ;;  %v22874_v3 = vld [vmem:[#allocation5_spill] sm:$0xff] }
 0x2b5   :  { %v4037_v11 = vrot.slane %v18759_v8, %v18447_v59  ;;  %9626 = vadd.xlane.f32.xlu1 %v9540_v22  ;;  %v18820_v9 = vcombine.low %v6279_v38, %v6286_v24  ;;  %v4041_v44 = vrot.slane %v18759_v8, %v18450_v21  ;;  %v4045_v40 = vrot.slane %v18759_v8, %v18453_v50  ;;  %v2891_v34 = vpop.f32.mrb[143].mxu1  ;;  %v3308_v53 = vpop.f32.mrb[79].mxu0  ;;  %v22875_v38 = vld [vmem:[#allocation51_spill] sm:$0xff] }
 0x2b6   :  { %v4049_v49 = vrot.slane %v18759_v8, %v18456_v33  ;;  %v18829_v60 = vmul.f32 %v22872_v31, %v2889_v47  ;;  %v9541_v16 = vmul.f32 %v22874_v3, %v3306_v5  ;;  %v4053_v63 = vrot.slane %v18759_v8, %v18460_v39  ;;  %v22877_v47 = vld [vmem:[#allocation40_spill] sm:$0xff]  ;;  %v22910_v31 = vld [vmem:[#allocation14_spill] sm:$0xff] }
 0x2b7   :  { %v18834_v62 = vcombine.low %v4025_v35, %v4029_v58  ;;  %v6197_v36 = vrot.slane %v18797_v6, %v18508_v15  ;;  %v6204_v55 = vrot.slane %v18804_v43, %v18508_v15  ;;  %v4121_v8 = vrot.slane %v18810_v27, %v18435_v12  ;;  %v22876_v6 = vld [vmem:[#allocation53_spill] sm:$0xff]  ;;  %v22879_v3 = vld [vmem:[#allocation8_spill] sm:$0xff] }
 0x2b8   :  { %22873 = vst [vmem:[#allocation50_spill] sm:$0xff] %v18829_v60  ;;  %3652 = vadd.xlane.f32.xlu0 %v22875_v38  ;;  %v4125_v24 = vrot.slane %v18810_v27, %v18441_v10  ;;  %v4129_v19 = vrot.slane %v18810_v27, %v18444_v32  ;;  %v4133_v14 = vrot.slane %v18810_v27, %v18447_v59  ;;  %v2894_v35 = vpop.f32.mrb[144].mxu1  ;;  %v3311_v58 = vpop.f32.mrb[80].mxu0 }
 0x2b9   :  { %3654 = vadd.xlane.f32.xlu1 %v22876_v6  ;;  %v6295_v29 = vrot.slane %v18814_v48, %v18508_v15  ;;  %v6302_v22 = vrot.slane %v18820_v9, %v18508_v15  ;;  %v6207_v56 = vcombine.low %v4033_v18, %v4037_v11  ;;  %v6208_v43 = vcombine.low %v4041_v44, %v4045_v40  ;;  %v2896_v53 = vpop.f32.mrb[145].mxu1  ;;  %v3313_v38 = vpop.f32.mrb[81].mxu0 }
 0x2ba   :  { %v18861_v5 = vmul.f32 %v2894_v35, %v22877_v47  ;;  %v9542_v34 = vmul.f32 %v3311_v58, %v22879_v3  ;;  %v6209_v46 = vcombine.low %v4049_v49, %v4053_v63  ;;  %v6216_v6 = vrot.slane %v18834_v62, %v18508_v15 }
 0x2bb   :  { %v4137_v37 = vrot.slane %v18810_v27, %v18450_v21  ;;  %v4141_v48 = vrot.slane %v18810_v27, %v18453_v50  ;;  %v4145_v18 = vrot.slane %v18810_v27, %v18456_v33  ;;  %v4149_v11 = vrot.slane %v18810_v27, %v18460_v39 }
 0x2bc   :  { %22878 = vst [vmem:[#allocation6_spill] sm:$0xff] %v18861_v5  ;;  %9628 = vadd.xlane.f32.xlu0 %v9541_v16  ;;  %v6353_v9 = vcombine.low %v4121_v8, %v4125_v24  ;;  %v6354_v44 = vcombine.low %v4129_v19, %v4133_v14  ;;  %v4089_v40 = vrot.slane %v18844_v57, %v18435_v12  ;;  %v2899_v63 = vpop.f32.mrb[146].mxu1  ;;  %v3316_v62 = vpop.f32.mrb[82].mxu0  ;;  %v22880_v8 = vld [vmem:[#allocation39_spill] sm:$0xff] }
 0x2bd   :  { %v4093_v49 = vrot.slane %v18844_v57, %v18441_v10  ;;  %9630 = vadd.xlane.f32.xlu1 %v9542_v34  ;;  %v4097_v35 = vrot.slane %v18844_v57, %v18444_v32  ;;  %v4101_v58 = vrot.slane %v18844_v57, %v18447_v59  ;;  %v4105_v27 = vrot.slane %v18844_v57, %v18450_v21  ;;  %v22882_v19 = vld [vmem:[#allocation7_spill] sm:$0xff]  ;;  %v2901_v3 = vpop.f32.mrb[147].mxu1  ;;  %v3318_v34 = vpop.f32.mrb[83].mxu0 }
 0x2be   :  { %v4109_v16 = vrot.slane %v18844_v57, %v18453_v50  ;;  %v18887_v24 = vmul.f32 %v22880_v8, %v2899_v63  ;;  %v9543_v14 = vmul.f32 %v22882_v19, %v3316_v62  ;;  %v4113_v53 = vrot.slane %v18844_v57, %v18456_v33  ;;  %v18899_v63 = vpop.xlane.xlu0 %3600  ;;  %v22883_v8 = vld [vmem:[#allocation62_spill] sm:$0xff] }
 0x2bf   :  { %v4117_v38 = vrot.slane %v18844_v57, %v18460_v39  ;;  %v6223_v30 = vrot.slane %v6207_v56, %v18508_v15  ;;  %v6230_v20 = vrot.slane %v6208_v43, %v18508_v15  ;;  %v6237_v26 = vrot.slane %v6209_v46, %v18508_v15  ;;  %v22884_v57 = vld [vmem:[#allocation63_spill] sm:$0xff] }
 0x2c0   :  { %22881 = vst [vmem:[#allocation5_spill] sm:$0xff] %v18887_v24  ;;  %v18897_v52 = vcombine.low %v4137_v37, %v4141_v48  ;;  %3656 = vadd.xlane.f32.xlu0 %v22883_v8  ;;  %v18902_v62 = vcombine.low %v4145_v18, %v4149_v11  ;;  %v6363_v19 = vrot.slane %v6353_v9, %v18508_v15  ;;  %v2904_v56 = vpop.f32.mrb[148].mxu1  ;;  %v3321_v43 = vpop.f32.mrb[84].mxu0 }
 0x2c1   :  { %v6370_v3 = vrot.slane %v6354_v44, %v18508_v15  ;;  %v18906_v34 = vcombine.low %v4089_v40, %v4093_v49  ;;  %3658 = vadd.xlane.f32.xlu1 %v22884_v57  ;;  %v22885_v46 = vrot.slane %v18777_v17, %v18508_v15  ;;  %v22886_v37 = vrot.slane %v18747_v2, %v18508_v15  ;;  %v22889_v44 = vld [vmem:[#allocation42_spill] sm:$0xff]  ;;  %v2906_v57 = vpop.f32.mrb[149].mxu1  ;;  %v3323_v47 = vpop.f32.mrb[85].mxu0 }
 0x2c2   :  { %v18917_v18 = vcombine.low %v6197_v36, %v6204_v55  ;;  %v18919_v11 = vcombine.low %v4097_v35, %v4101_v58  ;;  %v18921_v9 = vcombine.low %v4105_v27, %v4109_v16  ;;  %v18924_v40 = vmul.f32 %v2904_v56, %v22889_v44  ;;  %v22891_v49 = vld [vmem:[#allocation10_spill] sm:$0xff]  ;;  %v3599_v16 = vpop.xlane.xlu1 %3598 }
 0x2c3   :  { %v18915_v48 = vcombine.low %v22886_v37, %v22885_v46  ;;  %v9544_v8 = vmul.f32 %v3321_v43, %v22891_v49  ;;  %v22892_v17 = vrot.slane %v18808_v41, %v18508_v15  ;;  %v22893_v2 = vrot.slane %v18806_v45, %v18508_v15 }
 0x2c4   :  { %22888 = vst [vmem:[#allocation53_spill] sm:$0xff] %v18917_v18  ;;  %22890 = vst [vmem:[#allocation8_spill] sm:$0xff] %v18924_v40  ;;  %v6307_v36 = vcombine.low %v4113_v53, %v4117_v38  ;;  %v18935_v55 = vcombine.low %v6295_v29, %v6302_v22  ;;  %v18937_v35 = vcombine.low %v6216_v6, %v6223_v30  ;;  %9632 = vadd.xlane.f32.xlu0 %v9543_v14  ;;  %v2909_v30 = vpop.f32.mrb[150].mxu1  ;;  %v22898_v14 = vld [vmem:[#allocation41_spill] sm:$0xff] }
 0x2c5   :  { %22887 = vst [vmem:[#allocation51_spill] sm:$0xff] %v18915_v48  ;;  %v18933_v46 = vcombine.low %v22893_v2, %v22892_v17  ;;  %v18939_v58 = vcombine.low %v6230_v20, %v6237_v26  ;;  %v6377_v27 = vrot.slane %v18897_v52, %v18508_v15  ;;  %v6384_v41 = vrot.slane %v18902_v62, %v18508_v15  ;;  %v3326_v26 = vpop.f32.mrb[86].mxu0  ;;  %v22900_v38 = vld [vmem:[#allocation9_spill] sm:$0xff]  ;;  %v22901_v2 = vld [vmem:[#allocation64_spill] sm:$0xff] }
 0x2c6   :  { %22895 = vst [vmem:[#allocation62_spill] sm:$0xff] %v18935_v55  ;;  %22896 = vst [vmem:[#allocation63_spill] sm:$0xff] %v18937_v35  ;;  %v18945_v47 = vcombine.low %v6363_v19, %v6370_v3  ;;  %v6314_v45 = vrot.slane %v18906_v34, %v18508_v15  ;;  %v4185_v29 = vrot.slane %v18899_v63, %v18435_v12  ;;  %9634 = vadd.xlane.f32.xlu1 %v9544_v8  ;;  %v2911_v19 = vpop.f32.mrb[151].mxu1  ;;  %v3328_v3 = vpop.f32.mrb[87].mxu0  ;;  %v22904_v55 = vld [vmem:[#allocation12_spill] sm:$0xff] }
 0x2c7   :  { %22894 = vst [vmem:[#allocation7_spill] sm:$0xff] %v18933_v46  ;;  %v6321_v20 = vrot.slane %v18919_v11, %v18508_v15  ;;  %v6328_v52 = vrot.slane %v18921_v9, %v18508_v15  ;;  %v4189_v22 = vrot.slane %v18899_v63, %v18441_v10  ;;  %v4193_v6 = vrot.slane %v18899_v63, %v18444_v32  ;;  %v22902_v19 = vld [vmem:[#allocation44_spill] sm:$0xff] }
 0x2c8   :  { %22897 = vst [vmem:[#allocation10_spill] sm:$0xff] %v18945_v47  ;;  %v18960_v53 = vmul.f32 %v22898_v14, %v2909_v30  ;;  %v9545_v62 = vmul.f32 %v22900_v38, %v3326_v26  ;;  %v6335_v34 = vrot.slane %v6307_v36, %v18508_v15  ;;  %v4197_v56 = vrot.slane %v18899_v63, %v18447_v59  ;;  %v2914_v36 = vpop.f32.mrb[152].mxu1  ;;  %v3331_v30 = vpop.f32.mrb[88].mxu0 }
 0x2c9   :  { %v4201_v43 = vrot.slane %v18899_v63, %v18450_v21  ;;  %v4205_v37 = vrot.slane %v18899_v63, %v18453_v50  ;;  %v4209_v11 = vrot.slane %v18899_v63, %v18456_v33  ;;  %v4213_v9 = vrot.slane %v18899_v63, %v18460_v39  ;;  %3660 = vadd.xlane.f32.xlu0 %v18511_v28  ;;  %v2916_v18 = vpop.f32.mrb[153].mxu1  ;;  %v3333_v48 = vpop.f32.mrb[89].mxu0 }
 0x2ca   :  { %22899 = vst [vmem:[#allocation69_spill] sm:$0xff] %v18960_v53  ;;  %v4153_v49 = vrot.slane %v3599_v16, %v18435_v12  ;;  %v4157_v8 = vrot.slane %v3599_v16, %v18441_v10  ;;  %v4161_v57 = vrot.slane %v3599_v16, %v18444_v32  ;;  %v4165_v17 = vrot.slane %v3599_v16, %v18447_v59 }
 0x2cb   :  { %3662 = vadd.xlane.f32.xlu1 %v22901_v2  ;;  %v4169_v26 = vrot.slane %v3599_v16, %v18450_v21  ;;  %v4173_v38 = vrot.slane %v3599_v16, %v18453_v50  ;;  %v4177_v63 = vrot.slane %v3599_v16, %v18456_v33  ;;  %v4181_v28 = vrot.slane %v3599_v16, %v18460_v39 }
 0x2cc   :  { %v18985_v3 = vmul.f32 %v2914_v36, %v22902_v19  ;;  %v9546_v46 = vmul.f32 %v3331_v30, %v22904_v55  ;;  %v18988_v14 = vcombine.low %v4185_v29, %v4189_v22  ;;  %v18990_v2 = vcombine.low %v4193_v6, %v4197_v56  ;;  %v19000_v36 = vpop.xlane.xlu1 %3602  ;;  %v19002_v55 = vpop.xlane.xlu0 %3604  ;;  %v22913_v19 = vld [vmem:[#allocation13_spill] sm:$0xff] }
 0x2cd   :  { %v18996_v0 = vcombine.low %v6377_v27, %v6384_v41  ;;  %9636 = vadd.xlane.f32.xlu0 %v9545_v62  ;;  %v19004_v48 = vcombine.low %v4201_v43, %v4205_v37  ;;  %v19006_v18 = vcombine.low %v4209_v11, %v4213_v9  ;;  %v19008_v29 = vcombine.low %v4153_v49, %v4157_v8  ;;  %v2919_v6 = vpop.f32.mrb[154].mxu1  ;;  %v3336_v27 = vpop.f32.mrb[90].mxu0  ;;  %v22905_v62 = vld [vmem:[#allocation43_spill] sm:$0xff] }
 0x2ce   :  { %22903 = vst [vmem:[#allocation9_spill] sm:$0xff] %v18985_v3  ;;  %v19010_v22 = vcombine.low %v4161_v57, %v4165_v17  ;;  %v19012_v41 = vcombine.low %v6314_v45, %v6321_v20  ;;  %v19014_v56 = vcombine.low %v6328_v52, %v6335_v34  ;;  %v19016_v30 = vcombine.low %v4169_v26, %v4173_v38  ;;  %v22907_v37 = vld [vmem:[#allocation11_spill] sm:$0xff]  ;;  %v2921_v9 = vpop.f32.mrb[155].mxu1  ;;  %v3338_v49 = vpop.f32.mrb[91].mxu0 }
 0x2cf   :  { %9638 = vadd.xlane.f32.xlu1 %v9546_v46  ;;  %v19018_v16 = vcombine.low %v4177_v63, %v4181_v28  ;;  %v19021_v43 = vmul.f32 %v22905_v62, %v2919_v6  ;;  %v9547_v11 = vmul.f32 %v22907_v37, %v3336_v27  ;;  %v4249_v20 = vrot.slane %v19002_v55, %v18435_v12  ;;  %v22908_v49 = vld [vmem:[#allocation46_spill] sm:$0xff] }
 0x2d0   :  { %v4253_v52 = vrot.slane %v19002_v55, %v18441_v10  ;;  %v4257_v34 = vrot.slane %v19002_v55, %v18444_v32  ;;  %v4261_v8 = vrot.slane %v19002_v55, %v18447_v59  ;;  %v19036_v57 = vpop.xlane.xlu1 %3606  ;;  %v2924_v28 = vpop.f32.mrb[156].mxu1  ;;  %v4265_v37 = vrot.slane %v19002_v55, %v18450_v21 }
 0x2d1   :  { %22906 = vst [vmem:[#allocation64_spill] sm:$0xff] %v19021_v43  ;;  %3664 = vadd.xlane.f32.xlu0 %v18555_v13  ;;  %v3341_v6 = vpop.f32.mrb[92].mxu0  ;;  %v4269_v9 = vrot.slane %v19002_v55, %v18453_v50  ;;  %v19057_v44 = vmul.f32 %v2924_v28, %v22908_v49  ;;  %v4273_v17 = vrot.slane %v19002_v55, %v18456_v33  ;;  %v22911_v49 = vld [vmem:[#allocation45_spill] sm:$0xff] }
 0x2d2   :  { %v9548_v38 = vmul.f32 %v3341_v6, %v22910_v31  ;;  %v3343_v63 = vpop.f32.mrb[93].mxu0  ;;  %v4277_v27 = vrot.slane %v19002_v55, %v18460_v39  ;;  %v19064_v13 = vcombine.low %v4249_v20, %v4253_v52  ;;  %v19066_v26 = vcombine.low %v4257_v34, %v4261_v8 }
 0x2d3   :  { %3666 = vadd.xlane.f32.xlu1 %v18581_v4  ;;  %22909 = vst [vmem:[#allocation12_spill] sm:$0xff] %v19057_v44  ;;  %v2926_v4 = vpop.f32.mrb[157].mxu1  ;;  %v4217_v46 = vrot.slane %v19000_v36, %v18435_v12  ;;  %v4221_v28 = vrot.slane %v19000_v36, %v18441_v10  ;;  %v4225_v31 = vrot.slane %v19000_v36, %v18444_v32 }
 0x2d4   :  { %v3611_v45 = vpop.xlane.xlu1 %3610  ;;  %v4229_v63 = vrot.slane %v19000_v36, %v18447_v59  ;;  %v4233_v55 = vrot.slane %v19000_v36, %v18450_v21  ;;  %v4237_v20 = vrot.slane %v19000_v36, %v18453_v50  ;;  %v2929_v52 = vpop.f32.mrb[158].mxu1  ;;  %v4241_v8 = vrot.slane %v19000_v36, %v18456_v33 }
 0x2d5   :  { %9640 = vadd.xlane.f32.xlu0 %v9547_v11  ;;  %v3346_v34 = vpop.f32.mrb[94].mxu0  ;;  %v4245_v11 = vrot.slane %v19000_v36, %v18460_v39  ;;  %v4281_v6 = vrot.slane %v19036_v57, %v18435_v12  ;;  %v4285_v4 = vrot.slane %v19036_v57, %v18441_v10  ;;  %v19089_v62 = vmul.f32 %v22911_v49, %v2929_v52 }
 0x2d6   :  { %v9549_v1 = vmul.f32 %v22913_v19, %v3346_v34  ;;  %v3348_v44 = vpop.f32.mrb[95].mxu0  ;;  %v4289_v43 = vrot.slane %v19036_v57, %v18444_v32  ;;  %v4293_v3 = vrot.slane %v19036_v57, %v18447_v59  ;;  %v4297_v36 = vrot.slane %v19036_v57, %v18450_v21 }
 0x2d7   :  { %9642 = vadd.xlane.f32.xlu1 %v9548_v38  ;;  %22912 = vst [vmem:[#allocation11_spill] sm:$0xff] %v19089_v62  ;;  %v2931_v38 = vpop.f32.mrb[159].mxu1  ;;  %v4301_v53 = vrot.slane %v19036_v57, %v18453_v50  ;;  %v4305_v52 = vrot.slane %v19036_v57, %v18456_v33  ;;  %v4309_v19 = vrot.slane %v19036_v57, %v18460_v39 }
 0x2d8   :  { %v4345_v44 = vrot.slane %v3611_v45, %v18435_v12  ;;  %v4349_v34 = vrot.slane %v3611_v45, %v18441_v10  ;;  %v4353_v38 = vrot.slane %v3611_v45, %v18444_v32  ;;  %v4357_v49 = vrot.slane %v3611_v45, %v18447_v59  ;;  %v3351_v62 = vpop.f32.mrb[96].mxu0 }
 0x2d9   :  { %3668 = vadd.xlane.f32.xlu0 %v18601_v54  ;;  %v4361_v40 = vrot.slane %v3611_v45, %v18450_v21  ;;  %v4365_v24 = vrot.slane %v3611_v45, %v18453_v50  ;;  %v4369_v5 = vrot.slane %v3611_v45, %v18456_v33  ;;  %v4373_v57 = vrot.slane %v3611_v45, %v18460_v39  ;;  %v22914_v54 = vld [vmem:[#allocation16_spill] sm:$0xff]  ;;  %v3353_v42 = vpop.f32.mrb[97].mxu0 }
 0x2da   :  { %v9550_v60 = vmul.f32 %v3351_v62, %v22914_v54  ;;  %v6551_v7 = vcombine.low %v4265_v37, %v4269_v9  ;;  %v6552_v10 = vcombine.low %v4273_v17, %v4277_v27  ;;  %v6559_v32 = vrot.slane %v19064_v13, %v18508_v15  ;;  %v22915_v37 = vld [vmem:[#allocation15_spill] sm:$0xff] }
 0x2db   :  { %3670 = vadd.xlane.f32.xlu1 %v18622_v51  ;;  %v6500_v59 = vcombine.low %v4217_v46, %v4221_v28  ;;  %v6501_v12 = vcombine.low %v4225_v31, %v4229_v63  ;;  %v6502_v51 = vcombine.low %v4233_v55, %v4237_v20  ;;  %v6503_v61 = vcombine.low %v4241_v8, %v4245_v11 }
 0x2dc   :  { %v6598_v21 = vcombine.low %v4281_v6, %v4285_v4  ;;  %v6599_v47 = vcombine.low %v4289_v43, %v4293_v3  ;;  %v6600_v50 = vcombine.low %v4297_v36, %v4301_v53  ;;  %v6601_v35 = vcombine.low %v4305_v52, %v4309_v19  ;;  %v3356_v33 = vpop.f32.mrb[98].mxu0  ;;  %v22927_v19 = vld [vmem:[#allocation63_spill] sm:$0xff] }
 0x2dd   :  { %9644 = vadd.xlane.f32.xlu0 %v9549_v1  ;;  %v6696_v45 = vcombine.low %v4345_v44, %v4349_v34  ;;  %v6697_v39 = vcombine.low %v4353_v38, %v4357_v49  ;;  %v6698_v62 = vcombine.low %v4361_v40, %v4365_v24  ;;  %v6699_v42 = vcombine.low %v4369_v5, %v4373_v57  ;;  %v3358_v27 = vpop.f32.mrb[99].mxu0 }
 0x2de   :  { %v9551_v17 = vmul.f32 %v22915_v37, %v3356_v33  ;;  %v6566_v46 = vrot.slane %v19066_v26, %v18508_v15  ;;  %v6573_v13 = vrot.slane %v6551_v7, %v18508_v15  ;;  %v6580_v1 = vrot.slane %v6552_v10, %v18508_v15 }
 0x2df   :  { %9646 = vadd.xlane.f32.xlu1 %v9550_v60  ;;  %v6510_v3 = vrot.slane %v6500_v59, %v18508_v15  ;;  %v6517_v53 = vrot.slane %v6501_v12, %v18508_v15  ;;  %v6524_v60 = vrot.slane %v6502_v51, %v18508_v15  ;;  %v6531_v43 = vrot.slane %v6503_v61, %v18508_v15 }
 0x2e0   :  { %v6608_v33 = vrot.slane %v6598_v21, %v18508_v15  ;;  %v6615_v5 = vrot.slane %v6599_v47, %v18508_v15  ;;  %v6622_v24 = vrot.slane %v6600_v50, %v18508_v15  ;;  %v6629_v7 = vrot.slane %v6601_v35, %v18508_v15  ;;  %v3361_v10 = vpop.f32.mrb[100].mxu0 }
 0x2e1   :  { %3672 = vadd.xlane.f32.xlu0 %v18648_v23  ;;  %v6706_v59 = vrot.slane %v6696_v45, %v18508_v15  ;;  %v6713_v12 = vrot.slane %v6697_v39, %v18508_v15  ;;  %v6720_v40 = vrot.slane %v6698_v62, %v18508_v15  ;;  %v6727_v61 = vrot.slane %v6699_v42, %v18508_v15  ;;  %v22916_v23 = vld [vmem:[#allocation18_spill] sm:$0xff]  ;;  %v3363_v21 = vpop.f32.mrb[101].mxu0  ;;  %v22931_v62 = vld [vmem:[#allocation68_spill] sm:$0xff] }
 0x2e2   :  { %v9552_v26 = vmul.f32 %v3361_v10, %v22916_v23  ;;  %v6400_v47 = vrot.slane %v18996_v0, %v18508_v15  ;;  %v6344_v50 = vrot.slane %v19012_v41, %v18508_v15  ;;  %v22917_v35 = vrot.slane %v18990_v2, %v18508_v15  ;;  %v22937_v23 = vld [vmem:[#allocation57_spill] sm:$0xff]  ;;  %v22938_v21 = vld [vmem:[#allocation58_spill] sm:$0xff] }
 0x2e3   :  { %3674 = vadd.xlane.f32.xlu1 %v18684_v25  ;;  %v6351_v25 = vrot.slane %v19014_v56, %v18508_v15  ;;  %v22918_v39 = vrot.slane %v18988_v14, %v18508_v15  ;;  %v22919_v49 = vrot.slane %v19006_v18, %v18508_v15  ;;  %v22920_v28 = vrot.slane %v19004_v48, %v18508_v15 }
 0x2e4   :  { %v22921_v41 = vrot.slane %v19010_v22, %v18508_v15  ;;  %v22922_v56 = vrot.slane %v19008_v29, %v18508_v15  ;;  %v22923_v2 = vrot.slane %v19018_v16, %v18508_v15  ;;  %v22924_v14 = vrot.slane %v19016_v30, %v18508_v15  ;;  %v3366_v8 = vpop.f32.mrb[102].mxu0  ;;  %v22925_v29 = vld [vmem:[#allocation17_spill] sm:$0xff] }
 0x2e5   :  { %v6483_v9 = vcombine.low %v22918_v39, %v22917_v35  ;;  %v6484_v0 = vcombine.low %v22920_v28, %v22919_v49  ;;  %9648 = vadd.xlane.f32.xlu0 %v9551_v17  ;;  %v6581_v18 = vcombine.low %v6559_v32, %v6566_v46  ;;  %v6582_v55 = vcombine.low %v6573_v13, %v6580_v1  ;;  %v3368_v52 = vpop.f32.mrb[103].mxu0  ;;  %v22929_v32 = vld [vmem:[#allocation10_spill] sm:$0xff]  ;;  %v22932_v46 = vld [vmem:[#allocation47_spill] sm:$0xff]  ;;  %v22940_v35 = vld [vmem:[#allocation60_spill] sm:$0xff] }
 0x2e6   :  { %v6434_v31 = vcombine.low %v22922_v56, %v22921_v41  ;;  %v6435_v63 = vcombine.low %v22924_v14, %v22923_v2  ;;  %v6532_v20 = vcombine.low %v6510_v3, %v6517_v53  ;;  %v6533_v48 = vcombine.low %v6524_v60, %v6531_v43 }
 0x2e7   :  { %9650 = vadd.xlane.f32.xlu1 %v9552_v26  ;;  %v6630_v11 = vcombine.low %v6608_v33, %v6615_v5  ;;  %v6631_v22 = vcombine.low %v6622_v24, %v6629_v7  ;;  %v6728_v6 = vcombine.low %v6706_v59, %v6713_v12  ;;  %v6729_v4 = vcombine.low %v6720_v40, %v6727_v61  ;;  %v22933_v33 = vld [vmem:[#allocation20_spill] sm:$0xff]  ;;  %v22934_v7 = vld [vmem:[#allocation54_spill] sm:$0xff]  ;;  %v22935_v59 = vld [vmem:[#allocation55_spill] sm:$0xff] }
 0x2e8   :  { %v9553_v36 = vmul.f32 %v22925_v29, %v3366_v8  ;;  %v22926_v16 = vrot.slane %v18939_v58, %v18508_v15  ;;  %v22928_v30 = vrot.slane %v22927_v19, %v18508_v15  ;;  %v22930_v34 = vrot.slane %v22929_v32, %v18508_v15  ;;  %v3371_v13 = vpop.f32.mrb[104].mxu0  ;;  %v9583_v1 = vpop.xlane.xlu0 %9582  ;;  %v22936_v40 = vld [vmem:[#allocation56_spill] sm:$0xff] }
 0x2e9   :  { %v19181_v57 = vcombine.low %v6344_v50, %v6351_v25  ;;  %v6491_v54 = vrot.slane %v6483_v9, %v18508_v15  ;;  %v6498_v51 = vrot.slane %v6484_v0, %v18508_v15  ;;  %v6442_v45 = vrot.slane %v6434_v31, %v18508_v15  ;;  %3676 = vadd.xlane.f32.xlu0 %v22931_v62  ;;  %v3373_v24 = vpop.f32.mrb[105].mxu0  ;;  %v22939_v50 = vld [vmem:[#allocation59_spill] sm:$0xff]  ;;  %v22941_v0 = vld [vmem:[#allocation61_spill] sm:$0xff] }
 0x2ea   :  { %v19174_v44 = vcombine.low %v22928_v30, %v22926_v16  ;;  %v19179_v38 = vcombine.low %v22930_v34, %v6400_v47  ;;  %v6449_v58 = vrot.slane %v6435_v63, %v18508_v15  ;;  %v6589_v42 = vrot.slane %v6581_v18, %v18508_v15  ;;  %v22946_v16 = vld [vmem:[#allocation48_spill] sm:$0xff] }
 0x2eb   :  { %v6596_v37 = vrot.slane %v6582_v55, %v18508_v15  ;;  %v6540_v17 = vrot.slane %v6532_v20, %v18508_v15  ;;  %v6547_v27 = vrot.slane %v6533_v48, %v18508_v15  ;;  %3678 = vadd.xlane.f32.xlu1 %v22932_v46  ;;  %v6638_v3 = vrot.slane %v6630_v11, %v18508_v15  ;;  %v22943_v55 = vld [vmem:[#allocation19_spill] sm:$0xff] }
 0x2ec   :  { %v6645_v53 = vrot.slane %v6631_v22, %v18508_v15  ;;  %v6736_v60 = vrot.slane %v6728_v6, %v18508_v15  ;;  %v6743_v43 = vrot.slane %v6729_v4, %v18508_v15  ;;  %v9554_v5 = vmul.f32 %v3371_v13, %v22933_v33  ;;  %v19212_v56 = vpop.xlane.xlu1 %9584  ;;  %v3376_v31 = vpop.f32.mrb[106].mxu0 }
 0x2ed   :  { %v9777_v10 = vrot.slane %v9583_v1, %v22934_v7  ;;  %v9781_v12 = vrot.slane %v9583_v1, %v22935_v59  ;;  %v9785_v61 = vrot.slane %v9583_v1, %v22936_v40  ;;  %v9789_v26 = vrot.slane %v9583_v1, %v22937_v23  ;;  %9652 = vadd.xlane.f32.xlu0 %v9553_v36  ;;  %v3609_v48 = vpop.xlane.xlu0 %3608  ;;  %v3378_v8 = vpop.f32.mrb[107].mxu0 }
 0x2ee   :  { %v9793_v47 = vrot.slane %v9583_v1, %v22938_v21  ;;  %v9797_v25 = vrot.slane %v9583_v1, %v22939_v50  ;;  %v9801_v39 = vrot.slane %v9583_v1, %v22940_v35  ;;  %v19205_v9 = vcombine.low %v6491_v54, %v6498_v51  ;;  %22942 = vst [vmem:[#allocation14_spill] sm:$0xff] %v19212_v56  ;;  %v22947_v54 = vld [vmem:[#allocation49_spill] sm:$0xff] }
 0x2ef   :  { %v19207_v49 = vcombine.low %v6442_v45, %v6449_v58  ;;  %v19209_v28 = vcombine.low %v6589_v42, %v6596_v37  ;;  %v9805_v41 = vrot.slane %v9583_v1, %v22941_v0  ;;  %9654 = vadd.xlane.f32.xlu1 %v9554_v5  ;;  %v19214_v2 = vcombine.low %v6540_v17, %v6547_v27  ;;  %v22948_v17 = vld [vmem:[#allocation22_spill] sm:$0xff] }
 0x2f0   :  { %v19216_v14 = vcombine.low %v6638_v3, %v6645_v53  ;;  %v19218_v63 = vcombine.low %v9777_v10, %v9781_v12  ;;  %v19220_v18 = vcombine.low %v9785_v61, %v9789_v26  ;;  %v9555_v20 = vmul.f32 %v22943_v55, %v3376_v31  ;;  %v3615_v51 = vpop.xlane.xlu1 %3614  ;;  %v3381_v45 = vpop.f32.mrb[108].mxu0  ;;  %v22950_v31 = vld [vmem:[#allocation21_spill] sm:$0xff] }
 0x2f1   :  { %v19223_v11 = vcombine.low %v6736_v60, %v6743_v43  ;;  %v19225_v22 = vcombine.low %v9793_v47, %v9797_v25  ;;  %v19227_v6 = vcombine.low %v9801_v39, %v9805_v41  ;;  %v4313_v4 = vrot.slane %v3609_v48, %v22934_v7  ;;  %3680 = vadd.xlane.f32.xlu0 %v22946_v16  ;;  %v19244_v46 = vpop.xlane.xlu0 %9586  ;;  %v3383_v13 = vpop.f32.mrb[109].mxu0 }
 0x2f2   :  { %v4317_v29 = vrot.slane %v3609_v48, %v22935_v59  ;;  %v4321_v36 = vrot.slane %v3609_v48, %v22936_v40  ;;  %v4325_v52 = vrot.slane %v3609_v48, %v22937_v23  ;;  %v4329_v19 = vrot.slane %v3609_v48, %v22938_v21  ;;  %22949 = vst [vmem:[#allocation15_spill] sm:$0xff] %v19244_v46 }
 0x2f3   :  { %22944 = vst [vmem:[#allocation13_spill] sm:$0xff] %v19225_v22  ;;  %22945 = vst [vmem:[#allocation16_spill] sm:$0xff] %v19227_v6  ;;  %v4333_v30 = vrot.slane %v3609_v48, %v22939_v50  ;;  %v4337_v32 = vrot.slane %v3609_v48, %v22940_v35  ;;  %v4341_v34 = vrot.slane %v3609_v48, %v22941_v0  ;;  %3682 = vadd.xlane.f32.xlu1 %v22947_v54 }
 0x2f4   :  { %v6647_v58 = vcombine.low %v4313_v4, %v4317_v29  ;;  %v6648_v62 = vcombine.low %v4321_v36, %v4325_v52  ;;  %v11832_v42 = vrot.slane %v19218_v63, %v18508_v15  ;;  %v11839_v37 = vrot.slane %v19220_v18, %v18508_v15  ;;  %v3386_v26 = vpop.f32.mrb[110].mxu0  ;;  %v22959_v63 = vld [vmem:[#allocation8_spill] sm:$0xff] }
 0x2f5   :  { %v9556_v27 = vmul.f32 %v3381_v45, %v22948_v17  ;;  %v6649_v1 = vcombine.low %v4329_v19, %v4333_v30  ;;  %v6650_v3 = vcombine.low %v4337_v32, %v4341_v34  ;;  %v4409_v53 = vrot.slane %v3615_v51, %v22934_v7  ;;  %9656 = vadd.xlane.f32.xlu0 %v9555_v20  ;;  %v3613_v20 = vpop.xlane.xlu0 %3612  ;;  %v3388_v48 = vpop.f32.mrb[111].mxu0  ;;  %v22951_v30 = vld [vmem:[#allocation50_spill] sm:$0xff] }
 0x2f6   :  { %v6657_v60 = vrot.slane %v6647_v58, %v18508_v15  ;;  %v6664_v43 = vrot.slane %v6648_v62, %v18508_v15  ;;  %v4413_v33 = vrot.slane %v3615_v51, %v22935_v59  ;;  %v4417_v5 = vrot.slane %v3615_v51, %v22936_v40  ;;  %v22952_v45 = vld [vmem:[#allocation6_spill] sm:$0xff] }
 0x2f7   :  { %v6671_v24 = vrot.slane %v6649_v1, %v18508_v15  ;;  %v6678_v10 = vrot.slane %v6650_v3, %v18508_v15  ;;  %v4421_v12 = vrot.slane %v3615_v51, %v22937_v23  ;;  %v4425_v61 = vrot.slane %v3615_v51, %v22938_v21  ;;  %9658 = vadd.xlane.f32.xlu1 %v9556_v27  ;;  %v22954_v3 = vld [vmem:[#allocation24_spill] sm:$0xff] }
 0x2f8   :  { %v6679_v47 = vcombine.low %v6657_v60, %v6664_v43  ;;  %v4429_v25 = vrot.slane %v3615_v51, %v22939_v50  ;;  %v4433_v39 = vrot.slane %v3615_v51, %v22940_v35  ;;  %v4437_v41 = vrot.slane %v3615_v51, %v22941_v0  ;;  %v19269_v58 = vpop.xlane.xlu1 %9590  ;;  %v3391_v62 = vpop.f32.mrb[112].mxu0 }
 0x2f9   :  { %v9557_v55 = vmul.f32 %v22950_v31, %v3386_v26  ;;  %v6680_v8 = vcombine.low %v6671_v24, %v6678_v10  ;;  %v6794_v4 = vcombine.low %v4409_v53, %v4413_v33  ;;  %v6795_v29 = vcombine.low %v4417_v5, %v4421_v12  ;;  %3684 = vadd.xlane.f32.xlu0 %v22951_v30  ;;  %v19274_v60 = vpop.xlane.xlu0 %9588  ;;  %v3393_v43 = vpop.f32.mrb[113].mxu0 }
 0x2fa   :  { %v6687_v36 = vrot.slane %v6679_v47, %v18508_v15  ;;  %v4377_v52 = vrot.slane %v3613_v20, %v22934_v7  ;;  %v4381_v16 = vrot.slane %v3613_v20, %v22935_v59  ;;  %v4385_v19 = vrot.slane %v3613_v20, %v22936_v40  ;;  %22953 = vst [vmem:[#allocation18_spill] sm:$0xff] %v19269_v58 }
 0x2fb   :  { %v6694_v32 = vrot.slane %v6680_v8, %v18508_v15  ;;  %v4389_v34 = vrot.slane %v3613_v20, %v22937_v23  ;;  %v4393_v54 = vrot.slane %v3613_v20, %v22938_v21  ;;  %v4397_v51 = vrot.slane %v3613_v20, %v22939_v50  ;;  %3686 = vadd.xlane.f32.xlu1 %v22952_v45 }
 0x2fc   :  { %v4401_v17 = vrot.slane %v3613_v20, %v22940_v35  ;;  %v4405_v27 = vrot.slane %v3613_v20, %v22941_v0  ;;  %v6745_v13 = vcombine.low %v4377_v52, %v4381_v16  ;;  %v6796_v1 = vcombine.low %v4425_v61, %v4429_v25  ;;  %22955 = vst [vmem:[#allocation17_spill] sm:$0xff] %v19274_v60  ;;  %v19285_v48 = vpop.xlane.xlu1 %3618  ;;  %v3396_v8 = vpop.f32.mrb[114].mxu0 }
 0x2fd   :  { %v9558_v53 = vmul.f32 %v3391_v62, %v22954_v3  ;;  %v6746_v33 = vcombine.low %v4385_v19, %v4389_v34  ;;  %v6747_v5 = vcombine.low %v4393_v54, %v4397_v51  ;;  %v6797_v26 = vcombine.low %v4433_v39, %v4437_v41  ;;  %9660 = vadd.xlane.f32.xlu0 %v9557_v55  ;;  %v22956_v55 = vld [vmem:[#allocation23_spill] sm:$0xff]  ;;  %v3398_v19 = vpop.f32.mrb[115].mxu0  ;;  %v22958_v62 = vld [vmem:[#allocation5_spill] sm:$0xff] }
 0x2fe   :  { %v6748_v10 = vcombine.low %v4401_v17, %v4405_v27  ;;  %v6755_v12 = vrot.slane %v6745_v13, %v18508_v15  ;;  %v6804_v47 = vrot.slane %v6794_v4, %v18508_v15  ;;  %v19280_v31 = vcombine.low %v6687_v36, %v6694_v32  ;;  %v3617_v36 = vpop.xlane.xlu0 %3616 }
 0x2ff   :  { %v6762_v61 = vrot.slane %v6746_v33, %v18508_v15  ;;  %v6769_v25 = vrot.slane %v6747_v5, %v18508_v15  ;;  %v6811_v20 = vrot.slane %v6795_v29, %v18508_v15  ;;  %9662 = vadd.xlane.f32.xlu1 %v9558_v53  ;;  %v6818_v16 = vrot.slane %v6796_v1, %v18508_v15  ;;  %v22961_v33 = vld [vmem:[#allocation26_spill] sm:$0xff] }
 0x300   :  { %v6776_v52 = vrot.slane %v6748_v10, %v18508_v15  ;;  %v6825_v39 = vrot.slane %v6797_v26, %v18508_v15  ;;  %v9559_v4 = vmul.f32 %v22956_v55, %v3396_v8  ;;  %v19301_v29 = vcombine.low %v11832_v42, %v11839_v37  ;;  %v19312_v42 = vpop.xlane.xlu1 %9594  ;;  %v3401_v37 = vpop.f32.mrb[116].mxu0 }
 0x301   :  { %v6777_v30 = vcombine.low %v6755_v12, %v6762_v61  ;;  %v19293_v32 = vcombine.low %v6804_v47, %v6811_v20  ;;  %v4441_v54 = vrot.slane %v3617_v36, %v22934_v7  ;;  %v4445_v51 = vrot.slane %v3617_v36, %v22935_v59  ;;  %3688 = vadd.xlane.f32.xlu0 %v22958_v62  ;;  %v3403_v12 = vpop.f32.mrb[117].mxu0 }
 0x302   :  { %22957 = vst [vmem:[#allocation63_spill] sm:$0xff] %v19301_v29  ;;  %v6778_v34 = vcombine.low %v6769_v25, %v6776_v52  ;;  %v4449_v45 = vrot.slane %v3617_v36, %v22936_v40  ;;  %v4453_v27 = vrot.slane %v3617_v36, %v22937_v23  ;;  %v4457_v18 = vrot.slane %v3617_v36, %v22938_v21  ;;  %v19318_v10 = vpop.xlane.xlu0 %9592 }
 0x303   :  { %v6785_v17 = vrot.slane %v6777_v30, %v18508_v15  ;;  %v4461_v13 = vrot.slane %v3617_v36, %v22939_v50  ;;  %3690 = vadd.xlane.f32.xlu1 %v22959_v63  ;;  %22960 = vst [vmem:[#allocation10_spill] sm:$0xff] %v19312_v42  ;;  %v4465_v3 = vrot.slane %v3617_v36, %v22940_v35  ;;  %22962 = vst [vmem:[#allocation68_spill] sm:$0xff] %v19318_v10 }
 0x304   :  { %v6792_v1 = vrot.slane %v6778_v34, %v18508_v15  ;;  %v4469_v53 = vrot.slane %v3617_v36, %v22941_v0  ;;  %v6843_v43 = vcombine.low %v4441_v54, %v4445_v51  ;;  %v9560_v5 = vmul.f32 %v3401_v37, %v22961_v33 }
 0x305   :  { %v6844_v26 = vcombine.low %v4449_v45, %v4453_v27  ;;  %v6845_v47 = vcombine.low %v4457_v18, %v4461_v13  ;;  %v6827_v61 = vcombine.low %v6818_v16, %v6825_v39  ;;  %v4473_v52 = vrot.slane %v19285_v48, %v22934_v7  ;;  %9664 = vadd.xlane.f32.xlu0 %v9559_v4  ;;  %v19330_v16 = vpop.xlane.xlu1 %3622  ;;  %v3406_v39 = vpop.f32.mrb[118].mxu0  ;;  %v22963_v45 = vld [vmem:[#allocation25_spill] sm:$0xff] }
 0x306   :  { %v19320_v25 = vcombine.low %v6785_v17, %v6792_v1  ;;  %v6846_v20 = vcombine.low %v4465_v3, %v4469_v53  ;;  %v6853_v8 = vrot.slane %v6843_v43, %v18508_v15  ;;  %v6834_v19 = vrot.slane %v19293_v32, %v18508_v15  ;;  %v3621_v32 = vpop.xlane.xlu0 %3620  ;;  %v3408_v17 = vpop.f32.mrb[119].mxu0  ;;  %v22964_v53 = vld [vmem:[#allocation69_spill] sm:$0xff] }
 0x307   :  { %v6860_v55 = vrot.slane %v6844_v26, %v18508_v15  ;;  %v6867_v36 = vrot.slane %v6845_v47, %v18508_v15  ;;  %v6841_v30 = vrot.slane %v6827_v61, %v18508_v15  ;;  %9666 = vadd.xlane.f32.xlu1 %v9560_v5  ;;  %v4477_v54 = vrot.slane %v19285_v48, %v22935_v59  ;;  %v22965_v26 = vld [vmem:[#allocation9_spill] sm:$0xff] }
 0x308   :  { %v6874_v34 = vrot.slane %v6846_v20, %v18508_v15  ;;  %v4481_v4 = vrot.slane %v19285_v48, %v22936_v40  ;;  %v4485_v51 = vrot.slane %v19285_v48, %v22937_v23  ;;  %v9561_v62 = vmul.f32 %v22963_v45, %v3406_v39  ;;  %v3411_v47 = vpop.f32.mrb[120].mxu0  ;;  %v22967_v39 = vld [vmem:[#allocation28_spill] sm:$0xff] }
 0x309   :  { %v6875_v27 = vcombine.low %v6853_v8, %v6860_v55  ;;  %v4489_v18 = vrot.slane %v19285_v48, %v22938_v21  ;;  %v4493_v13 = vrot.slane %v19285_v48, %v22939_v50  ;;  %v4505_v37 = vrot.slane %v3621_v32, %v22934_v7  ;;  %3692 = vadd.xlane.f32.xlu0 %v22964_v53 }
 0x30a   :  { %v6876_v63 = vcombine.low %v6867_v36, %v6874_v34  ;;  %v4509_v1 = vrot.slane %v3621_v32, %v22935_v59  ;;  %v4513_v3 = vrot.slane %v3621_v32, %v22936_v40  ;;  %v4517_v33 = vrot.slane %v3621_v32, %v22937_v23  ;;  %v19356_v36 = vpop.xlane.xlu1 %9598  ;;  %v19359_v45 = vpop.xlane.xlu0 %9596 }
 0x30b   :  { %v6883_v43 = vrot.slane %v6875_v27, %v18508_v15  ;;  %v4521_v5 = vrot.slane %v3621_v32, %v22938_v21  ;;  %v4525_v12 = vrot.slane %v3621_v32, %v22939_v50  ;;  %3694 = vadd.xlane.f32.xlu1 %v22965_v26  ;;  %v4529_v20 = vrot.slane %v3621_v32, %v22940_v35  ;;  %v3413_v26 = vpop.f32.mrb[121].mxu0 }
 0x30c   :  { %v6890_v61 = vrot.slane %v6876_v63, %v18508_v15  ;;  %v4533_v8 = vrot.slane %v3621_v32, %v22941_v0  ;;  %v6941_v55 = vcombine.low %v4505_v37, %v4509_v1  ;;  %22966 = vst [vmem:[#allocation47_spill] sm:$0xff] %v19356_v36  ;;  %v9562_v34 = vmul.f32 %v3411_v47, %v22967_v39 }
 0x30d   :  { %22968 = vst [vmem:[#allocation20_spill] sm:$0xff] %v19359_v45  ;;  %v6942_v17 = vcombine.low %v4513_v3, %v4517_v33  ;;  %v6943_v27 = vcombine.low %v4521_v5, %v4525_v12  ;;  %v4497_v53 = vrot.slane %v19285_v48, %v22940_v35  ;;  %v19363_v24 = vcombine.low %v6834_v19, %v6841_v30  ;;  %v3416_v33 = vpop.f32.mrb[122].mxu0  ;;  %v22978_v45 = vld [vmem:[#allocation32_spill] sm:$0xff] }
 0x30e   :  { %v6944_v63 = vcombine.low %v4529_v20, %v4533_v8  ;;  %v6951_v41 = vrot.slane %v6941_v55, %v18508_v15  ;;  %v4501_v32 = vrot.slane %v19285_v48, %v22941_v0  ;;  %9668 = vadd.xlane.f32.xlu0 %v9561_v62  ;;  %v6892_v47 = vcombine.low %v4473_v52, %v4477_v54  ;;  %v19373_v20 = vpop.xlane.xlu1 %3626  ;;  %v22969_v8 = vld [vmem:[#allocation27_spill] sm:$0xff]  ;;  %v3625_v48 = vpop.xlane.xlu0 %3624 }
 0x30f   :  { %v6958_v37 = vrot.slane %v6942_v17, %v18508_v15  ;;  %v6965_v1 = vrot.slane %v6943_v27, %v18508_v15  ;;  %v6893_v3 = vcombine.low %v4481_v4, %v4485_v51  ;;  %9670 = vadd.xlane.f32.xlu1 %v9562_v34  ;;  %v19370_v5 = vcombine.low %v6883_v43, %v6890_v61  ;;  %v3418_v52 = vpop.f32.mrb[123].mxu0  ;;  %v22971_v27 = vld [vmem:[#allocation12_spill] sm:$0xff] }
 0x310   :  { %v6972_v19 = vrot.slane %v6944_v63, %v18508_v15  ;;  %v6894_v30 = vcombine.low %v4489_v18, %v4493_v13  ;;  %v6895_v12 = vcombine.low %v4497_v53, %v4501_v32  ;;  %v9563_v55 = vmul.f32 %v22969_v8, %v3416_v33  ;;  %v22970_v18 = vld [vmem:[#allocation64_spill] sm:$0xff]  ;;  %v3421_v53 = vpop.f32.mrb[124].mxu0 }
 0x311   :  { %v6973_v62 = vcombine.low %v6951_v41, %v6958_v37  ;;  %v6902_v39 = vrot.slane %v6892_v47, %v18508_v15  ;;  %v6909_v17 = vrot.slane %v6893_v3, %v18508_v15  ;;  %v4569_v43 = vrot.slane %v3625_v48, %v22934_v7  ;;  %v22973_v47 = vld [vmem:[#allocation30_spill] sm:$0xff]  ;;  %v3423_v8 = vpop.f32.mrb[125].mxu0 }
 0x312   :  { %v6974_v54 = vcombine.low %v6965_v1, %v6972_v19  ;;  %v6916_v4 = vrot.slane %v6894_v30, %v18508_v15  ;;  %v6923_v51 = vrot.slane %v6895_v12, %v18508_v15  ;;  %3696 = vadd.xlane.f32.xlu0 %v22970_v18  ;;  %v4573_v34 = vrot.slane %v3625_v48, %v22935_v59  ;;  %v19389_v1 = vpop.xlane.xlu1 %9602  ;;  %v19392_v33 = vpop.xlane.xlu0 %9600  ;;  %v22976_v8 = vld [vmem:[#allocation11_spill] sm:$0xff] }
 0x313   :  { %v6981_v13 = vrot.slane %v6973_v62, %v18508_v15  ;;  %v6924_v61 = vcombine.low %v6902_v39, %v6909_v17  ;;  %v4577_v41 = vrot.slane %v3625_v48, %v22936_v40  ;;  %3698 = vadd.xlane.f32.xlu1 %v22971_v27  ;;  %v4581_v32 = vrot.slane %v3625_v48, %v22937_v23 }
 0x314   :  { %v6988_v26 = vrot.slane %v6974_v54, %v18508_v15  ;;  %v6925_v63 = vcombine.low %v6916_v4, %v6923_v51  ;;  %v4585_v37 = vrot.slane %v3625_v48, %v22938_v21  ;;  %22972 = vst [vmem:[#allocation54_spill] sm:$0xff] %v19389_v1  ;;  %v9564_v3 = vmul.f32 %v3421_v53, %v22973_v47  ;;  %v3426_v27 = vpop.f32.mrb[126].mxu0 }
 0x315   :  { %22974 = vst [vmem:[#allocation55_spill] sm:$0xff] %v19392_v33  ;;  %v4589_v19 = vrot.slane %v3625_v48, %v22939_v50  ;;  %v4593_v30 = vrot.slane %v3625_v48, %v22940_v35  ;;  %v4537_v12 = vrot.slane %v19330_v16, %v22934_v7  ;;  %v6932_v62 = vrot.slane %v6924_v61, %v18508_v15 }
 0x316   :  { %v6939_v39 = vrot.slane %v6925_v63, %v18508_v15  ;;  %v4597_v17 = vrot.slane %v3625_v48, %v22941_v0  ;;  %v7039_v52 = vcombine.low %v4569_v43, %v4573_v34  ;;  %9672 = vadd.xlane.f32.xlu0 %v9563_v55  ;;  %v7040_v54 = vcombine.low %v4577_v41, %v4581_v32  ;;  %v19410_v43 = vpop.xlane.xlu1 %3630  ;;  %v22975_v55 = vld [vmem:[#allocation29_spill] sm:$0xff]  ;;  %v3629_v41 = vpop.xlane.xlu0 %3628 }
 0x317   :  { %v7041_v4 = vcombine.low %v4585_v37, %v4589_v19  ;;  %v4541_v51 = vrot.slane %v19330_v16, %v22935_v59  ;;  %v4545_v18 = vrot.slane %v19330_v16, %v22936_v40  ;;  %9674 = vadd.xlane.f32.xlu1 %v9564_v3  ;;  %v19405_v53 = vcombine.low %v6981_v13, %v6988_v26  ;;  %v3428_v13 = vpop.f32.mrb[127].mxu0 }
 0x318   :  { %v7042_v47 = vcombine.low %v4593_v30, %v4597_v17  ;;  %v7049_v61 = vrot.slane %v7039_v52, %v18508_v15  ;;  %v4549_v48 = vrot.slane %v19330_v16, %v22937_v23  ;;  %v9565_v34 = vmul.f32 %v22975_v55, %v3426_v27  ;;  %v3431_v27 = vpop.f32.mrb[128].mxu0 }
 0x319   :  { %v7056_v63 = vrot.slane %v7040_v54, %v18508_v15  ;;  %v7063_v32 = vrot.slane %v7041_v4, %v18508_v15  ;;  %v4553_v37 = vrot.slane %v19330_v16, %v22938_v21  ;;  %v4557_v3 = vrot.slane %v19330_v16, %v22939_v50 }
 0x31a   :  { %v7070_v26 = vrot.slane %v7042_v47, %v18508_v15  ;;  %v4561_v19 = vrot.slane %v19330_v16, %v22940_v35  ;;  %v4565_v30 = vrot.slane %v19330_v16, %v22941_v0  ;;  %3700 = vadd.xlane.f32.xlu0 %v22976_v8  ;;  %v19425_v17 = vcombine.low %v6932_v62, %v6939_v39  ;;  %v19428_v1 = vpop.xlane.xlu1 %9606  ;;  %v19431_v10 = vpop.xlane.xlu0 %9604 }
 0x31b   :  { %v7071_v52 = vcombine.low %v7049_v61, %v7056_v63  ;;  %v6990_v54 = vcombine.low %v4537_v12, %v4541_v51  ;;  %v6991_v4 = vcombine.low %v4545_v18, %v4549_v48  ;;  %v6992_v13 = vcombine.low %v4553_v37, %v4557_v3  ;;  %22977 = vst [vmem:[#allocation56_spill] sm:$0xff] %v19428_v1  ;;  %v3433_v12 = vpop.f32.mrb[129].mxu0 }
 0x31c   :  { %v7072_v55 = vcombine.low %v7063_v32, %v7070_v26  ;;  %v6993_v47 = vcombine.low %v4561_v19, %v4565_v30  ;;  %v4633_v33 = vrot.slane %v3629_v41, %v22934_v7  ;;  %v9566_v36 = vmul.f32 %v3431_v27, %v22978_v45  ;;  %22979 = vst [vmem:[#allocation57_spill] sm:$0xff] %v19431_v10  ;;  %v3436_v37 = vpop.f32.mrb[130].mxu0 }
 0x31d   :  { %v7000_v16 = vrot.slane %v6990_v54, %v18508_v15  ;;  %v7007_v62 = vrot.slane %v6991_v4, %v18508_v15  ;;  %v4637_v39 = vrot.slane %v3629_v41, %v22935_v59  ;;  %v7079_v51 = vrot.slane %v7071_v52, %v18508_v15  ;;  %v22980_v52 = vld [vmem:[#allocation31_spill] sm:$0xff] }
 0x31e   :  { %v7014_v18 = vrot.slane %v6992_v13, %v18508_v15  ;;  %v7021_v61 = vrot.slane %v6993_v47, %v18508_v15  ;;  %v4641_v48 = vrot.slane %v3629_v41, %v22936_v40  ;;  %9678 = vadd.xlane.f32.xlu1 %v9566_v36  ;;  %9676 = vadd.xlane.f32.xlu0 %v9565_v34  ;;  %v19445_v8 = vpop.xlane.xlu1 %3634  ;;  %v19448_v4 = vpop.xlane.xlu0 %3632 }
 0x31f   :  { %v7022_v45 = vcombine.low %v7000_v16, %v7007_v62  ;;  %v4645_v63 = vrot.slane %v3629_v41, %v22937_v23  ;;  %v4649_v32 = vrot.slane %v3629_v41, %v22938_v21  ;;  %v7086_v26 = vrot.slane %v7072_v55, %v18508_v15  ;;  %v3438_v13 = vpop.f32.mrb[131].mxu0 }
 0x320   :  { %v7023_v3 = vcombine.low %v7014_v18, %v7021_v61  ;;  %v4653_v19 = vrot.slane %v3629_v41, %v22939_v50  ;;  %v4657_v30 = vrot.slane %v3629_v41, %v22940_v35  ;;  %v9567_v54 = vmul.f32 %v22980_v52, %v3436_v37  ;;  %v22982_v37 = vld [vmem:[#allocation34_spill] sm:$0xff] }
 0x321   :  { %v7030_v36 = vrot.slane %v7022_v45, %v18508_v15  ;;  %v4661_v34 = vrot.slane %v3629_v41, %v22941_v0  ;;  %v7137_v27 = vcombine.low %v4633_v33, %v4637_v39  ;;  %v7138_v55 = vcombine.low %v4641_v48, %v4645_v63  ;;  %v3441_v41 = vpop.f32.mrb[132].mxu0 }
 0x322   :  { %v7037_v47 = vrot.slane %v7023_v3, %v18508_v15  ;;  %v7139_v16 = vcombine.low %v4649_v32, %v4653_v19  ;;  %v4601_v62 = vrot.slane %v19373_v20, %v22934_v7  ;;  %9680 = vadd.xlane.f32.xlu0 %v9567_v54  ;;  %v4605_v61 = vrot.slane %v19373_v20, %v22935_v59  ;;  %v19466_v32 = vpop.xlane.xlu1 %9610  ;;  %v19469_v19 = vpop.xlane.xlu0 %9608 }
 0x323   :  { %v7140_v12 = vcombine.low %v4657_v30, %v4661_v34  ;;  %v7147_v18 = vrot.slane %v7137_v27, %v18508_v15  ;;  %v4609_v45 = vrot.slane %v19373_v20, %v22936_v40  ;;  %v19460_v33 = vcombine.low %v7079_v51, %v7086_v26  ;;  %22981 = vst [vmem:[#allocation58_spill] sm:$0xff] %v19466_v32  ;;  %v3443_v26 = vpop.f32.mrb[133].mxu0 }
 0x324   :  { %v7154_v39 = vrot.slane %v7138_v55, %v18508_v15  ;;  %v7161_v48 = vrot.slane %v7139_v16, %v18508_v15  ;;  %v4613_v63 = vrot.slane %v19373_v20, %v22937_v23  ;;  %v9568_v3 = vmul.f32 %v3441_v41, %v22982_v37  ;;  %22983 = vst [vmem:[#allocation59_spill] sm:$0xff] %v19469_v19  ;;  %v3446_v37 = vpop.f32.mrb[134].mxu0 }
 0x325   :  { %v7168_v30 = vrot.slane %v7140_v12, %v18508_v15  ;;  %v4617_v52 = vrot.slane %v19373_v20, %v22938_v21  ;;  %v4621_v51 = vrot.slane %v19373_v20, %v22939_v50  ;;  %v4625_v34 = vrot.slane %v19373_v20, %v22940_v35 }
 0x326   :  { %v7169_v54 = vcombine.low %v7147_v18, %v7154_v39  ;;  %v4629_v27 = vrot.slane %v19373_v20, %v22941_v0  ;;  %v7088_v13 = vcombine.low %v4601_v62, %v4605_v61  ;;  %9682 = vadd.xlane.f32.xlu1 %v9568_v3  ;;  %v19480_v55 = vcombine.low %v7030_v36, %v7037_v47  ;;  %v19487_v26 = vpop.xlane.xlu1 %3638  ;;  %v22984_v20 = vld [vmem:[#allocation33_spill] sm:$0xff]  ;;  %v19490_v61 = vpop.xlane.xlu0 %3636 }
 0x327   :  { %v7170_v16 = vcombine.low %v7161_v48, %v7168_v30  ;;  %v7089_v12 = vcombine.low %v4609_v45, %v4613_v63  ;;  %v7090_v41 = vcombine.low %v4617_v52, %v4621_v51  ;;  %v4697_v18 = vrot.slane %v19448_v4, %v22934_v7  ;;  %v3448_v48 = vpop.f32.mrb[135].mxu0 }
 0x328   :  { %v7091_v19 = vcombine.low %v4625_v34, %v4629_v27  ;;  %v7098_v32 = vrot.slane %v7088_v13, %v18508_v15  ;;  %v4701_v39 = vrot.slane %v19448_v4, %v22935_v59  ;;  %v9569_v62 = vmul.f32 %v22984_v20, %v3446_v37  ;;  %v22986_v48 = vld [vmem:[#allocation36_spill] sm:$0xff] }
 0x329   :  { %v7177_v36 = vrot.slane %v7169_v54, %v18508_v15  ;;  %v7105_v47 = vrot.slane %v7089_v12, %v18508_v15  ;;  %v7112_v45 = vrot.slane %v7090_v41, %v18508_v15  ;;  %v4705_v3 = vrot.slane %v19448_v4, %v22936_v40 }
 0x32a   :  { %v7119_v63 = vrot.slane %v7091_v19, %v18508_v15  ;;  %v4709_v30 = vrot.slane %v19448_v4, %v22937_v23  ;;  %v4713_v52 = vrot.slane %v19448_v4, %v22938_v21  ;;  %9684 = vadd.xlane.f32.xlu0 %v9569_v62  ;;  %v7184_v51 = vrot.slane %v7170_v16, %v18508_v15  ;;  %v3451_v19 = vpop.f32.mrb[136].mxu0  ;;  %v19509_v20 = vpop.xlane.xlu1 %9614 }
 0x32b   :  { %v7120_v54 = vcombine.low %v7098_v32, %v7105_v47  ;;  %v4717_v34 = vrot.slane %v19448_v4, %v22939_v50  ;;  %v4721_v27 = vrot.slane %v19448_v4, %v22940_v35  ;;  %v4725_v12 = vrot.slane %v19448_v4, %v22941_v0  ;;  %22985 = vst [vmem:[#allocation60_spill] sm:$0xff] %v19509_v20  ;;  %v19512_v10 = vpop.xlane.xlu0 %9612  ;;  %v3453_v1 = vpop.f32.mrb[137].mxu0 }
 0x32c   :  { %v7121_v13 = vcombine.low %v7112_v45, %v7119_v63  ;;  %v7235_v41 = vcombine.low %v4697_v18, %v4701_v39  ;;  %v7236_v37 = vcombine.low %v4705_v3, %v4709_v30  ;;  %v9570_v62 = vmul.f32 %v3451_v19, %v22986_v48  ;;  %22987 = vst [vmem:[#allocation61_spill] sm:$0xff] %v19512_v10  ;;  %v3456_v1 = vpop.f32.mrb[138].mxu0 }
 0x32d   :  { %v7128_v32 = vrot.slane %v7120_v54, %v18508_v15  ;;  %v7237_v16 = vcombine.low %v4713_v52, %v4717_v34  ;;  %v4665_v47 = vrot.slane %v19410_v43, %v22934_v7  ;;  %v7238_v63 = vcombine.low %v4721_v27, %v4725_v12  ;;  %v22988_v12 = vld [vmem:[#allocation35_spill] sm:$0xff] }
 0x32e   :  { %v7135_v45 = vrot.slane %v7121_v13, %v18508_v15  ;;  %v7245_v4 = vrot.slane %v7235_v41, %v18508_v15  ;;  %v7252_v18 = vrot.slane %v7236_v37, %v18508_v15  ;;  %9686 = vadd.xlane.f32.xlu1 %v9570_v62  ;;  %v4669_v3 = vrot.slane %v19410_v43, %v22935_v59  ;;  %v19532_v13 = vpop.xlane.xlu1 %3642 }
 0x32f   :  { %v7259_v39 = vrot.slane %v7237_v16, %v18508_v15  ;;  %v4673_v30 = vrot.slane %v19410_v43, %v22936_v40  ;;  %v4677_v52 = vrot.slane %v19410_v43, %v22937_v23  ;;  %v19527_v54 = vcombine.low %v7177_v36, %v7184_v51  ;;  %v19535_v37 = vpop.xlane.xlu0 %3640  ;;  %v3458_v51 = vpop.f32.mrb[139].mxu0 }
 0x330   :  { %v7266_v34 = vrot.slane %v7238_v63, %v18508_v15  ;;  %v7267_v27 = vcombine.low %v7245_v4, %v7252_v18  ;;  %v4681_v19 = vrot.slane %v19410_v43, %v22938_v21  ;;  %v9571_v41 = vmul.f32 %v22988_v12, %v3456_v1  ;;  %v3461_v42 = vpop.f32.mrb[140].mxu0 }
 0x331   :  { %v4685_v48 = vrot.slane %v19410_v43, %v22939_v50  ;;  %v4689_v62 = vrot.slane %v19410_v43, %v22940_v35  ;;  %v4693_v36 = vrot.slane %v19410_v43, %v22941_v0  ;;  %v19543_v16 = vcombine.low %v7128_v32, %v7135_v45 }
 0x332   :  { %v7268_v63 = vcombine.low %v7259_v39, %v7266_v34  ;;  %v7186_v4 = vcombine.low %v4665_v47, %v4669_v3  ;;  %v7187_v18 = vcombine.low %v4673_v30, %v4677_v52  ;;  %9688 = vadd.xlane.f32.xlu0 %v9571_v41  ;;  %v4761_v12 = vrot.slane %v19490_v61, %v22934_v7  ;;  %v19554_v45 = vpop.xlane.xlu1 %9618  ;;  %v22990_v39 = vld [vmem:[#allocation38_spill] sm:$0xff] }
 0x333   :  { %v7188_v10 = vcombine.low %v4681_v19, %v4685_v48  ;;  %v7189_v1 = vcombine.low %v4689_v62, %v4693_v36  ;;  %v4765_v20 = vrot.slane %v19490_v61, %v22935_v59  ;;  %v7275_v60 = vrot.slane %v7267_v27, %v18508_v15  ;;  %22989 = vst [vmem:[#allocation19_spill] sm:$0xff] %v19554_v45  ;;  %v19557_v30 = vpop.xlane.xlu0 %9616  ;;  %v3463_v19 = vpop.f32.mrb[141].mxu0 }
 0x334   :  { %v7196_v43 = vrot.slane %v7186_v4, %v18508_v15  ;;  %v7203_v32 = vrot.slane %v7187_v18, %v18508_v15  ;;  %v4769_v47 = vrot.slane %v19490_v61, %v22936_v40  ;;  %v9572_v3 = vmul.f32 %v3461_v42, %v22990_v39  ;;  %22991 = vst [vmem:[#allocation48_spill] sm:$0xff] %v19557_v30  ;;  %v3466_v18 = vpop.f32.mrb[142].mxu0  ;;  %v22992_v19 = vld [vmem:[#allocation37_spill] sm:$0xff] }
 0x335   :  { %v7210_v52 = vrot.slane %v7188_v10, %v18508_v15  ;;  %v7217_v34 = vrot.slane %v7189_v1, %v18508_v15  ;;  %v4773_v27 = vrot.slane %v19490_v61, %v22937_v23  ;;  %v7282_v41 = vrot.slane %v7268_v63, %v18508_v15 }
 0x336   :  { %v7218_v48 = vcombine.low %v7196_v43, %v7203_v32  ;;  %v4777_v62 = vrot.slane %v19490_v61, %v22938_v21  ;;  %v4781_v36 = vrot.slane %v19490_v61, %v22939_v50  ;;  %9690 = vadd.xlane.f32.xlu1 %v9572_v3  ;;  %v4785_v10 = vrot.slane %v19490_v61, %v22940_v35  ;;  %v19575_v39 = vpop.xlane.xlu1 %3646 }
 0x337   :  { %v7219_v42 = vcombine.low %v7210_v52, %v7217_v34  ;;  %v4789_v51 = vrot.slane %v19490_v61, %v22941_v0  ;;  %v7333_v4 = vcombine.low %v4761_v12, %v4765_v20  ;;  %v7334_v63 = vcombine.low %v4769_v47, %v4773_v27  ;;  %v19578_v52 = vpop.xlane.xlu0 %3644  ;;  %v3468_v20 = vpop.f32.mrb[143].mxu0 }
 0x338   :  { %v7226_v1 = vrot.slane %v7218_v48, %v18508_v15  ;;  %v7335_v43 = vcombine.low %v4777_v62, %v4781_v36  ;;  %v4729_v32 = vrot.slane %v19445_v8, %v22934_v7  ;;  %v9573_v3 = vmul.f32 %v22992_v19, %v3466_v18 }
 0x339   :  { %v7233_v34 = vrot.slane %v7219_v42, %v18508_v15  ;;  %v7336_v30 = vcombine.low %v4785_v10, %v4789_v51  ;;  %v7343_v61 = vrot.slane %v7333_v4, %v18508_v15  ;;  %v7350_v12 = vrot.slane %v7334_v63, %v18508_v15  ;;  %v3471_v51 = vpop.f32.mrb[144].mxu0 }
 0x33a   :  { %v7357_v47 = vrot.slane %v7335_v43, %v18508_v15  ;;  %v4733_v27 = vrot.slane %v19445_v8, %v22935_v59  ;;  %v4737_v48 = vrot.slane %v19445_v8, %v22936_v40  ;;  %9692 = vadd.xlane.f32.xlu0 %v9573_v3  ;;  %v19588_v62 = vcombine.low %v7275_v60, %v7282_v41  ;;  %v19601_v41 = vpop.xlane.xlu1 %9622  ;;  %v3473_v58 = vpop.f32.mrb[145].mxu0 }
 0x33b   :  { %v7364_v36 = vrot.slane %v7336_v30, %v18508_v15  ;;  %v4741_v42 = vrot.slane %v19445_v8, %v22937_v23  ;;  %v4745_v10 = vrot.slane %v19445_v8, %v22938_v21  ;;  %v7365_v4 = vcombine.low %v7343_v61, %v7350_v12  ;;  %22993 = vst [vmem:[#allocation49_spill] sm:$0xff] %v19601_v41  ;;  %v22994_v30 = vld [vmem:[#allocation40_spill] sm:$0xff]  ;;  %v19604_v19 = vpop.xlane.xlu0 %9620 }
 0x33c   :  { %v4749_v18 = vrot.slane %v19445_v8, %v22939_v50  ;;  %v4753_v63 = vrot.slane %v19445_v8, %v22940_v35  ;;  %v4757_v60 = vrot.slane %v19445_v8, %v22941_v0  ;;  %v9574_v43 = vmul.f32 %v3471_v51, %v22994_v30  ;;  %22995 = vst [vmem:[#allocation22_spill] sm:$0xff] %v19604_v19  ;;  %v22998_v19 = vld [vmem:[#allocation42_spill] sm:$0xff] }
 0x33d   :  { %v7366_v3 = vcombine.low %v7357_v47, %v7364_v36  ;;  %v7284_v20 = vcombine.low %v4729_v32, %v4733_v27  ;;  %v7285_v45 = vcombine.low %v4737_v48, %v4741_v42  ;;  %v19606_v61 = vcombine.low %v7226_v1, %v7233_v34  ;;  %v3476_v32 = vpop.f32.mrb[146].mxu0 }
 0x33e   :  { %v7373_v12 = vrot.slane %v7365_v4, %v18508_v15  ;;  %v7286_v46 = vcombine.low %v4745_v10, %v4749_v18  ;;  %v7287_v56 = vcombine.low %v4753_v63, %v4757_v60  ;;  %9694 = vadd.xlane.f32.xlu1 %v9574_v43  ;;  %v4825_v51 = vrot.slane %v19535_v37, %v22934_v7  ;;  %v19621_v48 = vpop.xlane.xlu1 %3650  ;;  %v3478_v18 = vpop.f32.mrb[147].mxu0 }
 0x33f   :  { %v7294_v29 = vrot.slane %v7284_v20, %v18508_v15  ;;  %v7301_v8 = vrot.slane %v7285_v45, %v18508_v15  ;;  %v4829_v47 = vrot.slane %v19535_v37, %v22935_v59  ;;  %v4833_v34 = vrot.slane %v19535_v37, %v22936_v40  ;;  %v22996_v45 = vld [vmem:[#allocation39_spill] sm:$0xff]  ;;  %v19624_v42 = vpop.xlane.xlu0 %3648 }
 0x340   :  { %v7308_v58 = vrot.slane %v7286_v46, %v18508_v15  ;;  %v7315_v1 = vrot.slane %v7287_v56, %v18508_v15  ;;  %v4837_v27 = vrot.slane %v19535_v37, %v22937_v23  ;;  %v9575_v36 = vmul.f32 %v22996_v45, %v3476_v32 }
 0x341   :  { %v7380_v10 = vrot.slane %v7366_v3, %v18508_v15  ;;  %v7316_v4 = vcombine.low %v7294_v29, %v7301_v8  ;;  %v4841_v46 = vrot.slane %v19535_v37, %v22938_v21  ;;  %v4845_v63 = vrot.slane %v19535_v37, %v22939_v50  ;;  %v3481_v8 = vpop.f32.mrb[148].mxu0 }
 0x342   :  { %v7317_v56 = vcombine.low %v7308_v58, %v7315_v1  ;;  %v4849_v60 = vrot.slane %v19535_v37, %v22940_v35  ;;  %v4853_v30 = vrot.slane %v19535_v37, %v22941_v0  ;;  %9696 = vadd.xlane.f32.xlu0 %v9575_v36  ;;  %v7431_v20 = vcombine.low %v4825_v51, %v4829_v47  ;;  %v19641_v18 = vpop.xlane.xlu1 %9626 }
 0x343   :  { %v7324_v43 = vrot.slane %v7316_v4, %v18508_v15  ;;  %v7432_v3 = vcombine.low %v4833_v34, %v4837_v27  ;;  %v4793_v29 = vrot.slane %v19487_v26, %v22934_v7  ;;  %v7433_v58 = vcombine.low %v4841_v46, %v4845_v63  ;;  %22997 = vst [vmem:[#allocation21_spill] sm:$0xff] %v19641_v18  ;;  %v19644_v36 = vpop.xlane.xlu0 %9624  ;;  %v3483_v27 = vpop.f32.mrb[149].mxu0 }
 0x344   :  { %v7331_v32 = vrot.slane %v7317_v56, %v18508_v15  ;;  %v7434_v1 = vcombine.low %v4849_v60, %v4853_v30  ;;  %v4797_v45 = vrot.slane %v19487_v26, %v22935_v59  ;;  %v9576_v37 = vmul.f32 %v3481_v8, %v22998_v19  ;;  %22999 = vst [vmem:[#allocation50_spill] sm:$0xff] %v19644_v36 }
 0x345   :  { %v7441_v51 = vrot.slane %v7431_v20, %v18508_v15  ;;  %v7448_v47 = vrot.slane %v7432_v3, %v18508_v15  ;;  %v4801_v34 = vrot.slane %v19487_v26, %v22936_v40  ;;  %v19650_v4 = vcombine.low %v7373_v12, %v7380_v10  ;;  %v3486_v12 = vpop.f32.mrb[150].mxu0 }
 0x346   :  { %v7455_v46 = vrot.slane %v7433_v58, %v18508_v15  ;;  %v7462_v56 = vrot.slane %v7434_v1, %v18508_v15  ;;  %v4805_v63 = vrot.slane %v19487_v26, %v22937_v23  ;;  %9698 = vadd.xlane.f32.xlu1 %v9576_v37  ;;  %v4809_v60 = vrot.slane %v19487_v26, %v22938_v21  ;;  %v19664_v1 = vpop.xlane.xlu1 %3654  ;;  %v23001_v37 = vld [vmem:[#allocation41_spill] sm:$0xff]  ;;  %v3488_v41 = vpop.f32.mrb[151].mxu0 }
 0x347   :  { %23000 = vst [vmem:[#allocation6_spill] sm:$0xff] %v19650_v4  ;;  %v7463_v19 = vcombine.low %v7441_v51, %v7448_v47  ;;  %v4813_v30 = vrot.slane %v19487_v26, %v22939_v50  ;;  %v4817_v20 = vrot.slane %v19487_v26, %v22940_v35  ;;  %v4821_v3 = vrot.slane %v19487_v26, %v22941_v0  ;;  %v19667_v47 = vpop.xlane.xlu0 %3652 }
 0x348   :  { %v7464_v10 = vcombine.low %v7455_v46, %v7462_v56  ;;  %v7382_v8 = vcombine.low %v4793_v29, %v4797_v45  ;;  %v7383_v58 = vcombine.low %v4801_v34, %v4805_v63  ;;  %v9577_v51 = vmul.f32 %v23001_v37, %v3486_v12 }
 0x349   :  { %v19669_v27 = vcombine.low %v7324_v43, %v7331_v32  ;;  %v7471_v36 = vrot.slane %v7463_v19, %v18508_v15  ;;  %v7384_v18 = vcombine.low %v4809_v60, %v4813_v30  ;;  %v7385_v22 = vcombine.low %v4817_v20, %v4821_v3  ;;  %v3491_v32 = vpop.f32.mrb[152].mxu0 }
 0x34a   :  { %v7392_v46 = vrot.slane %v7382_v8, %v18508_v15  ;;  %v7399_v56 = vrot.slane %v7383_v58, %v18508_v15  ;;  %v4889_v26 = vrot.slane %v19578_v52, %v22934_v7  ;;  %9700 = vadd.xlane.f32.xlu0 %v9577_v51  ;;  %v4893_v45 = vrot.slane %v19578_v52, %v22935_v59  ;;  %v19687_v30 = vpop.xlane.xlu1 %9630 }
 0x34b   :  { %23002 = vst [vmem:[#allocation24_spill] sm:$0xff] %v19669_v27  ;;  %v7406_v29 = vrot.slane %v7384_v18, %v18508_v15  ;;  %v4897_v43 = vrot.slane %v19578_v52, %v22936_v40  ;;  %v4901_v41 = vrot.slane %v19578_v52, %v22937_v23  ;;  %v7478_v34 = vrot.slane %v7464_v10, %v18508_v15  ;;  %v23004_v18 = vld [vmem:[#allocation44_spill] sm:$0xff]  ;;  %v19690_v12 = vpop.xlane.xlu0 %9628 }
 0x34c   :  { %v7413_v63 = vrot.slane %v7385_v22, %v18508_v15  ;;  %v7414_v19 = vcombine.low %v7392_v46, %v7399_v56  ;;  %v4905_v60 = vrot.slane %v19578_v52, %v22938_v21  ;;  %23003 = vst [vmem:[#allocation23_spill] sm:$0xff] %v19687_v30  ;;  %v9578_v20 = vmul.f32 %v3491_v32, %v23004_v18  ;;  %v3493_v22 = vpop.f32.mrb[153].mxu0 }
 0x34d   :  { %23005 = vst [vmem:[#allocation5_spill] sm:$0xff] %v19690_v12  ;;  %v4909_v3 = vrot.slane %v19578_v52, %v22939_v50  ;;  %v4913_v8 = vrot.slane %v19578_v52, %v22940_v35  ;;  %v4917_v10 = vrot.slane %v19578_v52, %v22941_v0  ;;  %v7529_v51 = vcombine.low %v4889_v26, %v4893_v45  ;;  %v3496_v30 = vpop.f32.mrb[154].mxu0 }
 0x34e   :  { %v7415_v58 = vcombine.low %v7406_v29, %v7413_v63  ;;  %v7422_v37 = vrot.slane %v7414_v19, %v18508_v15  ;;  %v7530_v46 = vcombine.low %v4897_v43, %v4901_v41  ;;  %9702 = vadd.xlane.f32.xlu1 %v9578_v20  ;;  %v4857_v18 = vrot.slane %v19532_v13, %v22934_v7  ;;  %v19708_v45 = vpop.xlane.xlu1 %3658  ;;  %v23006_v43 = vld [vmem:[#allocation43_spill] sm:$0xff] }
 0x34f   :  { %v7531_v56 = vcombine.low %v4905_v60, %v4909_v3  ;;  %v7532_v32 = vcombine.low %v4913_v8, %v4917_v10  ;;  %v4861_v12 = vrot.slane %v19532_v13, %v22935_v59  ;;  %v7539_v52 = vrot.slane %v7529_v51, %v18508_v15  ;;  %v19711_v63 = vpop.xlane.xlu0 %3656  ;;  %v3498_v3 = vpop.f32.mrb[155].mxu0 }
 0x350   :  { %v7429_v6 = vrot.slane %v7415_v58, %v18508_v15  ;;  %v7546_v29 = vrot.slane %v7530_v46, %v18508_v15  ;;  %v4865_v26 = vrot.slane %v19532_v13, %v22936_v40  ;;  %v9579_v41 = vmul.f32 %v23006_v43, %v3496_v30  ;;  %v23010_v3 = vld [vmem:[#allocation46_spill] sm:$0xff] }
 0x351   :  { %v7553_v19 = vrot.slane %v7531_v56, %v18508_v15  ;;  %v7560_v60 = vrot.slane %v7532_v32, %v18508_v15  ;;  %v4869_v20 = vrot.slane %v19532_v13, %v22937_v23  ;;  %v19717_v8 = vcombine.low %v7471_v36, %v7478_v34  ;;  %v3501_v32 = vpop.f32.mrb[156].mxu0 }
 0x352   :  { %v7561_v10 = vcombine.low %v7539_v52, %v7546_v29  ;;  %v4873_v22 = vrot.slane %v19532_v13, %v22938_v21  ;;  %v4877_v58 = vrot.slane %v19532_v13, %v22939_v50  ;;  %9704 = vadd.xlane.f32.xlu0 %v9579_v41  ;;  %v4881_v51 = vrot.slane %v19532_v13, %v22940_v35 }
 0x353   :  { %23007 = vst [vmem:[#allocation8_spill] sm:$0xff] %v19717_v8  ;;  %v7562_v30 = vcombine.low %v7553_v19, %v7560_v60  ;;  %v4885_v46 = vrot.slane %v19532_v13, %v22941_v0  ;;  %v7480_v56 = vcombine.low %v4857_v18, %v4861_v12  ;;  %v19727_v43 = vcombine.low %v7422_v37, %v7429_v6  ;;  %v19730_v29 = vpop.xlane.xlu1 %9634  ;;  %v19733_v41 = vpop.xlane.xlu0 %9632 }
 0x354   :  { %v7569_v36 = vrot.slane %v7561_v10, %v18508_v15  ;;  %v7481_v34 = vcombine.low %v4865_v26, %v4869_v20  ;;  %v7482_v52 = vcombine.low %v4873_v22, %v4877_v58  ;;  %23009 = vst [vmem:[#allocation25_spill] sm:$0xff] %v19730_v29  ;;  %v9580_v8 = vmul.f32 %v3501_v32, %v23010_v3  ;;  %v3503_v12 = vpop.f32.mrb[157].mxu0 }
 0x355   :  { %23008 = vst [vmem:[#allocation26_spill] sm:$0xff] %v19727_v43  ;;  %23011 = vst [vmem:[#allocation69_spill] sm:$0xff] %v19733_v41  ;;  %v7483_v19 = vcombine.low %v4881_v51, %v4885_v46  ;;  %v7490_v60 = vrot.slane %v7480_v56, %v18508_v15  ;;  %v4953_v13 = vrot.slane %v19624_v42, %v22934_v7  ;;  %v3506_v51 = vpop.f32.mrb[158].mxu0 }
 0x356   :  { %v7497_v6 = vrot.slane %v7481_v34, %v18508_v15  ;;  %v7504_v37 = vrot.slane %v7482_v52, %v18508_v15  ;;  %v4957_v18 = vrot.slane %v19624_v42, %v22935_v59  ;;  %v4961_v26 = vrot.slane %v19624_v42, %v22936_v40  ;;  %9706 = vadd.xlane.f32.xlu1 %v9580_v8  ;;  %v23012_v34 = vld [vmem:[#allocation45_spill] sm:$0xff]  ;;  %v3508_v29 = vpop.f32.mrb[159].mxu0 }
 0x357   :  { %v7576_v20 = vrot.slane %v7562_v30, %v18508_v15  ;;  %v7511_v10 = vrot.slane %v7483_v19, %v18508_v15  ;;  %v4965_v22 = vrot.slane %v19624_v42, %v22937_v23  ;;  %v4969_v58 = vrot.slane %v19624_v42, %v22938_v21  ;;  %v19759_v3 = vpop.xlane.xlu0 %3660 }
 0x358   :  { %v7512_v46 = vcombine.low %v7490_v60, %v7497_v6  ;;  %v4973_v56 = vrot.slane %v19624_v42, %v22939_v50  ;;  %v4977_v32 = vrot.slane %v19624_v42, %v22940_v35  ;;  %v4981_v8 = vrot.slane %v19624_v42, %v22941_v0  ;;  %v19756_v30 = vpop.xlane.xlu1 %3662 }
 0x359   :  { %v9581_v52 = vmul.f32 %v23012_v34, %v3506_v51  ;;  %v7513_v19 = vcombine.low %v7504_v37, %v7511_v10  ;;  %v7627_v12 = vcombine.low %v4953_v13, %v4957_v18  ;;  %v7628_v41 = vcombine.low %v4961_v26, %v4965_v22 }
 0x35a   :  { %v7520_v60 = vrot.slane %v7512_v46, %v18508_v15  ;;  %v7629_v6 = vcombine.low %v4969_v58, %v4973_v56  ;;  %v7630_v43 = vcombine.low %v4977_v32, %v4981_v8  ;;  %v4921_v27 = vrot.slane %v19575_v39, %v22934_v7 }
 0x35b   :  { %9708 = vadd.xlane.f32.xlu0 %v9581_v52  ;;  %v7527_v42 = vrot.slane %v7513_v19, %v18508_v15  ;;  %v7637_v4 = vrot.slane %v7627_v12, %v18508_v15  ;;  %v7644_v51 = vrot.slane %v7628_v41, %v18508_v15  ;;  %v4925_v37 = vrot.slane %v19575_v39, %v22935_v59  ;;  %v19777_v22 = vpop.xlane.xlu0 %9636 }
 0x35c   :  { %v7651_v13 = vrot.slane %v7629_v6, %v18508_v15  ;;  %v7658_v29 = vrot.slane %v7630_v43, %v18508_v15  ;;  %v4929_v18 = vrot.slane %v19575_v39, %v22936_v40  ;;  %v4933_v26 = vrot.slane %v19575_v39, %v22937_v23  ;;  %v19775_v10 = vpop.xlane.xlu1 %9638  ;;  %23014 = vst [vmem:[#allocation28_spill] sm:$0xff] %v19777_v22 }
 0x35d   :  { %23013 = vst [vmem:[#allocation9_spill] sm:$0xff] %v19775_v10  ;;  %v19779_v58 = vcombine.low %v7569_v36, %v7576_v20  ;;  %v7659_v41 = vcombine.low %v7637_v4, %v7644_v51  ;;  %v4937_v46 = vrot.slane %v19575_v39, %v22938_v21  ;;  %v4941_v56 = vrot.slane %v19575_v39, %v22939_v50 }
 0x35e   :  { %v7660_v43 = vcombine.low %v7651_v13, %v7658_v29  ;;  %v4945_v32 = vrot.slane %v19575_v39, %v22940_v35  ;;  %v4949_v8 = vrot.slane %v19575_v39, %v22941_v0  ;;  %v7578_v34 = vcombine.low %v4921_v27, %v4925_v37 }
 0x35f   :  { %23015 = vst [vmem:[#allocation27_spill] sm:$0xff] %v19779_v58  ;;  %v19789_v52 = vcombine.low %v7520_v60, %v7527_v42  ;;  %v7579_v19 = vcombine.low %v4929_v18, %v4933_v26  ;;  %v7580_v36 = vcombine.low %v4937_v46, %v4941_v56  ;;  %v5017_v4 = vrot.slane %v19667_v47, %v22934_v7  ;;  %v19797_v13 = vpop.xlane.xlu0 %3664 }
 0x360   :  { %v7667_v20 = vrot.slane %v7659_v41, %v18508_v15  ;;  %v7581_v12 = vcombine.low %v4945_v32, %v4949_v8  ;;  %v7588_v6 = vrot.slane %v7578_v34, %v18508_v15  ;;  %v5021_v51 = vrot.slane %v19667_v47, %v22935_v59  ;;  %v19805_v37 = vpop.xlane.xlu1 %3666 }
 0x361   :  { %23016 = vst [vmem:[#allocation64_spill] sm:$0xff] %v19789_v52  ;;  %v7595_v39 = vrot.slane %v7579_v19, %v18508_v15  ;;  %v7602_v27 = vrot.slane %v7580_v36, %v18508_v15  ;;  %v5025_v60 = vrot.slane %v19667_v47, %v22936_v40  ;;  %v5029_v42 = vrot.slane %v19667_v47, %v22937_v23 }
 0x362   :  { %v7674_v29 = vrot.slane %v7660_v43, %v18508_v15  ;;  %v7609_v18 = vrot.slane %v7581_v12, %v18508_v15  ;;  %v5033_v26 = vrot.slane %v19667_v47, %v22938_v21  ;;  %v5037_v41 = vrot.slane %v19667_v47, %v22939_v50 }
 0x363   :  { %v7610_v46 = vcombine.low %v7588_v6, %v7595_v39  ;;  %v5041_v56 = vrot.slane %v19667_v47, %v22940_v35  ;;  %v5045_v32 = vrot.slane %v19667_v47, %v22941_v0  ;;  %v7725_v8 = vcombine.low %v5017_v4, %v5021_v51  ;;  %v19823_v39 = vpop.xlane.xlu0 %9640 }
 0x364   :  { %v7611_v34 = vcombine.low %v7602_v27, %v7609_v18  ;;  %v7726_v19 = vcombine.low %v5025_v60, %v5029_v42  ;;  %v7727_v36 = vcombine.low %v5033_v26, %v5037_v41  ;;  %v4985_v43 = vrot.slane %v19621_v48, %v22934_v7  ;;  %23017 = vst [vmem:[#allocation12_spill] sm:$0xff] %v19823_v39  ;;  %v19837_v26 = vpop.xlane.xlu1 %9642  ;;  %v23019_v41 = vld [vmem:[#allocation65_spill] sm:$0xff] }
 0x365   :  { %v7618_v12 = vrot.slane %v7610_v46, %v18508_v15  ;;  %v7728_v22 = vcombine.low %v5041_v56, %v5045_v32  ;;  %v7735_v10 = vrot.slane %v7725_v8, %v18508_v15  ;;  %v4989_v6 = vrot.slane %v19621_v48, %v22935_v59  ;;  %23018 = vst [vmem:[#allocation30_spill] sm:$0xff] %v19837_v26 }
 0x366   :  { %v7625_v52 = vrot.slane %v7611_v34, %v18508_v15  ;;  %v7742_v47 = vrot.slane %v7726_v19, %v18508_v15  ;;  %v7749_v4 = vrot.slane %v7727_v36, %v18508_v15  ;;  %v4993_v51 = vrot.slane %v19621_v48, %v22936_v40 }
 0x367   :  { %v7756_v27 = vrot.slane %v7728_v22, %v18508_v15  ;;  %v4997_v60 = vrot.slane %v19621_v48, %v22937_v23  ;;  %v5001_v42 = vrot.slane %v19621_v48, %v22938_v21  ;;  %v5005_v18 = vrot.slane %v19621_v48, %v22939_v50  ;;  %8951 = vperm.xlu1 %16405, %v23019_v41  }
 0x368   :  { %v19840_v46 = vcombine.low %v7667_v20, %v7674_v29  ;;  %v7757_v56 = vcombine.low %v7735_v10, %v7742_v47  ;;  %v5009_v32 = vrot.slane %v19621_v48, %v22940_v35  ;;  %v5013_v22 = vrot.slane %v19621_v48, %v22941_v0  ;;  %v19871_v41 = vpop.xlane.xlu1 %3670 }
 0x369   :  { %v7758_v8 = vcombine.low %v7749_v4, %v7756_v27  ;;  %v7676_v34 = vcombine.low %v4985_v43, %v4989_v6  ;;  %v7677_v19 = vcombine.low %v4993_v51, %v4997_v60  ;;  %v7678_v36 = vcombine.low %v5001_v42, %v5005_v18  ;;  %v19856_v43 = vpop.xlane.xlu0 %3668  ;;  %v23021_v6 = vld [vmem:[#allocation66_spill] sm:$0xff] }
 0x36a   :  { %v19846_v39 = vcombine.low %v7618_v12, %v7625_v52  ;;  %v7679_v58 = vcombine.low %v5009_v32, %v5013_v22  ;;  %v5081_v26 = vrot.slane %v19711_v63, %v22934_v7  ;;  %v5085_v20 = vrot.slane %v19711_v63, %v22935_v59 }
 0x36b   :  { %v7765_v10 = vrot.slane %v7757_v56, %v18508_v15  ;;  %v7686_v29 = vrot.slane %v7676_v34, %v18508_v15  ;;  %v7693_v47 = vrot.slane %v7677_v19, %v18508_v15  ;;  %v7700_v48 = vrot.slane %v7678_v36, %v18508_v15  ;;  %8957 = vperm.xlu1 %16405, %v23021_v6  }
 0x36c   :  { %23020 = vst [vmem:[#allocation29_spill] sm:$0xff] %v19846_v39  ;;  %v7707_v52 = vrot.slane %v7679_v58, %v18508_v15  ;;  %v5089_v12 = vrot.slane %v19711_v63, %v22936_v40  ;;  %v5093_v4 = vrot.slane %v19711_v63, %v22937_v23  ;;  %v5097_v51 = vrot.slane %v19711_v63, %v22938_v21 }
 0x36d   :  { %v7772_v27 = vrot.slane %v7758_v8, %v18508_v15  ;;  %v7708_v60 = vcombine.low %v7686_v29, %v7693_v47  ;;  %v5101_v42 = vrot.slane %v19711_v63, %v22939_v50  ;;  %v5105_v18 = vrot.slane %v19711_v63, %v22940_v35  ;;  %v23022_v29 = vld [vmem:[#allocation67_spill] sm:$0xff] }
 0x36e   :  { %v7709_v58 = vcombine.low %v7700_v48, %v7707_v52  ;;  %v5109_v56 = vrot.slane %v19711_v63, %v22941_v0  ;;  %v7823_v32 = vcombine.low %v5081_v26, %v5085_v20  ;;  %v7824_v22 = vcombine.low %v5089_v12, %v5093_v4  ;;  %v23023_v26 = vld [vmem:[#allocation4_spill] sm:$0xff] }
 0x36f   :  { %v7716_v34 = vrot.slane %v7708_v60, %v18508_v15  ;;  %v7825_v19 = vcombine.low %v5097_v51, %v5101_v42  ;;  %v5049_v8 = vrot.slane %v19664_v1, %v22934_v7  ;;  %v5053_v36 = vrot.slane %v19664_v1, %v22935_v59  ;;  %8960 = vperm.xlu1 %16405, %v23022_v29   ;;  %v19892_v51 = vpop.xlane.xlu0 %9644  ;;  %v19903_v29 = vpop.xlane.xlu1 %9646 }
 0x370   :  { %v7723_v47 = vrot.slane %v7709_v58, %v18508_v15  ;;  %v7826_v6 = vcombine.low %v5105_v18, %v5109_v56  ;;  %v7833_v48 = vrot.slane %v7823_v32, %v18508_v15  ;;  %v7840_v63 = vrot.slane %v7824_v22, %v18508_v15  ;;  %23024 = vst [vmem:[#allocation11_spill] sm:$0xff] %v19892_v51 }
 0x371   :  { %8954 = vperm.xlu0 %16404, %v23023_v26   ;;  %v7847_v20 = vrot.slane %v7825_v19, %v18508_v15  ;;  %v5057_v52 = vrot.slane %v19664_v1, %v22936_v40  ;;  %v5061_v12 = vrot.slane %v19664_v1, %v22937_v23  ;;  %v5065_v4 = vrot.slane %v19664_v1, %v22938_v21  ;;  %v23027_v26 = vld [vmem:[#allocation3_spill] sm:$0xff] }
 0x372   :  { %v19894_v60 = vcombine.low %v7765_v10, %v7772_v27  ;;  %v7854_v42 = vrot.slane %v7826_v6, %v18508_v15  ;;  %v7855_v18 = vcombine.low %v7833_v48, %v7840_v63  ;;  %v5069_v58 = vrot.slane %v19664_v1, %v22939_v50  ;;  %23026 = vst [vmem:[#allocation31_spill] sm:$0xff] %v19903_v29  ;;  %v23029_v63 = vld [vmem:[#allocation51_spill] sm:$0xff] }
 0x373   :  { %v5073_v56 = vrot.slane %v19664_v1, %v22940_v35  ;;  %v5077_v32 = vrot.slane %v19664_v1, %v22941_v0  ;;  %v7774_v22 = vcombine.low %v5049_v8, %v5053_v36  ;;  %v7775_v19 = vcombine.low %v5057_v52, %v5061_v12  ;;  %8966 = vperm.xlu1 %16405, %v23027_v26  }
 0x374   :  { %23025 = vst [vmem:[#allocation32_spill] sm:$0xff] %v19894_v60  ;;  %v19906_v10 = vcombine.low %v7716_v34, %v7723_v47  ;;  %v7856_v27 = vcombine.low %v7847_v20, %v7854_v42  ;;  %v7776_v6 = vcombine.low %v5065_v4, %v5069_v58  ;;  %v5145_v48 = vrot.slane %v19759_v3, %v22934_v7  ;;  %v19926_v58 = vpop.xlane.xlu0 %3672 }
 0x375   :  { %8963 = vperm.xlu0 %16404, %v23029_v63   ;;  %v7777_v51 = vcombine.low %v5073_v56, %v5077_v32  ;;  %v7784_v60 = vrot.slane %v7774_v22, %v18508_v15  ;;  %v7791_v1 = vrot.slane %v7775_v19, %v18508_v15  ;;  %v5149_v8 = vrot.slane %v19759_v3, %v22935_v59 }
 0x376   :  { %23028 = vst [vmem:[#allocation34_spill] sm:$0xff] %v19906_v10  ;;  %v7863_v36 = vrot.slane %v7855_v18, %v18508_v15  ;;  %v7798_v34 = vrot.slane %v7776_v6, %v18508_v15  ;;  %v5153_v47 = vrot.slane %v19759_v3, %v22936_v40  ;;  %v5157_v20 = vrot.slane %v19759_v3, %v22937_v23  ;;  %v23030_v18 = vld [vmem:[#allocation53_spill] sm:$0xff] }
 0x377   :  { %v7805_v52 = vrot.slane %v7777_v51, %v18508_v15  ;;  %v7806_v12 = vcombine.low %v7784_v60, %v7791_v1  ;;  %v5161_v4 = vrot.slane %v19759_v3, %v22938_v21  ;;  %v5165_v42 = vrot.slane %v19759_v3, %v22939_v50  ;;  %8972 = vperm.xlu1 %16405, %v23030_v18   ;;  %v23031_v60 = vld [vmem:[#allocation7_spill] sm:$0xff]  ;;  %v19936_v1 = vpop.xlane.xlu1 %3674 }
 0x378   :  { %v7870_v56 = vrot.slane %v7856_v27, %v18508_v15  ;;  %v5169_v32 = vrot.slane %v19759_v3, %v22940_v35  ;;  %v5173_v22 = vrot.slane %v19759_v3, %v22941_v0  ;;  %v7921_v51 = vcombine.low %v5145_v48, %v5149_v8 }
 0x379   :  { %8969 = vperm.xlu0 %16404, %v23031_v60   ;;  %v7807_v19 = vcombine.low %v7798_v34, %v7805_v52  ;;  %v7814_v26 = vrot.slane %v7806_v12, %v18508_v15  ;;  %v7922_v6 = vcombine.low %v5153_v47, %v5157_v20  ;;  %v7923_v63 = vcombine.low %v5161_v4, %v5165_v42  ;;  %v23032_v47 = vld [vmem:[#allocation62_spill] sm:$0xff] }
 0x37a   :  { %v7924_v29 = vcombine.low %v5169_v32, %v5173_v22  ;;  %v7931_v18 = vrot.slane %v7921_v51, %v18508_v15  ;;  %v5113_v27 = vrot.slane %v19708_v45, %v22934_v7  ;;  %v5117_v10 = vrot.slane %v19708_v45, %v22935_v59  ;;  %v19963_v51 = vpop.xlane.xlu0 %9648 }
 0x37b   :  { %v7821_v3 = vrot.slane %v7807_v19, %v18508_v15  ;;  %v7938_v48 = vrot.slane %v7922_v6, %v18508_v15  ;;  %v7945_v8 = vrot.slane %v7923_v63, %v18508_v15  ;;  %v5121_v34 = vrot.slane %v19708_v45, %v22936_v40  ;;  %8978 = vperm.xlu1 %16405, %v23032_v47  }
 0x37c   :  { %v7952_v20 = vrot.slane %v7924_v29, %v18508_v15  ;;  %v5125_v52 = vrot.slane %v19708_v45, %v22937_v23  ;;  %v5129_v12 = vrot.slane %v19708_v45, %v22938_v21  ;;  %v5133_v4 = vrot.slane %v19708_v45, %v22939_v50 }
 0x37d   :  { %8975 = vperm.xlu0 %16404, %v19174_v44   ;;  %v19957_v42 = vcombine.low %v7863_v36, %v7870_v56  ;;  %v7953_v32 = vcombine.low %v7931_v18, %v7938_v48  ;;  %v5137_v22 = vrot.slane %v19708_v45, %v22940_v35  ;;  %v5141_v29 = vrot.slane %v19708_v45, %v22941_v0  ;;  %v19971_v56 = vpop.xlane.xlu1 %9650 }
 0x37e   :  { %v7954_v60 = vcombine.low %v7945_v8, %v7952_v20  ;;  %v7872_v19 = vcombine.low %v5113_v27, %v5117_v10  ;;  %v7873_v6 = vcombine.low %v5121_v34, %v5125_v52  ;;  %v7874_v63 = vcombine.low %v5129_v12, %v5133_v4 }
 0x37f   :  { %v19965_v47 = vcombine.low %v7814_v26, %v7821_v3  ;;  %v7875_v39 = vcombine.low %v5137_v22, %v5141_v29  ;;  %v5209_v44 = vrot.slane %v19797_v13, %v22934_v7  ;;  %v5213_v36 = vrot.slane %v19797_v13, %v22935_v59  ;;  %8984 = vperm.xlu1 %16405, %v19179_v38  }
 0x380   :  { %v7961_v45 = vrot.slane %v7953_v32, %v18508_v15  ;;  %v7882_v18 = vrot.slane %v7872_v19, %v18508_v15  ;;  %v7889_v10 = vrot.slane %v7873_v6, %v18508_v15  ;;  %v7896_v26 = vrot.slane %v7874_v63, %v18508_v15  ;;  %v19993_v32 = vpop.xlane.xlu0 %3676 }
 0x381   :  { %8981 = vperm.xlu0 %16404, %v19181_v57   ;;  %v7903_v27 = vrot.slane %v7875_v39, %v18508_v15  ;;  %v5217_v3 = vrot.slane %v19797_v13, %v22936_v40  ;;  %v5221_v48 = vrot.slane %v19797_v13, %v22937_v23  ;;  %v5225_v38 = vrot.slane %v19797_v13, %v22938_v21 }
 0x382   :  { %v7968_v8 = vrot.slane %v7954_v60, %v18508_v15  ;;  %v7904_v34 = vcombine.low %v7882_v18, %v7889_v10  ;;  %v5229_v20 = vrot.slane %v19797_v13, %v22939_v50  ;;  %v5233_v57 = vrot.slane %v19797_v13, %v22940_v35 }
 0x383   :  { %v7905_v52 = vcombine.low %v7896_v26, %v7903_v27  ;;  %v5237_v39 = vrot.slane %v19797_v13, %v22941_v0  ;;  %v8019_v12 = vcombine.low %v5209_v44, %v5213_v36  ;;  %v8020_v4 = vcombine.low %v5217_v3, %v5221_v48  ;;  %8990 = vperm.xlu1 %16405, %v19205_v9   ;;  %v20005_v36 = vpop.xlane.xlu1 %3678 }
 0x384   :  { %v7912_v22 = vrot.slane %v7904_v34, %v18508_v15  ;;  %v8021_v29 = vcombine.low %v5225_v38, %v5229_v20  ;;  %v5177_v60 = vrot.slane %v19756_v30, %v22934_v7  ;;  %v5181_v19 = vrot.slane %v19756_v30, %v22935_v59 }
 0x385   :  { %8987 = vperm.xlu0 %16404, %v19207_v49   ;;  %v7919_v6 = vrot.slane %v7905_v52, %v18508_v15  ;;  %v8022_v13 = vcombine.low %v5233_v57, %v5237_v39  ;;  %v8029_v63 = vrot.slane %v8019_v12, %v18508_v15  ;;  %v8036_v44 = vrot.slane %v8020_v4, %v18508_v15  ;;  %v20029_v12 = vpop.xlane.xlu0 %9652 }
 0x386   :  { %v8043_v9 = vrot.slane %v8021_v29, %v18508_v15  ;;  %v5185_v18 = vrot.slane %v19756_v30, %v22936_v40  ;;  %v5189_v10 = vrot.slane %v19756_v30, %v22937_v23  ;;  %v5193_v49 = vrot.slane %v19756_v30, %v22938_v21 }
 0x387   :  { %v20014_v26 = vcombine.low %v7961_v45, %v7968_v8  ;;  %v8050_v27 = vrot.slane %v8022_v13, %v18508_v15  ;;  %v8051_v3 = vcombine.low %v8029_v63, %v8036_v44  ;;  %v5197_v48 = vrot.slane %v19756_v30, %v22939_v50  ;;  %8996 = vperm.xlu1 %16405, %v19209_v28  }
 0x388   :  { %v5201_v38 = vrot.slane %v19756_v30, %v22940_v35  ;;  %v5205_v34 = vrot.slane %v19756_v30, %v22941_v0  ;;  %v7970_v20 = vcombine.low %v5177_v60, %v5181_v19  ;;  %v7971_v57 = vcombine.low %v5185_v18, %v5189_v10 }
 0x389   :  { %8993 = vperm.xlu0 %16404, %v19214_v2   ;;  %v20025_v45 = vcombine.low %v7912_v22, %v7919_v6  ;;  %v8052_v8 = vcombine.low %v8043_v9, %v8050_v27  ;;  %v7972_v52 = vcombine.low %v5193_v49, %v5197_v48  ;;  %v5273_v39 = vrot.slane %v19856_v43, %v22934_v7  ;;  %v20041_v6 = vpop.xlane.xlu1 %9654 }
 0x38a   :  { %v7973_v28 = vcombine.low %v5201_v38, %v5205_v34  ;;  %v7980_v4 = vrot.slane %v7970_v20, %v18508_v15  ;;  %v7987_v29 = vrot.slane %v7971_v57, %v18508_v15  ;;  %v5277_v30 = vrot.slane %v19856_v43, %v22935_v59 }
 0x38b   :  { %v8059_v60 = vrot.slane %v8051_v3, %v18508_v15  ;;  %v7994_v2 = vrot.slane %v7972_v52, %v18508_v15  ;;  %v5281_v22 = vrot.slane %v19856_v43, %v22936_v40  ;;  %v5285_v19 = vrot.slane %v19856_v43, %v22937_v23  ;;  %9002 = vperm.xlu1 %16405, %v19280_v31  }
 0x38c   :  { %v8001_v13 = vrot.slane %v7973_v28, %v18508_v15  ;;  %v8002_v63 = vcombine.low %v7980_v4, %v7987_v29  ;;  %v5289_v44 = vrot.slane %v19856_v43, %v22938_v21  ;;  %v5293_v9 = vrot.slane %v19856_v43, %v22939_v50 }
 0x38d   :  { %8999 = vperm.xlu0 %16404, %v19216_v14   ;;  %v8066_v18 = vrot.slane %v8052_v8, %v18508_v15  ;;  %v5297_v10 = vrot.slane %v19856_v43, %v22940_v35  ;;  %v5301_v49 = vrot.slane %v19856_v43, %v22941_v0  ;;  %v8117_v31 = vcombine.low %v5273_v39, %v5277_v30  ;;  %v20061_v8 = vpop.xlane.xlu0 %3680 }
 0x38e   :  { %v8003_v27 = vcombine.low %v7994_v2, %v8001_v13  ;;  %v8010_v3 = vrot.slane %v8002_v63, %v18508_v15  ;;  %v8118_v48 = vcombine.low %v5281_v22, %v5285_v19  ;;  %v8119_v38 = vcombine.low %v5289_v44, %v5293_v9  ;;  %v20077_v2 = vpop.xlane.xlu1 %3682 }
 0x38f   :  { %v8120_v34 = vcombine.low %v5297_v10, %v5301_v49  ;;  %v8127_v20 = vrot.slane %v8117_v31, %v18508_v15  ;;  %v5241_v14 = vrot.slane %v19805_v37, %v22934_v7  ;;  %v5245_v57 = vrot.slane %v19805_v37, %v22935_v59  ;;  %9008 = vperm.xlu1 %16405, %v19320_v25  }
 0x390   :  { %v8017_v43 = vrot.slane %v8003_v27, %v18508_v15  ;;  %v8134_v52 = vrot.slane %v8118_v48, %v18508_v15  ;;  %v8141_v39 = vrot.slane %v8119_v38, %v18508_v15  ;;  %v5249_v28 = vrot.slane %v19805_v37, %v22936_v40 }
 0x391   :  { %9005 = vperm.xlu0 %16404, %v19223_v11   ;;  %v8148_v4 = vrot.slane %v8120_v34, %v18508_v15  ;;  %v5253_v29 = vrot.slane %v19805_v37, %v22937_v23  ;;  %v5257_v30 = vrot.slane %v19805_v37, %v22938_v21  ;;  %v5261_v25 = vrot.slane %v19805_v37, %v22939_v50 }
 0x392   :  { %v20079_v22 = vcombine.low %v8059_v60, %v8066_v18  ;;  %v8149_v19 = vcombine.low %v8127_v20, %v8134_v52  ;;  %v5265_v13 = vrot.slane %v19805_v37, %v22940_v35  ;;  %v5269_v11 = vrot.slane %v19805_v37, %v22941_v0 }
 0x393   :  { %v8150_v63 = vcombine.low %v8141_v39, %v8148_v4  ;;  %v8068_v44 = vcombine.low %v5241_v14, %v5245_v57  ;;  %v8069_v9 = vcombine.low %v5249_v28, %v5253_v29  ;;  %v8070_v10 = vcombine.low %v5257_v30, %v5261_v25  ;;  %9014 = vperm.xlu1 %16405, %v19370_v5   ;;  %v20097_v5 = vpop.xlane.xlu0 %9656  ;;  %v20111_v39 = vpop.xlane.xlu1 %9658 }
 0x394   :  { %v20086_v49 = vcombine.low %v8010_v3, %v8017_v43  ;;  %v8071_v31 = vcombine.low %v5265_v13, %v5269_v11  ;;  %v5337_v60 = vrot.slane %v19926_v58, %v22934_v7  ;;  %v5341_v18 = vrot.slane %v19926_v58, %v22935_v59 }
 0x395   :  { %9011 = vperm.xlu0 %16404, %v19363_v24   ;;  %v8157_v27 = vrot.slane %v8149_v19, %v18508_v15  ;;  %v8078_v37 = vrot.slane %v8068_v44, %v18508_v15  ;;  %v8085_v48 = vrot.slane %v8069_v9, %v18508_v15  ;;  %v8092_v38 = vrot.slane %v8070_v10, %v18508_v15 }
 0x396   :  { %v8099_v3 = vrot.slane %v8071_v31, %v18508_v15  ;;  %v5345_v34 = vrot.slane %v19926_v58, %v22936_v40  ;;  %v5349_v20 = vrot.slane %v19926_v58, %v22937_v23  ;;  %v5353_v24 = vrot.slane %v19926_v58, %v22938_v21 }
 0x397   :  { %v8164_v14 = vrot.slane %v8150_v63, %v18508_v15  ;;  %v8100_v57 = vcombine.low %v8078_v37, %v8085_v48  ;;  %v5357_v43 = vrot.slane %v19926_v58, %v22939_v50  ;;  %v5361_v52 = vrot.slane %v19926_v58, %v22940_v35  ;;  %9020 = vperm.xlu1 %16405, %v19405_v53  }
 0x398   :  { %v8101_v28 = vcombine.low %v8092_v38, %v8099_v3  ;;  %v5365_v4 = vrot.slane %v19926_v58, %v22941_v0  ;;  %v8215_v29 = vcombine.low %v5337_v60, %v5341_v18  ;;  %v8216_v30 = vcombine.low %v5345_v34, %v5349_v20  ;;  %v20132_v60 = vpop.xlane.xlu0 %3684 }
 0x399   :  { %9017 = vperm.xlu0 %16404, %v19425_v17   ;;  %v8108_v25 = vrot.slane %v8100_v57, %v18508_v15  ;;  %v8217_v19 = vcombine.low %v5353_v24, %v5357_v43  ;;  %v5305_v13 = vrot.slane %v19871_v41, %v22934_v7  ;;  %v5309_v11 = vrot.slane %v19871_v41, %v22935_v59  ;;  %v20145_v57 = vpop.xlane.xlu1 %3686 }
 0x39a   :  { %v8115_v63 = vrot.slane %v8101_v28, %v18508_v15  ;;  %v8218_v53 = vcombine.low %v5361_v52, %v5365_v4  ;;  %v8225_v44 = vrot.slane %v8215_v29, %v18508_v15  ;;  %v8232_v58 = vrot.slane %v8216_v30, %v18508_v15 }
 0x39b   :  { %v8239_v9 = vrot.slane %v8217_v19, %v18508_v15  ;;  %v5313_v17 = vrot.slane %v19871_v41, %v22936_v40  ;;  %v5317_v10 = vrot.slane %v19871_v41, %v22937_v23  ;;  %v5321_v31 = vrot.slane %v19871_v41, %v22938_v21  ;;  %9026 = vperm.xlu1 %16405, %v19460_v33  }
 0x39c   :  { %v20135_v18 = vcombine.low %v8157_v27, %v8164_v14  ;;  %v8246_v37 = vrot.slane %v8218_v53, %v18508_v15  ;;  %v8247_v48 = vcombine.low %v8225_v44, %v8232_v58  ;;  %v5325_v38 = vrot.slane %v19871_v41, %v22939_v50 }
 0x39d   :  { %9023 = vperm.xlu0 %16404, %v19480_v55   ;;  %v5329_v3 = vrot.slane %v19871_v41, %v22940_v35  ;;  %v5333_v34 = vrot.slane %v19871_v41, %v22941_v0  ;;  %v8166_v20 = vcombine.low %v5305_v13, %v5309_v11  ;;  %v8167_v24 = vcombine.low %v5313_v17, %v5317_v10 }
 0x39e   :  { %v20147_v33 = vcombine.low %v8108_v25, %v8115_v63  ;;  %v8248_v27 = vcombine.low %v8239_v9, %v8246_v37  ;;  %v8168_v14 = vcombine.low %v5321_v31, %v5325_v38  ;;  %v5401_v43 = vrot.slane %v19993_v32, %v22934_v7  ;;  %v20168_v63 = vpop.xlane.xlu0 %9660  ;;  %v20176_v37 = vpop.xlane.xlu1 %9662 }
 0x39f   :  { %v8169_v52 = vcombine.low %v5329_v3, %v5333_v34  ;;  %v8176_v55 = vrot.slane %v8166_v20, %v18508_v15  ;;  %v8183_v28 = vrot.slane %v8167_v24, %v18508_v15  ;;  %v5405_v4 = vrot.slane %v19993_v32, %v22935_v59  ;;  %9032 = vperm.xlu1 %16405, %v19527_v54  }
 0x3a0   :  { %v8255_v41 = vrot.slane %v8247_v48, %v18508_v15  ;;  %v8190_v29 = vrot.slane %v8168_v14, %v18508_v15  ;;  %v5409_v30 = vrot.slane %v19993_v32, %v22936_v40  ;;  %v5413_v25 = vrot.slane %v19993_v32, %v22937_v23 }
 0x3a1   :  { %9029 = vperm.xlu0 %16404, %v19543_v16   ;;  %v8197_v19 = vrot.slane %v8169_v52, %v18508_v15  ;;  %v8198_v13 = vcombine.low %v8176_v55, %v8183_v28  ;;  %v5417_v11 = vrot.slane %v19993_v32, %v22938_v21  ;;  %v5421_v54 = vrot.slane %v19993_v32, %v22939_v50 }
 0x3a2   :  { %v8262_v53 = vrot.slane %v8248_v27, %v18508_v15  ;;  %v5425_v44 = vrot.slane %v19993_v32, %v22940_v35  ;;  %v5429_v58 = vrot.slane %v19993_v32, %v22941_v0  ;;  %v8313_v16 = vcombine.low %v5401_v43, %v5405_v4 }
 0x3a3   :  { %v8199_v9 = vcombine.low %v8190_v29, %v8197_v19  ;;  %v8206_v17 = vrot.slane %v8198_v13, %v18508_v15  ;;  %v8314_v10 = vcombine.low %v5409_v30, %v5413_v25  ;;  %v8315_v31 = vcombine.low %v5417_v11, %v5421_v54  ;;  %9038 = vperm.xlu1 %16405, %v19588_v62   ;;  %v20203_v29 = vpop.xlane.xlu0 %3688  ;;  %v23033_v30 = vld [vmem:[#allocation6_spill] sm:$0xff]  ;;  %v23034_v54 = vld [vmem:[#allocation24_spill] sm:$0xff] }
 0x3a4   :  { %v8316_v48 = vcombine.low %v5425_v44, %v5429_v58  ;;  %v8323_v38 = vrot.slane %v8313_v16, %v18508_v15  ;;  %v5369_v3 = vrot.slane %v19936_v1, %v22934_v7  ;;  %v5373_v34 = vrot.slane %v19936_v1, %v22935_v59 }
 0x3a5   :  { %9035 = vperm.xlu0 %16404, %v19606_v61   ;;  %v8213_v32 = vrot.slane %v8199_v9, %v18508_v15  ;;  %v8330_v20 = vrot.slane %v8314_v10, %v18508_v15  ;;  %v8337_v24 = vrot.slane %v8315_v31, %v18508_v15  ;;  %v5377_v62 = vrot.slane %v19936_v1, %v22936_v40 }
 0x3a6   :  { %v8344_v27 = vrot.slane %v8316_v48, %v18508_v15  ;;  %v5381_v14 = vrot.slane %v19936_v1, %v22937_v23  ;;  %v5385_v43 = vrot.slane %v19936_v1, %v22938_v21  ;;  %v5389_v61 = vrot.slane %v19936_v1, %v22939_v50 }
 0x3a7   :  { %v20197_v52 = vcombine.low %v8255_v41, %v8262_v53  ;;  %v8345_v55 = vcombine.low %v8323_v38, %v8330_v20  ;;  %v5393_v28 = vrot.slane %v19936_v1, %v22940_v35  ;;  %v5397_v4 = vrot.slane %v19936_v1, %v22941_v0  ;;  %9044 = vperm.xlu1 %16405, %v23033_v30   ;;  %v20213_v1 = vpop.xlane.xlu1 %3690 }
 0x3a8   :  { %v8346_v25 = vcombine.low %v8337_v24, %v8344_v27  ;;  %v8264_v19 = vcombine.low %v5369_v3, %v5373_v34  ;;  %v8265_v13 = vcombine.low %v5377_v62, %v5381_v14  ;;  %v8266_v11 = vcombine.low %v5385_v43, %v5389_v61  ;;  %v23035_v34 = vld [vmem:[#allocation8_spill] sm:$0xff]  ;;  %v23036_v27 = vld [vmem:[#allocation26_spill] sm:$0xff] }
 0x3a9   :  { %9041 = vperm.xlu0 %16404, %v23034_v54   ;;  %v20207_v44 = vcombine.low %v8206_v17, %v8213_v32  ;;  %v8267_v41 = vcombine.low %v5393_v28, %v5397_v4  ;;  %v5465_v53 = vrot.slane %v20061_v8, %v22934_v7  ;;  %v5469_v58 = vrot.slane %v20061_v8, %v22935_v59  ;;  %v20235_v28 = vpop.xlane.xlu0 %9664 }
 0x3aa   :  { %v8353_v16 = vrot.slane %v8345_v55, %v18508_v15  ;;  %v8274_v9 = vrot.slane %v8264_v19, %v18508_v15  ;;  %v8281_v10 = vrot.slane %v8265_v13, %v18508_v15  ;;  %v8288_v31 = vrot.slane %v8266_v11, %v18508_v15  ;;  %23037 = vst [vmem:[#allocation33_spill] sm:$0xff] %v20235_v28 }
 0x3ab   :  { %v8295_v17 = vrot.slane %v8267_v41, %v18508_v15  ;;  %v5473_v48 = vrot.slane %v20061_v8, %v22936_v40  ;;  %v5477_v38 = vrot.slane %v20061_v8, %v22937_v23  ;;  %v5481_v3 = vrot.slane %v20061_v8, %v22938_v21  ;;  %9050 = vperm.xlu1 %16405, %v23035_v34   ;;  %v20245_v41 = vpop.xlane.xlu1 %9666 }
 0x3ac   :  { %v8360_v32 = vrot.slane %v8346_v25, %v18508_v15  ;;  %v8296_v20 = vcombine.low %v8274_v9, %v8281_v10  ;;  %v5485_v24 = vrot.slane %v20061_v8, %v22939_v50  ;;  %v5489_v62 = vrot.slane %v20061_v8, %v22940_v35  ;;  %23038 = vst [vmem:[#allocation36_spill] sm:$0xff] %v20245_v41 }
 0x3ad   :  { %9047 = vperm.xlu0 %16404, %v23036_v27   ;;  %v8297_v14 = vcombine.low %v8288_v31, %v8295_v17  ;;  %v5493_v43 = vrot.slane %v20061_v8, %v22941_v0  ;;  %v8411_v61 = vcombine.low %v5465_v53, %v5469_v58  ;;  %v8412_v55 = vcombine.low %v5473_v48, %v5477_v38  ;;  %v23039_v53 = vld [vmem:[#allocation27_spill] sm:$0xff]  ;;  %v23040_v17 = vld [vmem:[#allocation64_spill] sm:$0xff] }
 0x3ae   :  { %v8304_v4 = vrot.slane %v8296_v20, %v18508_v15  ;;  %v8413_v30 = vcombine.low %v5481_v3, %v5485_v24  ;;  %v5433_v25 = vrot.slane %v20005_v36, %v22934_v7  ;;  %v5437_v19 = vrot.slane %v20005_v36, %v22935_v59 }
 0x3af   :  { %v8311_v13 = vrot.slane %v8297_v14, %v18508_v15  ;;  %v8414_v11 = vcombine.low %v5489_v62, %v5493_v43  ;;  %v8421_v54 = vrot.slane %v8411_v61, %v18508_v15  ;;  %v8428_v8 = vrot.slane %v8412_v55, %v18508_v15  ;;  %9056 = vperm.xlu1 %16405, %v23039_v53  }
 0x3b0   :  { %v8435_v58 = vrot.slane %v8413_v30, %v18508_v15  ;;  %v5441_v9 = vrot.slane %v20005_v36, %v22936_v40  ;;  %v5445_v10 = vrot.slane %v20005_v36, %v22937_v23  ;;  %v5449_v31 = vrot.slane %v20005_v36, %v22938_v21 }
 0x3b1   :  { %9053 = vperm.xlu0 %16404, %v23040_v17   ;;  %v20256_v48 = vcombine.low %v8353_v16, %v8360_v32  ;;  %v8442_v38 = vrot.slane %v8414_v11, %v18508_v15  ;;  %v8443_v3 = vcombine.low %v8421_v54, %v8428_v8  ;;  %v5453_v34 = vrot.slane %v20005_v36, %v22939_v50  ;;  %v20269_v32 = vpop.xlane.xlu0 %3692  ;;  %v20283_v54 = vpop.xlane.xlu1 %3694 }
 0x3b2   :  { %v5457_v20 = vrot.slane %v20005_v36, %v22940_v35  ;;  %v5461_v24 = vrot.slane %v20005_v36, %v22941_v0  ;;  %v8362_v62 = vcombine.low %v5433_v25, %v5437_v19  ;;  %v8363_v27 = vcombine.low %v5441_v9, %v5445_v10  ;;  %v23041_v25 = vld [vmem:[#allocation29_spill] sm:$0xff] }
 0x3b3   :  { %v20265_v14 = vcombine.low %v8304_v4, %v8311_v13  ;;  %v8444_v43 = vcombine.low %v8435_v58, %v8442_v38  ;;  %v8364_v61 = vcombine.low %v5449_v31, %v5453_v34  ;;  %v5529_v16 = vrot.slane %v20132_v60, %v22934_v7  ;;  %9062 = vperm.xlu1 %16405, %v19840_v46  }
 0x3b4   :  { %v8365_v55 = vcombine.low %v5457_v20, %v5461_v24  ;;  %v8372_v30 = vrot.slane %v8362_v62, %v18508_v15  ;;  %v8379_v11 = vrot.slane %v8363_v27, %v18508_v15  ;;  %v5533_v36 = vrot.slane %v20132_v60, %v22935_v59  ;;  %v23043_v27 = vld [vmem:[#allocation34_spill] sm:$0xff] }
 0x3b5   :  { %9059 = vperm.xlu0 %16404, %v23041_v25   ;;  %v8451_v4 = vrot.slane %v8443_v3, %v18508_v15  ;;  %v8386_v19 = vrot.slane %v8364_v61, %v18508_v15  ;;  %v5537_v13 = vrot.slane %v20132_v60, %v22936_v40  ;;  %v5541_v46 = vrot.slane %v20132_v60, %v22937_v23  ;;  %v23042_v3 = vld [vmem:[#allocation32_spill] sm:$0xff] }
 0x3b6   :  { %v8393_v8 = vrot.slane %v8365_v55, %v18508_v15  ;;  %v8394_v53 = vcombine.low %v8372_v30, %v8379_v11  ;;  %v5545_v58 = vrot.slane %v20132_v60, %v22938_v21  ;;  %v5549_v9 = vrot.slane %v20132_v60, %v22939_v50 }
 0x3b7   :  { %v8458_v10 = vrot.slane %v8444_v43, %v18508_v15  ;;  %v5553_v31 = vrot.slane %v20132_v60, %v22940_v35  ;;  %v5557_v17 = vrot.slane %v20132_v60, %v22941_v0  ;;  %v8509_v38 = vcombine.low %v5529_v16, %v5533_v36  ;;  %9068 = vperm.xlu1 %16405, %v23042_v3   ;;  %v20303_v60 = vpop.xlane.xlu0 %9668 }
 0x3b8   :  { %v8395_v34 = vcombine.low %v8386_v19, %v8393_v8  ;;  %v8402_v20 = vrot.slane %v8394_v53, %v18508_v15  ;;  %v8510_v24 = vcombine.low %v5537_v13, %v5541_v46  ;;  %v8511_v62 = vcombine.low %v5545_v58, %v5549_v9  ;;  %23044 = vst [vmem:[#allocation35_spill] sm:$0xff] %v20303_v60  ;;  %v20317_v53 = vpop.xlane.xlu1 %9670 }
 0x3b9   :  { %9065 = vperm.xlu0 %16404, %v23043_v27   ;;  %v8512_v61 = vcombine.low %v5553_v31, %v5557_v17  ;;  %v8519_v55 = vrot.slane %v8509_v38, %v18508_v15  ;;  %v5497_v43 = vrot.slane %v20077_v2, %v22934_v7  ;;  %v5501_v30 = vrot.slane %v20077_v2, %v22935_v59 }
 0x3ba   :  { %v8409_v16 = vrot.slane %v8395_v34, %v18508_v15  ;;  %v8526_v11 = vrot.slane %v8510_v24, %v18508_v15  ;;  %v8533_v36 = vrot.slane %v8511_v62, %v18508_v15  ;;  %v5505_v25 = vrot.slane %v20077_v2, %v22936_v40  ;;  %23045 = vst [vmem:[#allocation38_spill] sm:$0xff] %v20317_v53 }
 0x3bb   :  { %v8540_v19 = vrot.slane %v8512_v61, %v18508_v15  ;;  %v5509_v13 = vrot.slane %v20077_v2, %v22937_v23  ;;  %v5513_v46 = vrot.slane %v20077_v2, %v22938_v21  ;;  %v5517_v8 = vrot.slane %v20077_v2, %v22939_v50  ;;  %9074 = vperm.xlu1 %16405, %v19957_v42  }
 0x3bc   :  { %v20320_v58 = vcombine.low %v8451_v4, %v8458_v10  ;;  %v8541_v9 = vcombine.low %v8519_v55, %v8526_v11  ;;  %v5521_v31 = vrot.slane %v20077_v2, %v22940_v35  ;;  %v5525_v17 = vrot.slane %v20077_v2, %v22941_v0  ;;  %v20337_v55 = vpop.xlane.xlu0 %3696 }
 0x3bd   :  { %9071 = vperm.xlu0 %16404, %v19965_v47   ;;  %v8542_v38 = vcombine.low %v8533_v36, %v8540_v19  ;;  %v8460_v3 = vcombine.low %v5497_v43, %v5501_v30  ;;  %v8461_v34 = vcombine.low %v5505_v25, %v5509_v13  ;;  %v8462_v24 = vcombine.low %v5513_v46, %v5517_v8  ;;  %v20353_v19 = vpop.xlane.xlu1 %3698 }
 0x3be   :  { %v20327_v62 = vcombine.low %v8402_v20, %v8409_v16  ;;  %v8463_v27 = vcombine.low %v5521_v31, %v5525_v17  ;;  %v5593_v42 = vrot.slane %v20203_v29, %v22934_v7  ;;  %v5597_v4 = vrot.slane %v20203_v29, %v22935_v59 }
 0x3bf   :  { %v8549_v10 = vrot.slane %v8541_v9, %v18508_v15  ;;  %v8470_v61 = vrot.slane %v8460_v3, %v18508_v15  ;;  %v8477_v2 = vrot.slane %v8461_v34, %v18508_v15  ;;  %v8484_v47 = vrot.slane %v8462_v24, %v18508_v15  ;;  %9080 = vperm.xlu1 %16405, %v20014_v26  }
 0x3c0   :  { %v8491_v20 = vrot.slane %v8463_v27, %v18508_v15  ;;  %v5601_v43 = vrot.slane %v20203_v29, %v22936_v40  ;;  %v5605_v30 = vrot.slane %v20203_v29, %v22937_v23  ;;  %v5609_v16 = vrot.slane %v20203_v29, %v22938_v21 }
 0x3c1   :  { %9077 = vperm.xlu0 %16404, %v20025_v45   ;;  %v8556_v11 = vrot.slane %v8542_v38, %v18508_v15  ;;  %v8492_v36 = vcombine.low %v8470_v61, %v8477_v2  ;;  %v5613_v25 = vrot.slane %v20203_v29, %v22939_v50  ;;  %v5617_v26 = vrot.slane %v20203_v29, %v22940_v35  ;;  %v20374_v61 = vpop.xlane.xlu0 %9672 }
 0x3c2   :  { %v8493_v13 = vcombine.low %v8484_v47, %v8491_v20  ;;  %v5621_v46 = vrot.slane %v20203_v29, %v22941_v0  ;;  %v8607_v8 = vcombine.low %v5593_v42, %v5597_v4  ;;  %v8608_v9 = vcombine.low %v5601_v43, %v5605_v30  ;;  %23046 = vst [vmem:[#allocation37_spill] sm:$0xff] %v20374_v61 }
 0x3c3   :  { %v8500_v31 = vrot.slane %v8492_v36, %v18508_v15  ;;  %v8609_v45 = vcombine.low %v5609_v16, %v5613_v25  ;;  %v5561_v17 = vrot.slane %v20145_v57, %v22934_v7  ;;  %v5565_v38 = vrot.slane %v20145_v57, %v22935_v59  ;;  %9086 = vperm.xlu1 %16405, %v20079_v22   ;;  %v20385_v25 = vpop.xlane.xlu1 %9674 }
 0x3c4   :  { %v8507_v3 = vrot.slane %v8493_v13, %v18508_v15  ;;  %v8610_v34 = vcombine.low %v5617_v26, %v5621_v46  ;;  %v8617_v24 = vrot.slane %v8607_v8, %v18508_v15  ;;  %v8624_v29 = vrot.slane %v8608_v9, %v18508_v15  ;;  %23047 = vst [vmem:[#allocation40_spill] sm:$0xff] %v20385_v25 }
 0x3c5   :  { %9083 = vperm.xlu0 %16404, %v20086_v49   ;;  %v8631_v27 = vrot.slane %v8609_v45, %v18508_v15  ;;  %v5569_v42 = vrot.slane %v20145_v57, %v22936_v40  ;;  %v5573_v4 = vrot.slane %v20145_v57, %v22937_v23  ;;  %v5577_v22 = vrot.slane %v20145_v57, %v22938_v21 }
 0x3c6   :  { %v20376_v2 = vcombine.low %v8549_v10, %v8556_v11  ;;  %v8638_v47 = vrot.slane %v8610_v34, %v18508_v15  ;;  %v8639_v20 = vcombine.low %v8617_v24, %v8624_v29  ;;  %v5581_v49 = vrot.slane %v20145_v57, %v22939_v50  ;;  %v20408_v24 = vpop.xlane.xlu0 %3700 }
 0x3c7   :  { %v5585_v43 = vrot.slane %v20145_v57, %v22940_v35  ;;  %v5589_v30 = vrot.slane %v20145_v57, %v22941_v0  ;;  %v8558_v16 = vcombine.low %v5561_v17, %v5565_v38  ;;  %v8559_v36 = vcombine.low %v5569_v42, %v5573_v4  ;;  %9092 = vperm.xlu1 %16405, %v20135_v18   ;;  %v20410_v29 = vpop.xlane.xlu1 %9678 }
 0x3c8   :  { %v20388_v10 = vcombine.low %v8500_v31, %v8507_v3  ;;  %v8640_v11 = vcombine.low %v8631_v27, %v8638_v47  ;;  %v8560_v26 = vcombine.low %v5577_v22, %v5581_v49  ;;  %v5657_v13 = vrot.slane %v20269_v32, %v22934_v7  ;;  %23048 = vst [vmem:[#allocation39_spill] sm:$0xff] %v20410_v29 }
 0x3c9   :  { %9089 = vperm.xlu0 %16404, %v20147_v33   ;;  %v8561_v46 = vcombine.low %v5585_v43, %v5589_v30  ;;  %v8568_v8 = vrot.slane %v8558_v16, %v18508_v15  ;;  %v8575_v57 = vrot.slane %v8559_v36, %v18508_v15  ;;  %v5661_v9 = vrot.slane %v20269_v32, %v22935_v59 }
 0x3ca   :  { %v8647_v45 = vrot.slane %v8639_v20, %v18508_v15  ;;  %v8582_v18 = vrot.slane %v8560_v26, %v18508_v15  ;;  %v5665_v31 = vrot.slane %v20269_v32, %v22936_v40  ;;  %v5669_v17 = vrot.slane %v20269_v32, %v22937_v23 }
 0x3cb   :  { %v8589_v33 = vrot.slane %v8561_v46, %v18508_v15  ;;  %v8590_v38 = vcombine.low %v8568_v8, %v8575_v57  ;;  %v5673_v3 = vrot.slane %v20269_v32, %v22938_v21  ;;  %v5677_v34 = vrot.slane %v20269_v32, %v22939_v50  ;;  %9098 = vperm.xlu1 %16405, %v20197_v52  }
 0x3cc   :  { %v8654_v27 = vrot.slane %v8640_v11, %v18508_v15  ;;  %v5681_v42 = vrot.slane %v20269_v32, %v22940_v35  ;;  %v5685_v4 = vrot.slane %v20269_v32, %v22941_v0  ;;  %v8705_v22 = vcombine.low %v5657_v13, %v5661_v9  ;;  %v20430_v13 = vpop.xlane.xlu1 %9682 }
 0x3cd   :  { %9095 = vperm.xlu0 %16404, %v20207_v44   ;;  %v8591_v47 = vcombine.low %v8582_v18, %v8589_v33  ;;  %v8598_v20 = vrot.slane %v8590_v38, %v18508_v15  ;;  %v8706_v49 = vcombine.low %v5665_v31, %v5669_v17  ;;  %v8707_v43 = vcombine.low %v5673_v3, %v5677_v34  ;;  %v20445_v33 = vpop.xlane.xlu0 %9676 }
 0x3ce   :  { %v8708_v30 = vcombine.low %v5681_v42, %v5685_v4  ;;  %v8715_v16 = vrot.slane %v8705_v22, %v18508_v15  ;;  %v5625_v52 = vrot.slane %v20213_v1, %v22934_v7  ;;  %v5629_v36 = vrot.slane %v20213_v1, %v22935_v59  ;;  %23049 = vst [vmem:[#allocation42_spill] sm:$0xff] %v20430_v13 }
 0x3cf   :  { %v8605_v11 = vrot.slane %v8591_v47, %v18508_v15  ;;  %v8722_v32 = vrot.slane %v8706_v49, %v18508_v15  ;;  %v8729_v44 = vrot.slane %v8707_v43, %v18508_v15  ;;  %v5633_v26 = vrot.slane %v20213_v1, %v22936_v40  ;;  %9104 = vperm.xlu1 %16405, %v20256_v48  }
 0x3d0   :  { %v8736_v46 = vrot.slane %v8708_v30, %v18508_v15  ;;  %v5637_v8 = vrot.slane %v20213_v1, %v22937_v23  ;;  %v5641_v57 = vrot.slane %v20213_v1, %v22938_v21  ;;  %v5645_v9 = vrot.slane %v20213_v1, %v22939_v50  ;;  %23050 = vst [vmem:[#allocation41_spill] sm:$0xff] %v20445_v33 }
 0x3d1   :  { %9101 = vperm.xlu0 %16404, %v20265_v14   ;;  %v8655_v18 = vcombine.low %v8647_v45, %v8654_v27  ;;  %v8737_v31 = vcombine.low %v8715_v16, %v8722_v32  ;;  %v5649_v17 = vrot.slane %v20213_v1, %v22940_v35  ;;  %v5653_v48 = vrot.slane %v20213_v1, %v22941_v0  ;;  %v20451_v45 = vpop.xlane.xlu1 %9686 }
 0x3d2   :  { %v8738_v38 = vcombine.low %v8729_v44, %v8736_v46  ;;  %v8656_v3 = vcombine.low %v5625_v52, %v5629_v36  ;;  %v8657_v34 = vcombine.low %v5633_v26, %v5637_v8  ;;  %v8658_v42 = vcombine.low %v5641_v57, %v5645_v9  ;;  %23051 = vst [vmem:[#allocation44_spill] sm:$0xff] %v20451_v45  ;;  %v20473_v8 = vpop.xlane.xlu0 %9680 }
 0x3d3   :  { %v8606_v4 = vcombine.low %v8598_v20, %v8605_v11  ;;  %v8659_v22 = vcombine.low %v5649_v17, %v5653_v48  ;;  %v5721_v47 = vrot.slane %v20337_v55, %v22934_v7  ;;  %v5725_v14 = vrot.slane %v20337_v55, %v22935_v59  ;;  %9110 = vperm.xlu1 %16405, %v20320_v58  }
 0x3d4   :  { %v8745_v1 = vrot.slane %v8737_v31, %v18508_v15  ;;  %v8666_v27 = vrot.slane %v8656_v3, %v18508_v15  ;;  %v8673_v49 = vrot.slane %v8657_v34, %v18508_v15  ;;  %v8680_v43 = vrot.slane %v8658_v42, %v18508_v15  ;;  %23052 = vst [vmem:[#allocation43_spill] sm:$0xff] %v20473_v8 }
 0x3d5   :  { %9107 = vperm.xlu0 %16404, %v20327_v62   ;;  %v8687_v20 = vrot.slane %v8659_v22, %v18508_v15  ;;  %v5729_v30 = vrot.slane %v20337_v55, %v22936_v40  ;;  %v5733_v16 = vrot.slane %v20337_v55, %v22937_v23  ;;  %v5737_v58 = vrot.slane %v20337_v55, %v22938_v21  ;;  %v20475_v57 = vpop.xlane.xlu1 %9690 }
 0x3d6   :  { %v8752_v52 = vrot.slane %v8738_v38, %v18508_v15  ;;  %v8688_v36 = vcombine.low %v8666_v27, %v8673_v49  ;;  %v5741_v11 = vrot.slane %v20337_v55, %v22939_v50  ;;  %v5745_v62 = vrot.slane %v20337_v55, %v22940_v35  ;;  %23053 = vst [vmem:[#allocation46_spill] sm:$0xff] %v20475_v57 }
 0x3d7   :  { %v8689_v32 = vcombine.low %v8680_v43, %v8687_v20  ;;  %v5749_v44 = vrot.slane %v20337_v55, %v22941_v0  ;;  %v8803_v26 = vcombine.low %v5721_v47, %v5725_v14  ;;  %v8804_v46 = vcombine.low %v5729_v30, %v5733_v16  ;;  %9116 = vperm.xlu1 %16405, %v20376_v2   ;;  %v20497_v43 = vpop.xlane.xlu0 %9684 }
 0x3d8   :  { %v8696_v9 = vrot.slane %v8688_v36, %v18508_v15  ;;  %v8805_v31 = vcombine.low %v5737_v58, %v5741_v11  ;;  %v5689_v17 = vrot.slane %v20283_v54, %v22934_v7  ;;  %v5693_v48 = vrot.slane %v20283_v54, %v22935_v59  ;;  %23054 = vst [vmem:[#allocation45_spill] sm:$0xff] %v20497_v43 }
 0x3d9   :  { %9113 = vperm.xlu0 %16404, %v20388_v10   ;;  %v8703_v55 = vrot.slane %v8689_v32, %v18508_v15  ;;  %v8806_v38 = vcombine.low %v5745_v62, %v5749_v44  ;;  %v8813_v3 = vrot.slane %v8803_v26, %v18508_v15  ;;  %v8820_v34 = vrot.slane %v8804_v46, %v18508_v15  ;;  %v20499_v20 = vpop.xlane.xlu1 %9694 }
 0x3da   :  { %v8827_v2 = vrot.slane %v8805_v31, %v18508_v15  ;;  %v5697_v42 = vrot.slane %v20283_v54, %v22936_v40  ;;  %v5701_v22 = vrot.slane %v20283_v54, %v22937_v23  ;;  %v5705_v47 = vrot.slane %v20283_v54, %v22938_v21  ;;  %23055 = vst [vmem:[#allocation65_spill] sm:$0xff] %v20499_v20 }
 0x3db   :  { %v8753_v14 = vcombine.low %v8745_v1, %v8752_v52  ;;  %v8834_v10 = vrot.slane %v8806_v38, %v18508_v15  ;;  %v8835_v27 = vcombine.low %v8813_v3, %v8820_v34  ;;  %v5709_v49 = vrot.slane %v20283_v54, %v22939_v50  ;;  %9122 = vperm.xlu1 %16405, %v8655_v18   ;;  %v20516_v31 = vpop.xlane.xlu0 %9688 }
 0x3dc   :  { %v5713_v30 = vrot.slane %v20283_v54, %v22940_v35  ;;  %v5717_v16 = vrot.slane %v20283_v54, %v22941_v0  ;;  %v8754_v58 = vcombine.low %v5689_v17, %v5693_v48  ;;  %v8755_v36 = vcombine.low %v5697_v42, %v5701_v22  ;;  %23056 = vst [vmem:[#allocation66_spill] sm:$0xff] %v20516_v31 }
 0x3dd   :  { %9119 = vperm.xlu0 %16404, %v8606_v4   ;;  %v8704_v1 = vcombine.low %v8696_v9, %v8703_v55  ;;  %v8836_v52 = vcombine.low %v8827_v2, %v8834_v10  ;;  %v8843_v11 = vrot.slane %v8835_v27, %v18508_v15  ;;  %v8756_v62 = vcombine.low %v5705_v47, %v5709_v49  ;;  %v20518_v17 = vpop.xlane.xlu1 %9698 }
 0x3de   :  { %v8757_v32 = vcombine.low %v5713_v30, %v5717_v16  ;;  %v8764_v44 = vrot.slane %v8754_v58, %v18508_v15  ;;  %v8771_v26 = vrot.slane %v8755_v36, %v18508_v15  ;;  %v5785_v18 = vrot.slane %v20408_v24, %v22934_v7  ;;  %23057 = vst [vmem:[#allocation67_spill] sm:$0xff] %v20518_v17 }
 0x3df   :  { %v8850_v46 = vrot.slane %v8836_v52, %v18508_v15  ;;  %v8778_v54 = vrot.slane %v8756_v62, %v18508_v15  ;;  %v5789_v4 = vrot.slane %v20408_v24, %v22935_v59  ;;  %v5793_v9 = vrot.slane %v20408_v24, %v22936_v40  ;;  %9128 = vperm.xlu1 %16405, %v8753_v14   ;;  %v20536_v36 = vpop.xlane.xlu0 %9692 }
 0x3e0   :  { %v8785_v48 = vrot.slane %v8757_v32, %v18508_v15  ;;  %v8786_v55 = vcombine.low %v8764_v44, %v8771_v26  ;;  %v5797_v38 = vrot.slane %v20408_v24, %v22937_v23  ;;  %v5801_v3 = vrot.slane %v20408_v24, %v22938_v21  ;;  %23058 = vst [vmem:[#allocation4_spill] sm:$0xff] %v20536_v36 }
 0x3e1   :  { %9125 = vperm.xlu0 %16404, %v8704_v1   ;;  %v8851_v34 = vcombine.low %v8843_v11, %v8850_v46  ;;  %v5805_v2 = vrot.slane %v20408_v24, %v22939_v50  ;;  %v5809_v42 = vrot.slane %v20408_v24, %v22940_v35  ;;  %v5813_v22 = vrot.slane %v20408_v24, %v22941_v0  ;;  %v20538_v1 = vpop.xlane.xlu1 %9702 }
 0x3e2   :  { %v8787_v47 = vcombine.low %v8778_v54, %v8785_v48  ;;  %v8794_v14 = vrot.slane %v8786_v55, %v18508_v15  ;;  %v8901_v10 = vcombine.low %v5785_v18, %v5789_v4  ;;  %v8902_v27 = vcombine.low %v5793_v9, %v5797_v38  ;;  %23059 = vst [vmem:[#allocation3_spill] sm:$0xff] %v20538_v1 }
 0x3e3   :  { %v8903_v49 = vcombine.low %v5801_v3, %v5805_v2  ;;  %v8904_v30 = vcombine.low %v5809_v42, %v5813_v22  ;;  %v5753_v16 = vrot.slane %v20353_v19, %v22934_v7  ;;  %v5757_v58 = vrot.slane %v20353_v19, %v22935_v59  ;;  %9134 = vperm.xlu1 %16405, %v8851_v34   ;;  %v20557_v34 = vpop.xlane.xlu0 %9696 }
 0x3e4   :  { %v8801_v24 = vrot.slane %v8787_v47, %v18508_v15  ;;  %v8911_v52 = vrot.slane %v8901_v10, %v18508_v15  ;;  %v8918_v11 = vrot.slane %v8902_v27, %v18508_v15  ;;  %v5761_v62 = vrot.slane %v20353_v19, %v22936_v40  ;;  %23060 = vst [vmem:[#allocation51_spill] sm:$0xff] %v20557_v34  ;;  %v23062_v47 = vld [vmem:[#allocation16_spill] sm:$0xff]  ;;  %v23064_v10 = vld [vmem:[#allocation13_spill] sm:$0xff] }
 0x3e5   :  { %v8925_v32 = vrot.slane %v8903_v49, %v18508_v15  ;;  %v8932_v44 = vrot.slane %v8904_v30, %v18508_v15  ;;  %v5765_v26 = vrot.slane %v20353_v19, %v22937_v23  ;;  %v5769_v18 = vrot.slane %v20353_v19, %v22938_v21  ;;  %v20559_v2 = vpop.xlane.xlu1 %9706 }
 0x3e6   :  { %v8802_v46 = vcombine.low %v8794_v14, %v8801_v24  ;;  %v8933_v54 = vcombine.low %v8911_v52, %v8918_v11  ;;  %v5773_v4 = vrot.slane %v20353_v19, %v22939_v50  ;;  %v5777_v9 = vrot.slane %v20353_v19, %v22940_v35  ;;  %23061 = vst [vmem:[#allocation53_spill] sm:$0xff] %v20559_v2  ;;  %v23066_v52 = vld [vmem:[#allocation63_spill] sm:$0xff] }
 0x3e7   :  { %v8934_v48 = vcombine.low %v8925_v32, %v8932_v44  ;;  %v5781_v55 = vrot.slane %v20353_v19, %v22941_v0  ;;  %v8852_v38 = vcombine.low %v5753_v16, %v5757_v58  ;;  %v8853_v3 = vcombine.low %v5761_v62, %v5765_v26  ;;  %v23067_v26 = vld [vmem:[#allocation14_spill] sm:$0xff] }
 0x3e8   :  { %9131 = vperm.xlu0 %16404, %v8802_v46   ;;  %v8941_v42 = vrot.slane %v8933_v54, %v18508_v15  ;;  %v8854_v22 = vcombine.low %v5769_v18, %v5773_v4  ;;  %v23063_v14 = vrot.slane %v23062_v47, %v18508_v15  ;;  %v23065_v27 = vrot.slane %v23064_v10, %v18508_v15  ;;  %v20578_v46 = vpop.xlane.xlu0 %9700 }
 0x3e9   :  { %v8948_v30 = vrot.slane %v8934_v48, %v18508_v15  ;;  %v8855_v19 = vcombine.low %v5777_v9, %v5781_v55  ;;  %v8862_v16 = vrot.slane %v8852_v38, %v18508_v15  ;;  %v8869_v58 = vrot.slane %v8853_v3, %v18508_v15  ;;  %23068 = vst [vmem:[#allocation7_spill] sm:$0xff] %v20578_v46  ;;  %v23069_v55 = vld [vmem:[#allocation52_spill] sm:$0xff]  ;;  %v23070_v38 = vld [vmem:[#allocation2_spill] sm:$0xff] }
 0x3ea   :  { %v11855_v49 = vcombine.low %v23065_v27, %v23063_v14  ;;  %v8876_v24 = vrot.slane %v8854_v22, %v18508_v15  ;;  %v11862_v11 = vrot.slane %v23066_v52, %v18508_v15  ;;  %v9809_v18 = vrot.slane %v23067_v26, %v22934_v7  ;;  %v20593_v14 = vpop.permute.xlu1 %8951 }
 0x3eb   :  { %v8949_v62 = vcombine.low %v8941_v42, %v8948_v30  ;;  %v8883_v32 = vrot.slane %v8855_v19, %v18508_v15  ;;  %v8884_v54 = vcombine.low %v8862_v16, %v8869_v58  ;;  %v9813_v4 = vrot.slane %v23067_v26, %v22935_v59 }
 0x3ec   :  { %v11869_v44 = vrot.slane %v11855_v49, %v18508_v15  ;;  %v9817_v9 = vrot.slane %v23067_v26, %v22936_v40  ;;  %v9821_v48 = vrot.slane %v23067_v26, %v22937_v23  ;;  %v20588_v3 = vsub.s32 %v23070_v38, %v23069_v55  ;;  %v20603_v52 = vpop.xlane.xlu0 %9704 }
 0x3ed   :  { %9140 = vperm.xlu1 %16405, %v8949_v62   ;;  %v8885_v42 = vcombine.low %v8876_v24, %v8883_v32  ;;  %v9153_v22 = vadd.s32 4294967280, %v23070_v38  ;;  %v9825_v47 = vrot.slane %v23067_v26, %v22938_v21  ;;  %v8892_v10 = vrot.slane %v8884_v54, %v18508_v15  ;;  %23072 = vst [vmem:[#allocation6_spill] sm:$0xff] %v20603_v52  ;;  %v23073_v54 = vld [vmem:[#allocation15_spill] sm:$0xff] }
 0x3ee   :  { %23071 = vst [vmem:[#allocation62_spill] sm:$0xff] %v20588_v3  ;;  %v9829_v27 = vrot.slane %v23067_v26, %v22939_v50  ;;  %v9833_v49 = vrot.slane %v23067_v26, %v22940_v35  ;;  %v9837_v30 = vrot.slane %v23067_v26, %v22941_v0  ;;  %v11870_v16 = vcombine.low %v11862_v11, %v11869_v44 }
 0x3ef   :  { %v8899_v19 = vrot.slane %v8885_v42, %v18508_v15  ;;  %v11871_v58 = vcombine.low %v9809_v18, %v9813_v4  ;;  %v11872_v24 = vcombine.low %v9817_v9, %v9821_v48  ;;  %v9841_v2 = vrot.slane %v23073_v54, %v22934_v7 }
 0x3f0   :  { %v11873_v62 = vcombine.low %v9825_v47, %v9829_v27  ;;  %v11874_v32 = vcombine.low %v9833_v49, %v9837_v30  ;;  %v9845_v33 = vrot.slane %v23073_v54, %v22935_v59  ;;  %v20610_v1 = vsub.s32 %v9153_v22, %v23069_v55  ;;  %v20627_v27 = vpop.permute.xlu1 %8957 }
 0x3f1   :  { %v8900_v25 = vcombine.low %v8892_v10, %v8899_v19  ;;  %14959 = vperm.xlu1 %16405, %v11870_v16   ;;  %v11881_v26 = vrot.slane %v11871_v58, %v18508_v15  ;;  %v11888_v11 = vrot.slane %v11872_v24, %v18508_v15  ;;  %v9849_v4 = vrot.slane %v23073_v54, %v22936_v40  ;;  %v20625_v10 = vpop.xlane.xlu0 %9708 }
 0x3f2   :  { %v11895_v44 = vrot.slane %v11873_v62, %v18508_v15  ;;  %v11902_v18 = vrot.slane %v11874_v32, %v18508_v15  ;;  %v9853_v9 = vrot.slane %v23073_v54, %v22937_v23  ;;  %v9160_v42 = vadd.s32 4294967272, %v23070_v38  ;;  %23074 = vst [vmem:[#allocation24_spill] sm:$0xff] %v20625_v10  ;;  %v23078_v10 = vld [vmem:[#allocation17_spill] sm:$0xff] }
 0x3f3   :  { %9137 = vperm.xlu0 %16404, %v8900_v25   ;;  %v11903_v48 = vcombine.low %v11881_v26, %v11888_v11  ;;  %v9857_v22 = vrot.slane %v23073_v54, %v22938_v21  ;;  %v9861_v47 = vrot.slane %v23073_v54, %v22939_v50  ;;  %v9865_v30 = vrot.slane %v23073_v54, %v22940_v35 }
 0x3f4   :  { %v11904_v49 = vcombine.low %v11895_v44, %v11902_v18  ;;  %v9869_v25 = vrot.slane %v23073_v54, %v22941_v0  ;;  %v11920_v19 = vcombine.low %v9841_v2, %v9845_v33  ;;  %v11921_v58 = vcombine.low %v9849_v4, %v9853_v9  ;;  %v8961_v61 = vpop.permute.xlu1 %8960 }
 0x3f5   :  { %v11911_v16 = vrot.slane %v11903_v48, %v18508_v15  ;;  %v11922_v24 = vcombine.low %v9857_v22, %v9861_v47  ;;  %v9146_v62 = vadd.s32 4294967288, %v23070_v38  ;;  %v9145_v32 = vrot.slane %v20593_v14, %v20588_v3  ;;  %v8955_v48 = vpop.permute.xlu0 %8954  ;;  %v23076_v14 = vld [vmem:[#allocation18_spill] sm:$0xff] }
 0x3f6   :  { %v11918_v26 = vrot.slane %v11904_v49, %v18508_v15  ;;  %v11923_v11 = vcombine.low %v9865_v30, %v9869_v25  ;;  %v11930_v44 = vrot.slane %v11920_v19, %v18508_v15  ;;  %v9157_v18 = vrot.slane %v20627_v27, %v20610_v1 }
 0x3f7   :  { %v11937_v54 = vrot.slane %v11921_v58, %v18508_v15  ;;  %v11944_v33 = vrot.slane %v11922_v24, %v18508_v15  ;;  %v20644_v2 = vsub.s32 %v9146_v62, %v23069_v55  ;;  %v9905_v22 = vrot.slane %v23076_v14, %v22934_v7 }
 0x3f8   :  { %v11919_v4 = vcombine.low %v11911_v16, %v11918_v26  ;;  %v11951_v9 = vrot.slane %v11923_v11, %v18508_v15  ;;  %v9909_v47 = vrot.slane %v23076_v14, %v22935_v59  ;;  %v20652_v49 = vsub.s32 %v9160_v42, %v23069_v55 }
 0x3f9   :  { %23075 = vst [vmem:[#allocation8_spill] sm:$0xff] %v20644_v2  ;;  %v11952_v27 = vcombine.low %v11930_v44, %v11937_v54  ;;  %v9913_v30 = vrot.slane %v23076_v14, %v22936_v40  ;;  %v9917_v25 = vrot.slane %v23076_v14, %v22937_v23  ;;  %v9921_v16 = vrot.slane %v23076_v14, %v22938_v21 }
 0x3fa   :  { %23077 = vst [vmem:[#allocation26_spill] sm:$0xff] %v20652_v49  ;;  %14962 = vperm.xlu0 %16404, %v11919_v4   ;;  %v11953_v19 = vcombine.low %v11944_v33, %v11951_v9  ;;  %v9925_v58 = vrot.slane %v23076_v14, %v22939_v50  ;;  %v9929_v24 = vrot.slane %v23076_v14, %v22940_v35 }
 0x3fb   :  { %v11960_v42 = vrot.slane %v11952_v27, %v18508_v15  ;;  %v9150_v62 = vrot.slane %v8955_v48, %v20644_v2  ;;  %v9933_v26 = vrot.slane %v23076_v14, %v22941_v0  ;;  %v12018_v11 = vcombine.low %v9905_v22, %v9909_v47 }
 0x3fc   :  { %v11967_v44 = vrot.slane %v11953_v19, %v18508_v15  ;;  %v12019_v54 = vcombine.low %v9913_v30, %v9917_v25  ;;  %v12020_v33 = vcombine.low %v9921_v16, %v9925_v58  ;;  %v9873_v52 = vrot.slane %v23078_v10, %v22934_v7 }
 0x3fd   :  { %v12021_v4 = vcombine.low %v9929_v24, %v9933_v26  ;;  %v12028_v9 = vrot.slane %v12018_v11, %v18508_v15  ;;  %v9877_v14 = vrot.slane %v23078_v10, %v22935_v59  ;;  %v9152_v22 = vsel %vm9151_vm5, %v9150_v62, %v9145_v32 }
 0x3fe   :  { %v11968_v27 = vcombine.low %v11960_v42, %v11967_v44  ;;  %v12035_v48 = vrot.slane %v12019_v54, %v18508_v15  ;;  %v12042_v46 = vrot.slane %v12020_v33, %v18508_v15  ;;  %v9881_v30 = vrot.slane %v23078_v10, %v22936_v40 }
 0x3ff   :  { %v12049_v47 = vrot.slane %v12021_v4, %v18508_v15  ;;  %v9885_v25 = vrot.slane %v23078_v10, %v22937_v23  ;;  %v9889_v16 = vrot.slane %v23078_v10, %v22938_v21  ;;  %v9893_v58 = vrot.slane %v23078_v10, %v22939_v50 }
 0x400   :  { %14965 = vperm.xlu1 %16405, %v11968_v27   ;;  %v12050_v19 = vcombine.low %v12028_v9, %v12035_v48  ;;  %v9897_v24 = vrot.slane %v23078_v10, %v22940_v35  ;;  %v9164_v32 = vrot.slane %v8961_v61, %v20652_v49  ;;  %v9901_v62 = vrot.slane %v23078_v10, %v22941_v0 }
 0x401   :  { %v12051_v42 = vcombine.low %v12042_v46, %v12049_v47  ;;  %v11969_v26 = vcombine.low %v9873_v52, %v9877_v14  ;;  %v9159_v11 = vsel %vm9158_vm7, %v9157_v18, %v9152_v22  ;;  %v11970_v54 = vcombine.low %v9881_v30, %v9885_v25  ;;  %v23079_v14 = vld [vmem:[#allocation10_spill] sm:$0xff] }
 0x402   :  { %v12058_v44 = vrot.slane %v12050_v19, %v18508_v15  ;;  %v11971_v33 = vcombine.low %v9889_v16, %v9893_v58  ;;  %v9174_v9 = vadd.s32 4294967256, %v23070_v38  ;;  %v11972_v27 = vcombine.low %v9897_v24, %v9901_v62 }
 0x403   :  { %v12065_v4 = vrot.slane %v12051_v42, %v18508_v15  ;;  %v11979_v48 = vrot.slane %v11969_v26, %v18508_v15  ;;  %v11986_v61 = vrot.slane %v11970_v54, %v18508_v15  ;;  %v9167_v52 = vadd.s32 4294967264, %v23070_v38  ;;  %v8964_v54 = vpop.permute.xlu0 %8963 }
 0x404   :  { %v11993_v46 = vrot.slane %v11971_v33, %v18508_v15  ;;  %v12000_v18 = vrot.slane %v11972_v27, %v18508_v15  ;;  %v9969_v22 = vrot.slane %v23079_v14, %v22934_v7  ;;  %v9973_v47 = vrot.slane %v23079_v14, %v22935_v59 }
 0x405   :  { %v12066_v10 = vcombine.low %v12058_v44, %v12065_v4  ;;  %v12001_v30 = vcombine.low %v11979_v48, %v11986_v61  ;;  %v20705_v25 = vsub.s32 %v9167_v52, %v23069_v55  ;;  %v9977_v19 = vrot.slane %v23079_v14, %v22936_v40 }
 0x406   :  { %v9981_v16 = vrot.slane %v23079_v14, %v22937_v23  ;;  %v12002_v58 = vcombine.low %v11993_v46, %v12000_v18  ;;  %v9985_v24 = vrot.slane %v23079_v14, %v22938_v21  ;;  %v9989_v42 = vrot.slane %v23079_v14, %v22939_v50 }
 0x407   :  { %14971 = vperm.xlu0 %16404, %v12066_v10   ;;  %v9993_v62 = vrot.slane %v23079_v14, %v22940_v35  ;;  %v20718_v26 = vsub.s32 %v9174_v9, %v23069_v55  ;;  %v12009_v44 = vrot.slane %v12001_v30, %v18508_v15  ;;  %v9997_v33 = vrot.slane %v23079_v14, %v22941_v0  ;;  %v23080_v9 = vld [vmem:[#allocation68_spill] sm:$0xff] }
 0x408   :  { %v12116_v4 = vcombine.low %v9969_v22, %v9973_v47  ;;  %v12016_v27 = vrot.slane %v12002_v58, %v18508_v15  ;;  %v9166_v48 = vsel %vm9165_vm0, %v9164_v32, %v9159_v11  ;;  %v12117_v61 = vcombine.low %v9977_v19, %v9981_v16  ;;  %v20731_v22 = vpop.permute.xlu1 %8966 }
 0x409   :  { %v12118_v46 = vcombine.low %v9985_v24, %v9989_v42  ;;  %v12119_v52 = vcombine.low %v9993_v62, %v9997_v33  ;;  %v9937_v18 = vrot.slane %v23080_v9, %v22934_v7  ;;  %v9171_v30 = vrot.slane %v8964_v54, %v20705_v25 }
 0x40a   :  { %v12126_v10 = vrot.slane %v12116_v4, %v18508_v15  ;;  %v12017_v53 = vcombine.low %v12009_v44, %v12016_v27  ;;  %v12133_v17 = vrot.slane %v12117_v61, %v18508_v15  ;;  %v9941_v11 = vrot.slane %v23080_v9, %v22935_v59 }
 0x40b   :  { %v12140_v14 = vrot.slane %v12118_v46, %v18508_v15  ;;  %v12147_v32 = vrot.slane %v12119_v52, %v18508_v15  ;;  %v9945_v47 = vrot.slane %v23080_v9, %v22936_v40  ;;  %v9949_v19 = vrot.slane %v23080_v9, %v22937_v23 }
 0x40c   :  { %14968 = vperm.xlu1 %16405, %v12017_v53   ;;  %v12148_v16 = vcombine.low %v12126_v10, %v12133_v17  ;;  %v9188_v58 = vadd.s32 4294967240, %v23070_v38  ;;  %v9953_v24 = vrot.slane %v23080_v9, %v22938_v21  ;;  %v9957_v42 = vrot.slane %v23080_v9, %v22939_v50 }
 0x40d   :  { %v12149_v62 = vcombine.low %v12140_v14, %v12147_v32  ;;  %v9961_v44 = vrot.slane %v23080_v9, %v22940_v35  ;;  %v9965_v54 = vrot.slane %v23080_v9, %v22941_v0  ;;  %v12067_v33 = vcombine.low %v9937_v18, %v9941_v11  ;;  %v20761_v11 = vpop.permute.xlu1 %8972 }
 0x40e   :  { %v9178_v53 = vrot.slane %v20731_v22, %v20718_v26  ;;  %v12156_v17 = vrot.slane %v12148_v16, %v18508_v15  ;;  %v12068_v4 = vcombine.low %v9945_v47, %v9949_v19  ;;  %v12069_v27 = vcombine.low %v9953_v24, %v9957_v42 }
 0x40f   :  { %v9173_v61 = vsel %vm9172_vm8, %v9171_v30, %v9166_v48  ;;  %v12163_v46 = vrot.slane %v12149_v62, %v18508_v15  ;;  %v12070_v52 = vcombine.low %v9961_v44, %v9965_v54  ;;  %v12077_v10 = vrot.slane %v12067_v33, %v18508_v15  ;;  %v23081_v48 = vld [vmem:[#allocation47_spill] sm:$0xff] }
 0x410   :  { %v20756_v14 = vsub.s32 %v9188_v58, %v23069_v55  ;;  %v12084_v9 = vrot.slane %v12068_v4, %v18508_v15  ;;  %v12091_v18 = vrot.slane %v12069_v27, %v18508_v15  ;;  %v9181_v22 = vadd.s32 4294967248, %v23070_v38  ;;  %v8970_v27 = vpop.permute.xlu0 %8969 }
 0x411   :  { %v12164_v32 = vcombine.low %v12156_v17, %v12163_v46  ;;  %v12098_v47 = vrot.slane %v12070_v52, %v18508_v15  ;;  %v10033_v30 = vrot.slane %v23081_v48, %v22934_v7  ;;  %v10037_v19 = vrot.slane %v23081_v48, %v22935_v59 }
 0x412   :  { %v12099_v16 = vcombine.low %v12077_v10, %v12084_v9  ;;  %v20769_v58 = vsub.s32 %v9181_v22, %v23069_v55  ;;  %v10041_v24 = vrot.slane %v23081_v48, %v22936_v40  ;;  %v10045_v42 = vrot.slane %v23081_v48, %v22937_v23 }
 0x413   :  { %14977 = vperm.xlu0 %16404, %v12164_v32   ;;  %v12100_v62 = vcombine.low %v12091_v18, %v12098_v47  ;;  %v10049_v44 = vrot.slane %v23081_v48, %v22938_v21  ;;  %v10053_v54 = vrot.slane %v23081_v48, %v22939_v50  ;;  %v10057_v33 = vrot.slane %v23081_v48, %v22940_v35  ;;  %v23082_v47 = vld [vmem:[#allocation20_spill] sm:$0xff] }
 0x414   :  { %v12107_v4 = vrot.slane %v12099_v16, %v18508_v15  ;;  %v10061_v46 = vrot.slane %v23081_v48, %v22941_v0  ;;  %v12214_v52 = vcombine.low %v10033_v30, %v10037_v19  ;;  %v12215_v9 = vcombine.low %v10041_v24, %v10045_v42 }
 0x415   :  { %v12114_v10 = vrot.slane %v12100_v62, %v18508_v15  ;;  %v12216_v18 = vcombine.low %v10049_v44, %v10053_v54  ;;  %v10001_v60 = vrot.slane %v23082_v47, %v22934_v7  ;;  %v9185_v16 = vrot.slane %v8970_v27, %v20769_v58 }
 0x416   :  { %v12217_v22 = vcombine.low %v10057_v33, %v10061_v46  ;;  %v12224_v32 = vrot.slane %v12214_v52, %v18508_v15  ;;  %v12231_v34 = vrot.slane %v12215_v9, %v18508_v15  ;;  %v10005_v19 = vrot.slane %v23082_v47, %v22935_v59 }
 0x417   :  { %v12115_v17 = vcombine.low %v12107_v4, %v12114_v10  ;;  %v12238_v48 = vrot.slane %v12216_v18, %v18508_v15  ;;  %v10009_v24 = vrot.slane %v23082_v47, %v22936_v40  ;;  %v10013_v42 = vrot.slane %v23082_v47, %v22937_v23 }
 0x418   :  { %v12245_v30 = vrot.slane %v12217_v22, %v18508_v15  ;;  %v12246_v62 = vcombine.low %v12224_v32, %v12231_v34  ;;  %v9202_v44 = vadd.s32 4294967224, %v23070_v38  ;;  %v10017_v54 = vrot.slane %v23082_v47, %v22938_v21 }
 0x419   :  { %14974 = vperm.xlu1 %16405, %v12115_v17   ;;  %v10021_v33 = vrot.slane %v23082_v47, %v22939_v50  ;;  %v10025_v27 = vrot.slane %v23082_v47, %v22940_v35  ;;  %v10029_v46 = vrot.slane %v23082_v47, %v22941_v0  ;;  %v12165_v52 = vcombine.low %v10001_v60, %v10005_v19  ;;  %v20820_v47 = vpop.permute.xlu1 %8978 }
 0x41a   :  { %v12247_v4 = vcombine.low %v12238_v48, %v12245_v30  ;;  %v9180_v10 = vsel %vm9179_vm9, %v9178_v53, %v9173_v61  ;;  %v12254_v34 = vrot.slane %v12246_v62, %v18508_v15  ;;  %v12166_v17 = vcombine.low %v10009_v24, %v10013_v42 }
 0x41b   :  { %v12167_v9 = vcombine.low %v10017_v54, %v10021_v33  ;;  %v9187_v18 = vsel %vm9186_vm10, %v9185_v16, %v9180_v10  ;;  %v12168_v32 = vcombine.low %v10025_v27, %v10029_v46  ;;  %v12175_v48 = vrot.slane %v12165_v52, %v18508_v15  ;;  %v23083_v16 = vld [vmem:[#allocation54_spill] sm:$0xff] }
 0x41c   :  { %v12261_v22 = vrot.slane %v12247_v4, %v18508_v15  ;;  %v20815_v30 = vsub.s32 %v9202_v44, %v23069_v55  ;;  %v12182_v41 = vrot.slane %v12166_v17, %v18508_v15  ;;  %v9195_v53 = vadd.s32 4294967232, %v23070_v38 }
 0x41d   :  { %v12189_v60 = vrot.slane %v12167_v9, %v18508_v15  ;;  %v12196_v19 = vrot.slane %v12168_v32, %v18508_v15  ;;  %v10097_v24 = vrot.slane %v23083_v16, %v22934_v7  ;;  %v10101_v42 = vrot.slane %v23083_v16, %v22935_v59 }
 0x41e   :  { %v12262_v61 = vcombine.low %v12254_v34, %v12261_v22  ;;  %v12197_v62 = vcombine.low %v12175_v48, %v12182_v41  ;;  %v20828_v44 = vsub.s32 %v9195_v53, %v23069_v55  ;;  %v10105_v54 = vrot.slane %v23083_v16, %v22936_v40  ;;  %v8976_v34 = vpop.permute.xlu0 %8975 }
 0x41f   :  { %v10109_v33 = vrot.slane %v23083_v16, %v22937_v23  ;;  %v12198_v4 = vcombine.low %v12189_v60, %v12196_v19  ;;  %v10113_v27 = vrot.slane %v23083_v16, %v22938_v21  ;;  %v10117_v46 = vrot.slane %v23083_v16, %v22939_v50 }
 0x420   :  { %14983 = vperm.xlu0 %16404, %v12262_v61   ;;  %v10121_v41 = vrot.slane %v23083_v16, %v22940_v35  ;;  %v12205_v10 = vrot.slane %v12197_v62, %v18508_v15  ;;  %v10125_v17 = vrot.slane %v23083_v16, %v22941_v0  ;;  %v12312_v9 = vcombine.low %v10097_v24, %v10101_v42  ;;  %v23084_v61 = vld [vmem:[#allocation55_spill] sm:$0xff] }
 0x421   :  { %v12212_v22 = vrot.slane %v12198_v4, %v18508_v15  ;;  %v12313_v32 = vcombine.low %v10105_v54, %v10109_v33  ;;  %v12314_v48 = vcombine.low %v10113_v27, %v10117_v46  ;;  %v10065_v19 = vrot.slane %v23084_v61, %v22934_v7 }
 0x422   :  { %v12315_v60 = vcombine.low %v10121_v41, %v10125_v17  ;;  %v12322_v53 = vrot.slane %v12312_v9, %v18508_v15  ;;  %v9199_v62 = vrot.slane %v8976_v34, %v20828_v44  ;;  %v10069_v42 = vrot.slane %v23084_v61, %v22935_v59 }
 0x423   :  { %v12213_v52 = vcombine.low %v12205_v10, %v12212_v22  ;;  %v12329_v36 = vrot.slane %v12313_v32, %v18508_v15  ;;  %v12336_v16 = vrot.slane %v12314_v48, %v18508_v15  ;;  %v10073_v54 = vrot.slane %v23084_v61, %v22936_v40 }
 0x424   :  { %v12343_v24 = vrot.slane %v12315_v60, %v18508_v15  ;;  %v10077_v33 = vrot.slane %v23084_v61, %v22937_v23  ;;  %v9216_v27 = vadd.s32 4294967208, %v23070_v38  ;;  %v10081_v46 = vrot.slane %v23084_v61, %v22938_v21 }
 0x425   :  { %14980 = vperm.xlu1 %16405, %v12213_v52   ;;  %v12344_v4 = vcombine.low %v12322_v53, %v12329_v36  ;;  %v10085_v41 = vrot.slane %v23084_v61, %v22939_v50  ;;  %v10089_v34 = vrot.slane %v23084_v61, %v22940_v35  ;;  %v10093_v17 = vrot.slane %v23084_v61, %v22941_v0 }
 0x426   :  { %v12345_v10 = vcombine.low %v12336_v16, %v12343_v24  ;;  %v12263_v9 = vcombine.low %v10065_v19, %v10069_v42  ;;  %v23085_v52 = vrot.slane %v20761_v11, %v20756_v14  ;;  %v12264_v32 = vcombine.low %v10073_v54, %v10077_v33  ;;  %v20882_v42 = vpop.permute.xlu1 %8984 }
 0x427   :  { %v12352_v22 = vrot.slane %v12344_v4, %v18508_v15  ;;  %v12265_v48 = vcombine.low %v10081_v46, %v10085_v41  ;;  %v12266_v16 = vcombine.low %v10089_v34, %v10093_v17  ;;  %v20877_v20 = vsub.s32 %v9216_v27, %v23069_v55 }
 0x428   :  { %v9194_v36 = vsel %vm9193_vm11, %v23085_v52, %v9187_v18  ;;  %v12359_v53 = vrot.slane %v12345_v10, %v18508_v15  ;;  %v12273_v24 = vrot.slane %v12263_v9, %v18508_v15  ;;  %v12280_v61 = vrot.slane %v12264_v32, %v18508_v15  ;;  %v8982_v32 = vpop.permute.xlu0 %8981 }
 0x429   :  { %v9201_v60 = vsel %vm9200_vm12, %v9199_v62, %v9194_v36  ;;  %v12287_v11 = vrot.slane %v12265_v48, %v18508_v15  ;;  %v9209_v18 = vadd.s32 4294967216, %v23070_v38  ;;  %v12294_v54 = vrot.slane %v12266_v16, %v18508_v15  ;;  %v23086_v62 = vld [vmem:[#allocation56_spill] sm:$0xff] }
 0x42a   :  { %v12360_v19 = vcombine.low %v12352_v22, %v12359_v53  ;;  %v10161_v33 = vrot.slane %v23086_v62, %v22934_v7  ;;  %v10165_v4 = vrot.slane %v23086_v62, %v22935_v59  ;;  %v12295_v46 = vcombine.low %v12273_v24, %v12280_v61 }
 0x42b   :  { %v20890_v27 = vsub.s32 %v9209_v18, %v23069_v55  ;;  %v10169_v41 = vrot.slane %v23086_v62, %v22936_v40  ;;  %v10173_v10 = vrot.slane %v23086_v62, %v22937_v23  ;;  %v12296_v34 = vcombine.low %v12287_v11, %v12294_v54 }
 0x42c   :  { %14989 = vperm.xlu0 %16404, %v12360_v19   ;;  %v10177_v17 = vrot.slane %v23086_v62, %v22938_v21  ;;  %v10181_v9 = vrot.slane %v23086_v62, %v22939_v50  ;;  %v10185_v52 = vrot.slane %v23086_v62, %v22940_v35  ;;  %v12303_v22 = vrot.slane %v12295_v46, %v18508_v15  ;;  %v23087_v19 = vld [vmem:[#allocation57_spill] sm:$0xff] }
 0x42d   :  { %v10189_v48 = vrot.slane %v23086_v62, %v22941_v0  ;;  %v12410_v53 = vcombine.low %v10161_v33, %v10165_v4  ;;  %v12310_v16 = vrot.slane %v12296_v34, %v18508_v15  ;;  %v12411_v24 = vcombine.low %v10169_v41, %v10173_v10 }
 0x42e   :  { %v12412_v61 = vcombine.low %v10177_v17, %v10181_v9  ;;  %v10129_v54 = vrot.slane %v23087_v19, %v22934_v7  ;;  %v9213_v46 = vrot.slane %v8982_v32, %v20890_v27  ;;  %v10133_v4 = vrot.slane %v23087_v19, %v22935_v59 }
 0x42f   :  { %v12413_v11 = vcombine.low %v10185_v52, %v10189_v48  ;;  %v12420_v18 = vrot.slane %v12410_v53, %v18508_v15  ;;  %v12311_v36 = vcombine.low %v12303_v22, %v12310_v16  ;;  %v12427_v31 = vrot.slane %v12411_v24, %v18508_v15 }
 0x430   :  { %v12434_v62 = vrot.slane %v12412_v61, %v18508_v15  ;;  %v10137_v41 = vrot.slane %v23087_v19, %v22936_v40  ;;  %v10141_v10 = vrot.slane %v23087_v19, %v22937_v23  ;;  %v9230_v17 = vadd.s32 4294967192, %v23070_v38 }
 0x431   :  { %v12441_v33 = vrot.slane %v12413_v11, %v18508_v15  ;;  %14986 = vperm.xlu1 %16405, %v12311_v36   ;;  %v12442_v34 = vcombine.low %v12420_v18, %v12427_v31  ;;  %v10145_v9 = vrot.slane %v23087_v19, %v22938_v21  ;;  %v10149_v52 = vrot.slane %v23087_v19, %v22939_v50 }
 0x432   :  { %v10153_v32 = vrot.slane %v23087_v19, %v22940_v35  ;;  %v10157_v48 = vrot.slane %v23087_v19, %v22941_v0  ;;  %v12361_v53 = vcombine.low %v10129_v54, %v10133_v4  ;;  %v23088_v36 = vrot.slane %v20820_v47, %v20815_v30  ;;  %v20944_v4 = vpop.permute.xlu1 %8990 }
 0x433   :  { %v12443_v22 = vcombine.low %v12434_v62, %v12441_v33  ;;  %v12450_v16 = vrot.slane %v12442_v34, %v18508_v15  ;;  %v12362_v24 = vcombine.low %v10137_v41, %v10141_v10  ;;  %v12363_v61 = vcombine.low %v10145_v9, %v10149_v52 }
 0x434   :  { %v9208_v31 = vsel %vm9207_vm13, %v23088_v36, %v9201_v60  ;;  %v12364_v62 = vcombine.low %v10153_v32, %v10157_v48  ;;  %v12371_v33 = vrot.slane %v12361_v53, %v18508_v15  ;;  %v20939_v57 = vsub.s32 %v9230_v17, %v23069_v55 }
 0x435   :  { %v9215_v11 = vsel %vm9214_vm14, %v9213_v46, %v9208_v31  ;;  %v12457_v18 = vrot.slane %v12443_v22, %v18508_v15  ;;  %v12378_v19 = vrot.slane %v12362_v24, %v18508_v15  ;;  %v12385_v47 = vrot.slane %v12363_v61, %v18508_v15  ;;  %v23089_v46 = vld [vmem:[#allocation58_spill] sm:$0xff]  ;;  %v8988_v24 = vpop.permute.xlu0 %8987 }
 0x436   :  { %v9223_v60 = vadd.s32 4294967200, %v23070_v38  ;;  %v12392_v41 = vrot.slane %v12364_v62, %v18508_v15  ;;  %v10225_v10 = vrot.slane %v23089_v46, %v22934_v7  ;;  %v10229_v34 = vrot.slane %v23089_v46, %v22935_v59 }
 0x437   :  { %v12458_v54 = vcombine.low %v12450_v16, %v12457_v18  ;;  %v12393_v9 = vcombine.low %v12371_v33, %v12378_v19  ;;  %v10233_v52 = vrot.slane %v23089_v46, %v22936_v40  ;;  %v10237_v22 = vrot.slane %v23089_v46, %v22937_v23 }
 0x438   :  { %v20952_v17 = vsub.s32 %v9223_v60, %v23069_v55  ;;  %v12394_v32 = vcombine.low %v12385_v47, %v12392_v41  ;;  %v10241_v48 = vrot.slane %v23089_v46, %v22938_v21  ;;  %v10245_v53 = vrot.slane %v23089_v46, %v22939_v50 }
 0x439   :  { %14995 = vperm.xlu0 %16404, %v12458_v54   ;;  %v10249_v36 = vrot.slane %v23089_v46, %v22940_v35  ;;  %v12401_v16 = vrot.slane %v12393_v9, %v18508_v15  ;;  %v10253_v61 = vrot.slane %v23089_v46, %v22941_v0  ;;  %v12508_v18 = vcombine.low %v10225_v10, %v10229_v34  ;;  %v23090_v54 = vld [vmem:[#allocation59_spill] sm:$0xff] }
 0x43a   :  { %v12408_v62 = vrot.slane %v12394_v32, %v18508_v15  ;;  %v12509_v33 = vcombine.low %v10233_v52, %v10237_v22  ;;  %v12510_v19 = vcombine.low %v10241_v48, %v10245_v53  ;;  %v10193_v41 = vrot.slane %v23090_v54, %v22934_v7 }
 0x43b   :  { %v12511_v47 = vcombine.low %v10249_v36, %v10253_v61  ;;  %v12518_v60 = vrot.slane %v12508_v18, %v18508_v15  ;;  %v9227_v9 = vrot.slane %v8988_v24, %v20952_v17  ;;  %v10197_v34 = vrot.slane %v23090_v54, %v22935_v59 }
 0x43c   :  { %v12409_v31 = vcombine.low %v12401_v16, %v12408_v62  ;;  %v12525_v43 = vrot.slane %v12509_v33, %v18508_v15  ;;  %v12532_v46 = vrot.slane %v12510_v19, %v18508_v15  ;;  %v10201_v52 = vrot.slane %v23090_v54, %v22936_v40  ;;  %v20997_v33 = vpop.permute.xlu1 %8996 }
 0x43d   :  { %v12539_v10 = vrot.slane %v12511_v47, %v18508_v15  ;;  %v10205_v22 = vrot.slane %v23090_v54, %v22937_v23  ;;  %v9244_v48 = vadd.s32 4294967176, %v23070_v38  ;;  %v10209_v53 = vrot.slane %v23090_v54, %v22938_v21 }
 0x43e   :  { %14992 = vperm.xlu1 %16405, %v12409_v31   ;;  %v12540_v32 = vcombine.low %v12518_v60, %v12525_v43  ;;  %v10213_v36 = vrot.slane %v23090_v54, %v22939_v50  ;;  %v10217_v24 = vrot.slane %v23090_v54, %v22940_v35  ;;  %v10221_v61 = vrot.slane %v23090_v54, %v22941_v0 }
 0x43f   :  { %v12541_v16 = vcombine.low %v12532_v46, %v12539_v10  ;;  %v12459_v18 = vcombine.low %v10193_v41, %v10197_v34  ;;  %v23091_v31 = vrot.slane %v20882_v42, %v20877_v20  ;;  %v12460_v19 = vcombine.low %v10201_v52, %v10205_v22 }
 0x440   :  { %v12548_v62 = vrot.slane %v12540_v32, %v18508_v15  ;;  %v12461_v47 = vcombine.low %v10209_v53, %v10213_v36  ;;  %v12462_v10 = vcombine.low %v10217_v24, %v10221_v61  ;;  %v21003_v54 = vsub.s32 %v9244_v48, %v23069_v55  ;;  %v21014_v36 = vpop.permute.xlu0 %8993 }
 0x441   :  { %v9222_v43 = vsel %vm9221_vm15, %v23091_v31, %v9215_v11  ;;  %v12555_v46 = vrot.slane %v12541_v16, %v18508_v15  ;;  %v12469_v45 = vrot.slane %v12459_v18, %v18508_v15  ;;  %v12476_v42 = vrot.slane %v12460_v19, %v18508_v15 }
 0x442   :  { %v9229_v60 = vsel %vm9228_vm1, %v9227_v9, %v9222_v43  ;;  %v12483_v11 = vrot.slane %v12461_v47, %v18508_v15  ;;  %v9237_v41 = vadd.s32 4294967184, %v23070_v38  ;;  %v12490_v52 = vrot.slane %v12462_v10, %v18508_v15  ;;  %v23092_v9 = vld [vmem:[#allocation60_spill] sm:$0xff] }
 0x443   :  { %v12556_v34 = vcombine.low %v12548_v62, %v12555_v46  ;;  %v10289_v22 = vrot.slane %v23092_v9, %v22934_v7  ;;  %v12491_v32 = vcombine.low %v12469_v45, %v12476_v42  ;;  %v10293_v48 = vrot.slane %v23092_v9, %v22935_v59  ;;  %v9003_v62 = vpop.permute.xlu1 %9002 }
 0x444   :  { %v21012_v53 = vsub.s32 %v9237_v41, %v23069_v55  ;;  %v10297_v16 = vrot.slane %v23092_v9, %v22936_v40  ;;  %v12492_v38 = vcombine.low %v12483_v11, %v12490_v52  ;;  %v10301_v24 = vrot.slane %v23092_v9, %v22937_v23  ;;  %v23094_v52 = vld [vmem:[#allocation61_spill] sm:$0xff] }
 0x445   :  { %15001 = vperm.xlu0 %16404, %v12556_v34   ;;  %v10305_v61 = vrot.slane %v23092_v9, %v22938_v21  ;;  %v10309_v45 = vrot.slane %v23092_v9, %v22939_v50  ;;  %v12499_v18 = vrot.slane %v12491_v32, %v18508_v15  ;;  %v10313_v31 = vrot.slane %v23092_v9, %v22940_v35 }
 0x446   :  { %v10317_v43 = vrot.slane %v23092_v9, %v22941_v0  ;;  %v12506_v19 = vrot.slane %v12492_v38, %v18508_v15  ;;  %v12606_v47 = vcombine.low %v10289_v22, %v10293_v48  ;;  %v12607_v46 = vcombine.low %v10297_v16, %v10301_v24  ;;  %v9000_v24 = vpop.permute.xlu0 %8999 }
 0x447   :  { %v12608_v10 = vcombine.low %v10305_v61, %v10309_v45  ;;  %v23093_v42 = vrot.slane %v20944_v4, %v20939_v57  ;;  %v10257_v32 = vrot.slane %v23094_v52, %v22934_v7  ;;  %v9258_v48 = vrot.slane %v9003_v62, %v20644_v2 }
 0x448   :  { %v12609_v34 = vcombine.low %v10313_v31, %v10317_v43  ;;  %v12507_v9 = vcombine.low %v12499_v18, %v12506_v19  ;;  %v12616_v55 = vrot.slane %v12606_v47, %v18508_v15  ;;  %v12623_v22 = vrot.slane %v12607_v46, %v18508_v15 }
 0x449   :  { %v21038_v11 = vsel %vm9235_vm2, %v23093_v42, %v9229_v60  ;;  %v12630_v16 = vrot.slane %v12608_v10, %v18508_v15  ;;  %v10261_v60 = vrot.slane %v23094_v52, %v22935_v59  ;;  %v10265_v38 = vrot.slane %v23094_v52, %v22936_v40 }
 0x44a   :  { %v12637_v4 = vrot.slane %v12609_v34, %v18508_v15  ;;  %14998 = vperm.xlu1 %16405, %v12507_v9   ;;  %v12638_v61 = vcombine.low %v12616_v55, %v12623_v22  ;;  %v10269_v45 = vrot.slane %v23094_v52, %v22937_v23  ;;  %v10273_v18 = vrot.slane %v23094_v52, %v22938_v21 }
 0x44b   :  { %v10277_v31 = vrot.slane %v23094_v52, %v22939_v50  ;;  %v10281_v62 = vrot.slane %v23094_v52, %v22940_v35  ;;  %v10285_v19 = vrot.slane %v23094_v52, %v22941_v0  ;;  %v12557_v47 = vcombine.low %v10257_v32, %v10261_v60 }
 0x44c   :  { %v12639_v43 = vcombine.low %v12630_v16, %v12637_v4  ;;  %v12646_v46 = vrot.slane %v12638_v61, %v18508_v15  ;;  %v12558_v55 = vcombine.low %v10265_v38, %v10269_v45  ;;  %v9254_v42 = vrot.slane %v9000_v24, %v20588_v3  ;;  %v23095_v16 = vld [vmem:[#allocation19_spill] sm:$0xff]  ;;  %v21079_v45 = vpop.permute.xlu1 %9008 }
 0x44d   :  { %v12559_v10 = vcombine.low %v10273_v18, %v10277_v31  ;;  %v12560_v9 = vcombine.low %v10281_v62, %v10285_v19  ;;  %v12567_v22 = vrot.slane %v12557_v47, %v18508_v15  ;;  %v10353_v4 = vrot.slane %v23095_v16, %v22934_v7 }
 0x44e   :  { %v12653_v34 = vrot.slane %v12639_v43, %v18508_v15  ;;  %v12574_v41 = vrot.slane %v12558_v55, %v18508_v15  ;;  %v9259_v52 = vsel %vm9151_vm5, %v9258_v48, %v9254_v42  ;;  %v10357_v32 = vrot.slane %v23095_v16, %v22935_v59  ;;  %v23096_v42 = vld [vmem:[#allocation48_spill] sm:$0xff] }
 0x44f   :  { %v12581_v8 = vrot.slane %v12559_v10, %v18508_v15  ;;  %v12588_v38 = vrot.slane %v12560_v9, %v18508_v15  ;;  %v10361_v24 = vrot.slane %v23095_v16, %v22936_v40  ;;  %v10365_v61 = vrot.slane %v23095_v16, %v22937_v23 }
 0x450   :  { %v12654_v60 = vcombine.low %v12646_v46, %v12653_v34  ;;  %v12589_v18 = vcombine.low %v12567_v22, %v12574_v41  ;;  %v10369_v31 = vrot.slane %v23095_v16, %v22938_v21  ;;  %v10373_v48 = vrot.slane %v23095_v16, %v22939_v50  ;;  %v23097_v41 = vld [vmem:[#allocation49_spill] sm:$0xff] }
 0x451   :  { %v10377_v43 = vrot.slane %v23095_v16, %v22940_v35  ;;  %v12590_v62 = vcombine.low %v12581_v8, %v12588_v38  ;;  %v10381_v19 = vrot.slane %v23095_v16, %v22941_v0  ;;  %v12704_v47 = vcombine.low %v10353_v4, %v10357_v32 }
 0x452   :  { %15007 = vperm.xlu0 %16404, %v12654_v60   ;;  %v12705_v46 = vcombine.low %v10361_v24, %v10365_v61  ;;  %v12597_v55 = vrot.slane %v12589_v18, %v18508_v15  ;;  %v12706_v10 = vcombine.low %v10369_v31, %v10373_v48  ;;  %v10321_v34 = vrot.slane %v23096_v42, %v22934_v7  ;;  %v9006_v24 = vpop.permute.xlu0 %9005 }
 0x453   :  { %v12604_v9 = vrot.slane %v12590_v62, %v18508_v15  ;;  %v12707_v22 = vcombine.low %v10377_v43, %v10381_v19  ;;  %v12714_v60 = vrot.slane %v12704_v47, %v18508_v15  ;;  %v10325_v4 = vrot.slane %v23096_v42, %v22935_v59 }
 0x454   :  { %v12721_v8 = vrot.slane %v12705_v46, %v18508_v15  ;;  %v12728_v16 = vrot.slane %v12706_v10, %v18508_v15  ;;  %v10329_v32 = vrot.slane %v23096_v42, %v22936_v40  ;;  %v10333_v38 = vrot.slane %v23096_v42, %v22937_v23 }
 0x455   :  { %v12605_v61 = vcombine.low %v12597_v55, %v12604_v9  ;;  %v12735_v18 = vrot.slane %v12707_v22, %v18508_v15  ;;  %v10337_v48 = vrot.slane %v23096_v42, %v22938_v21  ;;  %v10341_v43 = vrot.slane %v23096_v42, %v22939_v50 }
 0x456   :  { %v12736_v31 = vcombine.low %v12714_v60, %v12721_v8  ;;  %v10345_v62 = vrot.slane %v23096_v42, %v22940_v35  ;;  %v10349_v19 = vrot.slane %v23096_v42, %v22941_v0  ;;  %v12655_v47 = vcombine.low %v10321_v34, %v10325_v4 }
 0x457   :  { %15004 = vperm.xlu1 %16405, %v12605_v61   ;;  %v12737_v46 = vcombine.low %v12728_v16, %v12735_v18  ;;  %v12656_v10 = vcombine.low %v10329_v32, %v10333_v38  ;;  %v9263_v9 = vrot.slane %v9006_v24, %v20610_v1  ;;  %v12657_v22 = vcombine.low %v10337_v48, %v10341_v43  ;;  %v21129_v24 = vpop.permute.xlu1 %9014 }
 0x458   :  { %v12744_v55 = vrot.slane %v12736_v31, %v18508_v15  ;;  %v12658_v60 = vcombine.low %v10345_v62, %v10349_v19  ;;  %v12665_v8 = vrot.slane %v12655_v47, %v18508_v15  ;;  %v10417_v13 = vrot.slane %v23097_v41, %v22934_v7 }
 0x459   :  { %v12751_v28 = vrot.slane %v12737_v46, %v18508_v15  ;;  %v12672_v29 = vrot.slane %v12656_v10, %v18508_v15  ;;  %v9264_v42 = vsel %vm9158_vm7, %v9263_v9, %v9259_v52  ;;  %v10421_v34 = vrot.slane %v23097_v41, %v22935_v59 }
 0x45a   :  { %v12679_v16 = vrot.slane %v12657_v22, %v18508_v15  ;;  %v12686_v4 = vrot.slane %v12658_v60, %v18508_v15  ;;  %v10425_v32 = vrot.slane %v23097_v41, %v22936_v40  ;;  %v10429_v38 = vrot.slane %v23097_v41, %v22937_v23  ;;  %v23098_v22 = vld [vmem:[#allocation22_spill] sm:$0xff] }
 0x45b   :  { %v12752_v61 = vcombine.low %v12744_v55, %v12751_v28  ;;  %v12687_v18 = vcombine.low %v12665_v8, %v12672_v29  ;;  %v10433_v52 = vrot.slane %v23097_v41, %v22938_v21  ;;  %v10437_v31 = vrot.slane %v23097_v41, %v22939_v50 }
 0x45c   :  { %v12688_v48 = vcombine.low %v12679_v16, %v12686_v4  ;;  %v10441_v43 = vrot.slane %v23097_v41, %v22940_v35  ;;  %v10445_v62 = vrot.slane %v23097_v41, %v22941_v0  ;;  %v12802_v19 = vcombine.low %v10417_v13, %v10421_v34 }
 0x45d   :  { %15013 = vperm.xlu0 %16404, %v12752_v61   ;;  %v12695_v47 = vrot.slane %v12687_v18, %v18508_v15  ;;  %v12803_v46 = vcombine.low %v10425_v32, %v10429_v38  ;;  %v12804_v28 = vcombine.low %v10433_v52, %v10437_v31  ;;  %v10385_v60 = vrot.slane %v23098_v22, %v22934_v7  ;;  %v9012_v61 = vpop.permute.xlu0 %9011 }
 0x45e   :  { %v12702_v55 = vrot.slane %v12688_v48, %v18508_v15  ;;  %v12805_v10 = vcombine.low %v10441_v43, %v10445_v62  ;;  %v12812_v9 = vrot.slane %v12802_v19, %v18508_v15  ;;  %v10389_v41 = vrot.slane %v23098_v22, %v22935_v59 }
 0x45f   :  { %v12819_v8 = vrot.slane %v12803_v46, %v18508_v15  ;;  %v12826_v13 = vrot.slane %v12804_v28, %v18508_v15  ;;  %v10393_v34 = vrot.slane %v23098_v22, %v22936_v40  ;;  %v10397_v32 = vrot.slane %v23098_v22, %v22937_v23 }
 0x460   :  { %v12703_v16 = vcombine.low %v12695_v47, %v12702_v55  ;;  %v12833_v4 = vrot.slane %v12805_v10, %v18508_v15  ;;  %v10401_v38 = vrot.slane %v23098_v22, %v22938_v21  ;;  %v10405_v52 = vrot.slane %v23098_v22, %v22939_v50 }
 0x461   :  { %v12834_v18 = vcombine.low %v12812_v9, %v12819_v8  ;;  %v10409_v31 = vrot.slane %v23098_v22, %v22940_v35  ;;  %v10413_v48 = vrot.slane %v23098_v22, %v22941_v0  ;;  %v12753_v62 = vcombine.low %v10385_v60, %v10389_v41  ;;  %v23100_v60 = vld [vmem:[#allocation21_spill] sm:$0xff] }
 0x462   :  { %15010 = vperm.xlu1 %16405, %v12703_v16   ;;  %v12835_v43 = vcombine.low %v12826_v13, %v12833_v4  ;;  %v12754_v19 = vcombine.low %v10393_v34, %v10397_v32  ;;  %v23099_v47 = vrot.slane %v21079_v45, %v20652_v49  ;;  %v12755_v55 = vcombine.low %v10401_v38, %v10405_v52 }
 0x463   :  { %v12842_v28 = vrot.slane %v12834_v18, %v18508_v15  ;;  %v12756_v10 = vcombine.low %v10409_v31, %v10413_v48  ;;  %v9273_v9 = vrot.slane %v9012_v61, %v20705_v25  ;;  %v12763_v29 = vrot.slane %v12753_v62, %v18508_v15  ;;  %v21183_v61 = vpop.permute.xlu1 %9020 }
 0x464   :  { %v9269_v46 = vsel %vm9165_vm0, %v23099_v47, %v9264_v42  ;;  %v12849_v8 = vrot.slane %v12835_v43, %v18508_v15  ;;  %v12770_v22 = vrot.slane %v12754_v19, %v18508_v15  ;;  %v10481_v13 = vrot.slane %v23100_v60, %v22934_v7 }
 0x465   :  { %v12777_v41 = vrot.slane %v12755_v55, %v18508_v15  ;;  %v12784_v45 = vrot.slane %v12756_v10, %v18508_v15  ;;  %v9274_v42 = vsel %vm9172_vm8, %v9273_v9, %v9269_v46  ;;  %v10485_v34 = vrot.slane %v23100_v60, %v22935_v59  ;;  %v23101_v55 = vld [vmem:[#allocation50_spill] sm:$0xff] }
 0x466   :  { %v12850_v16 = vcombine.low %v12842_v28, %v12849_v8  ;;  %v12785_v4 = vcombine.low %v12763_v29, %v12770_v22  ;;  %v10489_v32 = vrot.slane %v23100_v60, %v22936_v40  ;;  %v10493_v38 = vrot.slane %v23100_v60, %v22937_v23 }
 0x467   :  { %v12786_v18 = vcombine.low %v12777_v41, %v12784_v45  ;;  %v10497_v52 = vrot.slane %v23100_v60, %v22938_v21  ;;  %v10501_v31 = vrot.slane %v23100_v60, %v22939_v50  ;;  %v10505_v48 = vrot.slane %v23100_v60, %v22940_v35 }
 0x468   :  { %15019 = vperm.xlu0 %16404, %v12850_v16   ;;  %v12793_v29 = vrot.slane %v12785_v4, %v18508_v15  ;;  %v10509_v43 = vrot.slane %v23100_v60, %v22941_v0  ;;  %v12900_v62 = vcombine.low %v10481_v13, %v10485_v34  ;;  %v12901_v19 = vcombine.low %v10489_v32, %v10493_v38 }
 0x469   :  { %v12800_v47 = vrot.slane %v12786_v18, %v18508_v15  ;;  %v12902_v46 = vcombine.low %v10497_v52, %v10501_v31  ;;  %v9288_v28 = vrot.slane %v21183_v61, %v20756_v14  ;;  %v10449_v10 = vrot.slane %v23101_v55, %v22934_v7  ;;  %v9018_v18 = vpop.permute.xlu0 %9017 }
 0x46a   :  { %v12903_v9 = vcombine.low %v10505_v48, %v10509_v43  ;;  %v12910_v8 = vrot.slane %v12900_v62, %v18508_v15  ;;  %v12917_v22 = vrot.slane %v12901_v19, %v18508_v15  ;;  %v10453_v41 = vrot.slane %v23101_v55, %v22935_v59 }
 0x46b   :  { %v12801_v60 = vcombine.low %v12793_v29, %v12800_v47  ;;  %v12924_v13 = vrot.slane %v12902_v46, %v18508_v15  ;;  %v10457_v45 = vrot.slane %v23101_v55, %v22936_v40  ;;  %v10461_v34 = vrot.slane %v23101_v55, %v22937_v23 }
 0x46c   :  { %v12931_v16 = vrot.slane %v12903_v9, %v18508_v15  ;;  %v12932_v4 = vcombine.low %v12910_v8, %v12917_v22  ;;  %v10465_v32 = vrot.slane %v23101_v55, %v22938_v21  ;;  %v10469_v38 = vrot.slane %v23101_v55, %v22939_v50 }
 0x46d   :  { %15016 = vperm.xlu1 %16405, %v12801_v60   ;;  %v10473_v52 = vrot.slane %v23101_v55, %v22940_v35  ;;  %v10477_v31 = vrot.slane %v23101_v55, %v22941_v0  ;;  %v12851_v48 = vcombine.low %v10449_v10, %v10453_v41  ;;  %v12852_v29 = vcombine.low %v10457_v45, %v10461_v34  ;;  %v23103_v41 = vld [vmem:[#allocation23_spill] sm:$0xff] }
 0x46e   :  { %v12933_v43 = vcombine.low %v12924_v13, %v12931_v16  ;;  %v12940_v62 = vrot.slane %v12932_v4, %v18508_v15  ;;  %v12853_v19 = vcombine.low %v10465_v32, %v10469_v38  ;;  %v23102_v47 = vrot.slane %v21129_v24, %v20718_v26  ;;  %v21235_v4 = vpop.permute.xlu1 %9026 }
 0x46f   :  { %v12854_v9 = vcombine.low %v10473_v52, %v10477_v31  ;;  %v12861_v8 = vrot.slane %v12851_v48, %v18508_v15  ;;  %v12868_v22 = vrot.slane %v12852_v29, %v18508_v15  ;;  %v9283_v60 = vrot.slane %v9018_v18, %v20769_v58 }
 0x470   :  { %v9279_v46 = vsel %vm9179_vm9, %v23102_v47, %v9274_v42  ;;  %v12947_v55 = vrot.slane %v12933_v43, %v18508_v15  ;;  %v12875_v10 = vrot.slane %v12853_v19, %v18508_v15  ;;  %v10545_v13 = vrot.slane %v23103_v41, %v22934_v7 }
 0x471   :  { %v10549_v45 = vrot.slane %v23103_v41, %v22935_v59  ;;  %v12882_v24 = vrot.slane %v12854_v9, %v18508_v15  ;;  %v12883_v42 = vcombine.low %v12861_v8, %v12868_v22  ;;  %v9284_v34 = vsel %vm9186_vm10, %v9283_v60, %v9279_v46  ;;  %v23104_v22 = vld [vmem:[#allocation5_spill] sm:$0xff] }
 0x472   :  { %v10553_v16 = vrot.slane %v23103_v41, %v22936_v40  ;;  %v12948_v32 = vcombine.low %v12940_v62, %v12947_v55  ;;  %v10557_v38 = vrot.slane %v23103_v41, %v22937_v23  ;;  %v10561_v18 = vrot.slane %v23103_v41, %v22938_v21 }
 0x473   :  { %v10565_v52 = vrot.slane %v23103_v41, %v22939_v50  ;;  %v12884_v31 = vcombine.low %v12875_v10, %v12882_v24  ;;  %v12891_v48 = vrot.slane %v12883_v42, %v18508_v15  ;;  %v10569_v29 = vrot.slane %v23103_v41, %v22940_v35 }
 0x474   :  { %v10573_v43 = vrot.slane %v23103_v41, %v22941_v0  ;;  %15025 = vperm.xlu0 %16404, %v12948_v32   ;;  %v12998_v62 = vcombine.low %v10545_v13, %v10549_v45  ;;  %v12999_v19 = vcombine.low %v10553_v16, %v10557_v38  ;;  %v10513_v60 = vrot.slane %v23104_v22, %v22934_v7  ;;  %v9024_v38 = vpop.permute.xlu0 %9023 }
 0x475   :  { %v13000_v47 = vcombine.low %v10561_v18, %v10565_v52  ;;  %v12898_v9 = vrot.slane %v12884_v31, %v18508_v15  ;;  %v10517_v55 = vrot.slane %v23104_v22, %v22935_v59  ;;  %v10521_v45 = vrot.slane %v23104_v22, %v22936_v40 }
 0x476   :  { %v13001_v8 = vcombine.low %v10569_v29, %v10573_v43  ;;  %v13008_v10 = vrot.slane %v12998_v62, %v18508_v15  ;;  %v13015_v41 = vrot.slane %v12999_v19, %v18508_v15  ;;  %v10525_v16 = vrot.slane %v23104_v22, %v22937_v23 }
 0x477   :  { %v13022_v13 = vrot.slane %v13000_v47, %v18508_v15  ;;  %v12899_v24 = vcombine.low %v12891_v48, %v12898_v9  ;;  %v10529_v32 = vrot.slane %v23104_v22, %v22938_v21  ;;  %v10533_v52 = vrot.slane %v23104_v22, %v22939_v50 }
 0x478   :  { %v13029_v42 = vrot.slane %v13001_v8, %v18508_v15  ;;  %v13030_v18 = vcombine.low %v13008_v10, %v13015_v41  ;;  %v10537_v31 = vrot.slane %v23104_v22, %v22940_v35  ;;  %v10541_v29 = vrot.slane %v23104_v22, %v22941_v0 }
 0x479   :  { %15022 = vperm.xlu1 %16405, %v12899_v24   ;;  %v12949_v43 = vcombine.low %v10513_v60, %v10517_v55  ;;  %v12950_v62 = vcombine.low %v10521_v45, %v10525_v16  ;;  %v9289_v19 = vsel %vm9193_vm11, %v9288_v28, %v9284_v34  ;;  %v12951_v9 = vcombine.low %v10529_v32, %v10533_v52  ;;  %v23105_v60 = vld [vmem:[#allocation25_spill] sm:$0xff]  ;;  %v21291_v32 = vpop.permute.xlu1 %9032 }
 0x47a   :  { %v13031_v48 = vcombine.low %v13022_v13, %v13029_v42  ;;  %v13038_v47 = vrot.slane %v13030_v18, %v18508_v15  ;;  %v12952_v8 = vcombine.low %v10537_v31, %v10541_v29  ;;  %v9293_v10 = vrot.slane %v9024_v38, %v20828_v44 }
 0x47b   :  { %v12959_v46 = vrot.slane %v12949_v43, %v18508_v15  ;;  %v12966_v22 = vrot.slane %v12950_v62, %v18508_v15  ;;  %v10609_v55 = vrot.slane %v23105_v60, %v22934_v7  ;;  %v12973_v13 = vrot.slane %v12951_v9, %v18508_v15  ;;  %v23106_v9 = vld [vmem:[#allocation69_spill] sm:$0xff] }
 0x47c   :  { %v13045_v41 = vrot.slane %v13031_v48, %v18508_v15  ;;  %v12980_v61 = vrot.slane %v12952_v8, %v18508_v15  ;;  %v9294_v28 = vsel %vm9200_vm12, %v9293_v10, %v9289_v19  ;;  %v10613_v34 = vrot.slane %v23105_v60, %v22935_v59 }
 0x47d   :  { %v12981_v24 = vcombine.low %v12959_v46, %v12966_v22  ;;  %v10617_v42 = vrot.slane %v23105_v60, %v22936_v40  ;;  %v10621_v16 = vrot.slane %v23105_v60, %v22937_v23  ;;  %v10625_v18 = vrot.slane %v23105_v60, %v22938_v21 }
 0x47e   :  { %v13046_v45 = vcombine.low %v13038_v47, %v13045_v41  ;;  %v12982_v38 = vcombine.low %v12973_v13, %v12980_v61  ;;  %v10629_v52 = vrot.slane %v23105_v60, %v22939_v50  ;;  %v10633_v31 = vrot.slane %v23105_v60, %v22940_v35 }
 0x47f   :  { %v12989_v46 = vrot.slane %v12981_v24, %v18508_v15  ;;  %v10637_v29 = vrot.slane %v23105_v60, %v22941_v0  ;;  %v13096_v48 = vcombine.low %v10609_v55, %v10613_v34  ;;  %v13097_v43 = vcombine.low %v10617_v42, %v10621_v16 }
 0x480   :  { %15031 = vperm.xlu0 %16404, %v13046_v45   ;;  %v12996_v62 = vrot.slane %v12982_v38, %v18508_v15  ;;  %v13098_v19 = vcombine.low %v10625_v18, %v10629_v52  ;;  %v9308_v47 = vrot.slane %v21291_v32, %v20877_v20  ;;  %v10577_v8 = vrot.slane %v23106_v9, %v22934_v7  ;;  %v9030_v38 = vpop.permute.xlu0 %9029 }
 0x481   :  { %v13099_v10 = vcombine.low %v10633_v31, %v10637_v29  ;;  %v13106_v41 = vrot.slane %v13096_v48, %v18508_v15  ;;  %v13113_v22 = vrot.slane %v13097_v43, %v18508_v15  ;;  %v10581_v13 = vrot.slane %v23106_v9, %v22935_v59 }
 0x482   :  { %v12997_v60 = vcombine.low %v12989_v46, %v12996_v62  ;;  %v13120_v55 = vrot.slane %v13098_v19, %v18508_v15  ;;  %v10585_v61 = vrot.slane %v23106_v9, %v22936_v40  ;;  %v10589_v34 = vrot.slane %v23106_v9, %v22937_v23 }
 0x483   :  { %v13127_v45 = vrot.slane %v13099_v10, %v18508_v15  ;;  %v13128_v24 = vcombine.low %v13106_v41, %v13113_v22  ;;  %v10593_v42 = vrot.slane %v23106_v9, %v22938_v21  ;;  %v10597_v16 = vrot.slane %v23106_v9, %v22939_v50 }
 0x484   :  { %15028 = vperm.xlu1 %16405, %v12997_v60   ;;  %v10601_v18 = vrot.slane %v23106_v9, %v22940_v35  ;;  %v10605_v52 = vrot.slane %v23106_v9, %v22941_v0  ;;  %v13047_v31 = vcombine.low %v10577_v8, %v10581_v13  ;;  %v13048_v46 = vcombine.low %v10585_v61, %v10589_v34  ;;  %v23108_v13 = vld [vmem:[#allocation9_spill] sm:$0xff] }
 0x485   :  { %v13129_v29 = vcombine.low %v13120_v55, %v13127_v45  ;;  %v13136_v48 = vrot.slane %v13128_v24, %v18508_v15  ;;  %v13049_v43 = vcombine.low %v10593_v42, %v10597_v16  ;;  %v23107_v62 = vrot.slane %v21235_v4, %v20815_v30  ;;  %v21343_v24 = vpop.permute.xlu1 %9038 }
 0x486   :  { %v13050_v10 = vcombine.low %v10601_v18, %v10605_v52  ;;  %v13057_v41 = vrot.slane %v13047_v31, %v18508_v15  ;;  %v13064_v22 = vrot.slane %v13048_v46, %v18508_v15  ;;  %v9303_v60 = vrot.slane %v9030_v38, %v20890_v27 }
 0x487   :  { %v9299_v19 = vsel %vm9207_vm13, %v23107_v62, %v9294_v28  ;;  %v13143_v9 = vrot.slane %v13129_v29, %v18508_v15  ;;  %v13071_v8 = vrot.slane %v13049_v43, %v18508_v15  ;;  %v10673_v55 = vrot.slane %v23108_v13, %v22934_v7 }
 0x488   :  { %v10677_v61 = vrot.slane %v23108_v13, %v22935_v59  ;;  %v13078_v4 = vrot.slane %v13050_v10, %v18508_v15  ;;  %v13079_v28 = vcombine.low %v13057_v41, %v13064_v22  ;;  %v9304_v34 = vsel %vm9214_vm14, %v9303_v60, %v9299_v19  ;;  %v23109_v22 = vld [vmem:[#allocation28_spill] sm:$0xff] }
 0x489   :  { %v10681_v45 = vrot.slane %v23108_v13, %v22936_v40  ;;  %v13144_v42 = vcombine.low %v13136_v48, %v13143_v9  ;;  %v10685_v16 = vrot.slane %v23108_v13, %v22937_v23  ;;  %v10689_v38 = vrot.slane %v23108_v13, %v22938_v21 }
 0x48a   :  { %v10693_v18 = vrot.slane %v23108_v13, %v22939_v50  ;;  %v13080_v52 = vcombine.low %v13071_v8, %v13078_v4  ;;  %v13087_v31 = vrot.slane %v13079_v28, %v18508_v15  ;;  %v10697_v46 = vrot.slane %v23108_v13, %v22940_v35 }
 0x48b   :  { %v10701_v29 = vrot.slane %v23108_v13, %v22941_v0  ;;  %15037 = vperm.xlu0 %16404, %v13144_v42   ;;  %v13194_v48 = vcombine.low %v10673_v55, %v10677_v61  ;;  %v13195_v43 = vcombine.low %v10681_v45, %v10685_v16  ;;  %v10641_v60 = vrot.slane %v23109_v22, %v22934_v7  ;;  %v9036_v16 = vpop.permute.xlu0 %9035 }
 0x48c   :  { %v13196_v62 = vcombine.low %v10689_v38, %v10693_v18  ;;  %v13094_v10 = vrot.slane %v13080_v52, %v18508_v15  ;;  %v10645_v9 = vrot.slane %v23109_v22, %v22935_v59  ;;  %v10649_v61 = vrot.slane %v23109_v22, %v22936_v40 }
 0x48d   :  { %v13197_v41 = vcombine.low %v10697_v46, %v10701_v29  ;;  %v13204_v8 = vrot.slane %v13194_v48, %v18508_v15  ;;  %v13211_v13 = vrot.slane %v13195_v43, %v18508_v15  ;;  %v10653_v45 = vrot.slane %v23109_v22, %v22937_v23 }
 0x48e   :  { %v13218_v55 = vrot.slane %v13196_v62, %v18508_v15  ;;  %v13095_v4 = vcombine.low %v13087_v31, %v13094_v10  ;;  %v10657_v42 = vrot.slane %v23109_v22, %v22938_v21  ;;  %v10661_v18 = vrot.slane %v23109_v22, %v22939_v50 }
 0x48f   :  { %v13225_v28 = vrot.slane %v13197_v41, %v18508_v15  ;;  %v13226_v38 = vcombine.low %v13204_v8, %v13211_v13  ;;  %v10665_v52 = vrot.slane %v23109_v22, %v22940_v35  ;;  %v10669_v46 = vrot.slane %v23109_v22, %v22941_v0 }
 0x490   :  { %15034 = vperm.xlu1 %16405, %v13095_v4   ;;  %v13145_v29 = vcombine.low %v10641_v60, %v10645_v9  ;;  %v13146_v48 = vcombine.low %v10649_v61, %v10653_v45  ;;  %v9309_v43 = vsel %vm9221_vm15, %v9308_v47, %v9304_v34  ;;  %v13147_v10 = vcombine.low %v10657_v42, %v10661_v18  ;;  %v23110_v60 = vld [vmem:[#allocation30_spill] sm:$0xff]  ;;  %v21399_v42 = vpop.permute.xlu1 %9044 }
 0x491   :  { %v13227_v31 = vcombine.low %v13218_v55, %v13225_v28  ;;  %v13234_v62 = vrot.slane %v13226_v38, %v18508_v15  ;;  %v13148_v41 = vcombine.low %v10665_v52, %v10669_v46  ;;  %v9313_v8 = vrot.slane %v9036_v16, %v20952_v17 }
 0x492   :  { %v13155_v19 = vrot.slane %v13145_v29, %v18508_v15  ;;  %v13162_v22 = vrot.slane %v13146_v48, %v18508_v15  ;;  %v10737_v9 = vrot.slane %v23110_v60, %v22934_v7  ;;  %v13169_v55 = vrot.slane %v13147_v10, %v18508_v15  ;;  %v23111_v10 = vld [vmem:[#allocation12_spill] sm:$0xff] }
 0x493   :  { %v13241_v13 = vrot.slane %v13227_v31, %v18508_v15  ;;  %v13176_v32 = vrot.slane %v13148_v41, %v18508_v15  ;;  %v9314_v47 = vsel %vm9228_vm1, %v9313_v8, %v9309_v43  ;;  %v10741_v34 = vrot.slane %v23110_v60, %v22935_v59 }
 0x494   :  { %v13177_v4 = vcombine.low %v13155_v19, %v13162_v22  ;;  %v10745_v28 = vrot.slane %v23110_v60, %v22936_v40  ;;  %v10749_v45 = vrot.slane %v23110_v60, %v22937_v23  ;;  %v10753_v38 = vrot.slane %v23110_v60, %v22938_v21 }
 0x495   :  { %v13242_v61 = vcombine.low %v13234_v62, %v13241_v13  ;;  %v13178_v16 = vcombine.low %v13169_v55, %v13176_v32  ;;  %v10757_v18 = vrot.slane %v23110_v60, %v22939_v50  ;;  %v10761_v52 = vrot.slane %v23110_v60, %v22940_v35 }
 0x496   :  { %v13185_v19 = vrot.slane %v13177_v4, %v18508_v15  ;;  %v10765_v46 = vrot.slane %v23110_v60, %v22941_v0  ;;  %v13292_v31 = vcombine.low %v10737_v9, %v10741_v34  ;;  %v13293_v29 = vcombine.low %v10745_v28, %v10749_v45 }
 0x497   :  { %15043 = vperm.xlu0 %16404, %v13242_v61   ;;  %v13192_v48 = vrot.slane %v13178_v16, %v18508_v15  ;;  %v13294_v43 = vcombine.low %v10753_v38, %v10757_v18  ;;  %v9328_v62 = vrot.slane %v21399_v42, %v21003_v54  ;;  %v10705_v41 = vrot.slane %v23111_v10, %v22934_v7  ;;  %v9042_v42 = vpop.permute.xlu0 %9041 }
 0x498   :  { %v13295_v8 = vcombine.low %v10761_v52, %v10765_v46  ;;  %v13302_v13 = vrot.slane %v13292_v31, %v18508_v15  ;;  %v13309_v22 = vrot.slane %v13293_v29, %v18508_v15  ;;  %v10709_v60 = vrot.slane %v23111_v10, %v22935_v59 }
 0x499   :  { %v13193_v9 = vcombine.low %v13185_v19, %v13192_v48  ;;  %v13316_v55 = vrot.slane %v13294_v43, %v18508_v15  ;;  %v10713_v32 = vrot.slane %v23111_v10, %v22936_v40  ;;  %v10717_v34 = vrot.slane %v23111_v10, %v22937_v23 }
 0x49a   :  { %v13323_v61 = vrot.slane %v13295_v8, %v18508_v15  ;;  %v13324_v4 = vcombine.low %v13302_v13, %v13309_v22  ;;  %v10721_v28 = vrot.slane %v23111_v10, %v22938_v21  ;;  %v10725_v45 = vrot.slane %v23111_v10, %v22939_v50 }
 0x49b   :  { %15040 = vperm.xlu1 %16405, %v13193_v9   ;;  %v10729_v16 = vrot.slane %v23111_v10, %v22940_v35  ;;  %v10733_v38 = vrot.slane %v23111_v10, %v22941_v0  ;;  %v13243_v18 = vcombine.low %v10705_v41, %v10709_v60  ;;  %v13244_v52 = vcombine.low %v10713_v32, %v10717_v34  ;;  %v23113_v60 = vld [vmem:[#allocation31_spill] sm:$0xff] }
 0x49c   :  { %v13325_v19 = vcombine.low %v13316_v55, %v13323_v61  ;;  %v13332_v46 = vrot.slane %v13324_v4, %v18508_v15  ;;  %v13245_v31 = vcombine.low %v10721_v28, %v10725_v45  ;;  %v23112_v29 = vrot.slane %v21343_v24, %v20939_v57 }
 0x49d   :  { %v13246_v43 = vcombine.low %v10729_v16, %v10733_v38  ;;  %v13253_v8 = vrot.slane %v13243_v18, %v18508_v15  ;;  %v13260_v13 = vrot.slane %v13244_v52, %v18508_v15  ;;  %v9323_v22 = vrot.slane %v9042_v42, %v21012_v53 }
 0x49e   :  { %v9319_v48 = vsel %vm9235_vm2, %v23112_v29, %v9314_v47  ;;  %v13339_v10 = vrot.slane %v13325_v19, %v18508_v15  ;;  %v13267_v41 = vrot.slane %v13245_v31, %v18508_v15  ;;  %v10801_v9 = vrot.slane %v23113_v60, %v22934_v7 }
 0x49f   :  { %v10805_v55 = vrot.slane %v23113_v60, %v22935_v59  ;;  %v13274_v24 = vrot.slane %v13246_v43, %v18508_v15  ;;  %v13275_v47 = vcombine.low %v13253_v8, %v13260_v13  ;;  %v9324_v32 = vsel %vm9242_vm3, %v9323_v22, %v9319_v48 }
 0x4a0   :  { %v10809_v34 = vrot.slane %v23113_v60, %v22936_v40  ;;  %v23114_v61 = vrot.slane %v21014_v36, %v21012_v53  ;;  %v13340_v28 = vcombine.low %v13332_v46, %v13339_v10  ;;  %v10813_v45 = vrot.slane %v23113_v60, %v22937_v23  ;;  %v23116_v10 = vld [vmem:[#allocation11_spill] sm:$0xff] }
 0x4a1   :  { %v10817_v42 = vrot.slane %v23113_v60, %v22938_v21  ;;  %v13276_v16 = vcombine.low %v13267_v41, %v13274_v24  ;;  %v13283_v38 = vrot.slane %v13275_v47, %v18508_v15  ;;  %v10821_v18 = vrot.slane %v23113_v60, %v22939_v50 }
 0x4a2   :  { %v9243_v4 = vsel %vm9242_vm3, %v23114_v61, %v21038_v11  ;;  %15049 = vperm.xlu0 %16404, %v13340_v28   ;;  %v10825_v52 = vrot.slane %v23113_v60, %v22940_v35  ;;  %v10829_v36 = vrot.slane %v23113_v60, %v22941_v0  ;;  %v13390_v11 = vcombine.low %v10801_v9, %v10805_v55  ;;  %v9051_v9 = vpop.permute.xlu1 %9050 }
 0x4a3   :  { %v13391_v19 = vcombine.low %v10809_v34, %v10813_v45  ;;  %v23115_v46 = vrot.slane %v20997_v33, %v21003_v54  ;;  %v13290_v29 = vrot.slane %v13276_v16, %v18508_v15  ;;  %v21475_v48 = vsel %vm9249_vm4, %v9328_v62, %v9324_v32 }
 0x4a4   :  { %v13392_v43 = vcombine.low %v10817_v42, %v10821_v18  ;;  %v13393_v8 = vcombine.low %v10825_v52, %v10829_v36  ;;  %v13400_v13 = vrot.slane %v13390_v11, %v18508_v15  ;;  %v10769_v41 = vrot.slane %v23116_v10, %v22934_v7  ;;  %v9048_v42 = vpop.permute.xlu0 %9047 }
 0x4a5   :  { %v21471_v31 = vsel %vm9249_vm4, %v23115_v46, %v9243_v4  ;;  %v13407_v22 = vrot.slane %v13391_v19, %v18508_v15  ;;  %v13291_v60 = vcombine.low %v13283_v38, %v13290_v29  ;;  %v10773_v55 = vrot.slane %v23116_v10, %v22935_v59 }
 0x4a6   :  { %v13414_v33 = vrot.slane %v13392_v43, %v18508_v15  ;;  %v10777_v62 = vrot.slane %v23116_v10, %v22936_v40  ;;  %v13421_v24 = vrot.slane %v13393_v8, %v18508_v15  ;;  %v10781_v32 = vrot.slane %v23116_v10, %v22937_v23 }
 0x4a7   :  { %v13422_v47 = vcombine.low %v13400_v13, %v13407_v22  ;;  %v10785_v34 = vrot.slane %v23116_v10, %v22938_v21  ;;  %15046 = vperm.xlu1 %16405, %v13291_v60   ;;  %v10789_v61 = vrot.slane %v23116_v10, %v22939_v50  ;;  %v10793_v4 = vrot.slane %v23116_v10, %v22940_v35 }
 0x4a8   :  { %v10797_v28 = vrot.slane %v23116_v10, %v22941_v0  ;;  %v13341_v45 = vcombine.low %v10769_v41, %v10773_v55  ;;  %v13423_v16 = vcombine.low %v13414_v33, %v13421_v24  ;;  %v9337_v18 = vrot.slane %v9051_v9, %v20644_v2 }
 0x4a9   :  { %v13430_v38 = vrot.slane %v13422_v47, %v18508_v15  ;;  %v13342_v52 = vcombine.low %v10777_v62, %v10781_v32  ;;  %v13343_v36 = vcombine.low %v10785_v34, %v10789_v61  ;;  %v10865_v46 = vrot.slane %v19971_v56, %v22934_v7 }
 0x4aa   :  { %v13344_v11 = vcombine.low %v10793_v4, %v10797_v28  ;;  %v13351_v19 = vrot.slane %v13341_v45, %v18508_v15  ;;  %v13437_v29 = vrot.slane %v13423_v16, %v18508_v15  ;;  %v9333_v8 = vrot.slane %v9048_v42, %v20588_v3 }
 0x4ab   :  { %v13358_v43 = vrot.slane %v13342_v52, %v18508_v15  ;;  %v10869_v13 = vrot.slane %v19971_v56, %v22935_v59  ;;  %v13365_v22 = vrot.slane %v13343_v36, %v18508_v15  ;;  %v10873_v41 = vrot.slane %v19971_v56, %v22936_v40 }
 0x4ac   :  { %v13372_v10 = vrot.slane %v13344_v11, %v18508_v15  ;;  %v10877_v60 = vrot.slane %v19971_v56, %v22937_v23  ;;  %v13438_v33 = vcombine.low %v13430_v38, %v13437_v29  ;;  %v10881_v55 = vrot.slane %v19971_v56, %v22938_v21  ;;  %v21529_v11 = vpop.permute.xlu1 %9056 }
 0x4ad   :  { %v13373_v9 = vcombine.low %v13351_v19, %v13358_v43  ;;  %v10885_v62 = vrot.slane %v19971_v56, %v22939_v50  ;;  %v10889_v47 = vrot.slane %v19971_v56, %v22940_v35  ;;  %v10893_v32 = vrot.slane %v19971_v56, %v22941_v0 }
 0x4ae   :  { %v13374_v24 = vcombine.low %v13365_v22, %v13372_v10  ;;  %v13488_v34 = vcombine.low %v10865_v46, %v10869_v13  ;;  %15055 = vperm.xlu0 %16404, %v13438_v33   ;;  %v9338_v4 = vsel %vm9151_vm5, %v9337_v18, %v9333_v8  ;;  %v13489_v28 = vcombine.low %v10873_v41, %v10877_v60  ;;  %v9054_v13 = vpop.permute.xlu0 %9053 }
 0x4af   :  { %v13381_v61 = vrot.slane %v13373_v9, %v18508_v15  ;;  %v13490_v45 = vcombine.low %v10881_v55, %v10885_v62  ;;  %v13491_v16 = vcombine.low %v10889_v47, %v10893_v32  ;;  %v10833_v52 = vrot.slane %v19963_v51, %v22934_v7 }
 0x4b0   :  { %v13388_v42 = vrot.slane %v13374_v24, %v18508_v15  ;;  %v13498_v38 = vrot.slane %v13488_v34, %v18508_v15  ;;  %v13505_v36 = vrot.slane %v13489_v28, %v18508_v15  ;;  %v10837_v19 = vrot.slane %v19963_v51, %v22935_v59 }
 0x4b1   :  { %v13512_v56 = vrot.slane %v13490_v45, %v18508_v15  ;;  %v10841_v18 = vrot.slane %v19963_v51, %v22936_v40  ;;  %v13519_v29 = vrot.slane %v13491_v16, %v18508_v15  ;;  %v10845_v43 = vrot.slane %v19963_v51, %v22937_v23 }
 0x4b2   :  { %v13389_v46 = vcombine.low %v13381_v61, %v13388_v42  ;;  %v10849_v8 = vrot.slane %v19963_v51, %v22938_v21  ;;  %v13520_v22 = vcombine.low %v13498_v38, %v13505_v36  ;;  %v10853_v10 = vrot.slane %v19963_v51, %v22939_v50 }
 0x4b3   :  { %v10857_v41 = vrot.slane %v19963_v51, %v22940_v35  ;;  %v10861_v60 = vrot.slane %v19963_v51, %v22941_v0  ;;  %v13521_v33 = vcombine.low %v13512_v56, %v13519_v29  ;;  %v9347_v9 = vrot.slane %v21529_v11, %v20652_v49 }
 0x4b4   :  { %15052 = vperm.xlu1 %16405, %v13389_v46   ;;  %v13439_v55 = vcombine.low %v10833_v52, %v10837_v19  ;;  %v13440_v62 = vcombine.low %v10841_v18, %v10845_v43  ;;  %v13528_v24 = vrot.slane %v13520_v22, %v18508_v15  ;;  %v13441_v47 = vcombine.low %v10849_v8, %v10853_v10 }
 0x4b5   :  { %v13442_v32 = vcombine.low %v10857_v41, %v10861_v60  ;;  %v9342_v34 = vrot.slane %v9054_v13, %v20610_v1  ;;  %v13535_v61 = vrot.slane %v13521_v33, %v18508_v15  ;;  %v10929_v51 = vrot.slane %v20041_v6, %v22934_v7 }
 0x4b6   :  { %v13449_v28 = vrot.slane %v13439_v55, %v18508_v15  ;;  %v13456_v45 = vrot.slane %v13440_v62, %v18508_v15  ;;  %v13463_v42 = vrot.slane %v13441_v47, %v18508_v15  ;;  %v10933_v38 = vrot.slane %v20041_v6, %v22935_v59  ;;  %v21574_v55 = vpop.permute.xlu1 %9062 }
 0x4b7   :  { %v13470_v16 = vrot.slane %v13442_v32, %v18508_v15  ;;  %v10937_v52 = vrot.slane %v20041_v6, %v22936_v40  ;;  %v13536_v36 = vcombine.low %v13528_v24, %v13535_v61  ;;  %v10941_v11 = vrot.slane %v20041_v6, %v22937_v23 }
 0x4b8   :  { %v13471_v56 = vcombine.low %v13449_v28, %v13456_v45  ;;  %v10945_v19 = vrot.slane %v20041_v6, %v22938_v21  ;;  %v10949_v46 = vrot.slane %v20041_v6, %v22939_v50  ;;  %v10953_v29 = vrot.slane %v20041_v6, %v22940_v35 }
 0x4b9   :  { %v13472_v18 = vcombine.low %v13463_v42, %v13470_v16  ;;  %v10957_v43 = vrot.slane %v20041_v6, %v22941_v0  ;;  %15061 = vperm.xlu0 %16404, %v13536_v36   ;;  %v9343_v13 = vsel %vm9158_vm7, %v9342_v34, %v9338_v4  ;;  %v13586_v22 = vcombine.low %v10929_v51, %v10933_v38 }
 0x4ba   :  { %v13479_v8 = vrot.slane %v13471_v56, %v18508_v15  ;;  %v13587_v10 = vcombine.low %v10937_v52, %v10941_v11  ;;  %v13588_v60 = vcombine.low %v10945_v19, %v10949_v46  ;;  %v10897_v62 = vrot.slane %v20029_v12, %v22934_v7  ;;  %v9060_v11 = vpop.permute.xlu0 %9059 }
 0x4bb   :  { %v13486_v41 = vrot.slane %v13472_v18, %v18508_v15  ;;  %v13589_v33 = vcombine.low %v10953_v29, %v10957_v43  ;;  %v13596_v24 = vrot.slane %v13586_v22, %v18508_v15  ;;  %v10901_v47 = vrot.slane %v20029_v12, %v22935_v59 }
 0x4bc   :  { %v13603_v6 = vrot.slane %v13587_v10, %v18508_v15  ;;  %v10905_v4 = vrot.slane %v20029_v12, %v22936_v40  ;;  %v13610_v34 = vrot.slane %v13588_v60, %v18508_v15  ;;  %v10909_v28 = vrot.slane %v20029_v12, %v22937_v23 }
 0x4bd   :  { %v13487_v32 = vcombine.low %v13479_v8, %v13486_v41  ;;  %v13617_v61 = vrot.slane %v13589_v33, %v18508_v15  ;;  %v10913_v51 = vrot.slane %v20029_v12, %v22938_v21  ;;  %v10917_v42 = vrot.slane %v20029_v12, %v22939_v50  ;;  %v21603_v41 = vpop.permute.xlu1 %9068 }
 0x4be   :  { %v13618_v45 = vcombine.low %v13596_v24, %v13603_v6  ;;  %v10921_v16 = vrot.slane %v20029_v12, %v22940_v35  ;;  %v10925_v52 = vrot.slane %v20029_v12, %v22941_v0  ;;  %v13537_v36 = vcombine.low %v10897_v62, %v10901_v47 }
 0x4bf   :  { %15058 = vperm.xlu1 %16405, %v13487_v32   ;;  %v13619_v38 = vcombine.low %v13610_v34, %v13617_v61  ;;  %v13538_v56 = vcombine.low %v10905_v4, %v10909_v28  ;;  %v9357_v18 = vrot.slane %v21574_v55, %v20718_v26  ;;  %v13539_v46 = vcombine.low %v10913_v51, %v10917_v42 }
 0x4c0   :  { %v13626_v19 = vrot.slane %v13618_v45, %v18508_v15  ;;  %v9348_v29 = vsel %vm9165_vm0, %v9347_v9, %v9343_v13  ;;  %v13540_v8 = vcombine.low %v10921_v16, %v10925_v52  ;;  %v13547_v22 = vrot.slane %v13537_v36, %v18508_v15 }
 0x4c1   :  { %v13633_v43 = vrot.slane %v13619_v38, %v18508_v15  ;;  %v13554_v10 = vrot.slane %v13538_v56, %v18508_v15  ;;  %v13561_v12 = vrot.slane %v13539_v46, %v18508_v15  ;;  %v9352_v60 = vrot.slane %v9060_v11, %v20705_v25  ;;  %v21632_v46 = vpop.permute.xlu1 %9074 }
 0x4c2   :  { %v10993_v33 = vrot.slane %v20111_v39, %v22934_v7  ;;  %v10997_v62 = vrot.slane %v20111_v39, %v22935_v59  ;;  %v13568_v13 = vrot.slane %v13540_v8, %v18508_v15  ;;  %v11001_v6 = vrot.slane %v20111_v39, %v22936_v40 }
 0x4c3   :  { %v13634_v9 = vcombine.low %v13626_v19, %v13633_v43  ;;  %v13569_v24 = vcombine.low %v13547_v22, %v13554_v10  ;;  %v11005_v47 = vrot.slane %v20111_v39, %v22937_v23  ;;  %v11009_v4 = vrot.slane %v20111_v39, %v22938_v21 }
 0x4c4   :  { %v11013_v32 = vrot.slane %v20111_v39, %v22939_v50  ;;  %v11017_v34 = vrot.slane %v20111_v39, %v22940_v35  ;;  %v13570_v61 = vcombine.low %v13561_v12, %v13568_v13  ;;  %v11021_v45 = vrot.slane %v20111_v39, %v22941_v0 }
 0x4c5   :  { %15067 = vperm.xlu0 %16404, %v13634_v9   ;;  %v13577_v28 = vrot.slane %v13569_v24, %v18508_v15  ;;  %v13684_v51 = vcombine.low %v10993_v33, %v10997_v62  ;;  %v9353_v42 = vsel %vm9172_vm8, %v9352_v60, %v9348_v29  ;;  %v13685_v16 = vcombine.low %v11001_v6, %v11005_v47  ;;  %v9066_v33 = vpop.permute.xlu0 %9065 }
 0x4c6   :  { %v13686_v38 = vcombine.low %v11009_v4, %v11013_v32  ;;  %v10961_v52 = vrot.slane %v20097_v5, %v22934_v7  ;;  %v13584_v36 = vrot.slane %v13570_v61, %v18508_v15  ;;  %v13687_v56 = vcombine.low %v11017_v34, %v11021_v45 }
 0x4c7   :  { %v13694_v11 = vrot.slane %v13684_v51, %v18508_v15  ;;  %v10965_v19 = vrot.slane %v20097_v5, %v22935_v59  ;;  %v13701_v39 = vrot.slane %v13685_v16, %v18508_v15  ;;  %v10969_v29 = vrot.slane %v20097_v5, %v22936_v40 }
 0x4c8   :  { %v13708_v43 = vrot.slane %v13686_v38, %v18508_v15  ;;  %v10973_v8 = vrot.slane %v20097_v5, %v22937_v23  ;;  %v13585_v22 = vcombine.low %v13577_v28, %v13584_v36  ;;  %v13715_v10 = vrot.slane %v13687_v56, %v18508_v15 }
 0x4c9   :  { %v10977_v12 = vrot.slane %v20097_v5, %v22938_v21  ;;  %v10981_v60 = vrot.slane %v20097_v5, %v22939_v50  ;;  %v13716_v62 = vcombine.low %v13694_v11, %v13701_v39  ;;  %v10985_v9 = vrot.slane %v20097_v5, %v22940_v35 }
 0x4ca   :  { %v10989_v13 = vrot.slane %v20097_v5, %v22941_v0  ;;  %v13635_v24 = vcombine.low %v10961_v52, %v10965_v19  ;;  %15064 = vperm.xlu1 %16405, %v13585_v22   ;;  %v13717_v6 = vcombine.low %v13708_v43, %v13715_v10  ;;  %v9367_v47 = vrot.slane %v21603_v41, %v20756_v14  ;;  %v21659_v52 = vpop.permute.xlu1 %9080 }
 0x4cb   :  { %v13636_v4 = vcombine.low %v10969_v29, %v10973_v8  ;;  %v13637_v32 = vcombine.low %v10977_v12, %v10981_v60  ;;  %v13724_v34 = vrot.slane %v13716_v62, %v18508_v15  ;;  %v9362_v45 = vrot.slane %v9066_v33, %v20769_v58 }
 0x4cc   :  { %v13638_v61 = vcombine.low %v10985_v9, %v10989_v13  ;;  %v13645_v28 = vrot.slane %v13635_v24, %v18508_v15  ;;  %v13731_v51 = vrot.slane %v13717_v6, %v18508_v15  ;;  %v11057_v38 = vrot.slane %v20176_v37, %v22934_v7 }
 0x4cd   :  { %v13652_v16 = vrot.slane %v13636_v4, %v18508_v15  ;;  %v13659_v5 = vrot.slane %v13637_v32, %v18508_v15  ;;  %v9358_v36 = vsel %vm9179_vm9, %v9357_v18, %v9353_v42  ;;  %v11061_v56 = vrot.slane %v20176_v37, %v22935_v59 }
 0x4ce   :  { %v13666_v41 = vrot.slane %v13638_v61, %v18508_v15  ;;  %v11065_v11 = vrot.slane %v20176_v37, %v22936_v40  ;;  %v13732_v19 = vcombine.low %v13724_v34, %v13731_v51  ;;  %v11069_v43 = vrot.slane %v20176_v37, %v22937_v23  ;;  %v21691_v32 = vpop.permute.xlu1 %9086  ;;  %v9072_v51 = vpop.permute.xlu0 %9071 }
 0x4cf   :  { %v13667_v39 = vcombine.low %v13645_v28, %v13652_v16  ;;  %v11073_v29 = vrot.slane %v20176_v37, %v22938_v21  ;;  %v11077_v55 = vrot.slane %v20176_v37, %v22939_v50  ;;  %v11081_v18 = vrot.slane %v20176_v37, %v22940_v35 }
 0x4d0   :  { %v13668_v8 = vcombine.low %v13659_v5, %v13666_v41  ;;  %v11085_v42 = vrot.slane %v20176_v37, %v22941_v0  ;;  %15073 = vperm.xlu0 %16404, %v13732_v19   ;;  %v9363_v10 = vsel %vm9186_vm10, %v9362_v45, %v9358_v36  ;;  %v13782_v12 = vcombine.low %v11057_v38, %v11061_v56 }
 0x4d1   :  { %v13675_v22 = vrot.slane %v13667_v39, %v18508_v15  ;;  %v13783_v60 = vcombine.low %v11065_v11, %v11069_v43  ;;  %v13784_v62 = vcombine.low %v11073_v29, %v11077_v55  ;;  %v11025_v13 = vrot.slane %v20168_v63, %v22934_v7 }
 0x4d2   :  { %v13682_v33 = vrot.slane %v13668_v8, %v18508_v15  ;;  %v13785_v9 = vcombine.low %v11081_v18, %v11085_v42  ;;  %v13792_v24 = vrot.slane %v13782_v12, %v18508_v15  ;;  %v11029_v37 = vrot.slane %v20168_v63, %v22935_v59 }
 0x4d3   :  { %v13799_v6 = vrot.slane %v13783_v60, %v18508_v15  ;;  %v11033_v4 = vrot.slane %v20168_v63, %v22936_v40  ;;  %v13806_v61 = vrot.slane %v13784_v62, %v18508_v15  ;;  %v11037_v45 = vrot.slane %v20168_v63, %v22937_v23  ;;  %v23117_v60 = vld [vmem:[#allocation39_spill] sm:$0xff] }
 0x4d4   :  { %v13683_v34 = vcombine.low %v13675_v22, %v13682_v33  ;;  %v13813_v28 = vrot.slane %v13785_v9, %v18508_v15  ;;  %v11041_v5 = vrot.slane %v20168_v63, %v22938_v21  ;;  %v11045_v38 = vrot.slane %v20168_v63, %v22939_v50  ;;  %v21718_v9 = vpop.permute.xlu1 %9092 }
 0x4d5   :  { %v13814_v16 = vcombine.low %v13792_v24, %v13799_v6  ;;  %v11049_v41 = vrot.slane %v20168_v63, %v22940_v35  ;;  %v11053_v56 = vrot.slane %v20168_v63, %v22941_v0  ;;  %v13733_v11 = vcombine.low %v11025_v13, %v11029_v37  ;;  %v21723_v6 = vpop.permute.xlu0 %9077 }
 0x4d6   :  { %15070 = vperm.xlu1 %16405, %v13683_v34   ;;  %v13815_v36 = vcombine.low %v13806_v61, %v13813_v28  ;;  %v13734_v19 = vcombine.low %v11033_v4, %v11037_v45  ;;  %v9377_v43 = vrot.slane %v21632_v46, %v20815_v30  ;;  %v13735_v29 = vcombine.low %v11041_v5, %v11045_v38 }
 0x4d7   :  { %v13822_v39 = vrot.slane %v13814_v16, %v18508_v15  ;;  %v9368_v8 = vsel %vm9193_vm11, %v9367_v47, %v9363_v10  ;;  %v13736_v18 = vcombine.low %v11049_v41, %v11053_v56  ;;  %v13743_v42 = vrot.slane %v13733_v11, %v18508_v15 }
 0x4d8   :  { %v13829_v55 = vrot.slane %v13815_v36, %v18508_v15  ;;  %v13750_v22 = vrot.slane %v13734_v19, %v18508_v15  ;;  %v13757_v12 = vrot.slane %v13735_v29, %v18508_v15  ;;  %v9372_v63 = vrot.slane %v9072_v51, %v20828_v44  ;;  %v23118_v36 = vld [vmem:[#allocation33_spill] sm:$0xff] }
 0x4d9   :  { %v11313_v33 = vrot.slane %v23117_v60, %v22934_v7  ;;  %v11317_v62 = vrot.slane %v23117_v60, %v22935_v59  ;;  %v13764_v10 = vrot.slane %v13736_v18, %v18508_v15  ;;  %v11321_v24 = vrot.slane %v23117_v60, %v22936_v40 }
 0x4da   :  { %v13830_v47 = vcombine.low %v13822_v39, %v13829_v55  ;;  %v13765_v13 = vcombine.low %v13743_v42, %v13750_v22  ;;  %v11325_v37 = vrot.slane %v23117_v60, %v22937_v23  ;;  %v11329_v4 = vrot.slane %v23117_v60, %v22938_v21  ;;  %v21749_v22 = vpop.permute.xlu1 %9098 }
 0x4db   :  { %v11333_v34 = vrot.slane %v23117_v60, %v22939_v50  ;;  %v11337_v61 = vrot.slane %v23117_v60, %v22940_v35  ;;  %v13766_v28 = vcombine.low %v13757_v12, %v13764_v10  ;;  %v11341_v51 = vrot.slane %v23117_v60, %v22941_v0 }
 0x4dc   :  { %15079 = vperm.xlu0 %16404, %v13830_v47   ;;  %v13773_v45 = vrot.slane %v13765_v13, %v18508_v15  ;;  %v14174_v16 = vcombine.low %v11313_v33, %v11317_v62  ;;  %v9373_v5 = vsel %vm9200_vm12, %v9372_v63, %v9368_v8  ;;  %v14175_v38 = vcombine.low %v11321_v24, %v11325_v37  ;;  %v21756_v62 = vpop.permute.xlu0 %9083 }
 0x4dd   :  { %v14176_v41 = vcombine.low %v11329_v4, %v11333_v34  ;;  %v11089_v56 = vrot.slane %v23118_v36, %v22934_v7  ;;  %v13780_v11 = vrot.slane %v13766_v28, %v18508_v15  ;;  %v14177_v19 = vcombine.low %v11337_v61, %v11341_v51 }
 0x4de   :  { %v14184_v39 = vrot.slane %v14174_v16, %v18508_v15  ;;  %v11093_v29 = vrot.slane %v23118_v36, %v22935_v59  ;;  %v14191_v55 = vrot.slane %v14175_v38, %v18508_v15  ;;  %v11097_v8 = vrot.slane %v23118_v36, %v22936_v40 }
 0x4df   :  { %v14198_v18 = vrot.slane %v14176_v41, %v18508_v15  ;;  %v11101_v42 = vrot.slane %v23118_v36, %v22937_v23  ;;  %v13781_v12 = vcombine.low %v13773_v45, %v13780_v11  ;;  %v14205_v63 = vrot.slane %v14177_v19, %v18508_v15 }
 0x4e0   :  { %v11105_v60 = vrot.slane %v23118_v36, %v22938_v21  ;;  %v11109_v33 = vrot.slane %v23118_v36, %v22939_v50  ;;  %v14206_v47 = vcombine.low %v14184_v39, %v14191_v55  ;;  %v11113_v10 = vrot.slane %v23118_v36, %v22940_v35  ;;  %v21782_v55 = vpop.permute.xlu1 %9104 }
 0x4e1   :  { %v11117_v13 = vrot.slane %v23118_v36, %v22941_v0  ;;  %v13831_v24 = vcombine.low %v11089_v56, %v11093_v29  ;;  %15076 = vperm.xlu1 %16405, %v13781_v12   ;;  %v14207_v37 = vcombine.low %v14198_v18, %v14205_v63  ;;  %v9387_v4 = vrot.slane %v21659_v52, %v20877_v20  ;;  %v23119_v56 = vld [vmem:[#allocation42_spill] sm:$0xff]  ;;  %v21788_v63 = vpop.permute.xlu0 %9089 }
 0x4e2   :  { %v13832_v34 = vcombine.low %v11097_v8, %v11101_v42  ;;  %v13833_v61 = vcombine.low %v11105_v60, %v11109_v33  ;;  %v14214_v28 = vrot.slane %v14206_v47, %v18508_v15  ;;  %v9382_v16 = vrot.slane %v21723_v6, %v20890_v27 }
 0x4e3   :  { %v13834_v45 = vcombine.low %v11113_v10, %v11117_v13  ;;  %v13841_v51 = vrot.slane %v13831_v24, %v18508_v15  ;;  %v14221_v38 = vrot.slane %v14207_v37, %v18508_v15  ;;  %v11377_v11 = vrot.slane %v23119_v56, %v22934_v7 }
 0x4e4   :  { %v13848_v41 = vrot.slane %v13832_v34, %v18508_v15  ;;  %v13855_v36 = vrot.slane %v13833_v61, %v18508_v15  ;;  %v9378_v39 = vsel %vm9207_vm13, %v9377_v43, %v9373_v5  ;;  %v11381_v29 = vrot.slane %v23119_v56, %v22935_v59  ;;  %v23120_v61 = vld [vmem:[#allocation43_spill] sm:$0xff] }
 0x4e5   :  { %v13862_v19 = vrot.slane %v13834_v45, %v18508_v15  ;;  %v11385_v6 = vrot.slane %v23119_v56, %v22936_v40  ;;  %v14222_v18 = vcombine.low %v14214_v28, %v14221_v38  ;;  %v11389_v42 = vrot.slane %v23119_v56, %v22937_v23 }
 0x4e6   :  { %v13863_v8 = vcombine.low %v13841_v51, %v13848_v41  ;;  %v11393_v12 = vrot.slane %v23119_v56, %v22938_v21  ;;  %v11397_v43 = vrot.slane %v23119_v56, %v22939_v50  ;;  %v11401_v5 = vrot.slane %v23119_v56, %v22940_v35 }
 0x4e7   :  { %v13864_v46 = vcombine.low %v13855_v36, %v13862_v19  ;;  %v11405_v60 = vrot.slane %v23119_v56, %v22941_v0  ;;  %15103 = vperm.xlu0 %16404, %v14222_v18   ;;  %v9383_v47 = vsel %vm9214_vm14, %v9382_v16, %v9378_v39  ;;  %v14272_v10 = vcombine.low %v11377_v11, %v11381_v29  ;;  %v21811_v19 = vpop.permute.xlu1 %9110 }
 0x4e8   :  { %v13871_v33 = vrot.slane %v13863_v8, %v18508_v15  ;;  %v14273_v13 = vcombine.low %v11385_v6, %v11389_v42  ;;  %v14274_v37 = vcombine.low %v11393_v12, %v11397_v43  ;;  %v11345_v28 = vrot.slane %v23120_v61, %v22934_v7  ;;  %v21819_v8 = vpop.permute.xlu0 %9095 }
 0x4e9   :  { %v13878_v24 = vrot.slane %v13864_v46, %v18508_v15  ;;  %v14275_v34 = vcombine.low %v11401_v5, %v11405_v60  ;;  %v14282_v45 = vrot.slane %v14272_v10, %v18508_v15  ;;  %v11349_v38 = vrot.slane %v23120_v61, %v22935_v59 }
 0x4ea   :  { %v14289_v51 = vrot.slane %v14273_v13, %v18508_v15  ;;  %v11353_v41 = vrot.slane %v23120_v61, %v22936_v40  ;;  %v14296_v36 = vrot.slane %v14274_v37, %v18508_v15  ;;  %v11357_v11 = vrot.slane %v23120_v61, %v22937_v23 }
 0x4eb   :  { %v13879_v16 = vcombine.low %v13871_v33, %v13878_v24  ;;  %v14303_v56 = vrot.slane %v14275_v34, %v18508_v15  ;;  %v11361_v29 = vrot.slane %v23120_v61, %v22938_v21  ;;  %v11365_v6 = vrot.slane %v23120_v61, %v22939_v50 }
 0x4ec   :  { %v14304_v39 = vcombine.low %v14282_v45, %v14289_v51  ;;  %v11369_v18 = vrot.slane %v23120_v61, %v22940_v35  ;;  %v11373_v12 = vrot.slane %v23120_v61, %v22941_v0  ;;  %v14223_v46 = vcombine.low %v11345_v28, %v11349_v38  ;;  %v23121_v45 = vld [vmem:[#allocation44_spill] sm:$0xff] }
 0x4ed   :  { %15082 = vperm.xlu1 %16405, %v13879_v16   ;;  %v14305_v42 = vcombine.low %v14296_v36, %v14303_v56  ;;  %v14224_v43 = vcombine.low %v11353_v41, %v11357_v11  ;;  %v9397_v33 = vrot.slane %v21691_v32, %v20939_v57  ;;  %v14225_v10 = vcombine.low %v11361_v29, %v11365_v6  ;;  %v21843_v11 = vpop.permute.xlu1 %9116  ;;  %v21853_v29 = vpop.permute.xlu0 %9101 }
 0x4ee   :  { %v14312_v60 = vrot.slane %v14304_v39, %v18508_v15  ;;  %v14226_v24 = vcombine.low %v11369_v18, %v11373_v12  ;;  %v14233_v37 = vrot.slane %v14223_v46, %v18508_v15  ;;  %v9388_v28 = vsel %vm9221_vm15, %v9387_v4, %v9383_v47 }
 0x4ef   :  { %v14319_v13 = vrot.slane %v14305_v42, %v18508_v15  ;;  %v14240_v34 = vrot.slane %v14224_v43, %v18508_v15  ;;  %v14247_v61 = vrot.slane %v14225_v10, %v18508_v15  ;;  %v11441_v51 = vrot.slane %v23121_v45, %v22934_v7  ;;  %v23122_v10 = vld [vmem:[#allocation45_spill] sm:$0xff] }
 0x4f0   :  { %v11445_v38 = vrot.slane %v23121_v45, %v22935_v59  ;;  %v14254_v16 = vrot.slane %v14226_v24, %v18508_v15  ;;  %v11449_v56 = vrot.slane %v23121_v45, %v22936_v40  ;;  %v11453_v52 = vrot.slane %v23121_v45, %v22937_v23 }
 0x4f1   :  { %v14320_v41 = vcombine.low %v14312_v60, %v14319_v13  ;;  %v14255_v36 = vcombine.low %v14233_v37, %v14240_v34  ;;  %v11457_v4 = vrot.slane %v23121_v45, %v22938_v21  ;;  %v11461_v47 = vrot.slane %v23121_v45, %v22939_v50 }
 0x4f2   :  { %v11465_v39 = vrot.slane %v23121_v45, %v22940_v35  ;;  %v14256_v6 = vcombine.low %v14247_v61, %v14254_v16  ;;  %v11469_v42 = vrot.slane %v23121_v45, %v22941_v0  ;;  %v14370_v12 = vcombine.low %v11441_v51, %v11445_v38 }
 0x4f3   :  { %15109 = vperm.xlu0 %16404, %v14320_v41   ;;  %v14263_v18 = vrot.slane %v14255_v36, %v18508_v15  ;;  %v9392_v46 = vrot.slane %v21756_v62, %v20952_v17  ;;  %v14371_v43 = vcombine.low %v11449_v56, %v11453_v52  ;;  %v14372_v60 = vcombine.low %v11457_v4, %v11461_v47  ;;  %v21877_v52 = vpop.permute.xlu1 %9122 }
 0x4f4   :  { %v11409_v13 = vrot.slane %v23122_v10, %v22934_v7  ;;  %v14270_v24 = vrot.slane %v14256_v6, %v18508_v15  ;;  %v14373_v37 = vcombine.low %v11465_v39, %v11469_v42  ;;  %v14380_v34 = vrot.slane %v14370_v12, %v18508_v15  ;;  %v21883_v42 = vpop.permute.xlu0 %9107 }
 0x4f5   :  { %v11413_v61 = vrot.slane %v23122_v10, %v22935_v59  ;;  %v14387_v41 = vrot.slane %v14371_v43, %v18508_v15  ;;  %v14394_v45 = vrot.slane %v14372_v60, %v18508_v15  ;;  %v11417_v62 = vrot.slane %v23122_v10, %v22936_v40 }
 0x4f6   :  { %v11421_v51 = vrot.slane %v23122_v10, %v22937_v23  ;;  %v14271_v38 = vcombine.low %v14263_v18, %v14270_v24  ;;  %v14401_v16 = vrot.slane %v14373_v37, %v18508_v15  ;;  %v11425_v36 = vrot.slane %v23122_v10, %v22938_v21 }
 0x4f7   :  { %v11429_v56 = vrot.slane %v23122_v10, %v22939_v50  ;;  %v14402_v4 = vcombine.low %v14380_v34, %v14387_v41  ;;  %v11433_v47 = vrot.slane %v23122_v10, %v22940_v35  ;;  %v11437_v39 = vrot.slane %v23122_v10, %v22941_v0 }
 0x4f8   :  { %v14321_v6 = vcombine.low %v11409_v13, %v11413_v61  ;;  %15106 = vperm.xlu1 %16405, %v14271_v38   ;;  %v9393_v18 = vsel %vm9228_vm1, %v9392_v46, %v9388_v28  ;;  %v14403_v12 = vcombine.low %v14394_v45, %v14401_v16  ;;  %v14322_v43 = vcombine.low %v11417_v62, %v11421_v51  ;;  %v23123_v61 = vld [vmem:[#allocation46_spill] sm:$0xff] }
 0x4f9   :  { %v14323_v60 = vcombine.low %v11425_v36, %v11429_v56  ;;  %v14410_v24 = vrot.slane %v14402_v4, %v18508_v15  ;;  %v14324_v34 = vcombine.low %v11433_v47, %v11437_v39  ;;  %v11505_v28 = vrot.slane %v23123_v61, %v22934_v7  ;;  %v21908_v4 = vpop.permute.xlu1 %9128 }
 0x4fa   :  { %v14331_v41 = vrot.slane %v14321_v6, %v18508_v15  ;;  %v14417_v5 = vrot.slane %v14403_v12, %v18508_v15  ;;  %v14338_v10 = vrot.slane %v14322_v43, %v18508_v15  ;;  %v9402_v45 = vrot.slane %v21788_v63, %v21012_v53  ;;  %v21916_v6 = vpop.permute.xlu0 %9113 }
 0x4fb   :  { %v14345_v13 = vrot.slane %v14323_v60, %v18508_v15  ;;  %v14352_v46 = vrot.slane %v14324_v34, %v18508_v15  ;;  %v11509_v62 = vrot.slane %v23123_v61, %v22935_v59  ;;  %v11513_v51 = vrot.slane %v23123_v61, %v22936_v40  ;;  %v23124_v34 = vld [vmem:[#allocation66_spill] sm:$0xff] }
 0x4fc   :  { %v14418_v38 = vcombine.low %v14410_v24, %v14417_v5  ;;  %v14353_v16 = vcombine.low %v14331_v41, %v14338_v10  ;;  %v9398_v36 = vsel %vm9235_vm2, %v9397_v33, %v9393_v18  ;;  %v11517_v56 = vrot.slane %v23123_v61, %v22937_v23 }
 0x4fd   :  { %v14354_v47 = vcombine.low %v14345_v13, %v14352_v46  ;;  %v11521_v63 = vrot.slane %v23123_v61, %v22938_v21  ;;  %v11525_v39 = vrot.slane %v23123_v61, %v22939_v50  ;;  %v11529_v5 = vrot.slane %v23123_v61, %v22940_v35 }
 0x4fe   :  { %15115 = vperm.xlu0 %16404, %v14418_v38   ;;  %v14361_v32 = vrot.slane %v14353_v16, %v18508_v15  ;;  %v11533_v33 = vrot.slane %v23123_v61, %v22941_v0  ;;  %v14468_v18 = vcombine.low %v11505_v28, %v11509_v62  ;;  %v14469_v12 = vcombine.low %v11513_v51, %v11517_v56 }
 0x4ff   :  { %v14368_v43 = vrot.slane %v14354_v47, %v18508_v15  ;;  %v21923_v60 = vsel %vm9242_vm3, %v9402_v45, %v9398_v36  ;;  %v14470_v24 = vcombine.low %v11521_v63, %v11525_v39  ;;  %v11473_v41 = vrot.slane %v23124_v34, %v22934_v7  ;;  %v21941_v47 = vpop.permute.xlu1 %9134 }
 0x500   :  { %v14471_v10 = vcombine.low %v11529_v5, %v11533_v33  ;;  %v14478_v13 = vrot.slane %v14468_v18, %v18508_v15  ;;  %v14485_v46 = vrot.slane %v14469_v12, %v18508_v15  ;;  %v11477_v38 = vrot.slane %v23124_v34, %v22935_v59  ;;  %v21947_v33 = vpop.permute.xlu0 %9119 }
 0x501   :  { %v14369_v61 = vcombine.low %v14361_v32, %v14368_v43  ;;  %v14492_v28 = vrot.slane %v14470_v24, %v18508_v15  ;;  %v11481_v62 = vrot.slane %v23124_v34, %v22936_v40  ;;  %v11485_v45 = vrot.slane %v23124_v34, %v22937_v23 }
 0x502   :  { %v14499_v51 = vrot.slane %v14471_v10, %v18508_v15  ;;  %v14500_v16 = vcombine.low %v14478_v13, %v14485_v46  ;;  %v11489_v36 = vrot.slane %v23124_v34, %v22938_v21  ;;  %v11493_v56 = vrot.slane %v23124_v34, %v22939_v50 }
 0x503   :  { %15112 = vperm.xlu1 %16405, %v14369_v61   ;;  %v11497_v63 = vrot.slane %v23124_v34, %v22940_v35  ;;  %v11501_v39 = vrot.slane %v23124_v34, %v22941_v0  ;;  %v14419_v5 = vcombine.low %v11473_v41, %v11477_v38  ;;  %v14420_v32 = vcombine.low %v11481_v62, %v11485_v45  ;;  %v23125_v61 = vld [vmem:[#allocation65_spill] sm:$0xff] }
 0x504   :  { %v14501_v18 = vcombine.low %v14492_v28, %v14499_v51  ;;  %v14508_v12 = vrot.slane %v14500_v16, %v18508_v15  ;;  %v9416_v43 = vrot.slane %v21749_v22, %v20644_v2  ;;  %v14421_v24 = vcombine.low %v11489_v36, %v11493_v56 }
 0x505   :  { %v14422_v10 = vcombine.low %v11497_v63, %v11501_v39  ;;  %v14429_v13 = vrot.slane %v14419_v5, %v18508_v15  ;;  %v14436_v46 = vrot.slane %v14420_v32, %v18508_v15  ;;  %v11569_v37 = vrot.slane %v23125_v61, %v22934_v7  ;;  %v21973_v63 = vpop.permute.xlu1 %9140 }
 0x506   :  { %v14515_v34 = vrot.slane %v14501_v18, %v18508_v15  ;;  %v14443_v41 = vrot.slane %v14421_v24, %v18508_v15  ;;  %v9412_v38 = vrot.slane %v21819_v8, %v20588_v3  ;;  %v11573_v28 = vrot.slane %v23125_v61, %v22935_v59  ;;  %v21978_v24 = vpop.permute.xlu0 %9125 }
 0x507   :  { %v14450_v22 = vrot.slane %v14422_v10, %v18508_v15  ;;  %v14451_v62 = vcombine.low %v14429_v13, %v14436_v46  ;;  %v11577_v45 = vrot.slane %v23125_v61, %v22936_v40  ;;  %v11581_v51 = vrot.slane %v23125_v61, %v22937_v23  ;;  %v23126_v46 = vld [vmem:[#allocation4_spill] sm:$0xff] }
 0x508   :  { %v14516_v16 = vcombine.low %v14508_v12, %v14515_v34  ;;  %v11585_v36 = vrot.slane %v23125_v61, %v22938_v21  ;;  %v11589_v56 = vrot.slane %v23125_v61, %v22939_v50  ;;  %v11593_v8 = vrot.slane %v23125_v61, %v22940_v35 }
 0x509   :  { %v14452_v39 = vcombine.low %v14443_v41, %v14450_v22  ;;  %v14459_v5 = vrot.slane %v14451_v62, %v18508_v15  ;;  %v11597_v32 = vrot.slane %v23125_v61, %v22941_v0  ;;  %v14566_v18 = vcombine.low %v11569_v37, %v11573_v28 }
 0x50a   :  { %15121 = vperm.xlu0 %16404, %v14516_v16   ;;  %v9417_v12 = vsel %vm9151_vm5, %v9416_v43, %v9412_v38  ;;  %v14567_v10 = vcombine.low %v11577_v45, %v11581_v51  ;;  %v14568_v13 = vcombine.low %v11585_v36, %v11589_v56  ;;  %v11537_v34 = vrot.slane %v23126_v46, %v22934_v7 }
 0x50b   :  { %v14466_v2 = vrot.slane %v14452_v39, %v18508_v15  ;;  %v14569_v3 = vcombine.low %v11593_v8, %v11597_v32  ;;  %v14576_v41 = vrot.slane %v14566_v18, %v18508_v15  ;;  %v11541_v22 = vrot.slane %v23126_v46, %v22935_v59  ;;  %v22002_v39 = vpop.permute.xlu1 %14959  ;;  %v22006_v18 = vpop.permute.xlu0 %9131 }
 0x50c   :  { %v14583_v37 = vrot.slane %v14567_v10, %v18508_v15  ;;  %v14590_v61 = vrot.slane %v14568_v13, %v18508_v15  ;;  %v11545_v43 = vrot.slane %v23126_v46, %v22936_v40  ;;  %v11549_v38 = vrot.slane %v23126_v46, %v22937_v23  ;;  %23127 = vst [vmem:[#allocation27_spill] sm:$0xff] %v22002_v39  ;;  %v23130_v39 = vld [vmem:[#allocation51_spill] sm:$0xff] }
 0x50d   :  { %v14467_v28 = vcombine.low %v14459_v5, %v14466_v2  ;;  %v14597_v62 = vrot.slane %v14569_v3, %v18508_v15  ;;  %v11553_v45 = vrot.slane %v23126_v46, %v22938_v21  ;;  %v11557_v51 = vrot.slane %v23126_v46, %v22939_v50 }
 0x50e   :  { %v14598_v16 = vcombine.low %v14576_v41, %v14583_v37  ;;  %v11561_v36 = vrot.slane %v23126_v46, %v22940_v35  ;;  %v11565_v56 = vrot.slane %v23126_v46, %v22941_v0  ;;  %v14517_v8 = vcombine.low %v11537_v34, %v11541_v22  ;;  %v23128_v37 = vld [vmem:[#allocation36_spill] sm:$0xff] }
 0x50f   :  { %15118 = vperm.xlu1 %16405, %v14467_v28   ;;  %v14599_v2 = vcombine.low %v14590_v61, %v14597_v62  ;;  %v9426_v3 = vrot.slane %v21782_v55, %v20652_v49  ;;  %v14518_v5 = vcombine.low %v11545_v43, %v11549_v38  ;;  %v14519_v32 = vcombine.low %v11553_v45, %v11557_v51 }
 0x510   :  { %v14606_v10 = vrot.slane %v14598_v16, %v18508_v15  ;;  %v14520_v13 = vcombine.low %v11561_v36, %v11565_v56  ;;  %v14527_v41 = vrot.slane %v14517_v8, %v18508_v15  ;;  %v11121_v46 = vrot.slane %v23128_v37, %v22934_v7 }
 0x511   :  { %v14613_v34 = vrot.slane %v14599_v2, %v18508_v15  ;;  %v14534_v22 = vrot.slane %v14518_v5, %v18508_v15  ;;  %v14541_v61 = vrot.slane %v14519_v32, %v18508_v15  ;;  %v9421_v55 = vrot.slane %v21853_v29, %v20610_v1  ;;  %v22032_v5 = vpop.permute.xlu1 %14965 }
 0x512   :  { %v14548_v43 = vrot.slane %v14520_v13, %v18508_v15  ;;  %v11125_v38 = vrot.slane %v23128_v37, %v22935_v59  ;;  %v11129_v28 = vrot.slane %v23128_v37, %v22936_v40  ;;  %v11133_v62 = vrot.slane %v23128_v37, %v22937_v23  ;;  %23129 = vst [vmem:[#allocation64_spill] sm:$0xff] %v22032_v5 }
 0x513   :  { %v14614_v45 = vcombine.low %v14606_v10, %v14613_v34  ;;  %v14549_v51 = vcombine.low %v14527_v41, %v14534_v22  ;;  %v11137_v16 = vrot.slane %v23128_v37, %v22938_v21  ;;  %v11141_v36 = vrot.slane %v23128_v37, %v22939_v50  ;;  %v22036_v34 = vpop.permute.xlu0 %9137 }
 0x514   :  { %v14550_v29 = vcombine.low %v14541_v61, %v14548_v43  ;;  %v11145_v56 = vrot.slane %v23128_v37, %v22940_v35  ;;  %v11149_v8 = vrot.slane %v23128_v37, %v22941_v0  ;;  %v13880_v2 = vcombine.low %v11121_v46, %v11125_v38 }
 0x515   :  { %15127 = vperm.xlu0 %16404, %v14614_v45   ;;  %v14557_v32 = vrot.slane %v14549_v51, %v18508_v15  ;;  %v9422_v10 = vsel %vm9158_vm7, %v9421_v55, %v9417_v12  ;;  %v13881_v13 = vcombine.low %v11129_v28, %v11133_v62  ;;  %v13882_v41 = vcombine.low %v11137_v16, %v11141_v36 }
 0x516   :  { %v14564_v22 = vrot.slane %v14550_v29, %v18508_v15  ;;  %v13883_v61 = vcombine.low %v11145_v56, %v11149_v8  ;;  %v13890_v43 = vrot.slane %v13880_v2, %v18508_v15  ;;  %v11601_v37 = vrot.slane %v23130_v39, %v22934_v7 }
 0x517   :  { %v13897_v46 = vrot.slane %v13881_v13, %v18508_v15  ;;  %v13904_v38 = vrot.slane %v13882_v41, %v18508_v15  ;;  %v11605_v45 = vrot.slane %v23130_v39, %v22935_v59  ;;  %v11609_v12 = vrot.slane %v23130_v39, %v22936_v40  ;;  %v22061_v41 = vpop.permute.xlu1 %14968  ;;  %v22065_v5 = vpop.permute.xlu0 %14962 }
 0x518   :  { %v14565_v55 = vcombine.low %v14557_v32, %v14564_v22  ;;  %v13911_v28 = vrot.slane %v13883_v61, %v18508_v15  ;;  %v11613_v62 = vrot.slane %v23130_v39, %v22937_v23  ;;  %v11617_v51 = vrot.slane %v23130_v39, %v22938_v21 }
 0x519   :  { %v13912_v16 = vcombine.low %v13890_v43, %v13897_v46  ;;  %v11621_v36 = vrot.slane %v23130_v39, %v22939_v50  ;;  %v11625_v29 = vrot.slane %v23130_v39, %v22940_v35  ;;  %v11629_v56 = vrot.slane %v23130_v39, %v22941_v0 }
 0x51a   :  { %15124 = vperm.xlu1 %16405, %v14565_v55   ;;  %v13913_v8 = vcombine.low %v13904_v38, %v13911_v28  ;;  %v14615_v32 = vcombine.low %v11601_v37, %v11605_v45  ;;  %v14616_v13 = vcombine.low %v11609_v12, %v11613_v62  ;;  %v9427_v46 = vsel %vm9165_vm0, %v9426_v3, %v9422_v10  ;;  %v23131_v55 = vld [vmem:[#allocation35_spill] sm:$0xff] }
 0x51b   :  { %v13920_v22 = vrot.slane %v13912_v16, %v18508_v15  ;;  %v14617_v61 = vcombine.low %v11617_v51, %v11621_v36  ;;  %v14618_v43 = vcombine.low %v11625_v29, %v11629_v56  ;;  %v11153_v37 = vrot.slane %v23131_v55, %v22934_v7 }
 0x51c   :  { %v13927_v49 = vrot.slane %v13913_v8, %v18508_v15  ;;  %v14625_v39 = vrot.slane %v14615_v32, %v18508_v15  ;;  %v14632_v38 = vrot.slane %v14616_v13, %v18508_v15  ;;  %v9431_v28 = vrot.slane %v21883_v42, %v20705_v25 }
 0x51d   :  { %v14639_v45 = vrot.slane %v14617_v61, %v18508_v15  ;;  %v14646_v12 = vrot.slane %v14618_v43, %v18508_v15  ;;  %v11157_v3 = vrot.slane %v23131_v55, %v22935_v59  ;;  %v11161_v51 = vrot.slane %v23131_v55, %v22936_v40 }
 0x51e   :  { %v13928_v10 = vcombine.low %v13920_v22, %v13927_v49  ;;  %v14647_v62 = vcombine.low %v14625_v39, %v14632_v38  ;;  %v11165_v16 = vrot.slane %v23131_v55, %v22937_v23  ;;  %v11169_v29 = vrot.slane %v23131_v55, %v22938_v21  ;;  %v22091_v22 = vpop.permute.xlu1 %14974  ;;  %v23132_v38 = vld [vmem:[#allocation67_spill] sm:$0xff] }
 0x51f   :  { %v14648_v36 = vcombine.low %v14639_v45, %v14646_v12  ;;  %v11173_v56 = vrot.slane %v23131_v55, %v22939_v50  ;;  %v11177_v42 = vrot.slane %v23131_v55, %v22940_v35  ;;  %v11181_v8 = vrot.slane %v23131_v55, %v22941_v0  ;;  %v22097_v12 = vpop.permute.xlu0 %14971 }
 0x520   :  { %15085 = vperm.xlu0 %16404, %v13928_v10   ;;  %v14655_v49 = vrot.slane %v14647_v62, %v18508_v15  ;;  %v13929_v32 = vcombine.low %v11153_v37, %v11157_v3  ;;  %v13930_v13 = vcombine.low %v11161_v51, %v11165_v16  ;;  %v9432_v43 = vsel %vm9172_vm8, %v9431_v28, %v9427_v46 }
 0x521   :  { %v14662_v61 = vrot.slane %v14648_v36, %v18508_v15  ;;  %v13931_v39 = vcombine.low %v11169_v29, %v11173_v56  ;;  %v11633_v45 = vrot.slane %v23132_v38, %v22934_v7  ;;  %23133 = vst [vmem:[#allocation29_spill] sm:$0xff] %v22097_v12  ;;  %v13932_v10 = vcombine.low %v11177_v42, %v11181_v8 }
 0x522   :  { %v13939_v62 = vrot.slane %v13929_v32, %v18508_v15  ;;  %v13946_v2 = vrot.slane %v13930_v13, %v18508_v15  ;;  %v11637_v55 = vrot.slane %v23132_v38, %v22935_v59  ;;  %v11641_v46 = vrot.slane %v23132_v38, %v22936_v40 }
 0x523   :  { %v14663_v37 = vcombine.low %v14655_v49, %v14662_v61  ;;  %v13953_v3 = vrot.slane %v13931_v39, %v18508_v15  ;;  %v11645_v28 = vrot.slane %v23132_v38, %v22937_v23  ;;  %v13960_v51 = vrot.slane %v13932_v10, %v18508_v15  ;;  %v22120_v39 = vpop.permute.xlu1 %14980 }
 0x524   :  { %v13961_v16 = vcombine.low %v13939_v62, %v13946_v2  ;;  %v11649_v36 = vrot.slane %v23132_v38, %v22938_v21  ;;  %v11653_v29 = vrot.slane %v23132_v38, %v22939_v50  ;;  %v11657_v56 = vrot.slane %v23132_v38, %v22940_v35 }
 0x525   :  { %15130 = vperm.xlu1 %16405, %v14663_v37   ;;  %v11661_v42 = vrot.slane %v23132_v38, %v22941_v0  ;;  %v14664_v49 = vcombine.low %v11633_v45, %v11637_v55  ;;  %v14665_v8 = vcombine.low %v11641_v46, %v11645_v28  ;;  %v13962_v32 = vcombine.low %v13953_v3, %v13960_v51  ;;  %v22126_v38 = vpop.permute.xlu0 %14977  ;;  %v23135_v3 = vld [vmem:[#allocation38_spill] sm:$0xff] }
 0x526   :  { %v13969_v13 = vrot.slane %v13961_v16, %v18508_v15  ;;  %v9446_v2 = vrot.slane %v21843_v11, %v20756_v14  ;;  %v14666_v61 = vcombine.low %v11649_v36, %v11653_v29  ;;  %v9441_v12 = vrot.slane %v21916_v6, %v20769_v58  ;;  %23134 = vst [vmem:[#allocation32_spill] sm:$0xff] %v22126_v38 }
 0x527   :  { %v14667_v10 = vcombine.low %v11657_v56, %v11661_v42  ;;  %v14674_v62 = vrot.slane %v14664_v49, %v18508_v15  ;;  %v14681_v37 = vrot.slane %v14665_v8, %v18508_v15  ;;  %v13976_v45 = vrot.slane %v13962_v32, %v18508_v15 }
 0x528   :  { %v14688_v55 = vrot.slane %v14666_v61, %v18508_v15  ;;  %v11185_v11 = vrot.slane %v23135_v3, %v22934_v7  ;;  %v11189_v46 = vrot.slane %v23135_v3, %v22935_v59  ;;  %v23136_v16 = vrot.slane %v21811_v19, %v20718_v26 }
 0x529   :  { %v14695_v28 = vrot.slane %v14667_v10, %v18508_v15  ;;  %v14696_v51 = vcombine.low %v14674_v62, %v14681_v37  ;;  %v11193_v36 = vrot.slane %v23135_v3, %v22936_v40  ;;  %v13977_v29 = vcombine.low %v13969_v13, %v13976_v45  ;;  %v22153_v37 = vpop.permute.xlu1 %14986  ;;  %v22160_v38 = vpop.permute.xlu0 %14983 }
 0x52a   :  { %v9437_v6 = vsel %vm9179_vm9, %v23136_v16, %v9432_v43  ;;  %v11197_v56 = vrot.slane %v23135_v3, %v22937_v23  ;;  %v11201_v42 = vrot.slane %v23135_v3, %v22938_v21  ;;  %v11205_v49 = vrot.slane %v23135_v3, %v22939_v50  ;;  %23137 = vst [vmem:[#allocation34_spill] sm:$0xff] %v22153_v37 }
 0x52b   :  { %v14697_v8 = vcombine.low %v14688_v55, %v14695_v28  ;;  %v14704_v32 = vrot.slane %v14696_v51, %v18508_v15  ;;  %v11209_v19 = vrot.slane %v23135_v3, %v22940_v35  ;;  %v11213_v43 = vrot.slane %v23135_v3, %v22941_v0  ;;  %15088 = vperm.xlu0 %16404, %v13977_v29   ;;  %v23138_v55 = vld [vmem:[#allocation7_spill] sm:$0xff] }
 0x52c   :  { %v9442_v13 = vsel %vm9186_vm10, %v9441_v12, %v9437_v6  ;;  %v13978_v61 = vcombine.low %v11185_v11, %v11189_v46  ;;  %v13979_v10 = vcombine.low %v11193_v36, %v11197_v56  ;;  %v13980_v62 = vcombine.low %v11201_v42, %v11205_v49  ;;  %23139 = vst [vmem:[#allocation16_spill] sm:$0xff] %v22160_v38 }
 0x52d   :  { %v14711_v45 = vrot.slane %v14697_v8, %v18508_v15  ;;  %v13981_v16 = vcombine.low %v11209_v19, %v11213_v43  ;;  %v11665_v28 = vrot.slane %v23138_v55, %v22934_v7  ;;  %v11669_v51 = vrot.slane %v23138_v55, %v22935_v59 }
 0x52e   :  { %v13988_v3 = vrot.slane %v13978_v61, %v18508_v15  ;;  %v13995_v12 = vrot.slane %v13979_v10, %v18508_v15  ;;  %v14002_v11 = vrot.slane %v13980_v62, %v18508_v15  ;;  %v11673_v46 = vrot.slane %v23138_v55, %v22936_v40 }
 0x52f   :  { %v14712_v6 = vcombine.low %v14704_v32, %v14711_v45  ;;  %v14009_v36 = vrot.slane %v13981_v16, %v18508_v15  ;;  %v11677_v29 = vrot.slane %v23138_v55, %v22937_v23  ;;  %v11681_v56 = vrot.slane %v23138_v55, %v22938_v21 }
 0x530   :  { %v14010_v42 = vcombine.low %v13988_v3, %v13995_v12  ;;  %v11685_v49 = vrot.slane %v23138_v55, %v22939_v50  ;;  %v11689_v8 = vrot.slane %v23138_v55, %v22940_v35  ;;  %v11693_v19 = vrot.slane %v23138_v55, %v22941_v0  ;;  %v22182_v12 = vpop.permute.xlu1 %14992 }
 0x531   :  { %15133 = vperm.xlu1 %16405, %v14712_v6   ;;  %v14011_v32 = vcombine.low %v14002_v11, %v14009_v36  ;;  %v14713_v61 = vcombine.low %v11665_v28, %v11669_v51  ;;  %v14714_v10 = vcombine.low %v11673_v46, %v11677_v29  ;;  %v9447_v3 = vsel %vm9193_vm11, %v9446_v2, %v9442_v13  ;;  %v23140_v11 = vld [vmem:[#allocation37_spill] sm:$0xff]  ;;  %v22189_v36 = vpop.permute.xlu0 %14989 }
 0x532   :  { %v14018_v62 = vrot.slane %v14010_v42, %v18508_v15  ;;  %v14715_v45 = vcombine.low %v11681_v56, %v11685_v49  ;;  %v14716_v16 = vcombine.low %v11689_v8, %v11693_v19  ;;  %v11217_v6 = vrot.slane %v23140_v11, %v22934_v7 }
 0x533   :  { %v14025_v37 = vrot.slane %v14011_v32, %v18508_v15  ;;  %v14723_v38 = vrot.slane %v14713_v61, %v18508_v15  ;;  %v14730_v55 = vrot.slane %v14714_v10, %v18508_v15  ;;  %v9451_v2 = vrot.slane %v21947_v33, %v20828_v44 }
 0x534   :  { %v14737_v28 = vrot.slane %v14715_v45, %v18508_v15  ;;  %v14744_v51 = vrot.slane %v14716_v16, %v18508_v15  ;;  %v11221_v13 = vrot.slane %v23140_v11, %v22935_v59  ;;  %v11225_v56 = vrot.slane %v23140_v11, %v22936_v40  ;;  %v23141_v16 = vld [vmem:[#allocation3_spill] sm:$0xff] }
 0x535   :  { %v14026_v46 = vcombine.low %v14018_v62, %v14025_v37  ;;  %v14745_v29 = vcombine.low %v14723_v38, %v14730_v55  ;;  %v11229_v42 = vrot.slane %v23140_v11, %v22937_v23  ;;  %v11233_v8 = vrot.slane %v23140_v11, %v22938_v21 }
 0x536   :  { %v14746_v49 = vcombine.low %v14737_v28, %v14744_v51  ;;  %v11237_v19 = vrot.slane %v23140_v11, %v22939_v50  ;;  %v11241_v33 = vrot.slane %v23140_v11, %v22940_v35  ;;  %v11245_v38 = vrot.slane %v23140_v11, %v22941_v0  ;;  %v22214_v28 = vpop.permute.xlu1 %14998 }
 0x537   :  { %15091 = vperm.xlu0 %16404, %v14026_v46   ;;  %v14753_v37 = vrot.slane %v14745_v29, %v18508_v15  ;;  %v14027_v32 = vcombine.low %v11217_v6, %v11221_v13  ;;  %v14028_v61 = vcombine.low %v11225_v56, %v11229_v42  ;;  %v9452_v62 = vsel %vm9200_vm12, %v9451_v2, %v9447_v3  ;;  %v22220_v6 = vpop.permute.xlu0 %14995 }
 0x538   :  { %v14760_v10 = vrot.slane %v14746_v49, %v18508_v15  ;;  %v14029_v45 = vcombine.low %v11233_v8, %v11237_v19  ;;  %v11697_v55 = vrot.slane %v23141_v16, %v22934_v7  ;;  %23142 = vst [vmem:[#allocation13_spill] sm:$0xff] %v22214_v28  ;;  %v14030_v51 = vcombine.low %v11241_v33, %v11245_v38 }
 0x539   :  { %v14037_v46 = vrot.slane %v14027_v32, %v18508_v15  ;;  %v14044_v29 = vrot.slane %v14028_v61, %v18508_v15  ;;  %v11701_v11 = vrot.slane %v23141_v16, %v22935_v59  ;;  %23143 = vst [vmem:[#allocation63_spill] sm:$0xff] %v22220_v6  ;;  %v11705_v3 = vrot.slane %v23141_v16, %v22936_v40 }
 0x53a   :  { %v14761_v13 = vcombine.low %v14753_v37, %v14760_v10  ;;  %v14051_v56 = vrot.slane %v14029_v45, %v18508_v15  ;;  %v11709_v2 = vrot.slane %v23141_v16, %v22937_v23  ;;  %v14058_v42 = vrot.slane %v14030_v51, %v18508_v15  ;;  %v22243_v28 = vpop.permute.xlu1 %15004 }
 0x53b   :  { %v14059_v49 = vcombine.low %v14037_v46, %v14044_v29  ;;  %v11713_v8 = vrot.slane %v23141_v16, %v22938_v21  ;;  %v11717_v19 = vrot.slane %v23141_v16, %v22939_v50  ;;  %v11721_v33 = vrot.slane %v23141_v16, %v22940_v35  ;;  %23144 = vst [vmem:[#allocation14_spill] sm:$0xff] %v22243_v28 }
 0x53c   :  { %15136 = vperm.xlu1 %16405, %v14761_v13   ;;  %v11725_v37 = vrot.slane %v23141_v16, %v22941_v0  ;;  %v14762_v38 = vcombine.low %v11697_v55, %v11701_v11  ;;  %v14763_v32 = vcombine.low %v11705_v3, %v11709_v2  ;;  %v14060_v61 = vcombine.low %v14051_v56, %v14058_v42  ;;  %v23145_v11 = vld [vmem:[#allocation40_spill] sm:$0xff]  ;;  %v22251_v3 = vpop.permute.xlu0 %15001 }
 0x53d   :  { %v14067_v10 = vrot.slane %v14059_v49, %v18508_v15  ;;  %v9466_v45 = vrot.slane %v21908_v4, %v20877_v20  ;;  %v14764_v51 = vcombine.low %v11713_v8, %v11717_v19  ;;  %v9461_v43 = vrot.slane %v21978_v24, %v20890_v27  ;;  %23146 = vst [vmem:[#allocation52_spill] sm:$0xff] %v22251_v3 }
 0x53e   :  { %v14765_v46 = vcombine.low %v11721_v33, %v11725_v37  ;;  %v14772_v29 = vrot.slane %v14762_v38, %v18508_v15  ;;  %v14779_v13 = vrot.slane %v14763_v32, %v18508_v15  ;;  %v14074_v16 = vrot.slane %v14060_v61, %v18508_v15 }
 0x53f   :  { %v14786_v55 = vrot.slane %v14764_v51, %v18508_v15  ;;  %v11249_v56 = vrot.slane %v23145_v11, %v22934_v7  ;;  %v11253_v4 = vrot.slane %v23145_v11, %v22935_v59  ;;  %v23147_v24 = vrot.slane %v21877_v52, %v20815_v30 }
 0x540   :  { %v14793_v2 = vrot.slane %v14765_v46, %v18508_v15  ;;  %v14794_v42 = vcombine.low %v14772_v29, %v14779_v13  ;;  %v11257_v8 = vrot.slane %v23145_v11, %v22936_v40  ;;  %v14075_v19 = vcombine.low %v14067_v10, %v14074_v16 }
 0x541   :  { %v9457_v49 = vsel %vm9207_vm13, %v23147_v24, %v9452_v62  ;;  %v11261_v33 = vrot.slane %v23145_v11, %v22937_v23  ;;  %v11265_v37 = vrot.slane %v23145_v11, %v22938_v21  ;;  %v11269_v38 = vrot.slane %v23145_v11, %v22939_v50  ;;  %v23148_v24 = vld [vmem:[#allocation6_spill] sm:$0xff] }
 0x542   :  { %v14795_v32 = vcombine.low %v14786_v55, %v14793_v2  ;;  %v14802_v61 = vrot.slane %v14794_v42, %v18508_v15  ;;  %v11273_v52 = vrot.slane %v23145_v11, %v22940_v35  ;;  %v11277_v62 = vrot.slane %v23145_v11, %v22941_v0  ;;  %15094 = vperm.xlu0 %16404, %v14075_v19   ;;  %v22277_v42 = vpop.permute.xlu1 %15010 }
 0x543   :  { %v9462_v10 = vsel %vm9214_vm14, %v9461_v43, %v9457_v49  ;;  %v14076_v51 = vcombine.low %v11249_v56, %v11253_v4  ;;  %v14077_v46 = vcombine.low %v11257_v8, %v11261_v33  ;;  %v14078_v29 = vcombine.low %v11265_v37, %v11269_v38  ;;  %v22284_v4 = vpop.permute.xlu0 %15007 }
 0x544   :  { %v14809_v13 = vrot.slane %v14795_v32, %v18508_v15  ;;  %v14079_v16 = vcombine.low %v11273_v52, %v11277_v62  ;;  %v11729_v55 = vrot.slane %v23148_v24, %v22934_v7  ;;  %v11733_v2 = vrot.slane %v23148_v24, %v22935_v59 }
 0x545   :  { %v14086_v28 = vrot.slane %v14076_v51, %v18508_v15  ;;  %v14093_v11 = vrot.slane %v14077_v46, %v18508_v15  ;;  %v14100_v43 = vrot.slane %v14078_v29, %v18508_v15  ;;  %v11737_v56 = vrot.slane %v23148_v24, %v22936_v40 }
 0x546   :  { %v14810_v49 = vcombine.low %v14802_v61, %v14809_v13  ;;  %v14107_v8 = vrot.slane %v14079_v16, %v18508_v15  ;;  %v11741_v19 = vrot.slane %v23148_v24, %v22937_v23  ;;  %v11745_v33 = vrot.slane %v23148_v24, %v22938_v21 }
 0x547   :  { %v14108_v37 = vcombine.low %v14086_v28, %v14093_v11  ;;  %v11749_v38 = vrot.slane %v23148_v24, %v22939_v50  ;;  %v11753_v32 = vrot.slane %v23148_v24, %v22940_v35  ;;  %v11757_v52 = vrot.slane %v23148_v24, %v22941_v0  ;;  %v23149_v24 = vld [vmem:[#allocation41_spill] sm:$0xff] }
 0x548   :  { %15139 = vperm.xlu1 %16405, %v14810_v49   ;;  %v14109_v61 = vcombine.low %v14100_v43, %v14107_v8  ;;  %v14811_v51 = vcombine.low %v11729_v55, %v11733_v2  ;;  %v14812_v46 = vcombine.low %v11737_v56, %v11741_v19  ;;  %v9467_v16 = vsel %vm9221_vm15, %v9466_v45, %v9462_v10  ;;  %v22306_v49 = vpop.permute.xlu1 %15016  ;;  %v22314_v10 = vpop.permute.xlu0 %15013 }
 0x549   :  { %v14116_v29 = vrot.slane %v14108_v37, %v18508_v15  ;;  %v14813_v13 = vcombine.low %v11745_v33, %v11749_v38  ;;  %v14814_v28 = vcombine.low %v11753_v32, %v11757_v52  ;;  %v11281_v43 = vrot.slane %v23149_v24, %v22934_v7 }
 0x54a   :  { %v14123_v11 = vrot.slane %v14109_v61, %v18508_v15  ;;  %v14821_v3 = vrot.slane %v14811_v51, %v18508_v15  ;;  %v14828_v6 = vrot.slane %v14812_v46, %v18508_v15  ;;  %v9471_v56 = vrot.slane %v22006_v18, %v20952_v17 }
 0x54b   :  { %v14835_v55 = vrot.slane %v14813_v13, %v18508_v15  ;;  %v14842_v2 = vrot.slane %v14814_v28, %v18508_v15  ;;  %v11285_v45 = vrot.slane %v23149_v24, %v22935_v59  ;;  %v11289_v33 = vrot.slane %v23149_v24, %v22936_v40  ;;  %v23150_v28 = vld [vmem:[#allocation53_spill] sm:$0xff] }
 0x54c   :  { %v14124_v8 = vcombine.low %v14116_v29, %v14123_v11  ;;  %v14843_v19 = vcombine.low %v14821_v3, %v14828_v6  ;;  %v11293_v37 = vrot.slane %v23149_v24, %v22937_v23  ;;  %v11297_v32 = vrot.slane %v23149_v24, %v22938_v21  ;;  %v22337_v62 = vpop.permute.xlu1 %15022 }
 0x54d   :  { %v14844_v38 = vcombine.low %v14835_v55, %v14842_v2  ;;  %v11301_v18 = vrot.slane %v23149_v24, %v22939_v50  ;;  %v11305_v52 = vrot.slane %v23149_v24, %v22940_v35  ;;  %v11309_v6 = vrot.slane %v23149_v24, %v22941_v0 }
 0x54e   :  { %15097 = vperm.xlu0 %16404, %v14124_v8   ;;  %v14851_v61 = vrot.slane %v14843_v19, %v18508_v15  ;;  %v14125_v3 = vcombine.low %v11281_v43, %v11285_v45  ;;  %v14126_v51 = vcombine.low %v11289_v33, %v11293_v37  ;;  %v9472_v29 = vsel %vm9228_vm1, %v9471_v56, %v9467_v16  ;;  %v22344_v45 = vpop.permute.xlu0 %15019 }
 0x54f   :  { %v14858_v46 = vrot.slane %v14844_v38, %v18508_v15  ;;  %v14127_v13 = vcombine.low %v11297_v32, %v11301_v18  ;;  %v11761_v11 = vrot.slane %v23150_v28, %v22934_v7  ;;  %v14128_v55 = vcombine.low %v11305_v52, %v11309_v6 }
 0x550   :  { %v14135_v2 = vrot.slane %v14125_v3, %v18508_v15  ;;  %v14142_v8 = vrot.slane %v14126_v51, %v18508_v15  ;;  %v11765_v19 = vrot.slane %v23150_v28, %v22935_v59  ;;  %v11769_v16 = vrot.slane %v23150_v28, %v22936_v40 }
 0x551   :  { %v14859_v24 = vcombine.low %v14851_v61, %v14858_v46  ;;  %v14149_v43 = vrot.slane %v14127_v13, %v18508_v15  ;;  %v11773_v56 = vrot.slane %v23150_v28, %v22937_v23  ;;  %v14156_v33 = vrot.slane %v14128_v55, %v18508_v15 }
 0x552   :  { %v14157_v37 = vcombine.low %v14135_v2, %v14142_v8  ;;  %v11777_v38 = vrot.slane %v23150_v28, %v22938_v21  ;;  %v11781_v32 = vrot.slane %v23150_v28, %v22939_v50  ;;  %v11785_v18 = vrot.slane %v23150_v28, %v22940_v35 }
 0x553   :  { %15142 = vperm.xlu1 %16405, %v14859_v24   ;;  %v11789_v52 = vrot.slane %v23150_v28, %v22941_v0  ;;  %v14860_v61 = vcombine.low %v11761_v11, %v11765_v19  ;;  %v14861_v6 = vcombine.low %v11769_v16, %v11773_v56  ;;  %v23151_v3 = vrot.slane %v21718_v9, %v21003_v54  ;;  %v22373_v16 = vpop.permute.xlu1 %15028 }
 0x554   :  { %v14158_v46 = vcombine.low %v14149_v43, %v14156_v33  ;;  %v14165_v13 = vrot.slane %v14157_v37, %v18508_v15  ;;  %v14862_v55 = vcombine.low %v11777_v38, %v11781_v32  ;;  %v9486_v2 = vrot.slane %v21973_v63, %v21003_v54  ;;  %v23153_v33 = vld [vmem:[#allocation24_spill] sm:$0xff]  ;;  %v15026_v32 = vpop.permute.xlu0 %15025 }
 0x555   :  { %v9408_v51 = vsel %vm9249_vm4, %v23151_v3, %v21923_v60  ;;  %v14863_v8 = vcombine.low %v11785_v18, %v11789_v52  ;;  %v14870_v24 = vrot.slane %v14860_v61, %v18508_v15  ;;  %v14877_v28 = vrot.slane %v14861_v6, %v18508_v15 }
 0x556   :  { %v14172_v11 = vrot.slane %v14158_v46, %v18508_v15  ;;  %v14884_v19 = vrot.slane %v14862_v55, %v18508_v15  ;;  %v23152_v9 = vrot.slane %v21941_v47, %v20939_v57  ;;  %v9481_v43 = vrot.slane %v22036_v34, %v21012_v53 }
 0x557   :  { %v14891_v63 = vrot.slane %v14863_v8, %v18508_v15  ;;  %v14892_v56 = vcombine.low %v14870_v24, %v14877_v28  ;;  %v11793_v37 = vrot.slane %v23153_v33, %v22934_v7  ;;  %v11797_v38 = vrot.slane %v23153_v33, %v22935_v59 }
 0x558   :  { %v9477_v60 = vsel %vm9235_vm2, %v23152_v9, %v9472_v29  ;;  %v14173_v18 = vcombine.low %v14165_v13, %v14172_v11  ;;  %v11801_v29 = vrot.slane %v23153_v33, %v22936_v40  ;;  %v11805_v34 = vrot.slane %v23153_v33, %v22937_v23 }
 0x559   :  { %v9482_v47 = vsel %vm9242_vm3, %v9481_v43, %v9477_v60  ;;  %v14893_v52 = vcombine.low %v14884_v19, %v14891_v63  ;;  %v14900_v61 = vrot.slane %v14892_v56, %v18508_v15  ;;  %v11809_v7 = vrot.slane %v23153_v33, %v22938_v21 }
 0x55a   :  { %v9487_v6 = vsel %vm9249_vm4, %v9486_v2, %v9482_v47  ;;  %15100 = vperm.xlu0 %16404, %v14173_v18   ;;  %v11813_v3 = vrot.slane %v23153_v33, %v22939_v50  ;;  %v11817_v46 = vrot.slane %v23153_v33, %v22940_v35  ;;  %v11821_v40 = vrot.slane %v23153_v33, %v22941_v0  ;;  %v15035_v50 = vpop.permute.xlu1 %15034  ;;  %v15032_v0 = vpop.permute.xlu0 %15031 }
 0x55b   :  { %v9489_v59 = vcombine.low %v9408_v51, %v9487_v6  ;;  %v14907_v23 = vrot.slane %v14893_v52, %v18508_v15  ;;  %v14909_v13 = vcombine.low %v11793_v37, %v11797_v38  ;;  %v14910_v55 = vcombine.low %v11801_v29, %v11805_v34  ;;  %v23158_v29 = vld [vmem:[#allocation62_spill] sm:$0xff]  ;;  %v23159_v52 = vld [vmem:[#allocation8_spill] sm:$0xff] }
 0x55c   :  { %v23154_v2 = vcombine.low %v21471_v31, %v21475_v48  ;;  %v14911_v8 = vcombine.low %v11809_v7, %v11813_v3  ;;  %v14912_v24 = vcombine.low %v11817_v46, %v11821_v40  ;;  %v23155_v43 = vlaneseq  ;;  %v23160_v7 = vld [vmem:[#allocation26_spill] sm:$0xff] }
 0x55d   :  { %v9503_v51 = vrot.slane %v9489_v59, %v18508_v15  ;;  %v14908_v28 = vcombine.low %v14900_v61, %v14907_v23  ;;  %v14919_v35 = vrot.slane %v14909_v13, %v18508_v15  ;;  %v14926_v11 = vrot.slane %v14910_v55, %v18508_v15 }
 0x55e   :  { %v9496_v21 = vrot.slane %v23154_v2, %v18508_v15  ;;  %v14933_v9 = vrot.slane %v14911_v8, %v18508_v15  ;;  %v14940_v60 = vrot.slane %v14912_v24, %v18508_v15  ;;  %vm22406_vm6 = vcmp.lt.s32.totalorder %v23155_v43, 512  ;;  %v15041_v38 = vpop.permute.xlu1 %15040  ;;  %v15038_v18 = vpop.permute.xlu0 %15037 }
 0x55f   :  { %15145 = vperm.xlu1 %16405, %v14908_v28   ;;  %v14941_v48 = vcombine.low %v14919_v35, %v14926_v11  ;;  %v15232_v34 = vrot.slane %v22284_v4, %v23158_v29  ;;  %v15236_v61 = vrot.slane %v22277_v42, %v23159_v52  ;;  %v15241_v6 = vrot.slane %v22314_v10, %v20610_v1 }
 0x560   :  { %v9504_v19 = vcombine.low %v9496_v21, %v9503_v51  ;;  %v14942_v56 = vcombine.low %v14933_v9, %v14940_v60  ;;  %v15246_v59 = vrot.slane %v22306_v49, %v23160_v7  ;;  %v15256_v46 = vrot.slane %v22337_v62, %v20718_v26 }
 0x561   :  { %v14949_v33 = vrot.slane %v14941_v48, %v18508_v15  ;;  %v15237_v3 = vsel %vm9151_vm5, %v15236_v61, %v15232_v34  ;;  %v15251_v40 = vrot.slane %v22344_v45, %v20705_v25  ;;  %v15266_v13 = vrot.slane %v22373_v16, %v20756_v14 }
 0x562   :  { %v9511_v63 = vrot.slane %v9504_v19, %v18508_v15  ;;  %v14956_v37 = vrot.slane %v14942_v56, %v18508_v15  ;;  %v15242_v4 = vsel %vm9158_vm7, %v15241_v6, %v15237_v3  ;;  %v15047_v23 = vpop.permute.xlu1 %15046  ;;  %v15044_v10 = vpop.permute.xlu0 %15043  ;;  %v15261_v55 = vrot.slane %v15026_v32, %v20769_v58 }
 0x563   :  { %v15247_v42 = vsel %vm9165_vm0, %v15246_v59, %v15242_v4  ;;  %v15276_v62 = vrot.slane %v15035_v50, %v20815_v30  ;;  %v15271_v21 = vrot.slane %v15032_v0, %v20828_v44  ;;  %v15286_v8 = vrot.slane %v15041_v38, %v20877_v20 }
 0x564   :  { %9517 = vst.msk [vmem:[%s22629_s5] ss:$2 sm:$0xf] %vm22406_vm6, %v9511_v63  ;;  %v14957_v47 = vcombine.low %v14949_v33, %v14956_v37  ;;  %v15252_v49 = vsel %vm9172_vm8, %v15251_v40, %v15247_v42  ;;  %v15281_v24 = vrot.slane %v15038_v18, %v20890_v27  ;;  %v15296_v11 = vrot.slane %v15047_v23, %v20939_v57 }
 0x565   :  { %v15257_v2 = vsel %vm9179_vm9, %v15256_v46, %v15252_v49  ;;  %v15291_v50 = vrot.slane %v15044_v10, %v20952_v17 }
 0x566   :  { %15148 = vperm.xlu1 %16405, %v14957_v47   ;;  %v15262_v45 = vsel %vm9186_vm10, %v15261_v55, %v15257_v2  ;;  %v15053_v28 = vpop.permute.xlu1 %15052  ;;  %v15050_v35 = vpop.permute.xlu0 %15049 }
 0x567   :  { %v15267_v51 = vsel %vm9193_vm11, %v15266_v13, %v15262_v45  ;;  %v15306_v9 = vrot.slane %v15053_v28, %v21003_v54  ;;  %v15301_v60 = vrot.slane %v15050_v35, %v21012_v53  ;;  %v15157_v45 = vrot.slane %v22065_v5, %v23159_v52 }
 0x568   :  { %v15272_v16 = vsel %vm9200_vm12, %v15271_v21, %v15267_v51 }
 0x569   :  { %v15277_v32 = vsel %vm9207_vm13, %v15276_v62, %v15272_v16  ;;  %v23161_v62 = vld [vmem:[#allocation27_spill] sm:$0xff]  ;;  %v15167_v16 = vrot.slane %v22061_v41, %v23160_v7 }
 0x56a   :  { %v15282_v0 = vsel %vm9214_vm14, %v15281_v24, %v15277_v32  ;;  %v15056_v33 = vpop.permute.xlu0 %15055  ;;  %v15059_v37 = vpop.permute.xlu1 %15058  ;;  %v15153_v21 = vrot.slane %v23161_v62, %v23158_v29 }
 0x56b   :  { %v15287_v19 = vsel %vm9221_vm15, %v15286_v8, %v15282_v0  ;;  %v23162_v8 = vld [vmem:[#allocation64_spill] sm:$0xff]  ;;  %v23163_v0 = vld [vmem:[#allocation29_spill] sm:$0xff]  ;;  %v15315_v62 = vrot.slane %v15059_v37, %v23159_v52 }
 0x56c   :  { %v15292_v43 = vsel %vm9228_vm1, %v15291_v50, %v15287_v19  ;;  %v15162_v24 = vrot.slane %v23162_v8, %v20610_v1  ;;  %v15158_v28 = vsel %vm9151_vm5, %v15157_v45, %v15153_v21  ;;  %v15177_v50 = vrot.slane %v22091_v22, %v20718_v26 }
 0x56d   :  { %v15297_v48 = vsel %vm9235_vm2, %v15296_v11, %v15292_v43  ;;  %v15172_v19 = vrot.slane %v23163_v0, %v20705_v25  ;;  %v15311_v8 = vrot.slane %v15056_v33, %v23158_v29  ;;  %v15202_v0 = vrot.slane %v22189_v36, %v20890_v27 }
 0x56e   :  { %v15302_v63 = vsel %vm9242_vm3, %v15301_v60, %v15297_v48  ;;  %v15062_v38 = vpop.permute.xlu0 %15061  ;;  %v15065_v18 = vpop.permute.xlu1 %15064  ;;  %v15163_v35 = vsel %vm9158_vm7, %v15162_v24, %v15158_v28  ;;  %v15187_v60 = vrot.slane %v22120_v39, %v20756_v14  ;;  %v23164_v48 = vld [vmem:[#allocation32_spill] sm:$0xff] }
 0x56f   :  { %v22456_v56 = vsel %vm9249_vm4, %v15306_v9, %v15302_v63  ;;  %v15168_v11 = vsel %vm9165_vm0, %v15167_v16, %v15163_v35  ;;  %v15182_v63 = vrot.slane %v23164_v48, %v20769_v58  ;;  %v23165_v16 = vld [vmem:[#allocation16_spill] sm:$0xff]  ;;  %v23166_v35 = vld [vmem:[#allocation34_spill] sm:$0xff]  ;;  %v15316_v37 = vsel %vm9151_vm5, %v15315_v62, %v15311_v8 }
 0x570   :  { %v15173_v9 = vsel %vm9172_vm8, %v15172_v19, %v15168_v11  ;;  %v15192_v39 = vrot.slane %v23165_v16, %v20828_v44  ;;  %v15197_v11 = vrot.slane %v23166_v35, %v20815_v30  ;;  %v15320_v33 = vrot.slane %v15062_v38, %v20610_v1 }
 0x571   :  { %v15178_v41 = vsel %vm9179_vm9, %v15177_v50, %v15173_v9 }
 0x572   :  { %v22458_v47 = vpop.permute.xlu0 %15067  ;;  %v22460_v34 = vpop.permute.xlu1 %15070  ;;  %v15183_v45 = vsel %vm9186_vm10, %v15182_v63, %v15178_v41  ;;  %v15321_v41 = vsel %vm9158_vm7, %v15320_v33, %v15316_v37 }
 0x573   :  { %v15188_v28 = vsel %vm9193_vm11, %v15187_v60, %v15183_v45  ;;  %v15330_v60 = vrot.slane %v22458_v47, %v20705_v25 }
 0x574   :  { %v15193_v19 = vsel %vm9200_vm12, %v15192_v39, %v15188_v28  ;;  %v23168_v39 = vld [vmem:[#allocation13_spill] sm:$0xff] }
 0x575   :  { %v15198_v9 = vsel %vm9207_vm13, %v15197_v11, %v15193_v19  ;;  %v15217_v28 = vrot.slane %v23168_v39, %v20939_v57 }
 0x576   :  { %v22462_v61 = vpop.permute.xlu0 %15073  ;;  %v22464_v6 = vpop.permute.xlu1 %15076 }
 0x577   :  { %v15345_v8 = vrot.slane %v22464_v6, %v20756_v14  ;;  %v23169_v6 = vld [vmem:[#allocation52_spill] sm:$0xff] }
 0x578   :  { %v15222_v35 = vrot.slane %v23169_v6, %v21012_v53 }
 0x57a   :  { %v22466_v59 = vpop.permute.xlu0 %15079  ;;  %v22468_v3 = vpop.permute.xlu1 %15082 }
 0x57e   :  { %v15104_v46 = vpop.permute.xlu0 %15103  ;;  %v15107_v40 = vpop.permute.xlu1 %15106 }
 0x57f   :  { %v15394_v22 = vrot.slane %v15107_v40, %v23159_v52  ;;  %v15390_v24 = vrot.slane %v15104_v46, %v23158_v29  ;;  %v15325_v52 = vrot.slane %v15065_v18, %v23160_v7  ;;  %v15207_v18 = vrot.slane %v22182_v12, %v20877_v20 }
 0x580   :  { %v15203_v12 = vsel %vm9214_vm14, %v15202_v0, %v15198_v9  ;;  %v23170_v0 = vld [vmem:[#allocation14_spill] sm:$0xff] }
 0x581   :  { %v15395_v40 = vsel %vm9151_vm5, %v15394_v22, %v15390_v24  ;;  %v15326_v38 = vsel %vm9165_vm0, %v15325_v52, %v15321_v41  ;;  %v15208_v63 = vsel %vm9221_vm15, %v15207_v18, %v15203_v12  ;;  %v15350_v52 = vrot.slane %v22466_v59, %v20828_v44 }
 0x582   :  { %v15110_v4 = vpop.permute.xlu0 %15109  ;;  %v15113_v23 = vpop.permute.xlu1 %15112  ;;  %v15331_v62 = vsel %vm9172_vm8, %v15330_v60, %v15326_v38  ;;  %v15227_v19 = vrot.slane %v23170_v0, %v21003_v54 }
 0x583   :  { %v15404_v50 = vrot.slane %v15113_v23, %v23160_v7  ;;  %v15399_v29 = vrot.slane %v15110_v4, %v20610_v1  ;;  %v15335_v1 = vrot.slane %v22460_v34, %v20718_v26 }
 0x585   :  { %v15400_v7 = vsel %vm9158_vm7, %v15399_v29, %v15395_v40  ;;  %v15336_v34 = vsel %vm9179_vm9, %v15335_v1, %v15331_v62 }
 0x586   :  { %v15116_v42 = vpop.permute.xlu0 %15115  ;;  %v15405_v4 = vsel %vm9165_vm0, %v15404_v50, %v15400_v7 }
 0x587   :  { %v15409_v48 = vrot.slane %v15116_v42, %v20705_v25  ;;  %v23167_v25 = vld [vmem:[#allocation63_spill] sm:$0xff] }
 0x588   :  { %v15212_v42 = vrot.slane %v23167_v25, %v20952_v17 }
 0x589   :  { %v15410_v22 = vsel %vm9172_vm8, %v15409_v48, %v15405_v4 }
 0x58a   :  { %v22470_v10 = vpop.permute.xlu0 %15121  ;;  %v15213_v11 = vsel %vm9228_vm1, %v15212_v42, %v15208_v63 }
 0x58b   :  { %v15419_v24 = vrot.slane %v22470_v10, %v20769_v58 }
 0x58e   :  { %v15119_v13 = vpop.permute.xlu1 %15118 }
 0x58f   :  { %v15414_v36 = vrot.slane %v15119_v13, %v20718_v26  ;;  %v15340_v13 = vrot.slane %v22462_v61, %v20769_v58  ;;  %v15355_v61 = vrot.slane %v22468_v3, %v20815_v30  ;;  %v15218_v3 = vsel %vm9235_vm2, %v15217_v28, %v15213_v11 }
 0x590   :  { %v15223_v38 = vsel %vm9242_vm3, %v15222_v35, %v15218_v3 }
 0x591   :  { %v15415_v26 = vsel %vm9179_vm9, %v15414_v36, %v15410_v22  ;;  %v15228_v4 = vsel %vm9249_vm4, %v15227_v19, %v15223_v38 }
 0x592   :  { %v15466_v48 = vcombine.low %v15228_v4, %v22456_v56 }
 0x594   :  { %v22474_v49 = vpop.permute.xlu0 %15127 }
 0x595   :  { %v15429_v40 = vrot.slane %v22474_v49, %v20828_v44 }
 0x599   :  { %v22472_v55 = vpop.permute.xlu1 %15124 }
 0x59a   :  { %v15424_v47 = vrot.slane %v22472_v55, %v20756_v14  ;;  %v15341_v14 = vsel %vm9186_vm10, %v15340_v13, %v15336_v34  ;;  %v15420_v55 = vsel %vm9186_vm10, %v15419_v24, %v15415_v26  ;;  %v15474_v34 = vrot.slane %v15466_v48, %v18508_v15 }
 0x59b   :  { %v15346_v37 = vsel %vm9193_vm11, %v15345_v8, %v15341_v14 }
 0x59c   :  { %v15425_v58 = vsel %vm9193_vm11, %v15424_v47, %v15420_v55  ;;  %v15351_v44 = vsel %vm9200_vm12, %v15350_v52, %v15346_v37 }
 0x59d   :  { %v15430_v49 = vsel %vm9200_vm12, %v15429_v40, %v15425_v58 }
 0x59f   :  { %v22482_v51 = vpop.permute.xlu0 %15085 }
 0x5a0   :  { %v15360_v50 = vrot.slane %v22482_v51, %v20890_v27 }
 0x5a4   :  { %v22476_v2 = vpop.permute.xlu1 %15130 }
 0x5a5   :  { %v15434_v10 = vrot.slane %v22476_v2, %v20815_v30 }
 0x5a7   :  { %v15435_v9 = vsel %vm9207_vm13, %v15434_v10, %v15430_v49 }
 0x5aa   :  { %v22495_v5 = vpop.permute.xlu0 %15088 }
 0x5ab   :  { %v15365_v30 = vrot.slane %v22495_v5, %v20877_v20 }
 0x5b0   :  { %v22489_v32 = vpop.permute.xlu1 %15133 }
 0x5b1   :  { %v15439_v33 = vrot.slane %v22489_v32, %v20890_v27  ;;  %v15356_v32 = vsel %vm9207_vm13, %v15355_v61, %v15351_v44 }
 0x5b6   :  { %v22509_v21 = vpop.permute.xlu0 %15091 }
 0x5b7   :  { %v15370_v2 = vrot.slane %v22509_v21, %v20952_v17 }
 0x5bb   :  { %v22503_v43 = vpop.permute.xlu1 %15136 }
 0x5bc   :  { %v15444_v59 = vrot.slane %v22503_v43, %v20877_v20  ;;  %v15361_v20 = vsel %vm9214_vm14, %v15360_v50, %v15356_v32  ;;  %v15440_v43 = vsel %vm9214_vm14, %v15439_v33, %v15435_v9 }
 0x5bd   :  { %v15366_v7 = vsel %vm9221_vm15, %v15365_v30, %v15361_v20 }
 0x5c1   :  { %v15095_v23 = vpop.permute.xlu0 %15094 }
 0x5c2   :  { %v15375_v5 = vrot.slane %v15095_v23, %v20939_v57  ;;  %v15371_v23 = vsel %vm9228_vm1, %v15370_v2, %v15366_v7 }
 0x5c4   :  { %v15376_v36 = vsel %vm9235_vm2, %v15375_v5, %v15371_v23 }
 0x5c7   :  { %v22525_v46 = vpop.permute.xlu1 %15139 }
 0x5c8   :  { %v15449_v27 = vrot.slane %v22525_v46, %v20952_v17  ;;  %v15445_v17 = vsel %vm9221_vm15, %v15444_v59, %v15440_v43 }
 0x5cd   :  { %v15098_v16 = vpop.permute.xlu0 %15097 }
 0x5ce   :  { %v15380_v41 = vrot.slane %v15098_v16, %v21012_v53 }
 0x5d0   :  { %v15381_v12 = vsel %vm9242_vm3, %v15380_v41, %v15376_v36 }
 0x5d2   :  { %v15143_v45 = vpop.permute.xlu1 %15142 }
 0x5d3   :  { %v15454_v18 = vrot.slane %v15143_v45, %v20939_v57  ;;  %v15450_v57 = vsel %vm9228_vm1, %v15449_v27, %v15445_v17 }
 0x5d5   :  { %v15455_v60 = vsel %vm9235_vm2, %v15454_v18, %v15450_v57 }
 0x5d9   :  { %v15101_v51 = vpop.permute.xlu0 %15100 }
 0x5da   :  { %v15385_v46 = vrot.slane %v15101_v51, %v21003_v54 }
 0x5dc   :  { %v15386_v62 = vsel %vm9249_vm4, %v15385_v46, %v15381_v12 }
 0x5de   :  { %v15146_v29 = vpop.permute.xlu1 %15145 }
 0x5df   :  { %v15459_v21 = vrot.slane %v15146_v29, %v21012_v53 }
 0x5e1   :  { %v15460_v63 = vsel %vm9242_vm3, %v15459_v21, %v15455_v60 }
 0x5e5   :  { %v15149_v1 = vpop.permute.xlu1 %15148 }
 0x5e6   :  { %v15464_v53 = vrot.slane %v15149_v1, %v21003_v54 }
 0x5e8   :  { %v15465_v22 = vsel %vm9249_vm4, %v15464_v53, %v15460_v63 }
 0x5e9   :  { %v15467_v45 = vcombine.low %v15386_v62, %v15465_v22 }
 0x5eb   :  { %v15481_v8 = vrot.slane %v15467_v45, %v18508_v15 }
 0x5ed   :  { %v15482_v26 = vcombine.low %v15474_v34, %v15481_v8 }
 0x5ef   :  { %v15489_v47 = vrot.slane %v15482_v26, %v18508_v15 }
 0x5f1   :  { %16137 = vst.msk [vmem:[%s22629_s5 + $0x1] ss:$2 sm:$0xf] %vm22406_vm6, %v15489_v47 }

</bundles_post_ra>
